<compile_context>
chip_gen: v7x
topology: tpu7x:2x2x1
jax: 0.10.0
libtpu: 0.0.40
codegen_flags: <defaults>
</compile_context>

<pallas_src>
import jax
import jax.numpy as jnp
import numpy as np
from jax import lax
from jax.experimental import pallas as pl
from jax.experimental.pallas import tpu as pltpu

N_FLOW = 2
FILTER = 512        # AffineCoupling hard-codes filter_size=512

# tap order matches PyTorch OIHW kernel flattening: t = kh*3 + kw, (dh,dw)=(kh-1,kw-1)
TAPS = tuple((kh - 1, kw - 1) for kh in range(3) for kw in range(3))


# ----------------------------- fused block kernel ---------------------------

def make_block_kernel(H, W, C, n_flow, P):
    HW = H * W
    half = C // 2
    offs = tuple(dh * W + dw for (dh, dw) in TAPS)     # row shift per tap

    def kernel(x_ref, wf_ref, bf_ref, mask_ref, w1_ref, b1_ref,
               w2_ref, b2_ref, w3_ref, b3r_ref, o_ref,
               rows_scr, a_scr, slab_scr, y_scr):
        msk = mask_ref[...]                             # (HW, 9) f32 {0,1}
        rows_scr[...] = x_ref[0]                        # working (HW, C) activation

        for f in range(n_flow):                         # both flow steps fused
            rows = rows_scr[...]

            # --- ActNorm folded into the invertible 1x1 conv: one f32 dot ----
            y = jnp.dot(rows, wf_ref[f],
                        preferred_element_type=jnp.float32) + bf_ref[f]
            in_a = y[:, :half]                          # pass-through half
            in_b = y[:, half:]

            # --- coupling conv1 (3x3, zero pad): im2col -> ONE K=9*half dot --
            a_scr[...] = jnp.zeros((HW + 2 * P, half), jnp.float32)
            a_scr[pl.ds(P, HW), :] = in_a
            for t in range(9):
                win = a_scr[pl.ds(P + offs[t], HW), :]          # shifted rows
                slab_scr[:, t * half:(t + 1) * half] = win * msk[:, t:t + 1]
            h1 = jnp.dot(slab_scr[...].astype(jnp.bfloat16), w1_ref[f],
                         preferred_element_type=jnp.float32) + b1_ref[f]
            h1 = jnp.maximum(h1, 0.0)

            # --- conv2 (1x1) -------------------------------------------------
            h2 = jnp.dot(h1.astype(jnp.bfloat16), w2_ref[f],
                         preferred_element_type=jnp.float32) + b2_ref[f]
            h2 = jnp.maximum(h2, 0.0)

            # --- ZeroConv2d (3x3, ones pad, * exp(3*zscale)) -----------------
            # merged per-tap weights along N -> ONE (HW,512)@(512,9*C) matmul,
            # then 9 shifted+masked (HW, C) adds.  Bias and the ones-padding
            # contribution are folded into the per-row bias b3r at prep time.
            yz = jnp.dot(h2.astype(jnp.bfloat16), w3_ref[f],
                         preferred_element_type=jnp.float32)     # (HW, 9*C)
            y_scr[...] = jnp.zeros((HW + 2 * P, 9 * C), jnp.float32)
            y_scr[pl.ds(P, HW), :] = yz
            net = b3r_ref[f]
            for t in range(9):
                net = net + (msk[:, t:t + 1] *
                             y_scr[pl.ds(P + offs[t], HW), t * C:(t + 1) * C])

            # --- affine coupling combine ------------------------------------
            log_s = net[:, :half]
            t_sh = net[:, half:]
            s = 1.0 / (1.0 + jnp.exp(-(log_s + 2.0)))            # exact sigmoid
            rows_scr[:, :half] = in_a
            rows_scr[:, half:] = (in_b + t_sh) * s

        o_ref[0, :, :] = rows_scr[...]                  # one full-width store

    return kernel


def block_pallas(x_rows, fp, H, W):
    B, HW, C = x_rows.shape
    half = C // 2
    P = ((W + 1 + 7) // 8) * 8                          # halo rows, sublane aligned
    kernel = make_block_kernel(H, W, C, fp['wf'].shape[0], P)

    def full(shape):
        n = len(shape)
        return pl.BlockSpec(tuple(shape), lambda b, n=n: (0,) * n)

    return pl.pallas_call(
        kernel,
        out_shape=jax.ShapeDtypeStruct((B, HW, C), jnp.float32),
        grid=(B,),
        in_specs=[
            pl.BlockSpec((1, HW, C), lambda b: (b, 0, 0)),       # activations
            full(fp['wf'].shape), full(fp['bf'].shape),          # actnorm+invconv
            full(fp['mask'].shape),                              # tap validity mask
            full(fp['w1'].shape), full(fp['b1'].shape),          # conv1 (K-concat)
            full(fp['w2'].shape), full(fp['b2'].shape),          # conv2
            full(fp['w3'].shape), full(fp['b3r'].shape),         # zeroconv (N-concat)
        ],
        out_specs=pl.BlockSpec((1, HW, C), lambda b: (b, 0, 0)),
        scratch_shapes=[
            pltpu.VMEM((HW, C), jnp.float32),                    # working rows
            pltpu.VMEM((HW + 2 * P, half), jnp.float32),         # in_a halo buf
            pltpu.VMEM((HW, 9 * half), jnp.float32),             # conv1 im2col slab
            pltpu.VMEM((HW + 2 * P, 9 * C), jnp.float32),        # zeroconv tap slab
        ],
        compiler_params=pltpu.CompilerParams(
            dimension_semantics=("parallel",)),                  # 2 TCs on v7x
    )(x_rows, fp['wf'], fp['bf'], fp['mask'], fp['w1'], fp['b1'],
      fp['w2'], fp['b2'], fp['w3'], fp['b3r'])


# ----------------------------- parameter folding ---------------------------
# Hoisted off the hot path: called ONCE per parameter set (outside jit).

def prepare_block_params(flow_params, H, W):
    C = flow_params[0]['inv_w'].shape[0]
    half = C // 2
    filt = flow_params[0]['w1'].shape[0]
    HW = H * W

    # static per-tap spatial validity mask (1 inside image, 0 on padding/wrap)
    m = np.zeros((9, H, W), np.float32)
    for t, (dh, dw) in enumerate(TAPS):
        m[t, max(0, -dh):min(H, H - dh), max(0, -dw):min(W, W - dw)] = 1.0
    mask_f = jnp.asarray(m.reshape(9, HW).T)             # (HW, 9) f32

    wf, bf, w1, b1, w2, b2, w3, b3r = [], [], [], [], [], [], [], []
    for p in flow_params:
        # ActNorm folded into the 1x1 invconv:  y = rows @ wf + bf
        wf.append(p['an_scale'].reshape(C, 1) * p['inv_w'].T)
        bf.append((p['an_loc'] * p['an_scale']) @ p['inv_w'].T)
        # conv1: 9 taps concatenated along K -> (9*half, filt)
        w1.append(jnp.transpose(p['w1'], (2, 3, 1, 0)).reshape(9 * half, filt))
        b1.append(p['b1'])
        w2.append(p['w2'].reshape(filt, filt).T)
        b2.append(p['b2'])
        # ZeroConv: exp(3*zscale) folded into weight; taps concatenated along N
        zexp = jnp.exp(p['zscale'] * 3.0)                # (1, C)
        w3t = jnp.transpose(p['w3'], (2, 3, 1, 0)).reshape(9, filt, C) * zexp
        w3.append(jnp.transpose(w3t, (1, 0, 2)).reshape(filt, 9 * C))
        # per-row bias = bias*exp(3z) + ZeroConv ones-padding contribution
        colsum = w3t.sum(axis=1)                         # (9, C)
        b3r.append(p['b3'] * zexp + (1.0 - mask_f) @ colsum)     # (HW, C)

    def st(xs, dt=None):
        s = jnp.stack(xs)
        return s.astype(dt) if dt is not None else s

    return dict(wf=st(wf), bf=st(bf), mask=mask_f,
                w1=st(w1, jnp.bfloat16), b1=st(b1),
                w2=st(w2, jnp.bfloat16), b2=st(b2),
                w3=st(w3, jnp.bfloat16), b3r=st(b3r))


# ----------------------------- Block forward --------------------------------

def block_forward(x_nchw, fp):
    b, c, h, w = x_nchw.shape
    sq = x_nchw.reshape(b, c, h // 2, 2, w // 2, 2)
    sq = sq.transpose(0, 1, 3, 5, 2, 4).reshape(b, c * 4, h // 2, w // 2)
    H2, W2 = h // 2, w // 2
    rows = jnp.transpose(sq, (0, 2, 3, 1)).reshape(b, H2 * W2, c * 4)
    out = block_pallas(rows, fp, H2, W2)
    out = out.reshape(b, H2, W2, c * 4)
    return jnp.transpose(out, (0, 3, 1, 2))              # back to NCHW


# ----------------------------- parameters ----------------------------------

def init_flow_params(key, C, filter_size=FILTER):
    half = C // 2
    ks = jax.random.split(key, 8)
    an_loc = 0.1 * jax.random.normal(ks[0], (1, C), jnp.float32)
    an_scale = 1.0 + 0.1 * jax.random.normal(ks[1], (1, C), jnp.float32)
    # TODO(synk): InvConv2dLU class not provided; use a deterministic orthogonal
    # 1x1 weight (forward semantics identical to an invertible 1x1 conv).
    inv_w = jnp.linalg.qr(jax.random.normal(ks[2], (C, C), jnp.float32))[0]
    w1 = 0.05 * jax.random.normal(ks[3], (filter_size, half, 3, 3), jnp.float32)
    b1 = jnp.zeros((1, filter_size), jnp.float32)
    w2 = 0.05 * jax.random.normal(ks[4], (filter_size, filter_size, 1, 1), jnp.float32)
    b2 = jnp.zeros((1, filter_size), jnp.float32)
    # TODO(synk): ZeroConv2d class not provided; standard Glow semantics assumed
    # (pad=1 with value 1, 3x3 conv, output * exp(scale*3)); its params are
    # zero-init in Glow, we use small non-zero values so the path is exercised.
    w3 = 0.02 * jax.random.normal(ks[5], (C, filter_size, 3, 3), jnp.float32)
    b3 = 0.02 * jax.random.normal(ks[6], (1, C), jnp.float32)
    zscale = 0.02 * jax.random.normal(ks[7], (1, C), jnp.float32)
    return dict(an_loc=an_loc, an_scale=an_scale, inv_w=inv_w,
                w1=w1, b1=b1, w2=w2, b2=b2, w3=w3, b3=b3, zscale=zscale)


# ----------------------------- pure-JAX reference --------------------------

_DN = ('NCHW', 'OIHW', 'NCHW')
_HI = lax.Precision.HIGHEST


def reference_block(x_nchw, flow_params):
    b, c, h, w = x_nchw.shape
    out = x_nchw.reshape(b, c, h // 2, 2, w // 2, 2)
    out = out.transpose(0, 1, 3, 5, 2, 4).reshape(b, c * 4, h // 2, w // 2)
    for p in flow_params:
        C = out.shape[1]
        half = C // 2
        y = p['an_scale'].reshape(1, C, 1, 1) * (out + p['an_loc'].reshape(1, C, 1, 1))
        y = jnp.einsum('oc,bchw->bohw', p['inv_w'], y, precision=_HI)
        in_a, in_b = y[:, :half], y[:, half:]
        h1 = jax.nn.relu(lax.conv_general_dilated(in_a, p['w1'], (1, 1), 'SAME',
                                                  dimension_numbers=_DN, precision=_HI)
                         + p['b1'].reshape(1, -1, 1, 1))
        h2 = jax.nn.relu(lax.conv_general_dilated(h1, p['w2'], (1, 1), 'VALID',
                                                  dimension_numbers=_DN, precision=_HI)
                         + p['b2'].reshape(1, -1, 1, 1))
        h2p = jnp.pad(h2, ((0, 0), (0, 0), (1, 1), (1, 1)), constant_values=1.0)
        net = (lax.conv_general_dilated(h2p, p['w3'], (1, 1), 'VALID',
                                        dimension_numbers=_DN, precision=_HI)
               + p['b3'].reshape(1, -1, 1, 1)) * jnp.exp(p['zscale'].reshape(1, -1, 1, 1) * 3.0)
        log_s, t = net[:, :half], net[:, half:]
        s = 1.0 / (1.0 + jnp.exp(-(log_s + 2.0)))
        out = jnp.concatenate([in_a, (in_b + t) * s], axis=1)
    return out


# ----------------------------- main -----------------------------------------

if __name__ == "__main__":
    key = jax.random.PRNGKey(0)
    kx, *kflows = jax.random.split(key, 1 + N_FLOW)
    B, Cin, H, W = 2, 4, 16, 16
    x = jax.random.normal(kx, (B, Cin, H, W), jnp.float32)

    C = Cin * 4  # squeeze_dim (in_channel * squeeze, squeeze=4)
    params = [init_flow_params(k, C) for k in kflows]

    # parameter folding done once, off the hot path
    fp = prepare_block_params(params, H // 2, W // 2)

    fwd = jax.jit(block_forward)
    out = jax.block_until_ready(fwd(x, fp))
    ref = jax.block_until_ready(reference_block(x, params))

    assert out.shape == (B, C, H // 2, W // 2)
    # bf16 MXU operands with f32 accumulation vs f32/HIGHEST reference.
    np.testing.assert_allclose(np.asarray(out), np.asarray(ref), rtol=2e-2, atol=2e-2)
    print("KERNEL_OK")
</pallas_src>

<mosaic_0001>
module attributes {stable_mosaic.version = 11 : i64} {
  func.func @kernel(%arg0: i32, %arg1: memref<1x64x16xf32, #tpu.memory_space<vmem>>, %arg2: memref<2x16x16xf32, #tpu.memory_space<vmem>>, %arg3: memref<2x1x16xf32, #tpu.memory_space<vmem>>, %arg4: memref<64x9xf32, #tpu.memory_space<vmem>>, %arg5: memref<2x72x512xbf16, #tpu.memory_space<vmem>>, %arg6: memref<2x1x512xf32, #tpu.memory_space<vmem>>, %arg7: memref<2x512x512xbf16, #tpu.memory_space<vmem>>, %arg8: memref<2x1x512xf32, #tpu.memory_space<vmem>>, %arg9: memref<2x512x144xbf16, #tpu.memory_space<vmem>>, %arg10: memref<2x64x16xf32, #tpu.memory_space<vmem>>, %arg11: memref<1x64x16xf32, #tpu.memory_space<vmem>>, %arg12: memref<64x16xf32, #tpu.memory_space<vmem>>, %arg13: memref<96x8xf32, #tpu.memory_space<vmem>>, %arg14: memref<64x72xf32, #tpu.memory_space<vmem>>, %arg15: memref<96x144xf32, #tpu.memory_space<vmem>>) attributes {dimension_semantics = [#tpu.dimension_semantics<parallel>], iteration_bounds = array<i64: 2>, scalar_prefetch = 0 : i64, scratch_operands = 4 : i64, tpu.core_type = #tpu.core_type<tc>, window_params = [{transform_indices = @transform_0, window_bounds = array<i64: 1, 64, 16>}, {pipeline_mode = #tpu.pipeline_mode<synchronous>, transform_indices = @transform_1, window_bounds = array<i64: 2, 16, 16>}, {pipeline_mode = #tpu.pipeline_mode<synchronous>, transform_indices = @transform_2, window_bounds = array<i64: 2, 1, 16>}, {pipeline_mode = #tpu.pipeline_mode<synchronous>, transform_indices = @transform_3, window_bounds = array<i64: 64, 9>}, {pipeline_mode = #tpu.pipeline_mode<synchronous>, transform_indices = @transform_4, window_bounds = array<i64: 2, 72, 512>}, {pipeline_mode = #tpu.pipeline_mode<synchronous>, transform_indices = @transform_5, window_bounds = array<i64: 2, 1, 512>}, {pipeline_mode = #tpu.pipeline_mode<synchronous>, transform_indices = @transform_6, window_bounds = array<i64: 2, 512, 512>}, {pipeline_mode = #tpu.pipeline_mode<synchronous>, transform_indices = @transform_7, window_bounds = array<i64: 2, 1, 512>}, {pipeline_mode = #tpu.pipeline_mode<synchronous>, transform_indices = @transform_8, window_bounds = array<i64: 2, 512, 144>}, {pipeline_mode = #tpu.pipeline_mode<synchronous>, transform_indices = @transform_9, window_bounds = array<i64: 2, 64, 16>}, {transform_indices = @transform_10, window_bounds = array<i64: 1, 64, 16>}]} {
    %c0 = arith.constant 0 : index
    %c0_0 = arith.constant 0 : index
    %0 = vector.load %arg4[%c0, %c0_0] : memref<64x9xf32, #tpu.memory_space<vmem>>, vector<64x9xf32>
    %c0_1 = arith.constant 0 : index
    %c0_2 = arith.constant 0 : index
    %c0_3 = arith.constant 0 : index
    %1 = vector.load %arg1[%c0_1, %c0_2, %c0_3] : memref<1x64x16xf32, #tpu.memory_space<vmem>>, vector<1x64x16xf32>
    %2 = vector.shape_cast %1 : vector<1x64x16xf32> to vector<64x16xf32>
    %c0_4 = arith.constant 0 : index
    %c0_5 = arith.constant 0 : index
    %3 = vector.load %arg12[%c0_4, %c0_5] : memref<64x16xf32, #tpu.memory_space<vmem>>, vector<64x16xf32>
    tpu.vector_store %arg12[%c0_4, %c0_5], %2 {strides = array<i32>} : memref<64x16xf32, #tpu.memory_space<vmem>>, vector<64x16xf32>,
    %c0_6 = arith.constant 0 : index
    %c0_7 = arith.constant 0 : index
    %4 = vector.load %arg12[%c0_6, %c0_7] : memref<64x16xf32, #tpu.memory_space<vmem>>, vector<64x16xf32>
    %c0_8 = arith.constant 0 : index
    %c0_9 = arith.constant 0 : index
    %c0_10 = arith.constant 0 : index
    %5 = vector.load %arg2[%c0_8, %c0_9, %c0_10] : memref<2x16x16xf32, #tpu.memory_space<vmem>>, vector<1x16x16xf32>
    %6 = vector.shape_cast %5 : vector<1x16x16xf32> to vector<16x16xf32>
    %cst = arith.constant dense<0.000000e+00> : vector<64x16xf32>
    %7 = tpu.matmul %4, %6, %cst {dimension_numbers = #tpu.dot_dimension_numbers<[1], [0], [0], [1], [0, 0, 1, 1], [], []>} : vector<64x16xf32>, vector<16x16xf32>, vector<64x16xf32> -> vector<64x16xf32>
    %c0_11 = arith.constant 0 : index
    %c0_12 = arith.constant 0 : index
    %c0_13 = arith.constant 0 : index
    %8 = vector.load %arg3[%c0_11, %c0_12, %c0_13] : memref<2x1x16xf32, #tpu.memory_space<vmem>>, vector<1x1x16xf32>
    %9 = vector.shape_cast %8 : vector<1x1x16xf32> to vector<1x16xf32>
    %10 = vector.broadcast %9 : vector<1x16xf32> to vector<64x16xf32>
    %11 = arith.addf %7, %10 : vector<64x16xf32>
    %12 = vector.extract_strided_slice %11 {offsets = [0, 0], sizes = [64, 8], strides = [1, 1]} : vector<64x16xf32> to vector<64x8xf32>
    %13 = vector.extract_strided_slice %11 {offsets = [0, 8], sizes = [64, 8], strides = [1, 1]} : vector<64x16xf32> to vector<64x8xf32>
    %cst_14 = arith.constant 0.000000e+00 : f32
    %14 = vector.broadcast %cst_14 : f32 to vector<96x8xf32>
    %c0_15 = arith.constant 0 : index
    %c0_16 = arith.constant 0 : index
    %15 = vector.load %arg13[%c0_15, %c0_16] : memref<96x8xf32, #tpu.memory_space<vmem>>, vector<96x8xf32>
    tpu.vector_store %arg13[%c0_15, %c0_16], %14 {strides = array<i32>} : memref<96x8xf32, #tpu.memory_space<vmem>>, vector<96x8xf32>,
    %c16 = arith.constant 16 : index
    %c0_17 = arith.constant 0 : index
    %16 = vector.load %arg13[%c16, %c0_17] : memref<96x8xf32, #tpu.memory_space<vmem>>, vector<64x8xf32>
    tpu.vector_store %arg13[%c16, %c0_17], %12 {strides = array<i32>} : memref<96x8xf32, #tpu.memory_space<vmem>>, vector<64x8xf32>,
    %c7 = arith.constant 7 : index
    %c0_18 = arith.constant 0 : index
    %17 = vector.load %arg13[%c7, %c0_18] : memref<96x8xf32, #tpu.memory_space<vmem>>, vector<64x8xf32>
    %18 = vector.extract_strided_slice %0 {offsets = [0, 0], sizes = [64, 1], strides = [1, 1]} : vector<64x9xf32> to vector<64x1xf32>
    %19 = vector.broadcast %18 : vector<64x1xf32> to vector<64x8xf32>
    %20 = arith.mulf %17, %19 : vector<64x8xf32>
    %c0_19 = arith.constant 0 : index
    %c0_20 = arith.constant 0 : index
    %21 = vector.load %arg14[%c0_19, %c0_20] : memref<64x72xf32, #tpu.memory_space<vmem>>, vector<64x8xf32>
    tpu.vector_store %arg14[%c0_19, %c0_20], %20 {strides = array<i32>} : memref<64x72xf32, #tpu.memory_space<vmem>>, vector<64x8xf32>,
    %c8 = arith.constant 8 : index
    %c0_21 = arith.constant 0 : index
    %22 = vector.load %arg13[%c8, %c0_21] : memref<96x8xf32, #tpu.memory_space<vmem>>, vector<64x8xf32>
    %23 = vector.extract_strided_slice %0 {offsets = [0, 1], sizes = [64, 1], strides = [1, 1]} : vector<64x9xf32> to vector<64x1xf32>
    %24 = vector.broadcast %23 : vector<64x1xf32> to vector<64x8xf32>
    %25 = arith.mulf %22, %24 : vector<64x8xf32>
    %c0_22 = arith.constant 0 : index
    %c8_23 = arith.constant 8 : index
    %26 = vector.load %arg14[%c0_22, %c8_23] : memref<64x72xf32, #tpu.memory_space<vmem>>, vector<64x8xf32>
    tpu.vector_store %arg14[%c0_22, %c8_23], %25 {strides = array<i32>} : memref<64x72xf32, #tpu.memory_space<vmem>>, vector<64x8xf32>,
    %c9 = arith.constant 9 : index
    %c0_24 = arith.constant 0 : index
    %27 = vector.load %arg13[%c9, %c0_24] : memref<96x8xf32, #tpu.memory_space<vmem>>, vector<64x8xf32>
    %28 = vector.extract_strided_slice %0 {offsets = [0, 2], sizes = [64, 1], strides = [1, 1]} : vector<64x9xf32> to vector<64x1xf32>
    %29 = vector.broadcast %28 : vector<64x1xf32> to vector<64x8xf32>
    %30 = arith.mulf %27, %29 : vector<64x8xf32>
    %c0_25 = arith.constant 0 : index
    %c16_26 = arith.constant 16 : index
    %31 = vector.load %arg14[%c0_25, %c16_26] : memref<64x72xf32, #tpu.memory_space<vmem>>, vector<64x8xf32>
    tpu.vector_store %arg14[%c0_25, %c16_26], %30 {strides = array<i32>} : memref<64x72xf32, #tpu.memory_space<vmem>>, vector<64x8xf32>,
    %c15 = arith.constant 15 : index
    %c0_27 = arith.constant 0 : index
    %32 = vector.load %arg13[%c15, %c0_27] : memref<96x8xf32, #tpu.memory_space<vmem>>, vector<64x8xf32>
    %33 = vector.extract_strided_slice %0 {offsets = [0, 3], sizes = [64, 1], strides = [1, 1]} : vector<64x9xf32> to vector<64x1xf32>
    %34 = vector.broadcast %33 : vector<64x1xf32> to vector<64x8xf32>
    %35 = arith.mulf %32, %34 : vector<64x8xf32>
    %c0_28 = arith.constant 0 : index
    %c24 = arith.constant 24 : index
    %36 = vector.load %arg14[%c0_28, %c24] : memref<64x72xf32, #tpu.memory_space<vmem>>, vector<64x8xf32>
    tpu.vector_store %arg14[%c0_28, %c24], %35 {strides = array<i32>} : memref<64x72xf32, #tpu.memory_space<vmem>>, vector<64x8xf32>,
    %c16_29 = arith.constant 16 : index
    %c0_30 = arith.constant 0 : index
    %37 = vector.load %arg13[%c16_29, %c0_30] : memref<96x8xf32, #tpu.memory_space<vmem>>, vector<64x8xf32>
    %38 = vector.extract_strided_slice %0 {offsets = [0, 4], sizes = [64, 1], strides = [1, 1]} : vector<64x9xf32> to vector<64x1xf32>
    %39 = vector.broadcast %38 : vector<64x1xf32> to vector<64x8xf32>
    %40 = arith.mulf %37, %39 : vector<64x8xf32>
    %c0_31 = arith.constant 0 : index
    %c32 = arith.constant 32 : index
    %41 = vector.load %arg14[%c0_31, %c32] : memref<64x72xf32, #tpu.memory_space<vmem>>, vector<64x8xf32>
    tpu.vector_store %arg14[%c0_31, %c32], %40 {strides = array<i32>} : memref<64x72xf32, #tpu.memory_space<vmem>>, vector<64x8xf32>,
    %c17 = arith.constant 17 : index
    %c0_32 = arith.constant 0 : index
    %42 = vector.load %arg13[%c17, %c0_32] : memref<96x8xf32, #tpu.memory_space<vmem>>, vector<64x8xf32>
    %43 = vector.extract_strided_slice %0 {offsets = [0, 5], sizes = [64, 1], strides = [1, 1]} : vector<64x9xf32> to vector<64x1xf32>
    %44 = vector.broadcast %43 : vector<64x1xf32> to vector<64x8xf32>
    %45 = arith.mulf %42, %44 : vector<64x8xf32>
    %c0_33 = arith.constant 0 : index
    %c40 = arith.constant 40 : index
    %46 = vector.load %arg14[%c0_33, %c40] : memref<64x72xf32, #tpu.memory_space<vmem>>, vector<64x8xf32>
    tpu.vector_store %arg14[%c0_33, %c40], %45 {strides = array<i32>} : memref<64x72xf32, #tpu.memory_space<vmem>>, vector<64x8xf32>,
    %c23 = arith.constant 23 : index
    %c0_34 = arith.constant 0 : index
    %47 = vector.load %arg13[%c23, %c0_34] : memref<96x8xf32, #tpu.memory_space<vmem>>, vector<64x8xf32>
    %48 = vector.extract_strided_slice %0 {offsets = [0, 6], sizes = [64, 1], strides = [1, 1]} : vector<64x9xf32> to vector<64x1xf32>
    %49 = vector.broadcast %48 : vector<64x1xf32> to vector<64x8xf32>
    %50 = arith.mulf %47, %49 : vector<64x8xf32>
    %c0_35 = arith.constant 0 : index
    %c48 = arith.constant 48 : index
    %51 = vector.load %arg14[%c0_35, %c48] : memref<64x72xf32, #tpu.memory_space<vmem>>, vector<64x8xf32>
    tpu.vector_store %arg14[%c0_35, %c48], %50 {strides = array<i32>} : memref<64x72xf32, #tpu.memory_space<vmem>>, vector<64x8xf32>,
    %c24_36 = arith.constant 24 : index
    %c0_37 = arith.constant 0 : index
    %52 = vector.load %arg13[%c24_36, %c0_37] : memref<96x8xf32, #tpu.memory_space<vmem>>, vector<64x8xf32>
    %53 = vector.extract_strided_slice %0 {offsets = [0, 7], sizes = [64, 1], strides = [1, 1]} : vector<64x9xf32> to vector<64x1xf32>
    %54 = vector.broadcast %53 : vector<64x1xf32> to vector<64x8xf32>
    %55 = arith.mulf %52, %54 : vector<64x8xf32>
    %c0_38 = arith.constant 0 : index
    %c56 = arith.constant 56 : index
    %56 = vector.load %arg14[%c0_38, %c56] : memref<64x72xf32, #tpu.memory_space<vmem>>, vector<64x8xf32>
    tpu.vector_store %arg14[%c0_38, %c56], %55 {strides = array<i32>} : memref<64x72xf32, #tpu.memory_space<vmem>>, vector<64x8xf32>,
    %c25 = arith.constant 25 : index
    %c0_39 = arith.constant 0 : index
    %57 = vector.load %arg13[%c25, %c0_39] : memref<96x8xf32, #tpu.memory_space<vmem>>, vector<64x8xf32>
    %58 = vector.extract_strided_slice %0 {offsets = [0, 8], sizes = [64, 1], strides = [1, 1]} : vector<64x9xf32> to vector<64x1xf32>
    %59 = vector.broadcast %58 : vector<64x1xf32> to vector<64x8xf32>
    %60 = arith.mulf %57, %59 : vector<64x8xf32>
    %c0_40 = arith.constant 0 : index
    %c64 = arith.constant 64 : index
    %61 = vector.load %arg14[%c0_40, %c64] : memref<64x72xf32, #tpu.memory_space<vmem>>, vector<64x8xf32>
    tpu.vector_store %arg14[%c0_40, %c64], %60 {strides = array<i32>} : memref<64x72xf32, #tpu.memory_space<vmem>>, vector<64x8xf32>,
    %c0_41 = arith.constant 0 : index
    %c0_42 = arith.constant 0 : index
    %62 = vector.load %arg14[%c0_41, %c0_42] : memref<64x72xf32, #tpu.memory_space<vmem>>, vector<64x72xf32>
    %63 = arith.truncf %62 : vector<64x72xf32> to vector<64x72xbf16>
    %c0_43 = arith.constant 0 : index
    %c0_44 = arith.constant 0 : index
    %c0_45 = arith.constant 0 : index
    %64 = vector.load %arg5[%c0_43, %c0_44, %c0_45] : memref<2x72x512xbf16, #tpu.memory_space<vmem>>, vector<1x72x512xbf16>
    %65 = vector.shape_cast %64 : vector<1x72x512xbf16> to vector<72x512xbf16>
    %cst_46 = arith.constant dense<0.000000e+00> : vector<64x512xf32>
    %66 = tpu.matmul %63, %65, %cst_46 {dimension_numbers = #tpu.dot_dimension_numbers<[1], [0], [0], [1], [0, 0, 1, 1], [], []>} : vector<64x72xbf16>, vector<72x512xbf16>, vector<64x512xf32> -> vector<64x512xf32>
    %c0_47 = arith.constant 0 : index
    %c0_48 = arith.constant 0 : index
    %c0_49 = arith.constant 0 : index
    %67 = vector.load %arg6[%c0_47, %c0_48, %c0_49] : memref<2x1x512xf32, #tpu.memory_space<vmem>>, vector<1x1x512xf32>
    %68 = vector.shape_cast %67 : vector<1x1x512xf32> to vector<1x512xf32>
    %69 = vector.broadcast %68 : vector<1x512xf32> to vector<64x512xf32>
    %70 = arith.addf %66, %69 : vector<64x512xf32>
    %cst_50 = arith.constant 0.000000e+00 : f32
    %71 = vector.broadcast %cst_50 : f32 to vector<64x512xf32>
    %72 = arith.maximumf %70, %71 : vector<64x512xf32>
    %73 = arith.truncf %72 : vector<64x512xf32> to vector<64x512xbf16>
    %c0_51 = arith.constant 0 : index
    %c0_52 = arith.constant 0 : index
    %c0_53 = arith.constant 0 : index
    %74 = vector.load %arg7[%c0_51, %c0_52, %c0_53] : memref<2x512x512xbf16, #tpu.memory_space<vmem>>, vector<1x512x512xbf16>
    %75 = vector.shape_cast %74 : vector<1x512x512xbf16> to vector<512x512xbf16>
    %cst_54 = arith.constant dense<0.000000e+00> : vector<64x512xf32>
    %76 = tpu.matmul %73, %75, %cst_54 {dimension_numbers = #tpu.dot_dimension_numbers<[1], [0], [0], [1], [0, 0, 1, 1], [], []>} : vector<64x512xbf16>, vector<512x512xbf16>, vector<64x512xf32> -> vector<64x512xf32>
    %c0_55 = arith.constant 0 : index
    %c0_56 = arith.constant 0 : index
    %c0_57 = arith.constant 0 : index
    %77 = vector.load %arg8[%c0_55, %c0_56, %c0_57] : memref<2x1x512xf32, #tpu.memory_space<vmem>>, vector<1x1x512xf32>
    %78 = vector.shape_cast %77 : vector<1x1x512xf32> to vector<1x512xf32>
    %79 = vector.broadcast %78 : vector<1x512xf32> to vector<64x512xf32>
    %80 = arith.addf %76, %79 : vector<64x512xf32>
    %cst_58 = arith.constant 0.000000e+00 : f32
    %81 = vector.broadcast %cst_58 : f32 to vector<64x512xf32>
    %82 = arith.maximumf %80, %81 : vector<64x512xf32>
    %83 = arith.truncf %82 : vector<64x512xf32> to vector<64x512xbf16>
    %c0_59 = arith.constant 0 : index
    %c0_60 = arith.constant 0 : index
    %c0_61 = arith.constant 0 : index
    %84 = vector.load %arg9[%c0_59, %c0_60, %c0_61] : memref<2x512x144xbf16, #tpu.memory_space<vmem>>, vector<1x512x144xbf16>
    %85 = vector.shape_cast %84 : vector<1x512x144xbf16> to vector<512x144xbf16>
    %cst_62 = arith.constant dense<0.000000e+00> : vector<64x144xf32>
    %86 = tpu.matmul %83, %85, %cst_62 {dimension_numbers = #tpu.dot_dimension_numbers<[1], [0], [0], [1], [0, 0, 1, 1], [], []>} : vector<64x512xbf16>, vector<512x144xbf16>, vector<64x144xf32> -> vector<64x144xf32>
    %cst_63 = arith.constant 0.000000e+00 : f32
    %87 = vector.broadcast %cst_63 : f32 to vector<96x144xf32>
    %c0_64 = arith.constant 0 : index
    %c0_65 = arith.constant 0 : index
    %88 = vector.load %arg15[%c0_64, %c0_65] : memref<96x144xf32, #tpu.memory_space<vmem>>, vector<96x144xf32>
    tpu.vector_store %arg15[%c0_64, %c0_65], %87 {strides = array<i32>} : memref<96x144xf32, #tpu.memory_space<vmem>>, vector<96x144xf32>,
    %c16_66 = arith.constant 16 : index
    %c0_67 = arith.constant 0 : index
    %89 = vector.load %arg15[%c16_66, %c0_67] : memref<96x144xf32, #tpu.memory_space<vmem>>, vector<64x144xf32>
    tpu.vector_store %arg15[%c16_66, %c0_67], %86 {strides = array<i32>} : memref<96x144xf32, #tpu.memory_space<vmem>>, vector<64x144xf32>,
    %c0_68 = arith.constant 0 : index
    %c0_69 = arith.constant 0 : index
    %c0_70 = arith.constant 0 : index
    %90 = vector.load %arg10[%c0_68, %c0_69, %c0_70] : memref<2x64x16xf32, #tpu.memory_space<vmem>>, vector<1x64x16xf32>
    %91 = vector.shape_cast %90 : vector<1x64x16xf32> to vector<64x16xf32>
    %92 = vector.extract_strided_slice %0 {offsets = [0, 0], sizes = [64, 1], strides = [1, 1]} : vector<64x9xf32> to vector<64x1xf32>
    %c7_71 = arith.constant 7 : index
    %c0_72 = arith.constant 0 : index
    %93 = vector.load %arg15[%c7_71, %c0_72] : memref<96x144xf32, #tpu.memory_space<vmem>>, vector<64x16xf32>
    %94 = vector.broadcast %92 : vector<64x1xf32> to vector<64x16xf32>
    %95 = arith.mulf %94, %93 : vector<64x16xf32>
    %96 = arith.addf %91, %95 : vector<64x16xf32>
    %97 = vector.extract_strided_slice %0 {offsets = [0, 1], sizes = [64, 1], strides = [1, 1]} : vector<64x9xf32> to vector<64x1xf32>
    %c8_73 = arith.constant 8 : index
    %c16_74 = arith.constant 16 : index
    %98 = vector.load %arg15[%c8_73, %c16_74] : memref<96x144xf32, #tpu.memory_space<vmem>>, vector<64x16xf32>
    %99 = vector.broadcast %97 : vector<64x1xf32> to vector<64x16xf32>
    %100 = arith.mulf %99, %98 : vector<64x16xf32>
    %101 = arith.addf %96, %100 : vector<64x16xf32>
    %102 = vector.extract_strided_slice %0 {offsets = [0, 2], sizes = [64, 1], strides = [1, 1]} : vector<64x9xf32> to vector<64x1xf32>
    %c9_75 = arith.constant 9 : index
    %c32_76 = arith.constant 32 : index
    %103 = vector.load %arg15[%c9_75, %c32_76] : memref<96x144xf32, #tpu.memory_space<vmem>>, vector<64x16xf32>
    %104 = vector.broadcast %102 : vector<64x1xf32> to vector<64x16xf32>
    %105 = arith.mulf %104, %103 : vector<64x16xf32>
    %106 = arith.addf %101, %105 : vector<64x16xf32>
    %107 = vector.extract_strided_slice %0 {offsets = [0, 3], sizes = [64, 1], strides = [1, 1]} : vector<64x9xf32> to vector<64x1xf32>
    %c15_77 = arith.constant 15 : index
    %c48_78 = arith.constant 48 : index
    %108 = vector.load %arg15[%c15_77, %c48_78] : memref<96x144xf32, #tpu.memory_space<vmem>>, vector<64x16xf32>
    %109 = vector.broadcast %107 : vector<64x1xf32> to vector<64x16xf32>
    %110 = arith.mulf %109, %108 : vector<64x16xf32>
    %111 = arith.addf %106, %110 : vector<64x16xf32>
    %112 = vector.extract_strided_slice %0 {offsets = [0, 4], sizes = [64, 1], strides = [1, 1]} : vector<64x9xf32> to vector<64x1xf32>
    %c16_79 = arith.constant 16 : index
    %c64_80 = arith.constant 64 : index
    %113 = vector.load %arg15[%c16_79, %c64_80] : memref<96x144xf32, #tpu.memory_space<vmem>>, vector<64x16xf32>
    %114 = vector.broadcast %112 : vector<64x1xf32> to vector<64x16xf32>
    %115 = arith.mulf %114, %113 : vector<64x16xf32>
    %116 = arith.addf %111, %115 : vector<64x16xf32>
    %117 = vector.extract_strided_slice %0 {offsets = [0, 5], sizes = [64, 1], strides = [1, 1]} : vector<64x9xf32> to vector<64x1xf32>
    %c17_81 = arith.constant 17 : index
    %c80 = arith.constant 80 : index
    %118 = vector.load %arg15[%c17_81, %c80] : memref<96x144xf32, #tpu.memory_space<vmem>>, vector<64x16xf32>
    %119 = vector.broadcast %117 : vector<64x1xf32> to vector<64x16xf32>
    %120 = arith.mulf %119, %118 : vector<64x16xf32>
    %121 = arith.addf %116, %120 : vector<64x16xf32>
    %122 = vector.extract_strided_slice %0 {offsets = [0, 6], sizes = [64, 1], strides = [1, 1]} : vector<64x9xf32> to vector<64x1xf32>
    %c23_82 = arith.constant 23 : index
    %c96 = arith.constant 96 : index
    %123 = vector.load %arg15[%c23_82, %c96] : memref<96x144xf32, #tpu.memory_space<vmem>>, vector<64x16xf32>
    %124 = vector.broadcast %122 : vector<64x1xf32> to vector<64x16xf32>
    %125 = arith.mulf %124, %123 : vector<64x16xf32>
    %126 = arith.addf %121, %125 : vector<64x16xf32>
    %127 = vector.extract_strided_slice %0 {offsets = [0, 7], sizes = [64, 1], strides = [1, 1]} : vector<64x9xf32> to vector<64x1xf32>
    %c24_83 = arith.constant 24 : index
    %c112 = arith.constant 112 : index
    %128 = vector.load %arg15[%c24_83, %c112] : memref<96x144xf32, #tpu.memory_space<vmem>>, vector<64x16xf32>
    %129 = vector.broadcast %127 : vector<64x1xf32> to vector<64x16xf32>
    %130 = arith.mulf %129, %128 : vector<64x16xf32>
    %131 = arith.addf %126, %130 : vector<64x16xf32>
    %132 = vector.extract_strided_slice %0 {offsets = [0, 8], sizes = [64, 1], strides = [1, 1]} : vector<64x9xf32> to vector<64x1xf32>
    %c25_84 = arith.constant 25 : index
    %c128 = arith.constant 128 : index
    %133 = vector.load %arg15[%c25_84, %c128] : memref<96x144xf32, #tpu.memory_space<vmem>>, vector<64x16xf32>
    %134 = vector.broadcast %132 : vector<64x1xf32> to vector<64x16xf32>
    %135 = arith.mulf %134, %133 : vector<64x16xf32>
    %136 = arith.addf %131, %135 : vector<64x16xf32>
    %137 = vector.extract_strided_slice %136 {offsets = [0, 0], sizes = [64, 8], strides = [1, 1]} : vector<64x16xf32> to vector<64x8xf32>
    %138 = vector.extract_strided_slice %136 {offsets = [0, 8], sizes = [64, 8], strides = [1, 1]} : vector<64x16xf32> to vector<64x8xf32>
    %cst_85 = arith.constant 2.000000e+00 : f32
    %139 = vector.broadcast %cst_85 : f32 to vector<64x8xf32>
    %140 = arith.addf %137, %139 : vector<64x8xf32>
    %cst_86 = arith.constant 0.000000e+00 : f32
    %141 = vector.broadcast %cst_86 : f32 to vector<64x8xf32>
    %142 = arith.subf %141, %140 : vector<64x8xf32>
    %143 = math.exp %142 : vector<64x8xf32>
    %cst_87 = arith.constant 1.000000e+00 : f32
    %144 = vector.broadcast %cst_87 : f32 to vector<64x8xf32>
    %145 = arith.addf %144, %143 : vector<64x8xf32>
    %cst_88 = arith.constant 1.000000e+00 : f32
    %146 = vector.broadcast %cst_88 : f32 to vector<64x8xf32>
    %147 = arith.divf %146, %145 : vector<64x8xf32>
    %c0_89 = arith.constant 0 : index
    %c0_90 = arith.constant 0 : index
    %148 = vector.load %arg12[%c0_89, %c0_90] : memref<64x16xf32, #tpu.memory_space<vmem>>, vector<64x8xf32>
    tpu.vector_store %arg12[%c0_89, %c0_90], %12 {strides = array<i32>} : memref<64x16xf32, #tpu.memory_space<vmem>>, vector<64x8xf32>,
    %149 = arith.addf %13, %138 : vector<64x8xf32>
    %150 = arith.mulf %149, %147 : vector<64x8xf32>
    %c0_91 = arith.constant 0 : index
    %c8_92 = arith.constant 8 : index
    %151 = vector.load %arg12[%c0_91, %c8_92] : memref<64x16xf32, #tpu.memory_space<vmem>>, vector<64x8xf32>
    tpu.vector_store %arg12[%c0_91, %c8_92], %150 {strides = array<i32>} : memref<64x16xf32, #tpu.memory_space<vmem>>, vector<64x8xf32>,
    %c0_93 = arith.constant 0 : index
    %c0_94 = arith.constant 0 : index
    %152 = vector.load %arg12[%c0_93, %c0_94] : memref<64x16xf32, #tpu.memory_space<vmem>>, vector<64x16xf32>
    %c1 = arith.constant 1 : index
    %c0_95 = arith.constant 0 : index
    %c0_96 = arith.constant 0 : index
    %153 = vector.load %arg2[%c1, %c0_95, %c0_96] : memref<2x16x16xf32, #tpu.memory_space<vmem>>, vector<1x16x16xf32>
    %154 = vector.shape_cast %153 : vector<1x16x16xf32> to vector<16x16xf32>
    %cst_97 = arith.constant dense<0.000000e+00> : vector<64x16xf32>
    %155 = tpu.matmul %152, %154, %cst_97 {dimension_numbers = #tpu.dot_dimension_numbers<[1], [0], [0], [1], [0, 0, 1, 1], [], []>} : vector<64x16xf32>, vector<16x16xf32>, vector<64x16xf32> -> vector<64x16xf32>
    %c1_98 = arith.constant 1 : index
    %c0_99 = arith.constant 0 : index
    %c0_100 = arith.constant 0 : index
    %156 = vector.load %arg3[%c1_98, %c0_99, %c0_100] : memref<2x1x16xf32, #tpu.memory_space<vmem>>, vector<1x1x16xf32>
    %157 = vector.shape_cast %156 : vector<1x1x16xf32> to vector<1x16xf32>
    %158 = vector.broadcast %157 : vector<1x16xf32> to vector<64x16xf32>
    %159 = arith.addf %155, %158 : vector<64x16xf32>
    %160 = vector.extract_strided_slice %159 {offsets = [0, 0], sizes = [64, 8], strides = [1, 1]} : vector<64x16xf32> to vector<64x8xf32>
    %161 = vector.extract_strided_slice %159 {offsets = [0, 8], sizes = [64, 8], strides = [1, 1]} : vector<64x16xf32> to vector<64x8xf32>
    %cst_101 = arith.constant 0.000000e+00 : f32
    %162 = vector.broadcast %cst_101 : f32 to vector<96x8xf32>
    %c0_102 = arith.constant 0 : index
    %c0_103 = arith.constant 0 : index
    %163 = vector.load %arg13[%c0_102, %c0_103] : memref<96x8xf32, #tpu.memory_space<vmem>>, vector<96x8xf32>
    tpu.vector_store %arg13[%c0_102, %c0_103], %162 {strides = array<i32>} : memref<96x8xf32, #tpu.memory_space<vmem>>, vector<96x8xf32>,
    %c16_104 = arith.constant 16 : index
    %c0_105 = arith.constant 0 : index
    %164 = vector.load %arg13[%c16_104, %c0_105] : memref<96x8xf32, #tpu.memory_space<vmem>>, vector<64x8xf32>
    tpu.vector_store %arg13[%c16_104, %c0_105], %160 {strides = array<i32>} : memref<96x8xf32, #tpu.memory_space<vmem>>, vector<64x8xf32>,
    %c7_106 = arith.constant 7 : index
    %c0_107 = arith.constant 0 : index
    %165 = vector.load %arg13[%c7_106, %c0_107] : memref<96x8xf32, #tpu.memory_space<vmem>>, vector<64x8xf32>
    %166 = vector.extract_strided_slice %0 {offsets = [0, 0], sizes = [64, 1], strides = [1, 1]} : vector<64x9xf32> to vector<64x1xf32>
    %167 = vector.broadcast %166 : vector<64x1xf32> to vector<64x8xf32>
    %168 = arith.mulf %165, %167 : vector<64x8xf32>
    %c0_108 = arith.constant 0 : index
    %c0_109 = arith.constant 0 : index
    %169 = vector.load %arg14[%c0_108, %c0_109] : memref<64x72xf32, #tpu.memory_space<vmem>>, vector<64x8xf32>
    tpu.vector_store %arg14[%c0_108, %c0_109], %168 {strides = array<i32>} : memref<64x72xf32, #tpu.memory_space<vmem>>, vector<64x8xf32>,
    %c8_110 = arith.constant 8 : index
    %c0_111 = arith.constant 0 : index
    %170 = vector.load %arg13[%c8_110, %c0_111] : memref<96x8xf32, #tpu.memory_space<vmem>>, vector<64x8xf32>
    %171 = vector.extract_strided_slice %0 {offsets = [0, 1], sizes = [64, 1], strides = [1, 1]} : vector<64x9xf32> to vector<64x1xf32>
    %172 = vector.broadcast %171 : vector<64x1xf32> to vector<64x8xf32>
    %173 = arith.mulf %170, %172 : vector<64x8xf32>
    %c0_112 = arith.constant 0 : index
    %c8_113 = arith.constant 8 : index
    %174 = vector.load %arg14[%c0_112, %c8_113] : memref<64x72xf32, #tpu.memory_space<vmem>>, vector<64x8xf32>
    tpu.vector_store %arg14[%c0_112, %c8_113], %173 {strides = array<i32>} : memref<64x72xf32, #tpu.memory_space<vmem>>, vector<64x8xf32>,
    %c9_114 = arith.constant 9 : index
    %c0_115 = arith.constant 0 : index
    %175 = vector.load %arg13[%c9_114, %c0_115] : memref<96x8xf32, #tpu.memory_space<vmem>>, vector<64x8xf32>
    %176 = vector.extract_strided_slice %0 {offsets = [0, 2], sizes = [64, 1], strides = [1, 1]} : vector<64x9xf32> to vector<64x1xf32>
    %177 = vector.broadcast %176 : vector<64x1xf32> to vector<64x8xf32>
    %178 = arith.mulf %175, %177 : vector<64x8xf32>
    %c0_116 = arith.constant 0 : index
    %c16_117 = arith.constant 16 : index
    %179 = vector.load %arg14[%c0_116, %c16_117] : memref<64x72xf32, #tpu.memory_space<vmem>>, vector<64x8xf32>
    tpu.vector_store %arg14[%c0_116, %c16_117], %178 {strides = array<i32>} : memref<64x72xf32, #tpu.memory_space<vmem>>, vector<64x8xf32>,
    %c15_118 = arith.constant 15 : index
    %c0_119 = arith.constant 0 : index
    %180 = vector.load %arg13[%c15_118, %c0_119] : memref<96x8xf32, #tpu.memory_space<vmem>>, vector<64x8xf32>
    %181 = vector.extract_strided_slice %0 {offsets = [0, 3], sizes = [64, 1], strides = [1, 1]} : vector<64x9xf32> to vector<64x1xf32>
    %182 = vector.broadcast %181 : vector<64x1xf32> to vector<64x8xf32>
    %183 = arith.mulf %180, %182 : vector<64x8xf32>
    %c0_120 = arith.constant 0 : index
    %c24_121 = arith.constant 24 : index
    %184 = vector.load %arg14[%c0_120, %c24_121] : memref<64x72xf32, #tpu.memory_space<vmem>>, vector<64x8xf32>
    tpu.vector_store %arg14[%c0_120, %c24_121], %183 {strides = array<i32>} : memref<64x72xf32, #tpu.memory_space<vmem>>, vector<64x8xf32>,
    %c16_122 = arith.constant 16 : index
    %c0_123 = arith.constant 0 : index
    %185 = vector.load %arg13[%c16_122, %c0_123] : memref<96x8xf32, #tpu.memory_space<vmem>>, vector<64x8xf32>
    %186 = vector.extract_strided_slice %0 {offsets = [0, 4], sizes = [64, 1], strides = [1, 1]} : vector<64x9xf32> to vector<64x1xf32>
    %187 = vector.broadcast %186 : vector<64x1xf32> to vector<64x8xf32>
    %188 = arith.mulf %185, %187 : vector<64x8xf32>
    %c0_124 = arith.constant 0 : index
    %c32_125 = arith.constant 32 : index
    %189 = vector.load %arg14[%c0_124, %c32_125] : memref<64x72xf32, #tpu.memory_space<vmem>>, vector<64x8xf32>
    tpu.vector_store %arg14[%c0_124, %c32_125], %188 {strides = array<i32>} : memref<64x72xf32, #tpu.memory_space<vmem>>, vector<64x8xf32>,
    %c17_126 = arith.constant 17 : index
    %c0_127 = arith.constant 0 : index
    %190 = vector.load %arg13[%c17_126, %c0_127] : memref<96x8xf32, #tpu.memory_space<vmem>>, vector<64x8xf32>
    %191 = vector.extract_strided_slice %0 {offsets = [0, 5], sizes = [64, 1], strides = [1, 1]} : vector<64x9xf32> to vector<64x1xf32>
    %192 = vector.broadcast %191 : vector<64x1xf32> to vector<64x8xf32>
    %193 = arith.mulf %190, %192 : vector<64x8xf32>
    %c0_128 = arith.constant 0 : index
    %c40_129 = arith.constant 40 : index
    %194 = vector.load %arg14[%c0_128, %c40_129] : memref<64x72xf32, #tpu.memory_space<vmem>>, vector<64x8xf32>
    tpu.vector_store %arg14[%c0_128, %c40_129], %193 {strides = array<i32>} : memref<64x72xf32, #tpu.memory_space<vmem>>, vector<64x8xf32>,
    %c23_130 = arith.constant 23 : index
    %c0_131 = arith.constant 0 : index
    %195 = vector.load %arg13[%c23_130, %c0_131] : memref<96x8xf32, #tpu.memory_space<vmem>>, vector<64x8xf32>
    %196 = vector.extract_strided_slice %0 {offsets = [0, 6], sizes = [64, 1], strides = [1, 1]} : vector<64x9xf32> to vector<64x1xf32>
    %197 = vector.broadcast %196 : vector<64x1xf32> to vector<64x8xf32>
    %198 = arith.mulf %195, %197 : vector<64x8xf32>
    %c0_132 = arith.constant 0 : index
    %c48_133 = arith.constant 48 : index
    %199 = vector.load %arg14[%c0_132, %c48_133] : memref<64x72xf32, #tpu.memory_space<vmem>>, vector<64x8xf32>
    tpu.vector_store %arg14[%c0_132, %c48_133], %198 {strides = array<i32>} : memref<64x72xf32, #tpu.memory_space<vmem>>, vector<64x8xf32>,
    %c24_134 = arith.constant 24 : index
    %c0_135 = arith.constant 0 : index
    %200 = vector.load %arg13[%c24_134, %c0_135] : memref<96x8xf32, #tpu.memory_space<vmem>>, vector<64x8xf32>
    %201 = vector.extract_strided_slice %0 {offsets = [0, 7], sizes = [64, 1], strides = [1, 1]} : vector<64x9xf32> to vector<64x1xf32>
    %202 = vector.broadcast %201 : vector<64x1xf32> to vector<64x8xf32>
    %203 = arith.mulf %200, %202 : vector<64x8xf32>
    %c0_136 = arith.constant 0 : index
    %c56_137 = arith.constant 56 : index
    %204 = vector.load %arg14[%c0_136, %c56_137] : memref<64x72xf32, #tpu.memory_space<vmem>>, vector<64x8xf32>
    tpu.vector_store %arg14[%c0_136, %c56_137], %203 {strides = array<i32>} : memref<64x72xf32, #tpu.memory_space<vmem>>, vector<64x8xf32>,
    %c25_138 = arith.constant 25 : index
    %c0_139 = arith.constant 0 : index
    %205 = vector.load %arg13[%c25_138, %c0_139] : memref<96x8xf32, #tpu.memory_space<vmem>>, vector<64x8xf32>
    %206 = vector.extract_strided_slice %0 {offsets = [0, 8], sizes = [64, 1], strides = [1, 1]} : vector<64x9xf32> to vector<64x1xf32>
    %207 = vector.broadcast %206 : vector<64x1xf32> to vector<64x8xf32>
    %208 = arith.mulf %205, %207 : vector<64x8xf32>
    %c0_140 = arith.constant 0 : index
    %c64_141 = arith.constant 64 : index
    %209 = vector.load %arg14[%c0_140, %c64_141] : memref<64x72xf32, #tpu.memory_space<vmem>>, vector<64x8xf32>
    tpu.vector_store %arg14[%c0_140, %c64_141], %208 {strides = array<i32>} : memref<64x72xf32, #tpu.memory_space<vmem>>, vector<64x8xf32>,
    %c0_142 = arith.constant 0 : index
    %c0_143 = arith.constant 0 : index
    %210 = vector.load %arg14[%c0_142, %c0_143] : memref<64x72xf32, #tpu.memory_space<vmem>>, vector<64x72xf32>
    %211 = arith.truncf %210 : vector<64x72xf32> to vector<64x72xbf16>
    %c1_144 = arith.constant 1 : index
    %c0_145 = arith.constant 0 : index
    %c0_146 = arith.constant 0 : index
    %212 = vector.load %arg5[%c1_144, %c0_145, %c0_146] : memref<2x72x512xbf16, #tpu.memory_space<vmem>>, vector<1x72x512xbf16>
    %213 = vector.shape_cast %212 : vector<1x72x512xbf16> to vector<72x512xbf16>
    %cst_147 = arith.constant dense<0.000000e+00> : vector<64x512xf32>
    %214 = tpu.matmul %211, %213, %cst_147 {dimension_numbers = #tpu.dot_dimension_numbers<[1], [0], [0], [1], [0, 0, 1, 1], [], []>} : vector<64x72xbf16>, vector<72x512xbf16>, vector<64x512xf32> -> vector<64x512xf32>
    %c1_148 = arith.constant 1 : index
    %c0_149 = arith.constant 0 : index
    %c0_150 = arith.constant 0 : index
    %215 = vector.load %arg6[%c1_148, %c0_149, %c0_150] : memref<2x1x512xf32, #tpu.memory_space<vmem>>, vector<1x1x512xf32>
    %216 = vector.shape_cast %215 : vector<1x1x512xf32> to vector<1x512xf32>
    %217 = vector.broadcast %216 : vector<1x512xf32> to vector<64x512xf32>
    %218 = arith.addf %214, %217 : vector<64x512xf32>
    %cst_151 = arith.constant 0.000000e+00 : f32
    %219 = vector.broadcast %cst_151 : f32 to vector<64x512xf32>
    %220 = arith.maximumf %218, %219 : vector<64x512xf32>
    %221 = arith.truncf %220 : vector<64x512xf32> to vector<64x512xbf16>
    %c1_152 = arith.constant 1 : index
    %c0_153 = arith.constant 0 : index
    %c0_154 = arith.constant 0 : index
    %222 = vector.load %arg7[%c1_152, %c0_153, %c0_154] : memref<2x512x512xbf16, #tpu.memory_space<vmem>>, vector<1x512x512xbf16>
    %223 = vector.shape_cast %222 : vector<1x512x512xbf16> to vector<512x512xbf16>
    %cst_155 = arith.constant dense<0.000000e+00> : vector<64x512xf32>
    %224 = tpu.matmul %221, %223, %cst_155 {dimension_numbers = #tpu.dot_dimension_numbers<[1], [0], [0], [1], [0, 0, 1, 1], [], []>} : vector<64x512xbf16>, vector<512x512xbf16>, vector<64x512xf32> -> vector<64x512xf32>
    %c1_156 = arith.constant 1 : index
    %c0_157 = arith.constant 0 : index
    %c0_158 = arith.constant 0 : index
    %225 = vector.load %arg8[%c1_156, %c0_157, %c0_158] : memref<2x1x512xf32, #tpu.memory_space<vmem>>, vector<1x1x512xf32>
    %226 = vector.shape_cast %225 : vector<1x1x512xf32> to vector<1x512xf32>
    %227 = vector.broadcast %226 : vector<1x512xf32> to vector<64x512xf32>
    %228 = arith.addf %224, %227 : vector<64x512xf32>
    %cst_159 = arith.constant 0.000000e+00 : f32
    %229 = vector.broadcast %cst_159 : f32 to vector<64x512xf32>
    %230 = arith.maximumf %228, %229 : vector<64x512xf32>
    %231 = arith.truncf %230 : vector<64x512xf32> to vector<64x512xbf16>
    %c1_160 = arith.constant 1 : index
    %c0_161 = arith.constant 0 : index
    %c0_162 = arith.constant 0 : index
    %232 = vector.load %arg9[%c1_160, %c0_161, %c0_162] : memref<2x512x144xbf16, #tpu.memory_space<vmem>>, vector<1x512x144xbf16>
    %233 = vector.shape_cast %232 : vector<1x512x144xbf16> to vector<512x144xbf16>
    %cst_163 = arith.constant dense<0.000000e+00> : vector<64x144xf32>
    %234 = tpu.matmul %231, %233, %cst_163 {dimension_numbers = #tpu.dot_dimension_numbers<[1], [0], [0], [1], [0, 0, 1, 1], [], []>} : vector<64x512xbf16>, vector<512x144xbf16>, vector<64x144xf32> -> vector<64x144xf32>
    %cst_164 = arith.constant 0.000000e+00 : f32
    %235 = vector.broadcast %cst_164 : f32 to vector<96x144xf32>
    %c0_165 = arith.constant 0 : index
    %c0_166 = arith.constant 0 : index
    %236 = vector.load %arg15[%c0_165, %c0_166] : memref<96x144xf32, #tpu.memory_space<vmem>>, vector<96x144xf32>
    tpu.vector_store %arg15[%c0_165, %c0_166], %235 {strides = array<i32>} : memref<96x144xf32, #tpu.memory_space<vmem>>, vector<96x144xf32>,
    %c16_167 = arith.constant 16 : index
    %c0_168 = arith.constant 0 : index
    %237 = vector.load %arg15[%c16_167, %c0_168] : memref<96x144xf32, #tpu.memory_space<vmem>>, vector<64x144xf32>
    tpu.vector_store %arg15[%c16_167, %c0_168], %234 {strides = array<i32>} : memref<96x144xf32, #tpu.memory_space<vmem>>, vector<64x144xf32>,
    %c1_169 = arith.constant 1 : index
    %c0_170 = arith.constant 0 : index
    %c0_171 = arith.constant 0 : index
    %238 = vector.load %arg10[%c1_169, %c0_170, %c0_171] : memref<2x64x16xf32, #tpu.memory_space<vmem>>, vector<1x64x16xf32>
    %239 = vector.shape_cast %238 : vector<1x64x16xf32> to vector<64x16xf32>
    %240 = vector.extract_strided_slice %0 {offsets = [0, 0], sizes = [64, 1], strides = [1, 1]} : vector<64x9xf32> to vector<64x1xf32>
    %c7_172 = arith.constant 7 : index
    %c0_173 = arith.constant 0 : index
    %241 = vector.load %arg15[%c7_172, %c0_173] : memref<96x144xf32, #tpu.memory_space<vmem>>, vector<64x16xf32>
    %242 = vector.broadcast %240 : vector<64x1xf32> to vector<64x16xf32>
    %243 = arith.mulf %242, %241 : vector<64x16xf32>
    %244 = arith.addf %239, %243 : vector<64x16xf32>
    %245 = vector.extract_strided_slice %0 {offsets = [0, 1], sizes = [64, 1], strides = [1, 1]} : vector<64x9xf32> to vector<64x1xf32>
    %c8_174 = arith.constant 8 : index
    %c16_175 = arith.constant 16 : index
    %246 = vector.load %arg15[%c8_174, %c16_175] : memref<96x144xf32, #tpu.memory_space<vmem>>, vector<64x16xf32>
    %247 = vector.broadcast %245 : vector<64x1xf32> to vector<64x16xf32>
    %248 = arith.mulf %247, %246 : vector<64x16xf32>
    %249 = arith.addf %244, %248 : vector<64x16xf32>
    %250 = vector.extract_strided_slice %0 {offsets = [0, 2], sizes = [64, 1], strides = [1, 1]} : vector<64x9xf32> to vector<64x1xf32>
    %c9_176 = arith.constant 9 : index
    %c32_177 = arith.constant 32 : index
    %251 = vector.load %arg15[%c9_176, %c32_177] : memref<96x144xf32, #tpu.memory_space<vmem>>, vector<64x16xf32>
    %252 = vector.broadcast %250 : vector<64x1xf32> to vector<64x16xf32>
    %253 = arith.mulf %252, %251 : vector<64x16xf32>
    %254 = arith.addf %249, %253 : vector<64x16xf32>
    %255 = vector.extract_strided_slice %0 {offsets = [0, 3], sizes = [64, 1], strides = [1, 1]} : vector<64x9xf32> to vector<64x1xf32>
    %c15_178 = arith.constant 15 : index
    %c48_179 = arith.constant 48 : index
    %256 = vector.load %arg15[%c15_178, %c48_179] : memref<96x144xf32, #tpu.memory_space<vmem>>, vector<64x16xf32>
    %257 = vector.broadcast %255 : vector<64x1xf32> to vector<64x16xf32>
    %258 = arith.mulf %257, %256 : vector<64x16xf32>
    %259 = arith.addf %254, %258 : vector<64x16xf32>
    %260 = vector.extract_strided_slice %0 {offsets = [0, 4], sizes = [64, 1], strides = [1, 1]} : vector<64x9xf32> to vector<64x1xf32>
    %c16_180 = arith.constant 16 : index
    %c64_181 = arith.constant 64 : index
    %261 = vector.load %arg15[%c16_180, %c64_181] : memref<96x144xf32, #tpu.memory_space<vmem>>, vector<64x16xf32>
    %262 = vector.broadcast %260 : vector<64x1xf32> to vector<64x16xf32>
    %263 = arith.mulf %262, %261 : vector<64x16xf32>
    %264 = arith.addf %259, %263 : vector<64x16xf32>
    %265 = vector.extract_strided_slice %0 {offsets = [0, 5], sizes = [64, 1], strides = [1, 1]} : vector<64x9xf32> to vector<64x1xf32>
    %c17_182 = arith.constant 17 : index
    %c80_183 = arith.constant 80 : index
    %266 = vector.load %arg15[%c17_182, %c80_183] : memref<96x144xf32, #tpu.memory_space<vmem>>, vector<64x16xf32>
    %267 = vector.broadcast %265 : vector<64x1xf32> to vector<64x16xf32>
    %268 = arith.mulf %267, %266 : vector<64x16xf32>
    %269 = arith.addf %264, %268 : vector<64x16xf32>
    %270 = vector.extract_strided_slice %0 {offsets = [0, 6], sizes = [64, 1], strides = [1, 1]} : vector<64x9xf32> to vector<64x1xf32>
    %c23_184 = arith.constant 23 : index
    %c96_185 = arith.constant 96 : index
    %271 = vector.load %arg15[%c23_184, %c96_185] : memref<96x144xf32, #tpu.memory_space<vmem>>, vector<64x16xf32>
    %272 = vector.broadcast %270 : vector<64x1xf32> to vector<64x16xf32>
    %273 = arith.mulf %272, %271 : vector<64x16xf32>
    %274 = arith.addf %269, %273 : vector<64x16xf32>
    %275 = vector.extract_strided_slice %0 {offsets = [0, 7], sizes = [64, 1], strides = [1, 1]} : vector<64x9xf32> to vector<64x1xf32>
    %c24_186 = arith.constant 24 : index
    %c112_187 = arith.constant 112 : index
    %276 = vector.load %arg15[%c24_186, %c112_187] : memref<96x144xf32, #tpu.memory_space<vmem>>, vector<64x16xf32>
    %277 = vector.broadcast %275 : vector<64x1xf32> to vector<64x16xf32>
    %278 = arith.mulf %277, %276 : vector<64x16xf32>
    %279 = arith.addf %274, %278 : vector<64x16xf32>
    %280 = vector.extract_strided_slice %0 {offsets = [0, 8], sizes = [64, 1], strides = [1, 1]} : vector<64x9xf32> to vector<64x1xf32>
    %c25_188 = arith.constant 25 : index
    %c128_189 = arith.constant 128 : index
    %281 = vector.load %arg15[%c25_188, %c128_189] : memref<96x144xf32, #tpu.memory_space<vmem>>, vector<64x16xf32>
    %282 = vector.broadcast %280 : vector<64x1xf32> to vector<64x16xf32>
    %283 = arith.mulf %282, %281 : vector<64x16xf32>
    %284 = arith.addf %279, %283 : vector<64x16xf32>
    %285 = vector.extract_strided_slice %284 {offsets = [0, 0], sizes = [64, 8], strides = [1, 1]} : vector<64x16xf32> to vector<64x8xf32>
    %286 = vector.extract_strided_slice %284 {offsets = [0, 8], sizes = [64, 8], strides = [1, 1]} : vector<64x16xf32> to vector<64x8xf32>
    %cst_190 = arith.constant 2.000000e+00 : f32
    %287 = vector.broadcast %cst_190 : f32 to vector<64x8xf32>
    %288 = arith.addf %285, %287 : vector<64x8xf32>
    %cst_191 = arith.constant 0.000000e+00 : f32
    %289 = vector.broadcast %cst_191 : f32 to vector<64x8xf32>
    %290 = arith.subf %289, %288 : vector<64x8xf32>
    %291 = math.exp %290 : vector<64x8xf32>
    %cst_192 = arith.constant 1.000000e+00 : f32
    %292 = vector.broadcast %cst_192 : f32 to vector<64x8xf32>
    %293 = arith.addf %292, %291 : vector<64x8xf32>
    %cst_193 = arith.constant 1.000000e+00 : f32
    %294 = vector.broadcast %cst_193 : f32 to vector<64x8xf32>
    %295 = arith.divf %294, %293 : vector<64x8xf32>
    %c0_194 = arith.constant 0 : index
    %c0_195 = arith.constant 0 : index
    %296 = vector.load %arg12[%c0_194, %c0_195] : memref<64x16xf32, #tpu.memory_space<vmem>>, vector<64x8xf32>
    tpu.vector_store %arg12[%c0_194, %c0_195], %160 {strides = array<i32>} : memref<64x16xf32, #tpu.memory_space<vmem>>, vector<64x8xf32>,
    %297 = arith.addf %161, %286 : vector<64x8xf32>
    %298 = arith.mulf %297, %295 : vector<64x8xf32>
    %c0_196 = arith.constant 0 : index
    %c8_197 = arith.constant 8 : index
    %299 = vector.load %arg12[%c0_196, %c8_197] : memref<64x16xf32, #tpu.memory_space<vmem>>, vector<64x8xf32>
    tpu.vector_store %arg12[%c0_196, %c8_197], %298 {strides = array<i32>} : memref<64x16xf32, #tpu.memory_space<vmem>>, vector<64x8xf32>,
    %c0_198 = arith.constant 0 : index
    %c0_199 = arith.constant 0 : index
    %300 = vector.load %arg12[%c0_198, %c0_199] : memref<64x16xf32, #tpu.memory_space<vmem>>, vector<64x16xf32>
    %c0_200 = arith.constant 0 : index
    %c0_201 = arith.constant 0 : index
    %c0_202 = arith.constant 0 : index
    %301 = vector.load %arg11[%c0_200, %c0_201, %c0_202] : memref<1x64x16xf32, #tpu.memory_space<vmem>>, vector<1x64x16xf32>
    %302 = vector.shape_cast %301 : vector<1x64x16xf32> to vector<64x16xf32>
    %303 = vector.shape_cast %300 : vector<64x16xf32> to vector<1x64x16xf32>
    tpu.vector_store %arg11[%c0_200, %c0_201, %c0_202], %303 {strides = array<i32>} : memref<1x64x16xf32, #tpu.memory_space<vmem>>, vector<1x64x16xf32>,
    return
  }
  func.func @transform_0(%arg0: i32) -> (i32, i32, i32) {
    %c0_i32 = arith.constant 0 : i32
    %c0_i32_0 = arith.constant 0 : i32
    %c0_i32_1 = arith.constant 0 : i32
    return %arg0, %c0_i32, %c0_i32_0 : i32, i32, i32
  }
  func.func @transform_1(%arg0: i32) -> (i32, i32, i32) {
    %c0_i32 = arith.constant 0 : i32
    %c0_i32_0 = arith.constant 0 : i32
    %c0_i32_1 = arith.constant 0 : i32
    %c0_i32_2 = arith.constant 0 : i32
    return %c0_i32, %c0_i32_0, %c0_i32_1 : i32, i32, i32
  }
  func.func @transform_2(%arg0: i32) -> (i32, i32, i32) {
    %c0_i32 = arith.constant 0 : i32
    %c0_i32_0 = arith.constant 0 : i32
    %c0_i32_1 = arith.constant 0 : i32
    %c0_i32_2 = arith.constant 0 : i32
    return %c0_i32, %c0_i32_0, %c0_i32_1 : i32, i32, i32
  }
  func.func @transform_3(%arg0: i32) -> (i32, i32) {
    %c0_i32 = arith.constant 0 : i32
    %c0_i32_0 = arith.constant 0 : i32
    %c0_i32_1 = arith.constant 0 : i32
    return %c0_i32, %c0_i32_0 : i32, i32
  }
  func.func @transform_4(%arg0: i32) -> (i32, i32, i32) {
    %c0_i32 = arith.constant 0 : i32
    %c0_i32_0 = arith.constant 0 : i32
    %c0_i32_1 = arith.constant 0 : i32
    %c0_i32_2 = arith.constant 0 : i32
    return %c0_i32, %c0_i32_0, %c0_i32_1 : i32, i32, i32
  }
  func.func @transform_5(%arg0: i32) -> (i32, i32, i32) {
    %c0_i32 = arith.constant 0 : i32
    %c0_i32_0 = arith.constant 0 : i32
    %c0_i32_1 = arith.constant 0 : i32
    %c0_i32_2 = arith.constant 0 : i32
    return %c0_i32, %c0_i32_0, %c0_i32_1 : i32, i32, i32
  }
  func.func @transform_6(%arg0: i32) -> (i32, i32, i32) {
    %c0_i32 = arith.constant 0 : i32
    %c0_i32_0 = arith.constant 0 : i32
    %c0_i32_1 = arith.constant 0 : i32
    %c0_i32_2 = arith.constant 0 : i32
    return %c0_i32, %c0_i32_0, %c0_i32_1 : i32, i32, i32
  }
  func.func @transform_7(%arg0: i32) -> (i32, i32, i32) {
    %c0_i32 = arith.constant 0 : i32
    %c0_i32_0 = arith.constant 0 : i32
    %c0_i32_1 = arith.constant 0 : i32
    %c0_i32_2 = arith.constant 0 : i32
    return %c0_i32, %c0_i32_0, %c0_i32_1 : i32, i32, i32
  }
  func.func @transform_8(%arg0: i32) -> (i32, i32, i32) {
    %c0_i32 = arith.constant 0 : i32
    %c0_i32_0 = arith.constant 0 : i32
    %c0_i32_1 = arith.constant 0 : i32
    %c0_i32_2 = arith.constant 0 : i32
    return %c0_i32, %c0_i32_0, %c0_i32_1 : i32, i32, i32
  }
  func.func @transform_9(%arg0: i32) -> (i32, i32, i32) {
    %c0_i32 = arith.constant 0 : i32
    %c0_i32_0 = arith.constant 0 : i32
    %c0_i32_1 = arith.constant 0 : i32
    %c0_i32_2 = arith.constant 0 : i32
    return %c0_i32, %c0_i32_0, %c0_i32_1 : i32, i32, i32
  }
  func.func @transform_10(%arg0: i32) -> (i32, i32, i32) {
    %c0_i32 = arith.constant 0 : i32
    %c0_i32_0 = arith.constant 0 : i32
    %c0_i32_1 = arith.constant 0 : i32
    return %arg0, %c0_i32, %c0_i32_0 : i32, i32, i32
  }
}

</mosaic_0001>

<bundles_post_ra>
// kernel: block_forward.1
= control target key start
LH: loop header
LB: loop body
LE: loop exit
PB: predicated region body
PF: predicated region fallthrough
CT: control target
= control target key end

     0   :  { %s12877_s0 = inlined_call_operand.vmem [shape: f32[2,64,16], index: 0, kind: input, shape index: {}]   ;;  %s12878_s1 = inlined_call_operand.vmem [shape: f32[2,16,16], index: 1, kind: input, shape index: {}]   ;;  %s12879_s2 = inlined_call_operand.vmem [shape: f32[2,1,16], index: 2, kind: input, shape index: {}]   ;;  %s12880_s3 = inlined_call_operand.vmem [shape: f32[64,9], index: 3, kind: input, shape index: {}]   ;;  %s12881_s4 = inlined_call_operand.vmem [shape: bf16[2,72,512], index: 4, kind: input, shape index: {}]   ;;  %s12882_s5 = inlined_call_operand.vmem [shape: f32[2,1,512], index: 5, kind: input, shape index: {}]   ;;  %s12883_s6 = inlined_call_operand.vmem [shape: bf16[2,512,512], index: 6, kind: input, shape index: {}]   ;;  %s12884_s7 = inlined_call_operand.vmem [shape: f32[2,1,512], index: 7, kind: input, shape index: {}]   ;;  %s12885_s8 = inlined_call_operand.vmem [shape: bf16[2,512,144], index: 8, kind: input, shape index: {}]   ;;  %s12886_s9 = inlined_call_operand.vmem [shape: f32[2,64,16], index: 9, kind: input, shape index: {}]   ;;  %s12887_s10 = inlined_call_operand.hbm [shape: f32[2,64,16], index: 10, kind: output, shape index: {}]  }
   0x1   :  { %13093 = sst [smem:[#allocation94_spill]] %s12877_s0 }
   0x2   :  { %13094 = sst [smem:[#allocation95_spill]] %s12878_s1 }
   0x3   :  { %13095 = sst [smem:[#allocation96_spill]] %s12879_s2 }
   0x4   :  { %13096 = sst [smem:[#allocation97_spill]] %s12880_s3 }
   0x5   :  { %15 = vsyncpa [#allocation7], 0 }
   0x6   :  { %17 = vsyncpa [#allocation7 + $0x1], 0  ;;  %s9270_s13 = smov 0   ;;  %s9272_s14 = smov 0  }
   0x7   :  { %s9274_s15 = smov 0   ;;  %s9276_s16 = smov 0  }
   0x8 LB: > { %13097 = sst [smem:[#allocation9_spill]] %s9186_s15  ;;  %s9291_s17 = sadd.s32 4294967295, %s9190_s16   ;;  %s9190_s16 = sphi %s9276_s16, %s13383_s16   ;;  %s9186_s15 = sphi %s9274_s15, %s13380_s15   ;;  %s9182_s14 = sphi %s9272_s14, %s13382_s14   ;;  %s9178_s13 = sphi %s9270_s13, %s13381_s13  }
   0x9   : > { %s7401_s18 = sadd.s32 4294967294, %s9190_s16   ;;  %s9295_s19 = sadd.s32 1, %s9190_s16  }
   0xa   : > { %s245_s20 = sadd.s32 1, %s9186_s15  ;;  %s242_s21 = ssub.s32 %s9190_s16, %s9295_s19 }
   0xb   : > { %p255_p0 = scmp.ne.s32.totalorder %s9186_s15, %s9182_s14  ;;  %p243_p1 = scmp.eq.s32.totalorder %s242_s21, 0 }
   0xc   : > { %p256_p2 = scmp.eq.s32.totalorder %s9291_s17, 1  ;;  %p261_p3 = scmp.ne.s32.totalorder %s9182_s14, %s9178_s13 }
   0xd   : > { %p262_p4 = scmp.eq.s32.totalorder %s7401_s18, 1  ;;  %p7404_p7 = scmp.ge.s32.totalorder %s9190_s16, 1 }
   0xe   : > { %s9306_s22 = scalar_select %p243_p1, %s9186_s15, %s245_s20  }
   0xf   : > { %p9308_p5 = por %p256_p2, %p255_p0  ;;  %p9312_p6 = por %p262_p4, %p261_p3 }
  0x10   : > { %13098 = sst [smem:[#allocation10_spill]] %s9306_s22  ;;  %p315_p8 = scmp.lt.s32.totalorder %s9190_s16, 3 }
  0x12   : > { %p316_p9 = pnand %p7404_p7, %p315_p8 }
  0x14   : > { %319 = sbr.rel (%p316_p9) target bundleno = 3170 (0xc62), region = 60 }
  0x1b   : > { %s13101_s3 = sld [smem:[#allocation97_spill]]  ;;  %s13102_s1 = sld [smem:[#allocation95_spill]]  ;;  %v9192_v2 = vmov 2   ;;  %v9193_v5 = vmov 4   ;;  %v12889_v8 = vmov 0   ;;  %vm375_vm0 = vcmask 130048  }
  0x1c   : > { %8381 = vset.pattern.permute.xlu1 %v9192_v2  ;;  %8384 = vset.pattern.permute.xlu0 %v9193_v5  ;;  %p353_p10 = scmp.lt.s32.totalorder %s9291_s17, 1  ;;  %s13103_s0 = sld [smem:[#allocation94_spill]]  ;;  %v9195_v17 = vmov 3   ;;  %v9196_v18 = vmov 7   ;;  %v9197_v26 = vmov 5   ;;  %v9198_v30 = vmov 1  }
  0x1d   : > { %1600 = vmatprep.mubr.bf16.mxu0 %v12889_v8  ;;  %v9199_v31 = vmov 6   ;;  %v9200_v33 = vmov 8   ;;  %vm530_vm1 = vcmask 64512   ;;  %v12891_v36 = vmov 0.0   ;;  %s12936_s30 = smov 8   ;;  %s13148_s2 = sld [smem:[#allocation96_spill]] }
  0x1e   : > { %s354_s18 = scalar_select %p353_p10, %s9291_s17, 1  ;;  %532 = vst.msk [vmem:[#allocation3 + $0x8] sm:$0xff] %vm530_vm1, %v12891_v36  ;;  %531 = vst.msk [vmem:[#allocation3] sm:$0xff] %vm530_vm1, %v12891_v36  ;;  %vm3511_vm2 = vcmask 1046528   ;;  %vm1482_vm3 = vcmask 1043456   ;;  %vm695_vm4 = vcmask 130112  }
  0x1f   : > { %533 = vst.msk [vmem:[#allocation3 + $0x10] sm:$0xff] %vm530_vm1, %v12891_v36  ;;  %534 = vst.msk [vmem:[#allocation3 + $0x18] sm:$0xff] %vm530_vm1, %v12891_v36  ;;  %s12958_s29 = smov 32   ;;  %s12934_s11 = smov 16   ;;  %vm784_vm5 = vcmask 195712   ;;  %vm873_vm6 = vcmask 261312  }
  0x20   : > { %s8098_s25 = sshll.u32 %s354_s18, 6  ;;  %535 = vst.msk [vmem:[#allocation3 + $0x20] sm:$0xff] %vm530_vm1, %v12891_v36  ;;  %536 = vst.msk [vmem:[#allocation3 + $0x28] sm:$0xff] %vm530_vm1, %v12891_v36  ;;  %s12938_s12 = smov 24   ;;  %vm962_vm7 = vcmask 326912   ;;  %vm1051_vm8 = vcmask 392512  }
  0x21   : > { %v9321_v0 = vld [vmem:[%s13101_s3] sm:$0xff]  ;;  %v9330_v3 = vld [vmem:[%s13101_s3 + $0x8] sm:$0xff]  ;;  %v9343_v7 = vld [vmem:[%s13101_s3 + $0x10] sm:$0xff]  ;;  %537 = vst.msk [vmem:[#allocation3 + $0x30] sm:$0xff] %vm530_vm1, %v12891_v36  ;;  %s12962_s21 = smov 48   ;;  %s13180_s20 = smov 16  }
  0x22   : > { %v392_v1 = vld [vmem:[%s13102_s1] sm:$0xff]  ;;  %v393_v4 = vld [vmem:[%s13102_s1 + $0x8] sm:$0xff]  ;;  %713 = vperm.xlu1 %8381, %v9321_v0   ;;  %895 = vperm.xlu0 %8384, %v9330_v3   ;;  %s357_s28 = scalar_lea.vmem %s13103_s0, %s8098_s25  ;;  %v9370_v22 = vld [vmem:[%s13101_s3 + $0x18] sm:$0xff]  ;;  %538 = vst.msk [vmem:[#allocation3 + $0x38] sm:$0xff] %vm530_vm1, %v12891_v36  ;;  %s12966_s25 = smov 64   ;;  %vm1140_vm9 = vcmask 458112  }
  0x23   : > { %v8152_v6 = vpack.c.bf16 %v393_v4, %v392_v1  ;;  %v367_v9 = vld [vmem:[%s357_s28] sm:$0xff]  ;;  %v368_v10 = vld [vmem:[%s357_s28 + $0x8] sm:$0xff]  ;;  %v369_v11 = vld [vmem:[%s357_s28 + $0x10] sm:$0xff]  ;;  %539 = vst.msk [vmem:[#allocation3 + $0x40] sm:$0xff] %vm530_vm1, %v12891_v36  ;;  %s13181_s26 = smov 24   ;;  %vm1229_vm10 = vcmask 523712  }
  0x24   : > { %376 = vst.msk [vmem:[#allocation2] sm:$0xff] %vm375_vm0, %v367_v9  ;;  %377 = vst.msk [vmem:[#allocation2 + $0x8] sm:$0xff] %vm375_vm0, %v368_v10  ;;  %v370_v12 = vld [vmem:[%s357_s28 + $0x18] sm:$0xff]  ;;  %v371_v13 = vld [vmem:[%s357_s28 + $0x20] sm:$0xff]  ;;  %vm1318_vm11 = vcmask 589312   ;;  %vm1469_vm12 = vcmask 588800  }
  0x25   : > { %8153 = vmatprep.subr.bf16.mxu1 %v8152_v6  ;;  %378 = vst.msk [vmem:[#allocation2 + $0x10] sm:$0xff] %vm375_vm0, %v369_v11  ;;  %v372_v14 = vld [vmem:[%s357_s28 + $0x28] sm:$0xff]  ;;  %379 = vst.msk [vmem:[#allocation2 + $0x18] sm:$0xff] %vm375_vm0, %v370_v12  ;;  %v373_v15 = vld [vmem:[%s357_s28 + $0x30] sm:$0xff]  ;;  %vm3415_vm13 = vcmask 1040384   ;;  %s13216_s0 = smov 64  }
  0x26   : > { %8155 = vmatpush3.bf16.msra.mxu1 %v8152_v6  ;;  %717 = vperm.xlu1 %8381, %v9330_v3   ;;  %380 = vst.msk [vmem:[#allocation2 + $0x20] sm:$0xff] %vm375_vm0, %v371_v13  ;;  %381 = vst.msk [vmem:[#allocation2 + $0x28] sm:$0xff] %vm375_vm0, %v372_v14  ;;  %v374_v16 = vld [vmem:[%s357_s28 + $0x38] sm:$0xff]  ;;  %v9378_v25 = vld [vmem:[%s13101_s3 + $0x20] sm:$0xff]  ;;  %s12942_s28 = smov 56   ;;  %s13221_s15 = smov 48  }
  0x27   : > { %899 = vperm.xlu0 %8384, %v9343_v7   ;;  %382 = vst.msk [vmem:[#allocation2 + $0x30] sm:$0xff] %vm375_vm0, %v373_v15  ;;  %383 = vst.msk [vmem:[#allocation2 + $0x38] sm:$0xff] %vm375_vm0, %v374_v16  ;;  %v9401_v32 = vld [vmem:[%s13101_s3 + $0x38] sm:$0xff]  ;;  %v9412_v34 = vld [vmem:[%s13101_s3 + $0x28] sm:$0xff]  ;;  %s13222_s22 = smov 32   ;;  %s9213_s27 = smov [#allocation6]  }
  0x28   : > { %v9429_v35 = vld [vmem:[%s13101_s3 + $0x30] sm:$0xff]  ;;  %540 = vst.msk [vmem:[#allocation3 + $0x48] sm:$0xff] %vm530_vm1, %v12891_v36  ;;  %541 = vst.msk [vmem:[#allocation3 + $0x50] sm:$0xff] %vm530_vm1, %v12891_v36  ;;  %v9510_v37 = vld [vmem:[#allocation3 + $0x7] sm:$0xff]  ;;  %s9132_s18 = sshll.u32 %s9213_s27, 4  ;;  %s9133_s18 = int_to_ptr.vmem [resolvable:$false] %s9132_s18 }
  0x29   : > { %542 = vst.msk [vmem:[#allocation3 + $0x58] sm:$0xff] %vm530_vm1, %v12891_v36  ;;  %3349 = vst [vmem:[#allocation5] sm:$0xff] %v12891_v36  ;;  %v9120_v54 = vld [vmem:[%s13101_s3 + $0x8] sm:$0xff] }
  0x2a   : > { %8382 = vset.pattern.permute.xlu1 %v9195_v17  ;;  %3351 = vst [vmem:[#allocation5 + $0x10] sm:$0xff] %v12891_v36  ;;  %3356 = vst.msk [vmem:[#allocation5 + $0x38] sm:$0xff] %vm375_vm0, %v12891_v36 }
  0x2b   : > { %8392 = vset.pattern.permute.xlu0 %v9196_v18  ;;  %806 = vperm.xlu1 %8382, %v9330_v3   ;;  %v384_v19 = vld [vmem:[#allocation2] sm:$0xff]  ;;  %v385_v20 = vld [vmem:[#allocation2 + $0x8] sm:$0xff]  ;;  %3358 = vst.msk [vmem:[#allocation5 + $0x48] sm:$0xff] %vm375_vm0, %v12891_v36  ;;  %3360 = vst.msk [vmem:[#allocation5 + $0x58] sm:$0xff] %vm375_vm0, %v12891_v36 }
  0x2c   : > { %1162 = vperm.xlu0 %8392, %v9330_v3   ;;  %v386_v21 = vld [vmem:[#allocation2 + $0x10] sm:$0xff]  ;;  %8124 = vmatprep.mubr.msk.f32.mxu1 %vm375_vm0, %v384_v19  ;;  %v387_v23 = vld [vmem:[#allocation2 + $0x18] sm:$0xff]  ;;  %3362 = vst.msk [vmem:[#allocation5 + $0x68] sm:$0xff] %vm375_vm0, %v12891_v36  ;;  %3364 = vst.msk [vmem:[#allocation5 + $0x78] sm:$0xff] %vm375_vm0, %v12891_v36 }
  0x2d   : > { %8125 = vmatmul.mubr.msk.f32.vlgmr.msra.gmra.mrb[0].mxu1 %vm375_vm0, %v385_v20  ;;  %v388_v24 = vld [vmem:[#allocation2 + $0x20] sm:$0xff]  ;;  %v389_v27 = vld [vmem:[#allocation2 + $0x28] sm:$0xff]  ;;  %3366 = vst.msk [vmem:[#allocation5 + $0x88] sm:$0xff] %vm375_vm0, %v12891_v36  ;;  %3368 = vst.msk [vmem:[#allocation5 + $0x98] sm:$0xff] %vm375_vm0, %v12891_v36 }
  0x2e   : > { %8127 = vmatprep.mubr.msk.f32.mxu1 %vm375_vm0, %v386_v21  ;;  %v390_v28 = vld [vmem:[#allocation2 + $0x30] sm:$0xff]  ;;  %v391_v29 = vld [vmem:[#allocation2 + $0x38] sm:$0xff]  ;;  %3369 = vst [vmem:[#allocation5 + $0xa0] sm:$0xff] %v12891_v36  ;;  %3370 = vst.msk [vmem:[#allocation5 + $0xa8] sm:$0xff] %vm375_vm0, %v12891_v36 }
  0x2f   : > { %8383 = vset.pattern.permute.xlu1 %v9193_v5  ;;  %3372 = vst.msk [vmem:[#allocation5 + $0xb8] sm:$0xff] %vm375_vm0, %v12891_v36  ;;  %6684 = vst [vmem:[#allocation5 + $0xb0] sm:$0xff] %v12891_v36  ;;  %v9121_v20 = vld [vmem:[%s13101_s3 + $0x10] sm:$0xff] }
  0x30   : > { %1166 = vperm.xlu0 %8392, %v9343_v7   ;;  %891 = vperm.xlu1 %8383, %v9321_v0   ;;  %4145 = vst.msk [vmem:[#allocation3] sm:$0xff] %vm530_vm1, %v12891_v36  ;;  %v9604_v4 = vld [vmem:[#allocation3 + $0x51] sm:$0xff]  ;;  %v9632_v16 = vld [vmem:[#allocation5] sm:$0x80] }
  0x31   : > { %8128 = vmatmul.mubr.msk.f32.gmra.mrb[2].mxu1 %vm375_vm0, %v387_v23  ;;  %13132 = vst [vmem:[#allocation39_spill] sm:$0xff] %v9604_v4  ;;  %4156 = vst.msk [vmem:[#allocation3 + $0x58] sm:$0xff] %vm530_vm1, %v12891_v36  ;;  %v9122_v23 = vld [vmem:[%s13101_s3 + $0x20] sm:$0xff] }
  0x32   : > { %8130 = vmatprep.mubr.msk.f32.mxu1 %vm375_vm0, %v388_v24  ;;  %13139 = vst [vmem:[#allocation46_spill] sm:$0xff] %v9632_v16  ;;  %6662 = vst [vmem:[#allocation5] sm:$0xff] %v12891_v36 }
  0x34   : > { %8396 = vset.pattern.permute.xlu0 %v9192_v2  ;;  %8385 = vset.pattern.permute.xlu1 %v9197_v26 }
  0x35   : > { %725 = vperm.xlu0 %8396, %v9370_v22   ;;  %980 = vperm.xlu1 %8385, %v9321_v0   ;;  %v9613_v9 = vld [vmem:[#allocation5 + $0xa8] sm:$0xff] }
  0x36   : > { %8131 = vmatmul.mubr.msk.f32.gmra.mrb[4].mxu1 %vm375_vm0, %v389_v27  ;;  %13134 = vst [vmem:[#allocation41_spill] sm:$0xff] %v9613_v9  ;;  %v3826_v10 = vld [vmem:[#allocation5 + $0xb8] sm:$0x1]  ;;  %6683 = vst.msk [vmem:[#allocation5 + $0xa8] sm:$0xff] %vm375_vm0, %v12891_v36 }
  0x37   : > { %8133 = vmatprep.mubr.msk.f32.mxu1 %vm375_vm0, %v390_v28  ;;  %6685 = vst.msk [vmem:[#allocation5 + $0xb8] sm:$0xff] %vm375_vm0, %v12891_v36  ;;  %v3851_v19 = vrot.slane %v3826_v10, 1  ;;  %v9123_v28 = vld [vmem:[%s13101_s3 + $0x38] sm:$0xff]  ;;  %s13217_s3 = smov 112  }
  0x39   : > { %729 = vperm.xlu0 %8396, %v9378_v25   ;;  %984 = vperm.xlu1 %8385, %v9330_v3  }
  0x3a   : > { %8134 = vmatmul.mubr.msk.f32.gmra.mrb[6].mxu1 %vm375_vm0, %v391_v29 }
  0x3b   : > { %1527 = vmatprep.mubr.bf16.mxu1 %v12889_v8 }
  0x3d   : > { %8400 = vset.pattern.permute.xlu0 %v9198_v30  ;;  %8386 = vset.pattern.permute.xlu1 %v9199_v31 }
  0x3e   : > { %1073 = vperm.xlu1 %8386, %v9330_v3   ;;  %624 = vperm.xlu0 %8400, %v9321_v0  }
  0x42   : > { %8387 = vset.pattern.permute.xlu1 %v9196_v18  ;;  %628 = vperm.xlu0 %8400, %v9330_v3  }
  0x43   : > { %1158 = vperm.xlu1 %8387, %v9321_v0  }
  0x46   : > { %632 = vperm.xlu0 %8400, %v9343_v7  }
  0x47   : > { %8388 = vset.pattern.permute.xlu1 %v9200_v33 }
  0x48   : > { %1247 = vperm.xlu1 %8388, %v9321_v0  }
  0x4a   : > { %652 = vperm.xlu0 %8400, %v9401_v32  }
  0x4c   : > { %1251 = vperm.xlu1 %8388, %v9330_v3  }
  0x4e   : > { %8409 = vset.pattern.permute.xlu0 %v9195_v17 }
  0x4f   : > { %802 = vperm.xlu0 %8409, %v9321_v0  }
  0x50   : > { %8389 = vset.pattern.permute.xlu1 %v9198_v30 }
  0x51   : > { %636 = vperm.xlu1 %8389, %v9370_v22  }
  0x53   : > { %822 = vperm.xlu0 %8409, %v9412_v34  }
  0x55   : > { %8390 = vset.pattern.permute.xlu1 %v9192_v2 }
  0x56   : > { %721 = vperm.xlu1 %8390, %v9343_v7  }
  0x57   : > { %830 = vperm.xlu0 %8409, %v9401_v32  }
  0x5a   : > { %8391 = vset.pattern.permute.xlu1 %v9195_v17 }
  0x5b   : > { %810 = vperm.xlu1 %8391, %v9343_v7   ;;  %8413 = vset.pattern.permute.xlu0 %v9197_v26 }
  0x5c   : > { %992 = vperm.xlu0 %8413, %v9370_v22  }
  0x5f   : > { %814 = vperm.xlu1 %8391, %v9370_v22  }
  0x60   : > { %996 = vperm.xlu0 %8413, %v9378_v25  }
  0x63   : > { %8393 = vset.pattern.permute.xlu1 %v9193_v5 }
  0x64   : > { %903 = vperm.xlu1 %8393, %v9370_v22   ;;  %1004 = vperm.xlu0 %8413, %v9429_v35  }
  0x68   : > { %8394 = vset.pattern.permute.xlu1 %v9197_v26  ;;  %8415 = vset.pattern.permute.xlu0 %v9199_v31 }
  0x69   : > { %988 = vperm.xlu1 %8394, %v9343_v7   ;;  %1069 = vperm.xlu0 %8415, %v9321_v0  }
  0x6d   : > { %8395 = vset.pattern.permute.xlu1 %v9199_v31  ;;  %1089 = vperm.xlu0 %8415, %v9412_v34  }
  0x6e   : > { %1077 = vperm.xlu1 %8395, %v9343_v7  }
  0x71   : > { %1097 = vperm.xlu0 %8415, %v9401_v32  }
  0x72   : > { %1081 = vperm.xlu1 %8395, %v9370_v22  }
  0x75   : > { %8418 = vset.pattern.permute.xlu0 %v9200_v33 }
  0x76   : > { %8397 = vset.pattern.permute.xlu1 %v9196_v18  ;;  %1259 = vperm.xlu0 %8418, %v9370_v22  }
  0x77   : > { %1170 = vperm.xlu1 %8397, %v9370_v22  }
  0x7a   : > { %1263 = vperm.xlu0 %8418, %v9378_v25  }
  0x7b   : > { %8398 = vset.pattern.permute.xlu1 %v9200_v33 }
  0x7c   : > { %1255 = vperm.xlu1 %8398, %v9343_v7   ;;  %v615_v7 = vld [vmem:[#allocation3 + $0x8] sm:$0xff] }
  0x7e   : > { %1271 = vperm.xlu0 %8418, %v9429_v35  }
  0x80   : > { %8399 = vset.pattern.permute.xlu1 %v9198_v30 }
  0x81   : > { %640 = vperm.xlu1 %8399, %v9378_v25  }
  0x82   : > { %8420 = vset.pattern.permute.xlu0 %v12889_v8 }
  0x83   : > { %561 = vperm.xlu0 %8420, %v9321_v0  }
  0x85   : > { %644 = vperm.xlu1 %8399, %v9412_v34  }
  0x87   : > { %576 = vperm.xlu0 %8420, %v9370_v22  }
  0x89   : > { %8401 = vset.pattern.permute.xlu1 %v9192_v2 }
  0x8a   : > { %733 = vperm.xlu1 %8401, %v9412_v34  }
  0x8b   : > { %591 = vperm.xlu0 %8420, %v9429_v35  }
  0x8e   : > { %8402 = vset.pattern.permute.xlu1 %v9195_v17 }
  0x8f   : > { %818 = vperm.xlu1 %8402, %v9378_v25   ;;  %8423 = vset.pattern.permute.xlu0 %v9200_v33 }
  0x93   : > { %8403 = vset.pattern.permute.xlu1 %v9193_v5 }
  0x94   : > { %907 = vperm.xlu1 %8403, %v9378_v25  }
  0x98   : > { %911 = vperm.xlu1 %8403, %v9412_v34  }
  0x9c   : > { %8404 = vset.pattern.permute.xlu1 %v9197_v26 }
  0x9d   : > { %1000 = vperm.xlu1 %8404, %v9412_v34  }
  0xa1   : > { %8405 = vset.pattern.permute.xlu1 %v9199_v31  ;;  %v9520_v38 = vpop.permute.xlu1 %713  ;;  %v9522_v39 = vpop.permute.xlu0 %895 }
  0xa2   : > { %13104 = vst [vmem:[#allocation11_spill] sm:$0xff] %v9520_v38  ;;  %13105 = vst [vmem:[#allocation12_spill] sm:$0xff] %v9522_v39  ;;  %1085 = vperm.xlu1 %8405, %v9378_v25  }
  0xa5   : > { %v9528_v41 = vpop.permute.xlu1 %717 }
  0xa6   : > { %v9525_v40 = vpop.permute.xlu0 %899  ;;  %8406 = vset.pattern.permute.xlu1 %v9196_v18  ;;  %13107 = vst [vmem:[#allocation14_spill] sm:$0xff] %v9528_v41 }
  0xa7   : > { %13106 = vst [vmem:[#allocation13_spill] sm:$0xff] %v9525_v40  ;;  %1174 = vperm.xlu1 %8406, %v9378_v25  }
  0xaa   : > { %v9531_v42 = vpop.permute.xlu1 %806 }
  0xab   : > { %13108 = vst [vmem:[#allocation15_spill] sm:$0xff] %v9531_v42  ;;  %v9533_v43 = vpop.permute.xlu0 %1162  ;;  %1178 = vperm.xlu1 %8406, %v9412_v34  }
  0xac   : > { %13109 = vst [vmem:[#allocation16_spill] sm:$0xff] %v9533_v43 }
  0xaf   : > { %v9536_v44 = vpop.permute.xlu0 %1166  ;;  %8407 = vset.pattern.permute.xlu1 %v9200_v33  ;;  %v9539_v45 = vpop.permute.xlu1 %891 }
  0xb0   : > { %13110 = vst [vmem:[#allocation17_spill] sm:$0xff] %v9539_v45  ;;  %1267 = vperm.xlu1 %8407, %v9412_v34  }
  0xb4   : > { %v9542_v46 = vpop.permute.xlu0 %725  ;;  %8408 = vset.pattern.permute.xlu1 %v9198_v30  ;;  %v9545_v47 = vpop.permute.xlu1 %980 }
  0xb5   : > { %13111 = vst [vmem:[#allocation18_spill] sm:$0xff] %v9542_v46  ;;  %13112 = vst [vmem:[#allocation19_spill] sm:$0xff] %v9545_v47  ;;  %648 = vperm.xlu1 %8408, %v9429_v35  }
  0xb8   : > { %v9548_v48 = vpop.permute.xlu0 %729  ;;  %v9551_v49 = vpop.permute.xlu1 %984 }
  0xb9   : > { %13113 = vst [vmem:[#allocation20_spill] sm:$0xff] %v9548_v48  ;;  %8410 = vset.pattern.permute.xlu1 %v9192_v2  ;;  %13114 = vst [vmem:[#allocation21_spill] sm:$0xff] %v9551_v49 }
  0xba   : > { %737 = vperm.xlu1 %8410, %v9429_v35  }
  0xbd   : > { %v9554_v50 = vpop.permute.xlu1 %1073  ;;  %v9556_v51 = vpop.permute.xlu0 %624 }
  0xbe   : > { %13115 = vst [vmem:[#allocation22_spill] sm:$0xff] %v9554_v50  ;;  %13116 = vst [vmem:[#allocation23_spill] sm:$0xff] %v9556_v51  ;;  %741 = vperm.xlu1 %8410, %v9401_v32   ;;  %v655_v13 = vmul.f32 %v9556_v51, %v615_v7 }
  0xc1   : > { %v9559_v52 = vpop.permute.xlu0 %628 }
  0xc2   : > { %13117 = vst [vmem:[#allocation24_spill] sm:$0xff] %v9559_v52  ;;  %8411 = vset.pattern.permute.xlu1 %v12889_v8  ;;  %v9562_v53 = vpop.permute.xlu1 %1158 }
  0xc3   : > { %13118 = vst [vmem:[#allocation25_spill] sm:$0xff] %v9562_v53  ;;  %566 = vperm.xlu1 %8411, %v9120_v54  }
  0xc5   : > { %v9567_v55 = vpop.permute.xlu0 %632 }
  0xc6   : > { %13119 = vst [vmem:[#allocation26_spill] sm:$0xff] %v9567_v55 }
  0xc7   : > { %8412 = vset.pattern.permute.xlu1 %v9195_v17  ;;  %v9570_v56 = vpop.permute.xlu1 %1247 }
  0xc8   : > { %13120 = vst [vmem:[#allocation27_spill] sm:$0xff] %v9570_v56  ;;  %826 = vperm.xlu1 %8412, %v9429_v35  }
  0xc9   : > { %v9573_v57 = vpop.permute.xlu0 %652 }
  0xca   : > { %13121 = vst [vmem:[#allocation28_spill] sm:$0xff] %v9573_v57 }
  0xcb   : > { %v9576_v58 = vpop.permute.xlu1 %1251 }
  0xcc   : > { %8414 = vset.pattern.permute.xlu1 %v9193_v5  ;;  %13122 = vst [vmem:[#allocation29_spill] sm:$0xff] %v9576_v58 }
  0xcd   : > { %915 = vperm.xlu1 %8414, %v9429_v35  }
  0xce   : > { %v9579_v59 = vpop.permute.xlu0 %802 }
  0xcf   : > { %13123 = vst [vmem:[#allocation30_spill] sm:$0xff] %v9579_v59 }
  0xd0   : > { %v9581_v60 = vpop.permute.xlu1 %636 }
  0xd1   : > { %13124 = vst [vmem:[#allocation31_spill] sm:$0xff] %v9581_v60  ;;  %919 = vperm.xlu1 %8414, %v9401_v32  }
  0xd2   : > { %v9584_v61 = vpop.permute.xlu0 %822 }
  0xd3   : > { %13125 = vst [vmem:[#allocation32_spill] sm:$0xff] %v9584_v61 }
  0xd5   : > { %8416 = vset.pattern.permute.xlu1 %v9197_v26  ;;  %v9587_v62 = vpop.permute.xlu1 %721 }
  0xd6   : > { %13126 = vst [vmem:[#allocation33_spill] sm:$0xff] %v9587_v62  ;;  %1008 = vperm.xlu1 %8416, %v9401_v32   ;;  %v9590_v63 = vpop.permute.xlu0 %830 }
  0xd7   : > { %13127 = vst [vmem:[#allocation34_spill] sm:$0xff] %v9590_v63 }
  0xda   : > { %8417 = vset.pattern.permute.xlu1 %v9199_v31  ;;  %v9593_v0 = vpop.permute.xlu1 %810  ;;  %v7408_v31 = vld [vmem:[%s13148_s2] ss:$0 sm:$0xff] }
  0xdb   : > { %13128 = vst [vmem:[#allocation35_spill] sm:$0xff] %v9593_v0  ;;  %1093 = vperm.xlu1 %8417, %v9429_v35   ;;  %v9596_v1 = vpop.permute.xlu0 %992 }
  0xdc   : > { %13129 = vst [vmem:[#allocation36_spill] sm:$0xff] %v9596_v1 }
  0xde   : > { %v9599_v2 = vpop.permute.xlu1 %814 }
  0xdf   : > { %8419 = vset.pattern.permute.xlu1 %v9196_v18  ;;  %13130 = vst [vmem:[#allocation37_spill] sm:$0xff] %v9599_v2  ;;  %v9601_v3 = vpop.permute.xlu0 %996  ;;  %v12888_v18 = vrot.slane %v9613_v9, 1 }
  0xe0   : > { %13131 = vst [vmem:[#allocation38_spill] sm:$0xff] %v9601_v3  ;;  %1182 = vperm.xlu1 %8419, %v9429_v35  }
  0xe1   : > { %v9646_v22 = vsel %vm3511_vm2, %v12888_v18, %v3851_v19 }
  0xe2   : > { %13142 = vst [vmem:[#allocation49_spill] sm:$0xff] %v9646_v22 }
  0xe3   : > { %v9608_v5 = vpop.permute.xlu1 %903  ;;  %v9610_v6 = vpop.permute.xlu0 %1004 }
  0xe4   : > { %13133 = vst [vmem:[#allocation40_spill] sm:$0xff] %v9610_v6  ;;  %1186 = vperm.xlu1 %8419, %v9401_v32  }
  0xe8   : > { %8421 = vset.pattern.permute.xlu1 %v9200_v33  ;;  %v9616_v11 = vpop.permute.xlu1 %988  ;;  %v9618_v12 = vpop.permute.xlu0 %1069 }
  0xe9   : > { %13135 = vst [vmem:[#allocation42_spill] sm:$0xff] %v9616_v11  ;;  %13136 = vst [vmem:[#allocation43_spill] sm:$0xff] %v9618_v12  ;;  %1275 = vperm.xlu1 %8421, %v9401_v32  }
  0xec   : > { %v9626_v14 = vpop.permute.xlu0 %1089 }
  0xed   : > { %13137 = vst [vmem:[#allocation44_spill] sm:$0xff] %v9626_v14  ;;  %671 = vrot.lane.b32.xlu1 %v655_v13, %s12936_s30  ;;  %v9629_v15 = vpop.permute.xlu1 %1077 }
  0xee   : > { %13138 = vst [vmem:[#allocation45_spill] sm:$0xff] %v9629_v15  ;;  %8422 = vset.pattern.permute.xlu1 %v12889_v8 }
  0xf0   : > { %v9634_v17 = vpop.permute.xlu0 %1097 }
  0xf1   : > { %13140 = vst [vmem:[#allocation47_spill] sm:$0xff] %v9634_v17  ;;  %571 = vperm.xlu1 %8422, %v9121_v20   ;;  %v9641_v21 = vpop.permute.xlu1 %1081 }
  0xf2   : > { %13141 = vst [vmem:[#allocation48_spill] sm:$0xff] %v9641_v21 }
  0xf5   : > { %581 = vperm.xlu1 %8422, %v9122_v23   ;;  %v9651_v24 = vpop.permute.xlu0 %1259 }
  0xf6   : > { %13143 = vst [vmem:[#allocation50_spill] sm:$0xff] %v9651_v24  ;;  %v9653_v25 = vpop.permute.xlu1 %1170 }
  0xf7   : > { %13144 = vst [vmem:[#allocation51_spill] sm:$0xff] %v9653_v25 }
  0xf9   : > { %586 = vperm.xlu1 %8422, %v9412_v34   ;;  %v9656_v26 = vpop.permute.xlu0 %1263 }
  0xfa   : > { %13145 = vst [vmem:[#allocation52_spill] sm:$0xff] %v9656_v26  ;;  %v8432_v26 = vld [vmem:[%s12881_s4 + $0x24] ss:$16 sps:$4 sm:$0xff]  }
  0xfb   : > { %v9658_v27 = vpop.permute.xlu1 %1255 }
  0xfc   : > { %13146 = vst [vmem:[#allocation53_spill] sm:$0xff] %v9658_v27 }
  0xfd   : > { %596 = vperm.xlu1 %8422, %v9123_v28   ;;  %v9663_v29 = vpop.permute.xlu0 %1271 }
  0xfe   : > { %13147 = vst [vmem:[#allocation54_spill] sm:$0xff] %v9663_v29 }
 0x100   : > { %v9665_v30 = vpop.permute.xlu1 %640  ;;  %v8126_v34 = vpop.f32.mrb[0].mxu1 }
 0x101   : > { %v9674_v35 = vadd.f32 %v8126_v34, %v7408_v31  ;;  %v491_v54 = vpop.f32.mrb[1].mxu1 }
 0x102   : > { %v9670_v32 = vpop.permute.xlu0 %561  ;;  %v9679_v10 = vadd.f32 %v7408_v31, %v491_v54 }
 0x103   : > { %13149 = vst [vmem:[#allocation55_spill] sm:$0xff] %v9670_v32  ;;  %v599_v33 = vmul.f32 %v9670_v32, %v9510_v37  ;;  %13150 = vst [vmem:[#allocation56_spill] sm:$0xff] %v9674_v35 }
 0x104   : > { %v9676_v7 = vpop.permute.xlu1 %644  ;;  %13152 = vst [vmem:[#allocation58_spill] sm:$0xff] %v9679_v10  ;;  %544 = vst.msk [vmem:[#allocation3 + $0x18] sm:$0xff] %vm530_vm1, %v9674_v35  ;;  %v8129_v37 = vpop.f32.mrb[2].mxu1 }
 0x105   : > { %13151 = vst [vmem:[#allocation57_spill] sm:$0xff] %v9676_v7  ;;  %607 = vst.msk [vmem:[#allocation4] sm:$0xff] %vm530_vm1, %v599_v33  ;;  %v9689_v13 = vadd.f32 %v8129_v37, %v7408_v31  ;;  %v501_v19 = vpop.f32.mrb[3].mxu1 }
 0x106   : > { %3934 = vst.msk [vmem:[#allocation2 + $0x8] sm:$0xff] %vm530_vm1, %v9674_v35  ;;  %543 = vst.msk [vmem:[#allocation3 + $0x10] sm:$0xff] %vm530_vm1, %v9679_v10  ;;  %v9693_v23 = vadd.f32 %v7408_v31, %v501_v19 }
 0x107   : > { %3933 = vst.msk [vmem:[#allocation2] sm:$0xff] %vm530_vm1, %v9679_v10  ;;  %13153 = vst [vmem:[#allocation59_spill] sm:$0xff] %v9689_v13 }
 0x108   : > { %13155 = vst [vmem:[#allocation61_spill] sm:$0xff] %v9693_v23  ;;  %546 = vst.msk [vmem:[#allocation3 + $0x28] sm:$0xff] %vm530_vm1, %v9689_v13 }
 0x109   : > { %v9691_v20 = vpop.permute.xlu1 %733  ;;  %3936 = vst.msk [vmem:[#allocation2 + $0x18] sm:$0xff] %vm530_vm1, %v9689_v13  ;;  %545 = vst.msk [vmem:[#allocation3 + $0x20] sm:$0xff] %vm530_vm1, %v9693_v23  ;;  %v8132_v28 = vpop.f32.mrb[4].mxu1 }
 0x10a   : > { %13154 = vst [vmem:[#allocation60_spill] sm:$0xff] %v9691_v20  ;;  %3935 = vst.msk [vmem:[#allocation2 + $0x10] sm:$0xff] %vm530_vm1, %v9693_v23  ;;  %v9703_v33 = vadd.f32 %v8132_v28, %v7408_v31  ;;  %v511_v34 = vpop.f32.mrb[5].mxu1 }
 0x10b   : > { %v9705_v54 = vadd.f32 %v7408_v31, %v511_v34  ;;  %v1149_v37 = vld [vmem:[#allocation3 + $0x18] sm:$0xff] }
 0x10c   : > { %13156 = vst [vmem:[#allocation62_spill] sm:$0xff] %v9703_v33  ;;  %548 = vst.msk [vmem:[#allocation3 + $0x38] sm:$0xff] %vm530_vm1, %v9703_v33  ;;  %v1189_v18 = vmul.f32 %v9562_v53, %v1149_v37  ;;  %v923_v8 = vmul.f32 %v1149_v37, %v9522_v39 }
 0x10d   : > { %13157 = vst [vmem:[#allocation63_spill] sm:$0xff] %v9705_v54  ;;  %3938 = vst.msk [vmem:[#allocation2 + $0x28] sm:$0xff] %vm530_vm1, %v9703_v33  ;;  %v704_v36 = vld [vmem:[#allocation3 + $0x9] sm:$0xff]  ;;  %v8135_v28 = vpop.f32.mrb[6].mxu1  ;;  %v9721_v23 = vld [vmem:[#allocation3 + $0x11] sm:$0xff]  ;;  %v13159_v33 = vmov 0.0  }
 0x10e   : > { %v9707_v19 = vpop.permute.xlu1 %818  ;;  %v9715_v13 = vld [vmem:[#allocation3 + $0xf] sm:$0xff]  ;;  %547 = vst.msk [vmem:[#allocation3 + $0x30] sm:$0xff] %vm530_vm1, %v9705_v54  ;;  %3937 = vst.msk [vmem:[#allocation2 + $0x20] sm:$0xff] %vm530_vm1, %v9705_v54  ;;  %v9723_v35 = vld [vmem:[#allocation3 + $0x17] sm:$0xff]  ;;  %v9727_v10 = vadd.f32 %v8135_v28, %v7408_v31  ;;  %1205 = vrot.lane.b32.xlu1 %v1189_v18, %s12942_s28  ;;  %940 = vrot.lane.b32.xlu0 %v923_v8, %s12958_s29  ;;  %v521_v22 = vpop.f32.mrb[7].mxu1  ;;  %v657_v28 = vmul.f32 %v1149_v37, %v9567_v55 }
 0x10f   : > { %13158 = vst [vmem:[#allocation64_spill] sm:$0xff] %v9707_v19  ;;  %v616_v34 = vld [vmem:[#allocation3 + $0x10] sm:$0xff]  ;;  %4146 = vst.msk [vmem:[#allocation3 + $0x8] sm:$0xff] %vm530_vm1, %v13159_v33  ;;  %v9733_v54 = vadd.f32 %v7408_v31, %v521_v22  ;;  %v744_v16 = vmul.f32 %v9520_v38, %v704_v36  ;;  %v9751_v22 = vpop.permute.xlu0 %576  ;;  %v9770_v39 = vld [vmem:[#allocation3 + $0x28] sm:$0xff]  ;;  %v1011_v63 = vmul.f32 %v9545_v47, %v9721_v23 }
 0x110   : > { %13160 = vst [vmem:[#allocation65_spill] sm:$0xff] %v9727_v10  ;;  %4147 = vst.msk [vmem:[#allocation3 + $0x10] sm:$0xff] %vm530_vm1, %v13159_v33  ;;  %v9743_v9 = vld [vmem:[#allocation3 + $0x19] sm:$0xff]  ;;  %v9757_v37 = vld [vmem:[#allocation3 + $0x27] sm:$0xff]  ;;  %v656_v38 = vmul.f32 %v9559_v52, %v616_v34 }
 0x111   : > { %13161 = vst [vmem:[#allocation66_spill] sm:$0xff] %v9733_v54  ;;  %550 = vst.msk [vmem:[#allocation3 + $0x48] sm:$0xff] %vm530_vm1, %v9727_v10  ;;  %v9745_v8 = vld [vmem:[#allocation3 + $0x1f] sm:$0xff]  ;;  %v9765_v36 = vld [vmem:[#allocation3 + $0x50] sm:$0xff] }
 0x112   : > { %3940 = vst.msk [vmem:[#allocation2 + $0x38] sm:$0xff] %vm530_vm1, %v9727_v10  ;;  %549 = vst.msk [vmem:[#allocation3 + $0x40] sm:$0xff] %vm530_vm1, %v9733_v54  ;;  %v9753_v31 = vld [vmem:[#allocation3 + $0x20] sm:$0xff]  ;;  %675 = vrot.lane.b32.xlu0 %v657_v28, %s12936_s30  ;;  %760 = vrot.lane.b32.xlu1 %v744_v16, %s12934_s11  ;;  %v602_v28 = vmul.f32 %v9745_v8, %v9751_v22 }
 0x113   : > { %v9741_v18 = vpop.permute.xlu1 %907  ;;  %3939 = vst.msk [vmem:[#allocation2 + $0x30] sm:$0xff] %vm530_vm1, %v9733_v54  ;;  %13163 = vst [vmem:[#allocation68_spill] sm:$0xff] %v9751_v22  ;;  %v9755_v10 = vld [vmem:[#allocation3 + $0x21] sm:$0xff]  ;;  %v833_v54 = vmul.f32 %v9579_v59, %v9715_v13  ;;  %v9790_v59 = vld [vmem:[#allocation3 + $0x38] sm:$0xff]  ;;  %v9804_v6 = vpop.permute.xlu0 %591 }
 0x114   : > { %13162 = vst [vmem:[#allocation67_spill] sm:$0xff] %v9741_v18  ;;  %4148 = vst.msk [vmem:[#allocation3 + $0x18] sm:$0xff] %vm530_vm1, %v13159_v33 }
 0x115   : > { %4149 = vst.msk [vmem:[#allocation3 + $0x20] sm:$0xff] %vm530_vm1, %v13159_v33  ;;  %13164 = vst [vmem:[#allocation69_spill] sm:$0xff] %v9765_v36  ;;  %v9772_v55 = vld [vmem:[#allocation3 + $0x29] sm:$0xff]  ;;  %v9782_v51 = vld [vmem:[#allocation3 + $0x31] sm:$0xff]  ;;  %v922_v36 = vmul.f32 %v9539_v45, %v616_v34 }
 0x116   : > { %v9774_v53 = vld [vmem:[#allocation3 + $0x2f] sm:$0xff]  ;;  %v9784_v29 = vld [vmem:[#allocation3 + $0x37] sm:$0xff]  ;;  %849 = vrot.lane.b32.xlu1 %v833_v54, %s12938_s12  ;;  %673 = vrot.lane.b32.xlu0 %v656_v38, %s12936_s30  ;;  %610 = vst.msk [vmem:[#allocation4 + $0x18] sm:$0xff] %vm530_vm1, %v602_v28  ;;  %v745_v54 = vmul.f32 %v9528_v41, %v9721_v23  ;;  %13169 = vst [vmem:[#allocation74_spill] sm:$0xff] %v9804_v6  ;;  %v1100_v23 = vmul.f32 %v9618_v12, %v9723_v35  ;;  %s13174_s30 = smov 40  }
 0x117   : > { %v9778_v16 = vpop.permute.xlu1 %911  ;;  %v9780_v32 = vld [vmem:[#allocation3 + $0x30] sm:$0xff]  ;;  %4150 = vst.msk [vmem:[#allocation3 + $0x28] sm:$0xff] %vm530_vm1, %v13159_v33  ;;  %v8427_v45 = vld [vmem:[%s12881_s4 + $0xc] ss:$16 sps:$4 sm:$0xff]  }
 0x118   : > { %13165 = vst [vmem:[#allocation70_spill] sm:$0xff] %v9778_v16  ;;  %4151 = vst.msk [vmem:[#allocation3 + $0x30] sm:$0xff] %vm530_vm1, %v13159_v33  ;;  %v9795_v22 = vld [vmem:[#allocation3 + $0x48] sm:$0xff]  ;;  %v8424_v34 = vld [vmem:[%s12881_s4] ss:$16 sps:$4 sm:$0xff]   ;;  %1568 = vmatprep.subr.bf16.mxu0 %v8427_v45 }
 0x119   : > { %13166 = vst [vmem:[#allocation71_spill] sm:$0xff] %v9795_v22  ;;  %v9797_v52 = vld [vmem:[#allocation3 + $0x49] sm:$0xff]  ;;  %v9806_v38 = vld [vmem:[#allocation3 + $0x39] sm:$0xff]  ;;  %v8426_v41 = vld [vmem:[%s12881_s4 + $0x4] ss:$16 sps:$4 sm:$0xff]  }
 0x11a   : > { %13167 = vst [vmem:[#allocation72_spill] sm:$0xff] %v9797_v52  ;;  %v9799_v4 = vld [vmem:[#allocation3 + $0x4f] sm:$0xff]  ;;  %v9808_v17 = vld [vmem:[#allocation3 + $0x3f] sm:$0xff]  ;;  %938 = vrot.lane.b32.xlu1 %v922_v36, %s12958_s29  ;;  %762 = vrot.lane.b32.xlu0 %v745_v54, %s12934_s11  ;;  %v8429_v36 = vld [vmem:[%s12881_s4 + $0x8] ss:$16 sps:$4 sm:$0xff]   ;;  %v605_v54 = vmul.f32 %v9784_v29, %v9804_v6  ;;  %s12940_s11 = smov 40  }
 0x11b   : > { %13168 = vst [vmem:[#allocation73_spill] sm:$0xff] %v9799_v4  ;;  %v9810_v28 = vld [vmem:[#allocation3 + $0x40] sm:$0xff]  ;;  %4155 = vst.msk [vmem:[#allocation3 + $0x50] sm:$0xff] %vm530_vm1, %v13159_v33  ;;  %1495 = vmatprep.subr.bf16.mxu1 %v8426_v41  ;;  %1569 = vmatpush1.bf16.msra.mxu0 %v8429_v36  ;;  %v8433_v6 = vld [vmem:[%s12881_s4 + $0x2c] ss:$16 sps:$4 sm:$0xff]  }
 0x11c   : > { %v9814_v22 = vpop.permute.xlu1 %1000  ;;  %v9816_v52 = vld [vmem:[#allocation3 + $0x41] sm:$0xff]  ;;  %4152 = vst.msk [vmem:[#allocation3 + $0x38] sm:$0xff] %vm530_vm1, %v13159_v33  ;;  %1496 = vmatpush1.bf16.msra.mxu1 %v8424_v34  ;;  %613 = vst.msk [vmem:[#allocation4 + $0x30] sm:$0xff] %vm530_vm1, %v605_v54  ;;  %1570 = vmatprep.subr.bf16.mxu0 %v8433_v6  ;;  %v1191_v34 = vmul.f32 %v9536_v44, %v9770_v39  ;;  %v8439_v6 = vld [vmem:[%s12881_s4 + $0x4c] ss:$16 sps:$4 sm:$0xff]   ;;  %v925_v54 = vmul.f32 %v9770_v39, %v9608_v5 }
 0x11d   : > { %13170 = vst [vmem:[#allocation75_spill] sm:$0xff] %v9814_v22  ;;  %v9818_v4 = vld [vmem:[#allocation3 + $0x47] sm:$0xff]  ;;  %1497 = vmatprep.subr.bf16.mxu1 %v8432_v26 }
 0x11e   : > { %13171 = vst [vmem:[#allocation76_spill] sm:$0xff] %v9818_v4  ;;  %4154 = vst.msk [vmem:[#allocation3 + $0x48] sm:$0xff] %vm530_vm1, %v13159_v33  ;;  %v834_v4 = vmul.f32 %v9531_v42, %v9723_v35  ;;  %1027 = vrot.lane.b32.xlu1 %v1011_v63, %s12940_s11  ;;  %v8435_v45 = vld [vmem:[%s12881_s4 + $0x28] ss:$16 sps:$4 sm:$0xff]   ;;  %v8436_v63 = vld [vmem:[%s12881_s4 + $0x40] ss:$16 sps:$4 sm:$0xff]  }
 0x11f   : > { %4153 = vst.msk [vmem:[#allocation3 + $0x40] sm:$0xff] %vm530_vm1, %v13159_v33  ;;  %v8430_v33 = vld [vmem:[%s12881_s4 + $0x20] ss:$16 sps:$4 sm:$0xff]   ;;  %1571 = vmatpush1.bf16.msra.mxu0 %v8435_v45  ;;  %v8441_v26 = vld [vmem:[%s12881_s4 + $0x48] ss:$16 sps:$4 sm:$0xff]   ;;  %s13177_s11 = smov 8  }
 0x120   : > { %851 = vrot.lane.b32.xlu0 %v834_v4, %s12938_s12  ;;  %1498 = vmatpush1.bf16.msra.mxu1 %v8430_v33  ;;  %v8438_v4 = vld [vmem:[%s12881_s4 + $0x44] ss:$16 sps:$4 sm:$0xff]   ;;  %v1012_v33 = vmul.f32 %v9551_v49, %v9743_v9  ;;  %v8442_v45 = vld [vmem:[%s12881_s4 + $0x60] ss:$16 sps:$4 sm:$0xff]   ;;  %s13178_s12 = smov 56  }
 0x121   : > { %v9858_v41 = vpop.permute.xlu1 %1085  ;;  %1499 = vmatprep.subr.bf16.mxu1 %v8438_v4  ;;  %1572 = vmatprep.subr.bf16.mxu0 %v8439_v6  ;;  %v1278_v6 = vmul.f32 %v9570_v56, %v9743_v9 }
 0x122   : > { %13172 = vst [vmem:[#allocation77_spill] sm:$0xff] %v9858_v41  ;;  %1116 = vrot.lane.b32.xlu1 %v1100_v23, %s12962_s21  ;;  %v8444_v23 = vld [vmem:[%s12881_s4 + $0x64] ss:$16 sps:$4 sm:$0xff]  }
 0x123   : > { %1573 = vmatpush1.bf16.msra.mxu0 %v8441_v26  ;;  %v1101_v26 = vmul.f32 %v9554_v50, %v9745_v8 }
 0x124   : > { %1209 = vrot.lane.b32.xlu0 %v1191_v34, %s12942_s28  ;;  %1500 = vmatpush1.bf16.msra.mxu1 %v8436_v63  ;;  %v8445_v34 = vld [vmem:[%s12881_s4 + $0x6c] ss:$16 sps:$4 sm:$0xff]   ;;  %v8447_v63 = vld [vmem:[%s12881_s4 + $0x68] ss:$16 sps:$4 sm:$0xff]   ;;  %s13030_s28 = smov 80  }
 0x125   : > { %1501 = vmatprep.subr.bf16.mxu1 %v8444_v23  ;;  %1574 = vmatprep.subr.bf16.mxu0 %v8445_v34 }
 0x126   : > { %v9881_v36 = vpop.permute.xlu1 %1174  ;;  %944 = vrot.lane.b32.xlu1 %v925_v54, %s12958_s29  ;;  %v1355_v54 = vld [vmem:[%s12881_s4 + $0x80] sm:$0xff] }
 0x127   : > { %13173 = vst [vmem:[#allocation78_spill] sm:$0xff] %v9881_v36  ;;  %1575 = vmatpush1.bf16.msra.mxu0 %v8447_v63  ;;  %v7434_v23 = vcombine.high %v1355_v54, %v1355_v54  ;;  %v7433_v49 = vcombine.low %v1355_v54, %v1355_v54  ;;  %v1190_v63 = vmul.f32 %v9533_v43, %v9753_v31 }
 0x128   : > { %1029 = vrot.lane.b32.xlu0 %v1012_v33, %s13174_s30  ;;  %1502 = vmatpush1.bf16.msra.mxu1 %v8442_v45  ;;  %v1356_v33 = vld [vmem:[%s12881_s4 + $0x88] sm:$0xff]  ;;  %v658_v45 = vmul.f32 %v9581_v60, %v9753_v31  ;;  %v747_v54 = vmul.f32 %v9542_v46, %v9755_v10 }
 0x129   : > { %v7436_v34 = vcombine.high %v1356_v33, %v1356_v33  ;;  %v7435_v50 = vcombine.low %v1356_v33, %v1356_v33  ;;  %7437 = vmatprep.subr.msk.bf16.mxu1 %vm1482_vm3, %v7434_v23  ;;  %v1279_v33 = vmul.f32 %v9576_v58, %v9755_v10  ;;  %v1014_v23 = vmul.f32 %v9596_v1, %v9772_v55 }
 0x12a   : > { %v9901_v4 = vpop.permute.xlu1 %1178  ;;  %1294 = vrot.lane.b32.xlu1 %v1278_v6, %s12966_s25 }
 0x12b   : > { %13175 = vst [vmem:[#allocation79_spill] sm:$0xff] %v9901_v4  ;;  %7442 = vmatprep.subr.msk.bf16.mxu0 %vm1482_vm3, %v7436_v34  ;;  %v1490_v56 = vsel %vm1482_vm3, %v7435_v50, 0  ;;  %v746_v50 = vmul.f32 %v9743_v9, %v9587_v62  ;;  %v835_v34 = vmul.f32 %v9745_v8, %v9593_v0  ;;  %v1103_v9 = vmul.f32 %v9641_v21, %v9774_v53 }
 0x12c   : > { %1118 = vrot.lane.b32.xlu0 %v1101_v26, %s12962_s21  ;;  %v1484_v26 = vsel %vm1482_vm3, %v7433_v49, 0  ;;  %1577 = vmatpush1.bf16.msra.mxu0 %v1490_v56  ;;  %v836_v49 = vmul.f32 %v9599_v2, %v9757_v37  ;;  %v1192_v8 = vmul.f32 %v9653_v25, %v9780_v32 }
 0x12d   : > { %1504 = vmatpush1.bf16.msra.mxu1 %v1484_v26 }
 0x12e   : > { %677 = vrot.lane.b32.xlu1 %v658_v45, %s13177_s11 }
 0x12f   : > { %v9919_v6 = vpop.permute.xlu1 %1267 }
 0x130   : > { %13176 = vst [vmem:[#allocation80_spill] sm:$0xff] %v9919_v6  ;;  %1207 = vrot.lane.b32.xlu0 %v1190_v63, %s13178_s12  ;;  %v924_v63 = vmul.f32 %v9525_v40, %v9753_v31  ;;  %v1281_v31 = vmul.f32 %v9651_v24, %v9782_v51 }
 0x132   : > { %766 = vrot.lane.b32.xlu1 %v747_v54, %s13180_s20  ;;  %v1013_v54 = vmul.f32 %v9616_v11, %v9755_v10  ;;  %v660_v10 = vmul.f32 %v9780_v32, %v9676_v7 }
 0x134   : > { %v9931_v42 = vpop.permute.xlu1 %648  ;;  %1296 = vrot.lane.b32.xlu0 %v1279_v33, %s12966_s25 }
 0x135   : > { %13179 = vst [vmem:[#allocation81_spill] sm:$0xff] %v9931_v42 }
 0x136   : > { %855 = vrot.lane.b32.xlu1 %v836_v49, %s13181_s26  ;;  %v1102_v49 = vmul.f32 %v9629_v15, %v9757_v37 }
 0x138   : > { %764 = vrot.lane.b32.xlu0 %v746_v50, %s13180_s20 }
 0x139   : > { %v9941_v56 = vpop.permute.xlu1 %737 }
 0x13a   : > { %13182 = vst [vmem:[#allocation82_spill] sm:$0xff] %v9941_v56  ;;  %1033 = vrot.lane.b32.xlu1 %v1014_v23, %s13174_s30 }
 0x13c   : > { %853 = vrot.lane.b32.xlu0 %v835_v34, %s13181_s26  ;;  %v749_v34 = vmul.f32 %v9782_v51, %v9691_v20 }
 0x13d   : > { %v9949_v45 = vpop.permute.xlu1 %741 }
 0x13e   : > { %13183 = vst [vmem:[#allocation83_spill] sm:$0xff] %v9949_v45  ;;  %1122 = vrot.lane.b32.xlu1 %v1103_v9, %s12962_s21  ;;  %v659_v9 = vmul.f32 %v9770_v39, %v9665_v30  ;;  %v927_v39 = vmul.f32 %v9778_v16, %v9790_v59 }
 0x140   : > { %942 = vrot.lane.b32.xlu0 %v924_v63, %s12958_s29 }
 0x142   : > { %v9957_v26 = vpop.permute.xlu1 %566  ;;  %1211 = vrot.lane.b32.xlu1 %v1192_v8, %s13178_s12  ;;  %v838_v8 = vmul.f32 %v9584_v61, %v9784_v29 }
 0x143   : > { %v600_v33 = vmul.f32 %v9715_v13, %v9957_v26  ;;  %v1280_v13 = vmul.f32 %v9658_v27, %v9772_v55 }
 0x144   : > { %1031 = vrot.lane.b32.xlu0 %v1013_v54, %s13174_s30  ;;  %v748_v54 = vmul.f32 %v9772_v55, %v9548_v48  ;;  %v1016_v55 = vmul.f32 %v9814_v22, %v9806_v38 }
 0x145   : > { %608 = vst.msk [vmem:[#allocation4 + $0x8] sm:$0xff] %vm530_vm1, %v600_v33 }
 0x146   : > { %1300 = vrot.lane.b32.xlu1 %v1281_v31, %s12966_s25  ;;  %v837_v31 = vmul.f32 %v9774_v53, %v9707_v19 }
 0x147   : > { %v9972_v50 = vpop.permute.xlu1 %826 }
 0x148   : > { %13184 = vst [vmem:[#allocation84_spill] sm:$0xff] %v9972_v50  ;;  %1120 = vrot.lane.b32.xlu0 %v1102_v49, %s12962_s21 }
 0x14a   : > { %681 = vrot.lane.b32.xlu1 %v660_v10, %s13177_s11  ;;  %v926_v10 = vmul.f32 %v9780_v32, %v9741_v18  ;;  %v1194_v32 = vmul.f32 %v9901_v4, %v9810_v28 }
 0x14c   : > { %v9980_v23 = vpop.permute.xlu1 %915  ;;  %1298 = vrot.lane.b32.xlu0 %v1280_v13, %s12966_s25 }
 0x14d   : > { %13185 = vst [vmem:[#allocation85_spill] sm:$0xff] %v9980_v23 }
 0x14e   : > { %770 = vrot.lane.b32.xlu1 %v749_v34, %s13180_s20  ;;  %v1105_v34 = vmul.f32 %v9626_v14, %v9808_v17 }
 0x150   : > { %v9988_v63 = vpop.permute.xlu1 %919  ;;  %679 = vrot.lane.b32.xlu0 %v659_v9, %s13177_s11  ;;  %v1015_v9 = vmul.f32 %v9782_v51, %v9601_v3  ;;  %v1193_v51 = vmul.f32 %v9881_v36, %v9790_v59 }
 0x151   : > { %13186 = vst [vmem:[#allocation86_spill] sm:$0xff] %v9988_v63 }
 0x152   : > { %859 = vrot.lane.b32.xlu1 %v838_v8, %s13181_s26 }
 0x154   : > { %768 = vrot.lane.b32.xlu0 %v748_v54, %s13180_s20  ;;  %v1104_v54 = vmul.f32 %v9858_v41, %v9784_v29  ;;  %v662_v29 = vmul.f32 %v9810_v28, %v9573_v57 }
 0x155   : > { %v9998_v33 = vpop.permute.xlu1 %1008 }
 0x156   : > { %13187 = vst [vmem:[#allocation87_spill] sm:$0xff] %v9998_v33  ;;  %948 = vrot.lane.b32.xlu1 %v927_v39, %s12958_s29  ;;  %v1283_v39 = vmul.f32 %v9919_v6, %v9816_v52  ;;  %v13203_v6 = vld [vmem:[#allocation40_spill] sm:$0xff] }
 0x158   : > { %857 = vrot.lane.b32.xlu0 %v837_v31, %s13181_s26 }
 0x15a   : > { %v10006_v49 = vpop.permute.xlu1 %1093  ;;  %1037 = vrot.lane.b32.xlu1 %v1016_v55, %s13174_s30  ;;  %v13192_v55 = vld [vmem:[#allocation52_spill] sm:$0xff] }
 0x15b   : > { %13188 = vst [vmem:[#allocation88_spill] sm:$0xff] %v10006_v49 }
 0x15c   : > { %946 = vrot.lane.b32.xlu0 %v926_v10, %s12958_s29  ;;  %v1282_v10 = vmul.f32 %v13192_v55, %v9806_v38 }
 0x15e   : > { %1126 = vrot.lane.b32.xlu1 %v1105_v34, %s12962_s21 }
 0x15f   : > { %v10014_v13 = vpop.permute.xlu1 %1182 }
 0x160   : > { %13189 = vst [vmem:[#allocation89_spill] sm:$0xff] %v10014_v13  ;;  %1035 = vrot.lane.b32.xlu0 %v1015_v9, %s13174_s30  ;;  %v751_v9 = vmul.f32 %v9816_v52, %v9949_v45 }
 0x162   : > { %1215 = vrot.lane.b32.xlu1 %v1194_v32, %s13178_s12  ;;  %v661_v32 = vmul.f32 %v9790_v59, %v9931_v42 }
 0x163   : > { %v10022_v8 = vpop.permute.xlu1 %1186 }
 0x164   : > { %13190 = vst [vmem:[#allocation90_spill] sm:$0xff] %v10022_v8  ;;  %1124 = vrot.lane.b32.xlu0 %v1104_v54, %s12962_s21 }
 0x166   : > { %1304 = vrot.lane.b32.xlu1 %v1283_v39, %s12966_s25 }
 0x168   : > { %v10034_v31 = vpop.permute.xlu1 %1275  ;;  %1213 = vrot.lane.b32.xlu0 %v1193_v51, %s13178_s12  ;;  %v13194_v51 = vld [vmem:[#allocation76_spill] sm:$0xff] }
 0x169   : > { %13191 = vst [vmem:[#allocation91_spill] sm:$0xff] %v10034_v31 }
 0x16a   : > { %685 = vrot.lane.b32.xlu1 %v662_v29, %s13177_s11 }
 0x16c   : > { %v672_v34 = vpop.permute.xlu1 %671  ;;  %1302 = vrot.lane.b32.xlu0 %v1282_v10, %s12966_s25  ;;  %v750_v10 = vmul.f32 %v9806_v38, %v9941_v56 }
 0x16d   : > { %696 = vst.msk [vmem:[#allocation4] sm:$0xff] %vm695_vm4, %v672_v34  ;;  %v13195_v34 = vld [vmem:[#allocation34_spill] sm:$0xff] }
 0x16e   : > { %774 = vrot.lane.b32.xlu1 %v751_v9, %s13180_s20  ;;  %v840_v29 = vmul.f32 %v13195_v34, %v13194_v51  ;;  %v13197_v9 = vld [vmem:[#allocation71_spill] sm:$0xff] }
 0x170   : > { %v10049_v54 = vpop.permute.xlu1 %571  ;;  %683 = vrot.lane.b32.xlu0 %v661_v32, %s13177_s11  ;;  %v839_v32 = vmul.f32 %v9808_v17, %v9972_v50 }
 0x171   : > { %13193 = vst [vmem:[#allocation92_spill] sm:$0xff] %v10049_v54  ;;  %v601_v39 = vmul.f32 %v9723_v35, %v10049_v54  ;;  %v929_v35 = vmul.f32 %v9988_v63, %v13197_v9 }
 0x172   : > { %863 = vrot.lane.b32.xlu1 %v840_v29, %s13181_s26  ;;  %v13199_v29 = vld [vmem:[#allocation72_spill] sm:$0xff] }
 0x173   : > { %609 = vst.msk [vmem:[#allocation4 + $0x10] sm:$0xff] %vm530_vm1, %v601_v39 }
 0x174   : > { %v10060_v45 = vpop.permute.xlu1 %581  ;;  %772 = vrot.lane.b32.xlu0 %v750_v10, %s13180_s20  ;;  %v928_v10 = vmul.f32 %v9810_v28, %v9980_v23 }
 0x175   : > { %13196 = vst [vmem:[#allocation76_spill] sm:$0xff] %v10060_v45  ;;  %v603_v59 = vmul.f32 %v9757_v37, %v10060_v45  ;;  %v1018_v37 = vmul.f32 %v9998_v33, %v13199_v29  ;;  %v1017_v33 = vmul.f32 %v9816_v52, %v13203_v6 }
 0x176   : > { %952 = vrot.lane.b32.xlu1 %v929_v35, %s12958_s29  ;;  %v13201_v35 = vld [vmem:[#allocation73_spill] sm:$0xff] }
 0x177   : > { %611 = vst.msk [vmem:[#allocation4 + $0x20] sm:$0xff] %vm530_vm1, %v603_v59 }
 0x178   : > { %v10071_v38 = vpop.permute.xlu1 %586  ;;  %861 = vrot.lane.b32.xlu0 %v839_v32, %s13181_s26  ;;  %v13202_v32 = vld [vmem:[#allocation47_spill] sm:$0xff] }
 0x179   : > { %13198 = vst [vmem:[#allocation71_spill] sm:$0xff] %v10071_v38  ;;  %v604_v39 = vmul.f32 %v9774_v53, %v10071_v38  ;;  %v1107_v53 = vmul.f32 %v13202_v32, %v13201_v35 }
 0x17a   : > { %1041 = vrot.lane.b32.xlu1 %v1018_v37, %s13174_s30  ;;  %v13204_v37 = vld [vmem:[#allocation69_spill] sm:$0xff] }
 0x17b   : > { %612 = vst.msk [vmem:[#allocation4 + $0x28] sm:$0xff] %vm530_vm1, %v604_v39 }
 0x17c   : > { %v10082_v34 = vpop.permute.xlu1 %596  ;;  %950 = vrot.lane.b32.xlu0 %v928_v10, %s12958_s29  ;;  %v1196_v10 = vmul.f32 %v10022_v8, %v13204_v37  ;;  %s12964_s29 = smov 112  }
 0x17d   : > { %13200 = vst [vmem:[#allocation72_spill] sm:$0xff] %v10082_v34  ;;  %v606_v59 = vmul.f32 %v9808_v17, %v10082_v34  ;;  %v1106_v17 = vmul.f32 %v10006_v49, %v13194_v51  ;;  %v8454_v51 = vld [vmem:[%s12883_s6 + $0x4] ss:$16 sps:$4 sm:$0xff]  }
 0x17e   : > { %1130 = vrot.lane.b32.xlu1 %v1107_v53, %s12962_s21  ;;  %2479 = vmatprep.subr.bf16.mxu1 %v8454_v51 }
 0x17f   : > { %614 = vst.msk [vmem:[#allocation4 + $0x38] sm:$0xff] %vm530_vm1, %v606_v59  ;;  %v13205_v59 = vld [vmem:[#allocation39_spill] sm:$0xff] }
 0x180   : > { %1039 = vrot.lane.b32.xlu0 %v1017_v33, %s13174_s30  ;;  %v1206_v28 = vpop.permute.xlu1 %1205  ;;  %v941_v39 = vpop.permute.xlu0 %940  ;;  %v1285_v53 = vmul.f32 %v10034_v31, %v13205_v59  ;;  %v1195_v33 = vmul.f32 %v10014_v13, %v13197_v9  ;;  %v8457_v9 = vld [vmem:[%s12883_s6 + $0xc] ss:$16 sps:$4 sm:$0xff]  }
 0x181   : > { %2625 = vmatprep.subr.bf16.mxu0 %v8457_v9 }
 0x182   : > { %1219 = vrot.lane.b32.xlu1 %v1196_v10, %s13178_s12 }
 0x184   : > { %1128 = vrot.lane.b32.xlu0 %v1106_v17, %s12962_s21  ;;  %v676_v52 = vpop.permute.xlu0 %675  ;;  %v761_v35 = vpop.permute.xlu1 %760  ;;  %v13206_v17 = vld [vmem:[#allocation54_spill] sm:$0xff] }
 0x185   : > { %698 = vst.msk [vmem:[#allocation4 + $0x10] sm:$0xff] %vm695_vm4, %v676_v52  ;;  %v1284_v59 = vmul.f32 %v13206_v17, %v13199_v29  ;;  %v8496_v17 = vld [vmem:[%s12883_s6 + $0xe4] ss:$16 sps:$4 sm:$0xff]  }
 0x186   : > { %785 = vst.msk [vmem:[#allocation4] sm:$0xff] %vm784_vm5, %v761_v35  ;;  %1308 = vrot.lane.b32.xlu1 %v1285_v53, %s12966_s25  ;;  %v9124_v53 = vld [vmem:[#allocation5 + $0x10] sm:$0xff] }
 0x188   : > { %1217 = vrot.lane.b32.xlu0 %v1195_v33, %s13178_s12  ;;  %v850_v37 = vpop.permute.xlu1 %849  ;;  %v674_v10 = vpop.permute.xlu0 %673  ;;  %v13207_v33 = vld [vmem:[#allocation23_spill] sm:$0xff] }
 0x189   : > { %874 = vst.msk [vmem:[#allocation4] sm:$0xff] %vm873_vm6, %v850_v37  ;;  %v3458_v31 = vmul.f32 %v9124_v53, %v13207_v33  ;;  %v4165_v53 = vld [vmem:[#allocation3 + $0x7] sm:$0xff] }
 0x18a   : > { %697 = vst.msk [vmem:[#allocation4 + $0x8] sm:$0xff] %vm695_vm4, %v674_v10 }
 0x18c   : > { %1306 = vrot.lane.b32.xlu0 %v1284_v59, %s12966_s25  ;;  %v939_v52 = vpop.permute.xlu1 %938  ;;  %v763_v35 = vpop.permute.xlu0 %762 }
 0x18d   : > { %963 = vst.msk [vmem:[#allocation4] sm:$0xff] %vm962_vm7, %v939_v52 }
 0x18e   : > { %786 = vst.msk [vmem:[#allocation4 + $0x8] sm:$0xff] %vm784_vm5, %v763_v35 }
 0x190   : > { %3474 = vrot.lane.b32.xlu0 %v3458_v31, %s12964_s29  ;;  %v1028_v29 = vpop.permute.xlu1 %1027  ;;  %s13032_s29 = smov 96  }
 0x191   : > { %1052 = vst.msk [vmem:[#allocation4] sm:$0xff] %vm1051_vm8, %v1028_v29  ;;  %v13208_v29 = vld [vmem:[#allocation55_spill] sm:$0xff] }
 0x192   : > { %v852_v37 = vpop.permute.xlu0 %851 }
 0x193   : > { %875 = vst.msk [vmem:[#allocation4 + $0x8] sm:$0xff] %vm873_vm6, %v852_v37 }
 0x194   : > { %964 = vst.msk [vmem:[#allocation4 + $0x8] sm:$0xff] %vm962_vm7, %v941_v39  ;;  %v1117_v51 = vpop.permute.xlu1 %1116 }
 0x195   : > { %1141 = vst.msk [vmem:[#allocation4] sm:$0xff] %vm1140_vm9, %v1117_v51 }
 0x196   : > { %v10127_v10 = vpop.permute.xlu0 %1209  ;;  %1230 = vst.msk [vmem:[#allocation4] sm:$0xff] %vm1229_vm10, %v1206_v28  ;;  %v4173_v28 = vmul.f32 %v4165_v53, %v13208_v29 }
 0x198   : > { %v945_v59 = vpop.permute.xlu1 %944 }
 0x19a   : > { %v1030_v31 = vpop.permute.xlu0 %1029 }
 0x19b   : > { %1053 = vst.msk [vmem:[#allocation4 + $0x8] sm:$0xff] %vm1051_vm8, %v1030_v31 }
 0x19c   : > { %v1295_v9 = vpop.permute.xlu1 %1294 }
 0x19d   : > { %1319 = vst.msk [vmem:[#allocation4] sm:$0xff] %vm1318_vm11, %v1295_v9 }
 0x19e   : > { %v1119_v52 = vpop.permute.xlu0 %1118 }
 0x19f   : > { %1142 = vst.msk [vmem:[#allocation4 + $0x8] sm:$0xff] %vm1140_vm9, %v1119_v52 }
 0x1a0   : > { %v678_v39 = vpop.permute.xlu1 %677 }
 0x1a1   : > { %699 = vst.msk [vmem:[#allocation4 + $0x18] sm:$0xff] %vm695_vm4, %v678_v39 }
 0x1a2   : > { %v1208_v35 = vpop.permute.xlu0 %1207 }
 0x1a3   : > { %1231 = vst.msk [vmem:[#allocation4 + $0x8] sm:$0xff] %vm1229_vm10, %v1208_v35 }
 0x1a4   : > { %v767_v37 = vpop.permute.xlu1 %766  ;;  %v1327_v33 = vld [vmem:[#allocation4] sm:$0xff] }
 0x1a5   : > { %788 = vst.msk [vmem:[#allocation4 + $0x18] sm:$0xff] %vm784_vm5, %v767_v37  ;;  %v8455_v37 = vld [vmem:[%s12883_s6 + $0x8] ss:$16 sps:$4 sm:$0xff]  }
 0x1a6   : > { %v1297_v51 = vpop.permute.xlu0 %1296  ;;  %4181 = vst.msk [vmem:[#allocation4] sm:$0xff] %vm530_vm1, %v4173_v28  ;;  %v8452_v28 = vld [vmem:[%s12883_s6] ss:$16 sps:$4 sm:$0xff]  }
 0x1a7   : > { %1320 = vst.msk [vmem:[#allocation4 + $0x8] sm:$0xff] %vm1318_vm11, %v1297_v51  ;;  %v8463_v51 = vld [vmem:[%s12883_s6 + $0x2c] ss:$16 sps:$4 sm:$0xff]  }
 0x1a8   : > { %v856_v31 = vpop.permute.xlu1 %855 }
 0x1a9   : > { %877 = vst.msk [vmem:[#allocation4 + $0x18] sm:$0xff] %vm873_vm6, %v856_v31 }
 0x1aa   : > { %v765_v9 = vpop.permute.xlu0 %764  ;;  %966 = vst.msk [vmem:[#allocation4 + $0x18] sm:$0xff] %vm962_vm7, %v945_v59  ;;  %v8460_v59 = vld [vmem:[%s12883_s6 + $0x24] ss:$16 sps:$4 sm:$0xff]  }
 0x1ab   : > { %787 = vst.msk [vmem:[#allocation4 + $0x10] sm:$0xff] %vm784_vm5, %v765_v9  ;;  %v13209_v9 = vmov 0  }
 0x1ac   : > { %v1034_v52 = vpop.permute.xlu1 %1033 }
 0x1ad   : > { %1055 = vst.msk [vmem:[#allocation4 + $0x18] sm:$0xff] %vm1051_vm8, %v1034_v52  ;;  %v8458_v52 = vld [vmem:[%s12883_s6 + $0x20] ss:$16 sps:$4 sm:$0xff]  }
 0x1ae   : > { %v854_v39 = vpop.permute.xlu0 %853  ;;  %v1328_v35 = vld [vmem:[#allocation4 + $0x8] sm:$0xff] }
 0x1af   : > { %876 = vst.msk [vmem:[#allocation4 + $0x10] sm:$0xff] %vm873_vm6, %v854_v39  ;;  %v1335_v53 = vpack.c.bf16 %v1328_v35, %v1327_v33  ;;  %v8461_v39 = vld [vmem:[%s12883_s6 + $0x28] ss:$16 sps:$4 sm:$0xff]   ;;  %v8466_v35 = vld [vmem:[%s12883_s6 + $0x44] ss:$16 sps:$4 sm:$0xff]  }
 0x1b0   : > { %v1123_v33 = vpop.permute.xlu1 %1122 }
 0x1b1   : > { %7438 = vmatmul.mubr.msk.bf16.vlgmr.msra.gmra.mrb[8].mxu1 %vm1469_vm12, %v1335_v53  ;;  %7443 = vmatmul.mubr.msk.bf16.vlgmr.msra.gmra.mrb[0].mxu0 %vm1469_vm12, %v1335_v53  ;;  %1144 = vst.msk [vmem:[#allocation4 + $0x18] sm:$0xff] %vm1140_vm9, %v1123_v33  ;;  %v8469_v53 = vld [vmem:[%s12883_s6 + $0x4c] ss:$16 sps:$4 sm:$0xff]   ;;  %v8472_v33 = vld [vmem:[%s12883_s6 + $0x64] ss:$16 sps:$4 sm:$0xff]  }
 0x1b2   : > { %v943_v31 = vpop.permute.xlu0 %942  ;;  %1537 = vmatprep.mubr.bf16.mxu1 %v13209_v9  ;;  %1610 = vmatprep.mubr.bf16.mxu0 %v13209_v9 }
 0x1b3   : > { %965 = vst.msk [vmem:[#allocation4 + $0x10] sm:$0xff] %vm962_vm7, %v943_v31  ;;  %2480 = vmatpush1.bf16.msra.mxu1 %v8452_v28  ;;  %2626 = vmatpush1.bf16.msra.mxu0 %v8455_v37  ;;  %v8475_v31 = vld [vmem:[%s12883_s6 + $0x6c] ss:$16 sps:$4 sm:$0xff]  }
 0x1b4   : > { %2481 = vmatprep.subr.bf16.mxu1 %v8460_v59  ;;  %2627 = vmatprep.subr.bf16.mxu0 %v8463_v51  ;;  %v1212_v28 = vpop.permute.xlu1 %1211  ;;  %v8464_v59 = vld [vmem:[%s12883_s6 + $0x40] ss:$16 sps:$4 sm:$0xff]   ;;  %v8467_v51 = vld [vmem:[%s12883_s6 + $0x48] ss:$16 sps:$4 sm:$0xff]  }
 0x1b5   : > { %1233 = vst.msk [vmem:[#allocation4 + $0x18] sm:$0xff] %vm1229_vm10, %v1212_v28  ;;  %v8478_v28 = vld [vmem:[%s12883_s6 + $0x84] ss:$16 sps:$4 sm:$0xff]  }
 0x1b6   : > { %v1032_v37 = vpop.permute.xlu0 %1031 }
 0x1b7   : > { %1054 = vst.msk [vmem:[#allocation4 + $0x10] sm:$0xff] %vm1051_vm8, %v1032_v37  ;;  %2482 = vmatpush1.bf16.msra.mxu1 %v8458_v52  ;;  %2628 = vmatpush1.bf16.msra.mxu0 %v8461_v39  ;;  %v8481_v37 = vld [vmem:[%s12883_s6 + $0x8c] ss:$16 sps:$4 sm:$0xff]  }
 0x1b8   : > { %2483 = vmatprep.subr.bf16.mxu1 %v8466_v35  ;;  %2629 = vmatprep.subr.bf16.mxu0 %v8469_v53  ;;  %v1301_v52 = vpop.permute.xlu1 %1300  ;;  %v8470_v35 = vld [vmem:[%s12883_s6 + $0x60] ss:$16 sps:$4 sm:$0xff]   ;;  %v8473_v53 = vld [vmem:[%s12883_s6 + $0x68] ss:$16 sps:$4 sm:$0xff]  }
 0x1b9   : > { %1322 = vst.msk [vmem:[#allocation4 + $0x18] sm:$0xff] %vm1318_vm11, %v1301_v52  ;;  %v8487_v52 = vld [vmem:[%s12883_s6 + $0xac] ss:$16 sps:$4 sm:$0xff]  }
 0x1ba   : > { %v1121_v39 = vpop.permute.xlu0 %1120 }
 0x1bb   : > { %1143 = vst.msk [vmem:[#allocation4 + $0x10] sm:$0xff] %vm1140_vm9, %v1121_v39  ;;  %2484 = vmatpush1.bf16.msra.mxu1 %v8464_v59  ;;  %2630 = vmatpush1.bf16.msra.mxu0 %v8467_v51 }
 0x1bc   : > { %1232 = vst.msk [vmem:[#allocation4 + $0x10] sm:$0xff] %vm1229_vm10, %v10127_v10  ;;  %2485 = vmatprep.subr.bf16.mxu1 %v8472_v33  ;;  %2631 = vmatprep.subr.bf16.mxu0 %v8475_v31  ;;  %v682_v59 = vpop.permute.xlu1 %681  ;;  %v8476_v10 = vld [vmem:[%s12883_s6 + $0x80] ss:$16 sps:$4 sm:$0xff]   ;;  %v8479_v33 = vld [vmem:[%s12883_s6 + $0x88] ss:$16 sps:$4 sm:$0xff]  }
 0x1bd   : > { %701 = vst.msk [vmem:[#allocation4 + $0x28] sm:$0xff] %vm695_vm4, %v682_v59  ;;  %v8484_v31 = vld [vmem:[%s12883_s6 + $0xa4] ss:$16 sps:$4 sm:$0xff]   ;;  %v8493_v59 = vld [vmem:[%s12883_s6 + $0xcc] ss:$16 sps:$4 sm:$0xff]  }
 0x1be   : > { %v1299_v51 = vpop.permute.xlu0 %1298 }
 0x1bf   : > { %1321 = vst.msk [vmem:[#allocation4 + $0x10] sm:$0xff] %vm1318_vm11, %v1299_v51  ;;  %2486 = vmatpush1.bf16.msra.mxu1 %v8470_v35  ;;  %2632 = vmatpush1.bf16.msra.mxu0 %v8473_v53  ;;  %v8482_v53 = vld [vmem:[%s12883_s6 + $0xa0] ss:$16 sps:$4 sm:$0xff]  }
 0x1c0   : > { %2487 = vmatprep.subr.bf16.mxu1 %v8478_v28  ;;  %2633 = vmatprep.subr.bf16.mxu0 %v8481_v37  ;;  %v771_v39 = vpop.permute.xlu1 %770  ;;  %v8485_v28 = vld [vmem:[%s12883_s6 + $0xa8] ss:$16 sps:$4 sm:$0xff]   ;;  %v8490_v37 = vld [vmem:[%s12883_s6 + $0xc4] ss:$16 sps:$4 sm:$0xff]  }
 0x1c1   : > { %790 = vst.msk [vmem:[#allocation4 + $0x28] sm:$0xff] %vm784_vm5, %v771_v39  ;;  %v1330_v39 = vld [vmem:[#allocation4 + $0x18] sm:$0xff] }
 0x1c2   : > { %v680_v35 = vpop.permute.xlu0 %679 }
 0x1c3   : > { %700 = vst.msk [vmem:[#allocation4 + $0x20] sm:$0xff] %vm695_vm4, %v680_v35  ;;  %2488 = vmatpush1.bf16.msra.mxu1 %v8476_v10  ;;  %2634 = vmatpush1.bf16.msra.mxu0 %v8479_v33 }
 0x1c4   : > { %2489 = vmatprep.subr.bf16.mxu1 %v8484_v31  ;;  %2635 = vmatprep.subr.bf16.mxu0 %v8487_v52  ;;  %v860_v51 = vpop.permute.xlu1 %859  ;;  %v8488_v31 = vld [vmem:[%s12883_s6 + $0xc0] ss:$16 sps:$4 sm:$0xff]   ;;  %v8491_v52 = vld [vmem:[%s12883_s6 + $0xc8] ss:$16 sps:$4 sm:$0xff]  }
 0x1c5   : > { %879 = vst.msk [vmem:[#allocation4 + $0x28] sm:$0xff] %vm873_vm6, %v860_v51  ;;  %v8499_v51 = vld [vmem:[%s12883_s6 + $0xec] ss:$16 sps:$4 sm:$0xff]  }
 0x1c6   : > { %v769_v10 = vpop.permute.xlu0 %768  ;;  %v1329_v33 = vld [vmem:[#allocation4 + $0x10] sm:$0xff] }
 0x1c7   : > { %789 = vst.msk [vmem:[#allocation4 + $0x20] sm:$0xff] %vm784_vm5, %v769_v10  ;;  %v1336_v35 = vpack.c.bf16 %v1330_v39, %v1329_v33  ;;  %2490 = vmatpush1.bf16.msra.mxu1 %v8482_v53  ;;  %2636 = vmatpush1.bf16.msra.mxu0 %v8485_v28  ;;  %v8502_v10 = vld [vmem:[%s12883_s6 + $0x104] ss:$16 sps:$4 sm:$0xff]   ;;  %v8505_v33 = vld [vmem:[%s12883_s6 + $0x10c] ss:$16 sps:$4 sm:$0xff]  }
 0x1c8   : > { %2491 = vmatprep.subr.bf16.mxu1 %v8490_v37  ;;  %2637 = vmatprep.subr.bf16.mxu0 %v8493_v59  ;;  %v949_v53 = vpop.permute.xlu1 %948  ;;  %v8494_v37 = vld [vmem:[%s12883_s6 + $0xe0] ss:$16 sps:$4 sm:$0xff]   ;;  %v8497_v59 = vld [vmem:[%s12883_s6 + $0xe8] ss:$16 sps:$4 sm:$0xff]  }
 0x1c9   : > { %7439 = vmatmul.mubr.msk.bf16.gmra.mrb[12].mxu1 %vm1469_vm12, %v1336_v35  ;;  %7444 = vmatmul.mubr.msk.bf16.gmra.mrb[4].mxu0 %vm1469_vm12, %v1336_v35  ;;  %968 = vst.msk [vmem:[#allocation4 + $0x28] sm:$0xff] %vm962_vm7, %v949_v53 }
 0x1ca   : > { %v858_v28 = vpop.permute.xlu0 %857  ;;  %1547 = vmatprep.mubr.bf16.mxu1 %v13209_v9  ;;  %1620 = vmatprep.mubr.bf16.mxu0 %v13209_v9 }
 0x1cb   : > { %878 = vst.msk [vmem:[#allocation4 + $0x20] sm:$0xff] %vm873_vm6, %v858_v28  ;;  %2492 = vmatpush1.bf16.msra.mxu1 %v8488_v31  ;;  %2638 = vmatpush1.bf16.msra.mxu0 %v8491_v52  ;;  %v8503_v31 = vld [vmem:[%s12883_s6 + $0x108] ss:$16 sps:$4 sm:$0xff]   ;;  %v8508_v52 = vld [vmem:[%s12883_s6 + $0x124] ss:$16 sps:$4 sm:$0xff]  }
 0x1cc   : > { %2493 = vmatprep.subr.bf16.mxu1 %v8496_v17  ;;  %2639 = vmatprep.subr.bf16.mxu0 %v8499_v51  ;;  %v1038_v39 = vpop.permute.xlu1 %1037  ;;  %v8500_v17 = vld [vmem:[%s12883_s6 + $0x100] ss:$16 sps:$4 sm:$0xff]   ;;  %v8511_v51 = vld [vmem:[%s12883_s6 + $0x12c] ss:$16 sps:$4 sm:$0xff]  }
 0x1cd   : > { %1057 = vst.msk [vmem:[#allocation4 + $0x28] sm:$0xff] %vm1051_vm8, %v1038_v39 }
 0x1ce   : > { %v947_v35 = vpop.permute.xlu0 %946 }
 0x1cf   : > { %967 = vst.msk [vmem:[#allocation4 + $0x20] sm:$0xff] %vm962_vm7, %v947_v35  ;;  %2494 = vmatpush1.bf16.msra.mxu1 %v8494_v37  ;;  %2640 = vmatpush1.bf16.msra.mxu0 %v8497_v59  ;;  %v8506_v37 = vld [vmem:[%s12883_s6 + $0x120] ss:$16 sps:$4 sm:$0xff]   ;;  %v8509_v59 = vld [vmem:[%s12883_s6 + $0x128] ss:$16 sps:$4 sm:$0xff]  }
 0x1d0   : > { %2495 = vmatprep.subr.bf16.mxu1 %v8502_v10  ;;  %2641 = vmatprep.subr.bf16.mxu0 %v8505_v33  ;;  %v1127_v53 = vpop.permute.xlu1 %1126  ;;  %v8514_v10 = vld [vmem:[%s12883_s6 + $0x144] ss:$16 sps:$4 sm:$0xff]   ;;  %v8517_v33 = vld [vmem:[%s12883_s6 + $0x14c] ss:$16 sps:$4 sm:$0xff]  }
 0x1d1   : > { %1146 = vst.msk [vmem:[#allocation4 + $0x28] sm:$0xff] %vm1140_vm9, %v1127_v53 }
 0x1d2   : > { %v1036_v28 = vpop.permute.xlu0 %1035 }
 0x1d3   : > { %1056 = vst.msk [vmem:[#allocation4 + $0x20] sm:$0xff] %vm1051_vm8, %v1036_v28  ;;  %2496 = vmatpush1.bf16.msra.mxu1 %v8500_v17  ;;  %2642 = vmatpush1.bf16.msra.mxu0 %v8503_v31  ;;  %v8512_v17 = vld [vmem:[%s12883_s6 + $0x140] ss:$16 sps:$4 sm:$0xff]   ;;  %v8515_v31 = vld [vmem:[%s12883_s6 + $0x148] ss:$16 sps:$4 sm:$0xff]  }
 0x1d4   : > { %2497 = vmatprep.subr.bf16.mxu1 %v8508_v52  ;;  %2643 = vmatprep.subr.bf16.mxu0 %v8511_v51  ;;  %v1216_v39 = vpop.permute.xlu1 %1215  ;;  %v8520_v52 = vld [vmem:[%s12883_s6 + $0x164] ss:$16 sps:$4 sm:$0xff]   ;;  %v8523_v51 = vld [vmem:[%s12883_s6 + $0x16c] ss:$16 sps:$4 sm:$0xff]  }
 0x1d5   : > { %1235 = vst.msk [vmem:[#allocation4 + $0x28] sm:$0xff] %vm1229_vm10, %v1216_v39 }
 0x1d6   : > { %v1125_v35 = vpop.permute.xlu0 %1124 }
 0x1d7   : > { %1145 = vst.msk [vmem:[#allocation4 + $0x20] sm:$0xff] %vm1140_vm9, %v1125_v35  ;;  %2498 = vmatpush1.bf16.msra.mxu1 %v8506_v37  ;;  %2644 = vmatpush1.bf16.msra.mxu0 %v8509_v59  ;;  %v8518_v37 = vld [vmem:[%s12883_s6 + $0x160] ss:$16 sps:$4 sm:$0xff]   ;;  %v8521_v59 = vld [vmem:[%s12883_s6 + $0x168] ss:$16 sps:$4 sm:$0xff]  }
 0x1d8   : > { %2499 = vmatprep.subr.bf16.mxu1 %v8514_v10  ;;  %2645 = vmatprep.subr.bf16.mxu0 %v8517_v33  ;;  %v1305_v53 = vpop.permute.xlu1 %1304  ;;  %v8526_v10 = vld [vmem:[%s12883_s6 + $0x184] ss:$16 sps:$4 sm:$0xff]   ;;  %v8529_v33 = vld [vmem:[%s12883_s6 + $0x18c] ss:$16 sps:$4 sm:$0xff]  }
 0x1d9   : > { %1324 = vst.msk [vmem:[#allocation4 + $0x28] sm:$0xff] %vm1318_vm11, %v1305_v53 }
 0x1da   : > { %v1214_v28 = vpop.permute.xlu0 %1213 }
 0x1db   : > { %1234 = vst.msk [vmem:[#allocation4 + $0x20] sm:$0xff] %vm1229_vm10, %v1214_v28  ;;  %2500 = vmatpush1.bf16.msra.mxu1 %v8512_v17  ;;  %2646 = vmatpush1.bf16.msra.mxu0 %v8515_v31  ;;  %v8524_v17 = vld [vmem:[%s12883_s6 + $0x180] ss:$16 sps:$4 sm:$0xff]   ;;  %v8527_v31 = vld [vmem:[%s12883_s6 + $0x188] ss:$16 sps:$4 sm:$0xff]  }
 0x1dc   : > { %2501 = vmatprep.subr.bf16.mxu1 %v8520_v52  ;;  %2647 = vmatprep.subr.bf16.mxu0 %v8523_v51  ;;  %v686_v39 = vpop.permute.xlu1 %685  ;;  %v8532_v52 = vld [vmem:[%s12883_s6 + $0x1a4] ss:$16 sps:$4 sm:$0xff]   ;;  %v8535_v51 = vld [vmem:[%s12883_s6 + $0x1ac] ss:$16 sps:$4 sm:$0xff]  }
 0x1dd   : > { %703 = vst.msk [vmem:[#allocation4 + $0x38] sm:$0xff] %vm695_vm4, %v686_v39 }
 0x1de   : > { %v1303_v35 = vpop.permute.xlu0 %1302 }
 0x1df   : > { %1323 = vst.msk [vmem:[#allocation4 + $0x20] sm:$0xff] %vm1318_vm11, %v1303_v35  ;;  %2502 = vmatpush1.bf16.msra.mxu1 %v8518_v37  ;;  %2648 = vmatpush1.bf16.msra.mxu0 %v8521_v59  ;;  %v8530_v37 = vld [vmem:[%s12883_s6 + $0x1a0] ss:$16 sps:$4 sm:$0xff]   ;;  %v8533_v59 = vld [vmem:[%s12883_s6 + $0x1a8] ss:$16 sps:$4 sm:$0xff]  }
 0x1e0   : > { %2503 = vmatprep.subr.bf16.mxu1 %v8526_v10  ;;  %2649 = vmatprep.subr.bf16.mxu0 %v8529_v33  ;;  %v775_v53 = vpop.permute.xlu1 %774  ;;  %v1332_v35 = vld [vmem:[#allocation4 + $0x28] sm:$0xff] }
 0x1e1   : > { %792 = vst.msk [vmem:[#allocation4 + $0x38] sm:$0xff] %vm784_vm5, %v775_v53 }
 0x1e2   : > { %v684_v28 = vpop.permute.xlu0 %683 }
 0x1e3   : > { %702 = vst.msk [vmem:[#allocation4 + $0x30] sm:$0xff] %vm695_vm4, %v684_v28  ;;  %2504 = vmatpush1.bf16.msra.mxu1 %v8524_v17  ;;  %2650 = vmatpush1.bf16.msra.mxu0 %v8527_v31 }
 0x1e4   : > { %2505 = vmatprep.subr.bf16.mxu1 %v8532_v52  ;;  %2651 = vmatprep.subr.bf16.mxu0 %v8535_v51  ;;  %v864_v10 = vpop.permute.xlu1 %863 }
 0x1e5   : > { %881 = vst.msk [vmem:[#allocation4 + $0x38] sm:$0xff] %vm873_vm6, %v864_v10 }
 0x1e6   : > { %v773_v33 = vpop.permute.xlu0 %772  ;;  %v1331_v39 = vld [vmem:[#allocation4 + $0x20] sm:$0xff] }
 0x1e7   : > { %791 = vst.msk [vmem:[#allocation4 + $0x30] sm:$0xff] %vm784_vm5, %v773_v33  ;;  %v1337_v17 = vpack.c.bf16 %v1332_v35, %v1331_v39  ;;  %2506 = vmatpush1.bf16.msra.mxu1 %v8530_v37  ;;  %2652 = vmatpush1.bf16.msra.mxu0 %v8533_v59 }
 0x1e8   : > { %v953_v31 = vpop.permute.xlu1 %952 }
 0x1e9   : > { %7440 = vmatmul.mubr.msk.bf16.gmra.mrb[16].mxu1 %vm1469_vm12, %v1337_v17  ;;  %7445 = vmatmul.mubr.msk.bf16.gmra.mrb[8].mxu0 %vm1469_vm12, %v1337_v17  ;;  %970 = vst.msk [vmem:[#allocation4 + $0x38] sm:$0xff] %vm962_vm7, %v953_v31 }
 0x1ea   : > { %v862_v53 = vpop.permute.xlu0 %861  ;;  %1557 = vmatprep.mubr.bf16.mxu1 %v13209_v9  ;;  %1630 = vmatprep.mubr.bf16.mxu0 %v13209_v9 }
 0x1eb   : > { %880 = vst.msk [vmem:[#allocation4 + $0x30] sm:$0xff] %vm873_vm6, %v862_v53 }
 0x1ec   : > { %v1042_v52 = vpop.permute.xlu1 %1041 }
 0x1ed   : > { %1059 = vst.msk [vmem:[#allocation4 + $0x38] sm:$0xff] %vm1051_vm8, %v1042_v52  ;;  %v8538_v52 = vld [vmem:[%s12883_s6 + $0x1c4] ss:$16 sps:$4 sm:$0xff]  }
 0x1ee   : > { %v951_v51 = vpop.permute.xlu0 %950  ;;  %2507 = vmatprep.subr.bf16.mxu1 %v8538_v52 }
 0x1ef   : > { %969 = vst.msk [vmem:[#allocation4 + $0x30] sm:$0xff] %vm962_vm7, %v951_v51  ;;  %v8541_v51 = vld [vmem:[%s12883_s6 + $0x1cc] ss:$16 sps:$4 sm:$0xff]  }
 0x1f0   : > { %v1131_v28 = vpop.permute.xlu1 %1130  ;;  %2653 = vmatprep.subr.bf16.mxu0 %v8541_v51 }
 0x1f1   : > { %1148 = vst.msk [vmem:[#allocation4 + $0x38] sm:$0xff] %vm1140_vm9, %v1131_v28  ;;  %v8536_v28 = vld [vmem:[%s12883_s6 + $0x1c0] ss:$16 sps:$4 sm:$0xff]  }
 0x1f2   : > { %v1040_v37 = vpop.permute.xlu0 %1039  ;;  %2508 = vmatpush1.bf16.msra.mxu1 %v8536_v28  ;;  %v1357_v28 = vld [vmem:[%s12882_s5] sm:$0xf] }
 0x1f3   : > { %1058 = vst.msk [vmem:[#allocation4 + $0x30] sm:$0xff] %vm1051_vm8, %v1040_v37  ;;  %v8539_v37 = vld [vmem:[%s12883_s6 + $0x1c8] ss:$16 sps:$4 sm:$0xff]  }
 0x1f4   : > { %v1220_v59 = vpop.permute.xlu1 %1219  ;;  %2654 = vmatpush1.bf16.msra.mxu0 %v8539_v37 }
 0x1f5   : > { %1237 = vst.msk [vmem:[#allocation4 + $0x38] sm:$0xff] %vm1229_vm10, %v1220_v59  ;;  %v8542_v59 = vld [vmem:[%s12883_s6 + $0x1e0] ss:$16 sps:$4 sm:$0xff]  }
 0x1f6   : > { %v1129_v10 = vpop.permute.xlu0 %1128 }
 0x1f7   : > { %1147 = vst.msk [vmem:[#allocation4 + $0x30] sm:$0xff] %vm1140_vm9, %v1129_v10  ;;  %v8544_v10 = vld [vmem:[%s12883_s6 + $0x1e4] ss:$16 sps:$4 sm:$0xff]  }
 0x1f8   : > { %v1309_v33 = vpop.permute.xlu1 %1308  ;;  %2509 = vmatprep.subr.bf16.mxu1 %v8544_v10 }
 0x1f9   : > { %1326 = vst.msk [vmem:[#allocation4 + $0x38] sm:$0xff] %vm1318_vm11, %v1309_v33  ;;  %v8545_v33 = vld [vmem:[%s12883_s6 + $0x1e8] ss:$16 sps:$4 sm:$0xff]   ;;  %2510 = vmatpush1.bf16.msra.mxu1 %v8542_v59 }
 0x1fa   : > { %v1218_v39 = vpop.permute.xlu0 %1217 }
 0x1fb   : > { %1236 = vst.msk [vmem:[#allocation4 + $0x30] sm:$0xff] %vm1229_vm10, %v1218_v39  ;;  %v8547_v39 = vld [vmem:[%s12883_s6 + $0x1ec] ss:$16 sps:$4 sm:$0xff]  }
 0x1fc   : > { %2655 = vmatprep.subr.bf16.mxu0 %v8547_v39 }
 0x1fd   : > { %2656 = vmatpush1.bf16.msra.mxu0 %v8545_v33 }
 0x1fe   : > { %v1307_v35 = vpop.permute.xlu0 %1306 }
 0x1ff   : > { %1325 = vst.msk [vmem:[#allocation4 + $0x30] sm:$0xff] %vm1318_vm11, %v1307_v35  ;;  %v8550_v35 = vld [vmem:[%s12883_s6 + $0x204] ss:$16 sps:$4 sm:$0xff]  }
 0x200   : > { %v1334_v31 = vld [vmem:[#allocation4 + $0x38] sm:$0xff]  ;;  %2552 = vmatprep.subr.bf16.mxu1 %v8550_v35 }
 0x206   : > { %v1333_v17 = vld [vmem:[#allocation4 + $0x30] sm:$0xff] }
 0x207   : > { %v1338_v53 = vpack.c.bf16 %v1334_v31, %v1333_v17  ;;  %v8553_v17 = vld [vmem:[%s12883_s6 + $0x20c] ss:$16 sps:$4 sm:$0xff]   ;;  %v1359_v31 = vlaneseq }
 0x208   : > { %2698 = vmatprep.subr.bf16.mxu0 %v8553_v17 }
 0x209   : > { %7441 = vmatmul.mubr.msk.bf16.gmra.mrb[20].mxu1 %vm1469_vm12, %v1338_v53  ;;  %7446 = vmatmul.mubr.msk.bf16.gmra.mrb[12].mxu0 %vm1469_vm12, %v1338_v53  ;;  %v1360_v53 = vshrl.u32 %v1359_v31, 7 }
 0x20b   : > { %v10392_v52 = vsub.s32 0, %v1360_v53  ;;  %v10394_v51 = vsub.s32 2, %v1360_v53  ;;  %v10399_v37 = vsub.s32 1, %v1360_v53  ;;  %v10401_v59 = vsub.s32 3, %v1360_v53 }
 0x20d   : > { %13210 = vst [vmem:[#allocation73_spill] sm:$0xff] %v10392_v52  ;;  %13211 = vst [vmem:[#allocation69_spill] sm:$0xff] %v10394_v51  ;;  %v10404_v10 = vrot.slane %v1357_v28, %v10392_v52  ;;  %v10407_v33 = vrot.slane %v1357_v28, %v10394_v51  ;;  %v10410_v39 = vrot.slane %v1357_v28, %v10399_v37 }
 0x20e   : > { %13212 = vst [vmem:[#allocation39_spill] sm:$0xff] %v10399_v37  ;;  %13213 = vst [vmem:[#allocation93_spill] sm:$0xff] %v10401_v59  ;;  %v10413_v35 = vrot.slane %v1357_v28, %v10401_v59 }
 0x284   : > { %v1529_v17 = vpop.f32.mrb[8].mxu1  ;;  %v1602_v31 = vpop.f32.mrb[0].mxu0 }
 0x285   : > { %v1530_v32 = vadd.f32 %v1529_v17, %v10404_v10  ;;  %v1603_v49 = vadd.f32 %v1602_v31, %v10407_v33  ;;  %v1531_v53 = vpop.f32.mrb[9].mxu1  ;;  %v1604_v6 = vpop.f32.mrb[1].mxu0 }
 0x286   : > { %v1532_v50 = vadd.f32 %v1531_v53, %v10410_v39  ;;  %v1605_v14 = vadd.f32 %v1604_v6, %v10413_v35  ;;  %v1533_v56 = vpop.f32.mrb[10].mxu1  ;;  %v1606_v34 = vpop.f32.mrb[2].mxu0 }
 0x287   : > { %v1534_v22 = vadd.f32 %v1533_v56, %v10404_v10  ;;  %v1607_v55 = vadd.f32 %v1606_v34, %v10407_v33  ;;  %v1535_v28 = vpop.f32.mrb[11].mxu1  ;;  %v1608_v41 = vpop.f32.mrb[3].mxu0  ;;  %v1641_v3 = vmax.f32 %v1530_v32, 0.0  ;;  %v1643_v31 = vmax.f32 %v1603_v49, 0.0  ;;  %v8548_v34 = vld [vmem:[%s12883_s6 + $0x200] ss:$16 sps:$4 sm:$0xff]  }
 0x288   : > { %v1536_v61 = vadd.f32 %v1535_v28, %v10410_v39  ;;  %v1609_v17 = vadd.f32 %v1608_v41, %v10413_v35  ;;  %v1642_v19 = vmax.f32 %v1532_v50, 0.0  ;;  %v1644_v53 = vmax.f32 %v1605_v14, 0.0  ;;  %v8551_v41 = vld [vmem:[%s12883_s6 + $0x208] ss:$16 sps:$4 sm:$0xff]   ;;  %v8556_v14 = vld [vmem:[%s12883_s6 + $0x224] ss:$16 sps:$4 sm:$0xff]  }
 0x289   : > { %v1645_v20 = vmax.f32 %v1534_v22, 0.0  ;;  %v1647_v38 = vmax.f32 %v1607_v55, 0.0  ;;  %v8560_v22 = vld [vmem:[%s12883_s6 + $0x240] ss:$16 sps:$4 sm:$0xff]   ;;  %v8568_v50 = vld [vmem:[%s12883_s6 + $0x264] ss:$16 sps:$4 sm:$0xff]  }
 0x28a   : > { %v1646_v48 = vmax.f32 %v1536_v61, 0.0  ;;  %v1648_v6 = vmax.f32 %v1609_v17, 0.0  ;;  %v8559_v61 = vld [vmem:[%s12883_s6 + $0x22c] ss:$16 sps:$4 sm:$0xff]   ;;  %v8566_v55 = vld [vmem:[%s12883_s6 + $0x260] ss:$16 sps:$4 sm:$0xff]  }
 0x28b   : > { %v1673_v45 = vpack.c.bf16 %v1645_v20, %v1641_v3  ;;  %v10423_v24 = vpack.c.bf16 %v1647_v38, %v1643_v31  ;;  %v8557_v3 = vld [vmem:[%s12883_s6 + $0x228] ss:$16 sps:$4 sm:$0xff]   ;;  %v8562_v20 = vld [vmem:[%s12883_s6 + $0x244] ss:$16 sps:$4 sm:$0xff]   ;;  %v8571_v49 = vld [vmem:[%s12883_s6 + $0x26c] ss:$16 sps:$4 sm:$0xff]  }
 0x28c   : > { %v1674_v56 = vpack.c.bf16 %v1646_v48, %v1642_v19  ;;  %v10425_v21 = vpack.c.bf16 %v1648_v6, %v1644_v53  ;;  %v8554_v48 = vld [vmem:[%s12883_s6 + $0x220] ss:$16 sps:$4 sm:$0xff]   ;;  %v8565_v19 = vld [vmem:[%s12883_s6 + $0x24c] ss:$16 sps:$4 sm:$0xff]   ;;  %v8569_v38 = vld [vmem:[%s12883_s6 + $0x268] ss:$16 sps:$4 sm:$0xff]  }
 0x28d   : > { %v8574_v32 = vld [vmem:[%s12883_s6 + $0x284] ss:$16 sps:$4 sm:$0xff]   ;;  %v8577_v28 = vld [vmem:[%s12883_s6 + $0x28c] ss:$16 sps:$4 sm:$0xff]   ;;  %v8572_v53 = vld [vmem:[%s12883_s6 + $0x280] ss:$16 sps:$4 sm:$0xff]  }
 0x28e   : > { %2511 = vmatprep.mubr.bf16.mxu1 %v1674_v56  ;;  %2657 = vmatprep.mubr.bf16.mxu0 %v1674_v56  ;;  %v8575_v6 = vld [vmem:[%s12883_s6 + $0x288] ss:$16 sps:$4 sm:$0xff]  }
 0x28f   : > { %2512 = vmatmul.mubr.bf16.vlgmr.msra.gmra.mrb[24].mxu1 %v1673_v45  ;;  %2658 = vmatmul.mubr.bf16.vlgmr.msra.gmra.mrb[16].mxu0 %v1673_v45  ;;  %v8563_v45 = vld [vmem:[%s12883_s6 + $0x248] ss:$16 sps:$4 sm:$0xff]  }
 0x290   : > { %2553 = vmatpush1.bf16.msra.mxu1 %v8548_v34  ;;  %2699 = vmatpush1.bf16.msra.mxu0 %v8551_v41 }
 0x291   : > { %2554 = vmatprep.subr.bf16.mxu1 %v8556_v14  ;;  %2700 = vmatprep.subr.bf16.mxu0 %v8559_v61  ;;  %v8580_v61 = vld [vmem:[%s12883_s6 + $0x2a4] ss:$16 sps:$4 sm:$0xff]  }
 0x294   : > { %2555 = vmatpush1.bf16.msra.mxu1 %v8554_v48  ;;  %2701 = vmatpush1.bf16.msra.mxu0 %v8557_v3  ;;  %v8583_v48 = vld [vmem:[%s12883_s6 + $0x2ac] ss:$16 sps:$4 sm:$0xff]  }
 0x295   : > { %2556 = vmatprep.subr.bf16.mxu1 %v8562_v20  ;;  %2702 = vmatprep.subr.bf16.mxu0 %v8565_v19 }
 0x298   : > { %2557 = vmatpush1.bf16.msra.mxu1 %v8560_v22  ;;  %2703 = vmatpush1.bf16.msra.mxu0 %v8563_v45 }
 0x299   : > { %2558 = vmatprep.subr.bf16.mxu1 %v8568_v50  ;;  %2704 = vmatprep.subr.bf16.mxu0 %v8571_v49 }
 0x29c   : > { %v1539_v17 = vpop.f32.mrb[12].mxu1  ;;  %v1612_v31 = vpop.f32.mrb[4].mxu0  ;;  %2559 = vmatpush1.bf16.msra.mxu1 %v8566_v55  ;;  %2705 = vmatpush1.bf16.msra.mxu0 %v8569_v38 }
 0x29d   : > { %v1540_v56 = vadd.f32 %v1539_v17, %v10404_v10  ;;  %v1613_v34 = vadd.f32 %v1612_v31, %v10407_v33  ;;  %v1541_v41 = vpop.f32.mrb[13].mxu1  ;;  %v1614_v14 = vpop.f32.mrb[5].mxu0  ;;  %2560 = vmatprep.subr.bf16.mxu1 %v8574_v32  ;;  %2706 = vmatprep.subr.bf16.mxu0 %v8577_v28  ;;  %v8578_v28 = vld [vmem:[%s12883_s6 + $0x2a0] ss:$16 sps:$4 sm:$0xff]   ;;  %v8581_v17 = vld [vmem:[%s12883_s6 + $0x2a8] ss:$16 sps:$4 sm:$0xff]  }
 0x29e   : > { %v1542_v3 = vadd.f32 %v1541_v41, %v10410_v39  ;;  %v1615_v20 = vadd.f32 %v1614_v14, %v10413_v35  ;;  %v1543_v19 = vpop.f32.mrb[14].mxu1  ;;  %v1616_v22 = vpop.f32.mrb[6].mxu0  ;;  %v8586_v31 = vld [vmem:[%s12883_s6 + $0x2c4] ss:$16 sps:$4 sm:$0xff]  }
 0x29f   : > { %v1544_v45 = vadd.f32 %v1543_v19, %v10404_v10  ;;  %v1617_v50 = vadd.f32 %v1616_v22, %v10407_v33  ;;  %v1545_v49 = vpop.f32.mrb[15].mxu1  ;;  %v1618_v55 = vpop.f32.mrb[7].mxu0  ;;  %v1649_v41 = vmax.f32 %v1540_v56, 0.0  ;;  %v1651_v14 = vmax.f32 %v1613_v34, 0.0  ;;  %v8584_v56 = vld [vmem:[%s12883_s6 + $0x2c0] ss:$16 sps:$4 sm:$0xff]  }
 0x2a0   : > { %v1546_v38 = vadd.f32 %v1545_v49, %v10410_v39  ;;  %v1619_v32 = vadd.f32 %v1618_v55, %v10413_v35  ;;  %2561 = vmatpush1.bf16.msra.mxu1 %v8572_v53  ;;  %2707 = vmatpush1.bf16.msra.mxu0 %v8575_v6  ;;  %v8589_v53 = vld [vmem:[%s12883_s6 + $0x2cc] ss:$16 sps:$4 sm:$0xff]   ;;  %v1650_v6 = vmax.f32 %v1542_v3, 0.0  ;;  %v1652_v49 = vmax.f32 %v1615_v20, 0.0  ;;  %v8587_v34 = vld [vmem:[%s12883_s6 + $0x2c8] ss:$16 sps:$4 sm:$0xff]  }
 0x2a1   : > { %v1653_v19 = vmax.f32 %v1544_v45, 0.0  ;;  %v1655_v22 = vmax.f32 %v1617_v50, 0.0  ;;  %2562 = vmatprep.subr.bf16.mxu1 %v8580_v61  ;;  %2708 = vmatprep.subr.bf16.mxu0 %v8583_v48  ;;  %v8592_v61 = vld [vmem:[%s12883_s6 + $0x2e4] ss:$16 sps:$4 sm:$0xff]   ;;  %v8590_v48 = vld [vmem:[%s12883_s6 + $0x2e0] ss:$16 sps:$4 sm:$0xff]  }
 0x2a2   : > { %v1654_v55 = vmax.f32 %v1546_v38, 0.0  ;;  %v1656_v1 = vmax.f32 %v1619_v32, 0.0  ;;  %v8593_v3 = vld [vmem:[%s12883_s6 + $0x2e8] ss:$16 sps:$4 sm:$0xff]   ;;  %v8598_v20 = vld [vmem:[%s12883_s6 + $0x304] ss:$16 sps:$4 sm:$0xff]  }
 0x2a3   : > { %v1677_v27 = vpack.c.bf16 %v1653_v19, %v1649_v41  ;;  %v10507_v15 = vpack.c.bf16 %v1655_v22, %v1651_v14  ;;  %v8599_v45 = vld [vmem:[%s12883_s6 + $0x308] ss:$16 sps:$4 sm:$0xff]   ;;  %v8604_v50 = vld [vmem:[%s12883_s6 + $0x324] ss:$16 sps:$4 sm:$0xff]   ;;  %v8607_v38 = vld [vmem:[%s12883_s6 + $0x32c] ss:$16 sps:$4 sm:$0xff]  }
 0x2a4   : > { %v1678_v11 = vpack.c.bf16 %v1654_v55, %v1650_v6  ;;  %v10509_v2 = vpack.c.bf16 %v1656_v1, %v1652_v49  ;;  %2563 = vmatpush1.bf16.msra.mxu1 %v8578_v28  ;;  %2709 = vmatpush1.bf16.msra.mxu0 %v8581_v17  ;;  %v8595_v1 = vld [vmem:[%s12883_s6 + $0x2ec] ss:$16 sps:$4 sm:$0xff]   ;;  %v8602_v32 = vld [vmem:[%s12883_s6 + $0x320] ss:$16 sps:$4 sm:$0xff]   ;;  %v8605_v28 = vld [vmem:[%s12883_s6 + $0x328] ss:$16 sps:$4 sm:$0xff]  }
 0x2a5   : > { %2564 = vmatprep.subr.bf16.mxu1 %v8586_v31  ;;  %2710 = vmatprep.subr.bf16.mxu0 %v8589_v53  ;;  %v8610_v17 = vld [vmem:[%s12883_s6 + $0x344] ss:$16 sps:$4 sm:$0xff]   ;;  %v8613_v31 = vld [vmem:[%s12883_s6 + $0x34c] ss:$16 sps:$4 sm:$0xff]   ;;  %v8608_v41 = vld [vmem:[%s12883_s6 + $0x340] ss:$16 sps:$4 sm:$0xff]  }
 0x2a6   : > { %2521 = vmatprep.mubr.bf16.mxu1 %v1678_v11  ;;  %2667 = vmatprep.mubr.bf16.mxu0 %v1678_v11  ;;  %v8601_v11 = vld [vmem:[%s12883_s6 + $0x30c] ss:$16 sps:$4 sm:$0xff]   ;;  %v8611_v14 = vld [vmem:[%s12883_s6 + $0x348] ss:$16 sps:$4 sm:$0xff]   ;;  %v8616_v19 = vld [vmem:[%s12883_s6 + $0x364] ss:$16 sps:$4 sm:$0xff]  }
 0x2a7   : > { %2522 = vmatmul.mubr.bf16.gmra.mrb[28].mxu1 %v1677_v27  ;;  %2668 = vmatmul.mubr.bf16.gmra.mrb[20].mxu0 %v1677_v27  ;;  %v8596_v27 = vld [vmem:[%s12883_s6 + $0x300] ss:$16 sps:$4 sm:$0xff]   ;;  %v8619_v22 = vld [vmem:[%s12883_s6 + $0x36c] ss:$16 sps:$4 sm:$0xff]   ;;  %v8617_v6 = vld [vmem:[%s12883_s6 + $0x368] ss:$16 sps:$4 sm:$0xff]  }
 0x2a8   : > { %2565 = vmatpush1.bf16.msra.mxu1 %v8584_v56  ;;  %2711 = vmatpush1.bf16.msra.mxu0 %v8587_v34  ;;  %v8614_v53 = vld [vmem:[%s12883_s6 + $0x360] ss:$16 sps:$4 sm:$0xff]   ;;  %v8622_v49 = vld [vmem:[%s12883_s6 + $0x384] ss:$16 sps:$4 sm:$0xff]   ;;  %v8625_v55 = vld [vmem:[%s12883_s6 + $0x38c] ss:$16 sps:$4 sm:$0xff]  }
 0x2a9   : > { %2566 = vmatprep.subr.bf16.mxu1 %v8592_v61  ;;  %2712 = vmatprep.subr.bf16.mxu0 %v8595_v1  ;;  %v8620_v61 = vld [vmem:[%s12883_s6 + $0x380] ss:$16 sps:$4 sm:$0xff]   ;;  %v8623_v1 = vld [vmem:[%s12883_s6 + $0x388] ss:$16 sps:$4 sm:$0xff]  }
 0x2ac   : > { %2567 = vmatpush1.bf16.msra.mxu1 %v8590_v48  ;;  %2713 = vmatpush1.bf16.msra.mxu0 %v8593_v3 }
 0x2ad   : > { %2568 = vmatprep.subr.bf16.mxu1 %v8598_v20  ;;  %2714 = vmatprep.subr.bf16.mxu0 %v8601_v11 }
 0x2b0   : > { %2569 = vmatpush1.bf16.msra.mxu1 %v8596_v27  ;;  %2715 = vmatpush1.bf16.msra.mxu0 %v8599_v45  ;;  %v8628_v27 = vld [vmem:[%s12883_s6 + $0x3a4] ss:$16 sps:$4 sm:$0xff]   ;;  %v8631_v45 = vld [vmem:[%s12883_s6 + $0x3ac] ss:$16 sps:$4 sm:$0xff]  }
 0x2b1   : > { %2570 = vmatprep.subr.bf16.mxu1 %v8604_v50  ;;  %2716 = vmatprep.subr.bf16.mxu0 %v8607_v38 }
 0x2b4   : > { %2571 = vmatpush1.bf16.msra.mxu1 %v8602_v32  ;;  %2717 = vmatpush1.bf16.msra.mxu0 %v8605_v28 }
 0x2b5   : > { %2572 = vmatprep.subr.bf16.mxu1 %v8610_v17  ;;  %2718 = vmatprep.subr.bf16.mxu0 %v8613_v31 }
 0x2b8   : > { %2573 = vmatpush1.bf16.msra.mxu1 %v8608_v41  ;;  %2719 = vmatpush1.bf16.msra.mxu0 %v8611_v14 }
 0x2b9   : > { %2574 = vmatprep.subr.bf16.mxu1 %v8616_v19  ;;  %2720 = vmatprep.subr.bf16.mxu0 %v8619_v22 }
 0x2bc   : > { %v1549_v56 = vpop.f32.mrb[16].mxu1  ;;  %v1622_v34 = vpop.f32.mrb[8].mxu0  ;;  %2575 = vmatpush1.bf16.msra.mxu1 %v8614_v53  ;;  %2721 = vmatpush1.bf16.msra.mxu0 %v8617_v6  ;;  %v8626_v53 = vld [vmem:[%s12883_s6 + $0x3a0] ss:$16 sps:$4 sm:$0xff]   ;;  %v8629_v6 = vld [vmem:[%s12883_s6 + $0x3a8] ss:$16 sps:$4 sm:$0xff]  }
 0x2bd   : > { %v1550_v48 = vadd.f32 %v1549_v56, %v10404_v10  ;;  %v1623_v3 = vadd.f32 %v1622_v34, %v10407_v33  ;;  %v1551_v20 = vpop.f32.mrb[17].mxu1  ;;  %v1624_v11 = vpop.f32.mrb[9].mxu0  ;;  %2576 = vmatprep.subr.bf16.mxu1 %v8622_v49  ;;  %2722 = vmatprep.subr.bf16.mxu0 %v8625_v55  ;;  %v8634_v49 = vld [vmem:[%s12883_s6 + $0x3c4] ss:$16 sps:$4 sm:$0xff]  }
 0x2be   : > { %v1552_v50 = vadd.f32 %v1551_v20, %v10410_v39  ;;  %v1625_v38 = vadd.f32 %v1624_v11, %v10413_v35  ;;  %v1553_v32 = vpop.f32.mrb[18].mxu1  ;;  %v1626_v28 = vpop.f32.mrb[10].mxu0 }
 0x2bf   : > { %v1554_v17 = vadd.f32 %v1553_v32, %v10404_v10  ;;  %v1627_v31 = vadd.f32 %v1626_v28, %v10407_v33  ;;  %v1555_v41 = vpop.f32.mrb[19].mxu1  ;;  %v1628_v14 = vpop.f32.mrb[11].mxu0  ;;  %v1657_v55 = vmax.f32 %v1550_v48, 0.0  ;;  %v1659_v56 = vmax.f32 %v1623_v3, 0.0  ;;  %v8632_v48 = vld [vmem:[%s12883_s6 + $0x3c0] ss:$16 sps:$4 sm:$0xff]  }
 0x2c0   : > { %v1556_v19 = vadd.f32 %v1555_v41, %v10410_v39  ;;  %v1629_v22 = vadd.f32 %v1628_v14, %v10413_v35  ;;  %2577 = vmatpush1.bf16.msra.mxu1 %v8620_v61  ;;  %2723 = vmatpush1.bf16.msra.mxu0 %v8623_v1  ;;  %v8637_v61 = vld [vmem:[%s12883_s6 + $0x3cc] ss:$16 sps:$4 sm:$0xff]   ;;  %v1658_v1 = vmax.f32 %v1552_v50, 0.0  ;;  %v1660_v11 = vmax.f32 %v1625_v38, 0.0  ;;  %v8635_v3 = vld [vmem:[%s12883_s6 + $0x3c8] ss:$16 sps:$4 sm:$0xff]  }
 0x2c1   : > { %v1661_v34 = vmax.f32 %v1554_v17, 0.0  ;;  %v1663_v20 = vmax.f32 %v1627_v31, 0.0  ;;  %2578 = vmatprep.subr.bf16.mxu1 %v8628_v27  ;;  %2724 = vmatprep.subr.bf16.mxu0 %v8631_v45  ;;  %v8640_v27 = vld [vmem:[%s12883_s6 + $0x3e4] ss:$16 sps:$4 sm:$0xff]   ;;  %v8643_v45 = vld [vmem:[%s12883_s6 + $0x3ec] ss:$16 sps:$4 sm:$0xff]  }
 0x2c2   : > { %v1662_v32 = vmax.f32 %v1556_v19, 0.0  ;;  %v1664_v28 = vmax.f32 %v1629_v22, 0.0  ;;  %v8638_v50 = vld [vmem:[%s12883_s6 + $0x3e0] ss:$16 sps:$4 sm:$0xff]   ;;  %v8641_v38 = vld [vmem:[%s12883_s6 + $0x3e8] ss:$16 sps:$4 sm:$0xff]  }
 0x2c3   : > { %v1681_v41 = vpack.c.bf16 %v1661_v34, %v1657_v55  ;;  %v10615_v14 = vpack.c.bf16 %v1663_v20, %v1659_v56  ;;  %v8646_v17 = vld [vmem:[%s12885_s8 + $0x4] ss:$8 sps:$4 sm:$0xff]  }
 0x2c4   : > { %v1682_v46 = vpack.c.bf16 %v1662_v32, %v1658_v1  ;;  %v10617_v0 = vpack.c.bf16 %v1664_v28, %v1660_v11  ;;  %2579 = vmatpush1.bf16.msra.mxu1 %v8626_v53  ;;  %2725 = vmatpush1.bf16.msra.mxu0 %v8629_v6 }
 0x2c5   : > { %2580 = vmatprep.subr.bf16.mxu1 %v8634_v49  ;;  %2726 = vmatprep.subr.bf16.mxu0 %v8637_v61 }
 0x2c6   : > { %2531 = vmatprep.mubr.bf16.mxu1 %v1682_v46  ;;  %2677 = vmatprep.mubr.bf16.mxu0 %v1682_v46 }
 0x2c7   : > { %2532 = vmatmul.mubr.bf16.gmra.mrb[32].mxu1 %v1681_v41  ;;  %2678 = vmatmul.mubr.bf16.gmra.mrb[24].mxu0 %v1681_v41 }
 0x2c8   : > { %2581 = vmatpush1.bf16.msra.mxu1 %v8632_v48  ;;  %2727 = vmatpush1.bf16.msra.mxu0 %v8635_v3 }
 0x2c9   : > { %2582 = vmatprep.subr.bf16.mxu1 %v8640_v27  ;;  %2728 = vmatprep.subr.bf16.mxu0 %v8643_v45 }
 0x2cc   : > { %2583 = vmatpush1.bf16.msra.mxu1 %v8638_v50  ;;  %2729 = vmatpush1.bf16.msra.mxu0 %v8641_v38 }
 0x2cd   : > { %3203 = vmatprep.subr.bf16.mxu1 %v8646_v17 }
 0x2dc   : > { %v1559_v46 = vpop.f32.mrb[20].mxu1  ;;  %v1632_v31 = vpop.f32.mrb[12].mxu0 }
 0x2dd   : > { %v1560_v19 = vadd.f32 %v1559_v46, %v10404_v10  ;;  %v1633_v22 = vadd.f32 %v1632_v31, %v10407_v33  ;;  %v1561_v53 = vpop.f32.mrb[21].mxu1  ;;  %v1634_v6 = vpop.f32.mrb[13].mxu0 }
 0x2de   : > { %v1562_v49 = vadd.f32 %v1561_v53, %v10410_v39  ;;  %v1635_v55 = vadd.f32 %v1634_v6, %v10413_v35  ;;  %v1563_v56 = vpop.f32.mrb[22].mxu1  ;;  %v1636_v34 = vpop.f32.mrb[14].mxu0  ;;  %v8656_v6 = vld [vmem:[%s12885_s8 + $0x40] ss:$8 sps:$4 sm:$0xff]  }
 0x2df   : > { %v1564_v20 = vadd.f32 %v1563_v56, %v10404_v10  ;;  %v1637_v61 = vadd.f32 %v1636_v34, %v10407_v33  ;;  %v1565_v1 = vpop.f32.mrb[23].mxu1  ;;  %v1638_v11 = vpop.f32.mrb[15].mxu0  ;;  %v1665_v41 = vmax.f32 %v1560_v19, 0.0  ;;  %v1667_v48 = vmax.f32 %v1633_v22, 0.0  ;;  %v8644_v33 = vld [vmem:[%s12885_s8] ss:$8 sps:$4 sm:$0xff]  }
 0x2e0   : > { %v1566_v32 = vadd.f32 %v1565_v1, %v10410_v39  ;;  %v1639_v28 = vadd.f32 %v1638_v11, %v10413_v35  ;;  %v1666_v45 = vmax.f32 %v1562_v49, 0.0  ;;  %v1668_v50 = vmax.f32 %v1635_v55, 0.0  ;;  %v8649_v39 = vld [vmem:[%s12885_s8 + $0x14] ss:$8 sps:$4 sm:$0xff]   ;;  %v8652_v35 = vld [vmem:[%s12885_s8 + $0x24] ss:$8 sps:$4 sm:$0xff]  }
 0x2e1   : > { %v1669_v3 = vmax.f32 %v1564_v20, 0.0  ;;  %v1671_v27 = vmax.f32 %v1637_v61, 0.0  ;;  %v8650_v19 = vld [vmem:[%s12885_s8 + $0x20] ss:$8 sps:$4 sm:$0xff]   ;;  %v8658_v22 = vld [vmem:[%s12885_s8 + $0x44] ss:$8 sps:$4 sm:$0xff]  }
 0x2e2   : > { %v1670_v38 = vmax.f32 %v1566_v32, 0.0  ;;  %v1672_v17 = vmax.f32 %v1639_v28, 0.0  ;;  %v8664_v49 = vld [vmem:[%s12885_s8 + $0x64] ss:$8 sps:$4 sm:$0xff]   ;;  %v8662_v55 = vld [vmem:[%s12885_s8 + $0x60] ss:$8 sps:$4 sm:$0xff]  }
 0x2e3   : > { %v1685_v46 = vpack.c.bf16 %v1669_v3, %v1665_v41  ;;  %v1687_v31 = vpack.c.bf16 %v1671_v27, %v1667_v48  ;;  %v8665_v56 = vld [vmem:[%s12885_s8 + $0x70] ss:$8 sps:$4 sm:$0xff]   ;;  %v8670_v34 = vld [vmem:[%s12885_s8 + $0x84] ss:$8 sps:$4 sm:$0xff]   ;;  %v8668_v20 = vld [vmem:[%s12885_s8 + $0x80] ss:$8 sps:$4 sm:$0xff]  }
 0x2e4   : > { %v1686_v53 = vpack.c.bf16 %v1670_v38, %v1666_v45  ;;  %v1688_v10 = vpack.c.bf16 %v1672_v17, %v1668_v50  ;;  %v8673_v61 = vld [vmem:[%s12885_s8 + $0x94] ss:$8 sps:$4 sm:$0xff]   ;;  %v8671_v1 = vld [vmem:[%s12885_s8 + $0x90] ss:$8 sps:$4 sm:$0xff]   ;;  %v8676_v11 = vld [vmem:[%s12885_s8 + $0xa4] ss:$8 sps:$4 sm:$0xff]  }
 0x2e5   : > { %v8674_v32 = vld [vmem:[%s12885_s8 + $0xa0] ss:$8 sps:$4 sm:$0xff]   ;;  %v8679_v28 = vld [vmem:[%s12885_s8 + $0xb4] ss:$8 sps:$4 sm:$0xff]   ;;  %v8677_v41 = vld [vmem:[%s12885_s8 + $0xb0] ss:$8 sps:$4 sm:$0xff]  }
 0x2e6   : > { %2541 = vmatprep.mubr.bf16.mxu1 %v1686_v53  ;;  %2687 = vmatprep.mubr.bf16.mxu0 %v1686_v53  ;;  %v8682_v48 = vld [vmem:[%s12885_s8 + $0xc4] ss:$8 sps:$4 sm:$0xff]   ;;  %v8680_v3 = vld [vmem:[%s12885_s8 + $0xc0] ss:$8 sps:$4 sm:$0xff]   ;;  %v8685_v27 = vld [vmem:[%s12885_s8 + $0xd4] ss:$8 sps:$4 sm:$0xff]  }
 0x2e7   : > { %2542 = vmatmul.mubr.bf16.gmra.mrb[36].mxu1 %v1685_v46  ;;  %2688 = vmatmul.mubr.bf16.gmra.mrb[28].mxu0 %v1685_v46  ;;  %v8683_v45 = vld [vmem:[%s12885_s8 + $0xd0] ss:$8 sps:$4 sm:$0xff]   ;;  %v8688_v50 = vld [vmem:[%s12885_s8 + $0xe4] ss:$8 sps:$4 sm:$0xff]   ;;  %v8686_v38 = vld [vmem:[%s12885_s8 + $0xe0] ss:$8 sps:$4 sm:$0xff]  }
 0x2e8   : > { %2584 = vmatprep.mubr.bf16.mxu1 %v10425_v21  ;;  %2730 = vmatprep.mubr.bf16.mxu0 %v10425_v21  ;;  %v8647_v21 = vld [vmem:[%s12885_s8 + $0x10] ss:$8 sps:$4 sm:$0xff]   ;;  %v8691_v17 = vld [vmem:[%s12885_s8 + $0xf4] ss:$8 sps:$4 sm:$0xff]   ;;  %v1817_v53 = vld [vmem:[%s12884_s7] sm:$0xf] }
 0x2e9   : > { %v8689_v46 = vld [vmem:[%s12885_s8 + $0xf0] ss:$8 sps:$4 sm:$0xff]  }
 0x2ef   : > { %2585 = vmatmul.mubr.bf16.vlgmr.msra.gmra.mrb[24].mxu1 %v10423_v24  ;;  %2731 = vmatmul.mubr.bf16.vlgmr.msra.gmra.mrb[16].mxu0 %v10423_v24  ;;  %v8653_v24 = vld [vmem:[%s12885_s8 + $0x30] ss:$8 sps:$4 sm:$0xff]  }
 0x2f0   : > { %2594 = vmatprep.mubr.bf16.mxu1 %v10509_v2  ;;  %2740 = vmatprep.mubr.bf16.mxu0 %v10509_v2  ;;  %v8655_v2 = vld [vmem:[%s12885_s8 + $0x34] ss:$8 sps:$4 sm:$0xff]  }
 0x2f1   : > { %3204 = vmatpush1.bf16.msra.mxu1 %v8644_v33  ;;  %v10763_v33 = vrot.slane %v1817_v53, %v10394_v51 }
 0x2f2   : > { %3205 = vmatprep.subr.bf16.mxu1 %v8649_v39  ;;  %v10766_v39 = vrot.slane %v1817_v53, %v10399_v37 }
 0x2f5   : > { %3206 = vmatpush1.bf16.msra.mxu1 %v8647_v21  ;;  %v10769_v21 = vrot.slane %v1817_v53, %v10401_v59 }
 0x2f6   : > { %3207 = vmatprep.subr.bf16.mxu1 %v8652_v35 }
 0x2f7   : > { %2595 = vmatmul.mubr.bf16.gmra.mrb[28].mxu1 %v10507_v15  ;;  %2741 = vmatmul.mubr.bf16.gmra.mrb[20].mxu0 %v10507_v15  ;;  %v8659_v15 = vld [vmem:[%s12885_s8 + $0x50] ss:$8 sps:$4 sm:$0xff]  }
 0x2f8   : > { %2604 = vmatprep.mubr.bf16.mxu1 %v10617_v0  ;;  %2750 = vmatprep.mubr.bf16.mxu0 %v10617_v0  ;;  %v8661_v0 = vld [vmem:[%s12885_s8 + $0x54] ss:$8 sps:$4 sm:$0xff]  }
 0x2f9   : > { %3208 = vmatpush1.bf16.msra.mxu1 %v8650_v19 }
 0x2fa   : > { %3209 = vmatprep.subr.bf16.mxu1 %v8655_v2 }
 0x2fd   : > { %3210 = vmatpush1.bf16.msra.mxu1 %v8653_v24 }
 0x2fe   : > { %3211 = vmatprep.subr.bf16.mxu1 %v8658_v22 }
 0x2ff   : > { %2605 = vmatmul.mubr.bf16.gmra.mrb[32].mxu1 %v10615_v14  ;;  %2751 = vmatmul.mubr.bf16.gmra.mrb[24].mxu0 %v10615_v14  ;;  %v8667_v14 = vld [vmem:[%s12885_s8 + $0x74] ss:$8 sps:$4 sm:$0xff]  }
 0x300   : > { %2614 = vmatprep.mubr.bf16.mxu1 %v1688_v10  ;;  %2760 = vmatprep.mubr.bf16.mxu0 %v1688_v10  ;;  %v10760_v10 = vrot.slane %v1817_v53, %v10392_v52 }
 0x301   : > { %3212 = vmatpush1.bf16.msra.mxu1 %v8656_v6 }
 0x302   : > { %3213 = vmatprep.subr.bf16.mxu1 %v8661_v0 }
 0x305   : > { %3214 = vmatpush1.bf16.msra.mxu1 %v8659_v15 }
 0x306   : > { %3215 = vmatprep.subr.bf16.mxu1 %v8664_v49 }
 0x307   : > { %2615 = vmatmul.mubr.bf16.gmra.mrb[36].mxu1 %v1687_v31  ;;  %2761 = vmatmul.mubr.bf16.gmra.mrb[28].mxu0 %v1687_v31  ;;  %v8694_v31 = vld [vmem:[%s12885_s8 + $0x104] ss:$8 sps:$4 sm:$0xff]  }
 0x309   : > { %3216 = vmatpush1.bf16.msra.mxu1 %v8662_v55 }
 0x30a   : > { %3217 = vmatprep.subr.bf16.mxu1 %v8667_v14 }
 0x30d   : > { %3218 = vmatpush1.bf16.msra.mxu1 %v8665_v56 }
 0x30e   : > { %3219 = vmatprep.subr.bf16.mxu1 %v8670_v34 }
 0x311   : > { %3220 = vmatpush1.bf16.msra.mxu1 %v8668_v20 }
 0x312   : > { %3221 = vmatprep.subr.bf16.mxu1 %v8673_v61 }
 0x315   : > { %3222 = vmatpush1.bf16.msra.mxu1 %v8671_v1 }
 0x316   : > { %3223 = vmatprep.subr.bf16.mxu1 %v8676_v11 }
 0x319   : > { %3224 = vmatpush1.bf16.msra.mxu1 %v8674_v32 }
 0x31a   : > { %3225 = vmatprep.subr.bf16.mxu1 %v8679_v28 }
 0x31d   : > { %3226 = vmatpush1.bf16.msra.mxu1 %v8677_v41 }
 0x31e   : > { %3227 = vmatprep.subr.bf16.mxu1 %v8682_v48 }
 0x321   : > { %3228 = vmatpush1.bf16.msra.mxu1 %v8680_v3 }
 0x322   : > { %3229 = vmatprep.subr.bf16.mxu1 %v8685_v27 }
 0x325   : > { %3230 = vmatpush1.bf16.msra.mxu1 %v8683_v45 }
 0x326   : > { %3231 = vmatprep.subr.bf16.mxu1 %v8688_v50 }
 0x329   : > { %3232 = vmatpush1.bf16.msra.mxu1 %v8686_v38 }
 0x32a   : > { %3233 = vmatprep.subr.bf16.mxu1 %v8691_v17 }
 0x32d   : > { %3234 = vmatpush1.bf16.msra.mxu1 %v8689_v46 }
 0x32e   : > { %3276 = vmatprep.subr.bf16.mxu1 %v8694_v31 }
 0x3c2   : > { %v2586_v35 = vpop.f32.mrb[24].mxu1  ;;  %v2732_v19 = vpop.f32.mrb[16].mxu0 }
 0x3c3   : > { %v8160_v2 = vadd.f32 %v2586_v35, %v10760_v10  ;;  %v8176_v24 = vadd.f32 %v2732_v19, %v10763_v33  ;;  %v2588_v22 = vpop.f32.mrb[25].mxu1  ;;  %v2734_v6 = vpop.f32.mrb[17].mxu0  ;;  %v8692_v35 = vld [vmem:[%s12885_s8 + $0x100] ss:$8 sps:$4 sm:$0xff]  }
 0x3c4   : > { %v8161_v0 = vadd.f32 %v2588_v22, %v10766_v39  ;;  %v8177_v15 = vadd.f32 %v2734_v6, %v10769_v21  ;;  %v2590_v49 = vpop.f32.mrb[26].mxu1  ;;  %v2736_v55 = vpop.f32.mrb[18].mxu0  ;;  %v8697_v6 = vld [vmem:[%s12885_s8 + $0x114] ss:$8 sps:$4 sm:$0xff]  }
 0x3c5   : > { %v8162_v14 = vadd.f32 %v2590_v49, %v10760_v10  ;;  %v8178_v56 = vadd.f32 %v2736_v55, %v10763_v33  ;;  %v2592_v34 = vpop.f32.mrb[27].mxu1  ;;  %v2738_v20 = vpop.f32.mrb[19].mxu0  ;;  %v2771_v11 = vmax.f32 %v8160_v2, 0.0  ;;  %v2773_v32 = vmax.f32 %v8176_v24, 0.0 }
 0x3c6   : > { %v8163_v61 = vadd.f32 %v2592_v34, %v10766_v39  ;;  %v8179_v1 = vadd.f32 %v2738_v20, %v10769_v21  ;;  %v2772_v48 = vmax.f32 %v8161_v0, 0.0  ;;  %v2774_v3 = vmax.f32 %v8177_v15, 0.0 }
 0x3c7   : > { %v2775_v28 = vmax.f32 %v8162_v14, 0.0  ;;  %v2777_v41 = vmax.f32 %v8178_v56, 0.0 }
 0x3c8   : > { %v2776_v27 = vmax.f32 %v8163_v61, 0.0  ;;  %v2778_v45 = vmax.f32 %v8179_v1, 0.0 }
 0x3c9   : > { %v2803_v50 = vpack.c.bf16 %v2775_v28, %v2771_v11  ;;  %v10779_v38 = vpack.c.bf16 %v2777_v41, %v2773_v32  ;;  %v8695_v11 = vld [vmem:[%s12885_s8 + $0x110] ss:$8 sps:$4 sm:$0xff]  }
 0x3ca   : > { %v2804_v17 = vpack.c.bf16 %v2776_v27, %v2772_v48  ;;  %v10781_v46 = vpack.c.bf16 %v2778_v45, %v2774_v3  ;;  %v2596_v31 = vpop.f32.mrb[28].mxu1  ;;  %v2742_v53 = vpop.f32.mrb[20].mxu0  ;;  %v8700_v3 = vld [vmem:[%s12885_s8 + $0x124] ss:$8 sps:$4 sm:$0xff]  }
 0x3cb   : > { %v8164_v19 = vadd.f32 %v2596_v31, %v10760_v10  ;;  %v8180_v2 = vadd.f32 %v2742_v53, %v10763_v33  ;;  %v2598_v24 = vpop.f32.mrb[29].mxu1  ;;  %v2744_v22 = vpop.f32.mrb[21].mxu0 }
 0x3cc   : > { %v8165_v0 = vadd.f32 %v2598_v24, %v10766_v39  ;;  %v8181_v15 = vadd.f32 %v2744_v22, %v10769_v21  ;;  %v2600_v49 = vpop.f32.mrb[30].mxu1  ;;  %v2746_v55 = vpop.f32.mrb[22].mxu0  ;;  %3235 = vmatprep.mubr.bf16.mxu1 %v2804_v17  ;;  %v8698_v22 = vld [vmem:[%s12885_s8 + $0x120] ss:$8 sps:$4 sm:$0xff]  }
 0x3cd   : > { %v8166_v14 = vadd.f32 %v2600_v49, %v10760_v10  ;;  %v8182_v56 = vadd.f32 %v2746_v55, %v10763_v33  ;;  %v2602_v34 = vpop.f32.mrb[31].mxu1  ;;  %v2748_v20 = vpop.f32.mrb[23].mxu0  ;;  %3236 = vmatmul.mubr.bf16.vlgmr.msra.gmra.mrb[40].mxu1 %v2803_v50  ;;  %v2779_v32 = vmax.f32 %v8164_v19, 0.0  ;;  %v2781_v28 = vmax.f32 %v8180_v2, 0.0  ;;  %v8703_v55 = vld [vmem:[%s12885_s8 + $0x134] ss:$8 sps:$4 sm:$0xff]  }
 0x3ce   : > { %v8167_v61 = vadd.f32 %v2602_v34, %v10766_v39  ;;  %v8183_v1 = vadd.f32 %v2748_v20, %v10769_v21  ;;  %3277 = vmatpush1.bf16.msra.mxu1 %v8692_v35  ;;  %v2780_v27 = vmax.f32 %v8165_v0, 0.0  ;;  %v2782_v45 = vmax.f32 %v8181_v15, 0.0 }
 0x3cf   : > { %v2783_v41 = vmax.f32 %v8166_v14, 0.0  ;;  %v2785_v48 = vmax.f32 %v8182_v56, 0.0  ;;  %3278 = vmatprep.subr.bf16.mxu1 %v8697_v6 }
 0x3d0   : > { %v2784_v50 = vmax.f32 %v8167_v61, 0.0  ;;  %v2786_v17 = vmax.f32 %v8183_v1, 0.0 }
 0x3d1   : > { %v2807_v31 = vpack.c.bf16 %v2783_v41, %v2779_v32  ;;  %v10803_v53 = vpack.c.bf16 %v2785_v48, %v2781_v28  ;;  %v8701_v48 = vld [vmem:[%s12885_s8 + $0x130] ss:$8 sps:$4 sm:$0xff]  }
 0x3d2   : > { %v2808_v35 = vpack.c.bf16 %v2784_v50, %v2780_v27  ;;  %v10805_v24 = vpack.c.bf16 %v2786_v17, %v2782_v45  ;;  %3279 = vmatpush1.bf16.msra.mxu1 %v8695_v11  ;;  %v2606_v19 = vpop.f32.mrb[32].mxu1  ;;  %v2752_v2 = vpop.f32.mrb[24].mxu0  ;;  %v8706_v17 = vld [vmem:[%s12885_s8 + $0x144] ss:$8 sps:$4 sm:$0xff]  }
 0x3d3   : > { %v8168_v6 = vadd.f32 %v2606_v19, %v10760_v10  ;;  %v8184_v0 = vadd.f32 %v2752_v2, %v10763_v33  ;;  %v2608_v15 = vpop.f32.mrb[33].mxu1  ;;  %v2754_v49 = vpop.f32.mrb[25].mxu0  ;;  %3280 = vmatprep.subr.bf16.mxu1 %v8700_v3 }
 0x3d4   : > { %v8169_v14 = vadd.f32 %v2608_v15, %v10766_v39  ;;  %v8185_v56 = vadd.f32 %v2754_v49, %v10769_v21  ;;  %v2610_v34 = vpop.f32.mrb[34].mxu1  ;;  %v2756_v20 = vpop.f32.mrb[26].mxu0  ;;  %3245 = vmatprep.mubr.bf16.mxu1 %v2808_v35 }
 0x3d5   : > { %v8170_v61 = vadd.f32 %v2610_v34, %v10760_v10  ;;  %v8186_v1 = vadd.f32 %v2756_v20, %v10763_v33  ;;  %v2612_v11 = vpop.f32.mrb[35].mxu1  ;;  %v2758_v32 = vpop.f32.mrb[27].mxu0  ;;  %3246 = vmatmul.mubr.bf16.gmra.mrb[44].mxu1 %v2807_v31  ;;  %v2787_v3 = vmax.f32 %v8168_v6, 0.0  ;;  %v2789_v27 = vmax.f32 %v8184_v0, 0.0 }
 0x3d6   : > { %v8171_v28 = vadd.f32 %v2612_v11, %v10766_v39  ;;  %v8187_v41 = vadd.f32 %v2758_v32, %v10769_v21  ;;  %3281 = vmatpush1.bf16.msra.mxu1 %v8698_v22  ;;  %v2788_v35 = vmax.f32 %v8169_v14, 0.0  ;;  %v2790_v31 = vmax.f32 %v8185_v56, 0.0 }
 0x3d7   : > { %v2791_v45 = vmax.f32 %v8170_v61, 0.0  ;;  %v2793_v50 = vmax.f32 %v8186_v1, 0.0  ;;  %3282 = vmatprep.subr.bf16.mxu1 %v8703_v55  ;;  %v8704_v55 = vld [vmem:[%s12885_s8 + $0x140] ss:$8 sps:$4 sm:$0xff]   ;;  %v8709_v1 = vld [vmem:[%s12885_s8 + $0x154] ss:$8 sps:$4 sm:$0xff]  }
 0x3d8   : > { %v2792_v19 = vmax.f32 %v8171_v28, 0.0  ;;  %v2794_v2 = vmax.f32 %v8187_v41, 0.0 }
 0x3d9   : > { %v2811_v15 = vpack.c.bf16 %v2791_v45, %v2787_v3  ;;  %v10827_v49 = vpack.c.bf16 %v2793_v50, %v2789_v27 }
 0x3da   : > { %v2812_v22 = vpack.c.bf16 %v2792_v19, %v2788_v35  ;;  %v10829_v34 = vpack.c.bf16 %v2794_v2, %v2790_v31  ;;  %3283 = vmatpush1.bf16.msra.mxu1 %v8701_v48  ;;  %v2616_v6 = vpop.f32.mrb[36].mxu1  ;;  %v2762_v0 = vpop.f32.mrb[28].mxu0  ;;  %v8707_v35 = vld [vmem:[%s12885_s8 + $0x150] ss:$8 sps:$4 sm:$0xff]  }
 0x3db   : > { %v8172_v20 = vadd.f32 %v2616_v6, %v10760_v10  ;;  %v8188_v14 = vadd.f32 %v2762_v0, %v10763_v33  ;;  %v2618_v56 = vpop.f32.mrb[37].mxu1  ;;  %v2764_v61 = vpop.f32.mrb[29].mxu0  ;;  %3284 = vmatprep.subr.bf16.mxu1 %v8706_v17 }
 0x3dc   : > { %v8173_v11 = vadd.f32 %v2618_v56, %v10766_v39  ;;  %v8189_v32 = vadd.f32 %v2764_v61, %v10769_v21  ;;  %v2620_v28 = vpop.f32.mrb[38].mxu1  ;;  %v2766_v41 = vpop.f32.mrb[30].mxu0  ;;  %3255 = vmatprep.mubr.bf16.mxu1 %v2812_v22  ;;  %v8713_v61 = vld [vmem:[%s12885_s8 + $0x170] ss:$8 sps:$4 sm:$0xff]  }
 0x3dd   : > { %v8174_v48 = vadd.f32 %v2620_v28, %v10760_v10  ;;  %v8190_v3 = vadd.f32 %v2766_v41, %v10763_v33  ;;  %v2622_v27 = vpop.f32.mrb[39].mxu1  ;;  %v2768_v45 = vpop.f32.mrb[31].mxu0  ;;  %3256 = vmatmul.mubr.bf16.gmra.mrb[48].mxu1 %v2811_v15  ;;  %v2795_v31 = vmax.f32 %v8172_v20, 0.0  ;;  %v2797_v19 = vmax.f32 %v8188_v14, 0.0  ;;  %v8712_v10 = vld [vmem:[%s12885_s8 + $0x164] ss:$8 sps:$4 sm:$0xff]  }
 0x3de   : > { %v8175_v50 = vadd.f32 %v2622_v27, %v10766_v39  ;;  %v8191_v17 = vadd.f32 %v2768_v45, %v10769_v21  ;;  %3285 = vmatpush1.bf16.msra.mxu1 %v8704_v55  ;;  %v2796_v33 = vmax.f32 %v8173_v11, 0.0  ;;  %v2798_v15 = vmax.f32 %v8189_v32, 0.0  ;;  %v8710_v20 = vld [vmem:[%s12885_s8 + $0x160] ss:$8 sps:$4 sm:$0xff]   ;;  %v8715_v14 = vld [vmem:[%s12885_s8 + $0x174] ss:$8 sps:$4 sm:$0xff]  }
 0x3df   : > { %v2799_v2 = vmax.f32 %v8174_v48, 0.0  ;;  %v2801_v22 = vmax.f32 %v8190_v3, 0.0  ;;  %3286 = vmatprep.subr.bf16.mxu1 %v8709_v1  ;;  %v8718_v1 = vld [vmem:[%s12885_s8 + $0x184] ss:$8 sps:$4 sm:$0xff]   ;;  %v8716_v11 = vld [vmem:[%s12885_s8 + $0x180] ss:$8 sps:$4 sm:$0xff]  }
 0x3e0   : > { %v2800_v6 = vmax.f32 %v8175_v50, 0.0  ;;  %v2802_v39 = vmax.f32 %v8191_v17, 0.0  ;;  %v8721_v32 = vld [vmem:[%s12885_s8 + $0x194] ss:$8 sps:$4 sm:$0xff]   ;;  %v8724_v28 = vld [vmem:[%s12885_s8 + $0x1a4] ss:$8 sps:$4 sm:$0xff]  }
 0x3e1   : > { %v2815_v0 = vpack.c.bf16 %v2799_v2, %v2795_v31  ;;  %v2817_v21 = vpack.c.bf16 %v2801_v22, %v2797_v19  ;;  %v8722_v41 = vld [vmem:[%s12885_s8 + $0x1a0] ss:$8 sps:$4 sm:$0xff]   ;;  %v8727_v48 = vld [vmem:[%s12885_s8 + $0x1b4] ss:$8 sps:$4 sm:$0xff]   ;;  %v8725_v3 = vld [vmem:[%s12885_s8 + $0x1b0] ss:$8 sps:$4 sm:$0xff]  }
 0x3e2   : > { %v2816_v55 = vpack.c.bf16 %v2800_v6, %v2796_v33  ;;  %v2818_v56 = vpack.c.bf16 %v2802_v39, %v2798_v15  ;;  %3287 = vmatpush1.bf16.msra.mxu1 %v8707_v35  ;;  %v8730_v27 = vld [vmem:[%s12885_s8 + $0x1c4] ss:$8 sps:$4 sm:$0xff]   ;;  %v8728_v45 = vld [vmem:[%s12885_s8 + $0x1c0] ss:$8 sps:$4 sm:$0xff]   ;;  %v8733_v50 = vld [vmem:[%s12885_s8 + $0x1d4] ss:$8 sps:$4 sm:$0xff]  }
 0x3e3   : > { %3288 = vmatprep.subr.bf16.mxu1 %v8712_v10  ;;  %v8731_v17 = vld [vmem:[%s12885_s8 + $0x1d0] ss:$8 sps:$4 sm:$0xff]   ;;  %v8736_v35 = vld [vmem:[%s12885_s8 + $0x1e4] ss:$8 sps:$4 sm:$0xff]   ;;  %v8734_v31 = vld [vmem:[%s12885_s8 + $0x1e0] ss:$8 sps:$4 sm:$0xff]  }
 0x3e4   : > { %3265 = vmatprep.mubr.bf16.mxu1 %v2816_v55  ;;  %v8739_v19 = vld [vmem:[%s12885_s8 + $0x1f4] ss:$8 sps:$4 sm:$0xff]   ;;  %v8737_v2 = vld [vmem:[%s12885_s8 + $0x1f0] ss:$8 sps:$4 sm:$0xff]   ;;  %v10915_v33 = vld [vmem:[#allocation5 + $0xa0] sm:$0xff] }
 0x3e5   : > { %3266 = vmatmul.mubr.bf16.gmra.mrb[52].mxu1 %v2815_v0  ;;  %v3506_v22 = vld [vmem:[#allocation5 + $0x10] sm:$0xfe]  ;;  %v10918_v15 = vld [vmem:[#allocation5 + $0xa0] sm:$0x1]  ;;  %v13215_v0 = vld [vmem:[#allocation24_spill] sm:$0xff] }
 0x3e6   : > { %3289 = vmatpush1.bf16.msra.mxu1 %v8710_v20  ;;  %3308 = vmatprep.mubr.bf16.mxu1 %v10781_v46  ;;  %v8719_v46 = vld [vmem:[%s12885_s8 + $0x190] ss:$8 sps:$4 sm:$0xff]   ;;  %v3569_v10 = vld [vmem:[#allocation5 + $0x10] sm:$0x80] }
 0x3e7   : > { %3290 = vmatprep.subr.bf16.mxu1 %v8715_v14  ;;  %6664 = vst [vmem:[#allocation5 + $0x10] sm:$0xff] %v10915_v33  ;;  %v13214_v6 = vld [vmem:[#allocation17_spill] sm:$0xff] }
 0x3ea   : > { %3291 = vmatpush1.bf16.msra.mxu1 %v8713_v61 }
 0x3eb   : > { %3292 = vmatprep.subr.bf16.mxu1 %v8718_v1 }
 0x3ee   : > { %3293 = vmatpush1.bf16.msra.mxu1 %v8716_v11 }
 0x3ef   : > { %3294 = vmatprep.subr.bf16.mxu1 %v8721_v32 }
 0x3f2   : > { %3295 = vmatpush1.bf16.msra.mxu1 %v8719_v46 }
 0x3f3   : > { %3296 = vmatprep.subr.bf16.mxu1 %v8724_v28 }
 0x3f6   : > { %3297 = vmatpush1.bf16.msra.mxu1 %v8722_v41 }
 0x3f7   : > { %3298 = vmatprep.subr.bf16.mxu1 %v8727_v48 }
 0x3fa   : > { %3299 = vmatpush1.bf16.msra.mxu1 %v8725_v3  ;;  %v13218_v3 = vld [vmem:[#allocation25_spill] sm:$0xff] }
 0x3fb   : > { %3300 = vmatprep.subr.bf16.mxu1 %v8730_v27 }
 0x3fe   : > { %3301 = vmatpush1.bf16.msra.mxu1 %v8728_v45  ;;  %v13219_v45 = vld [vmem:[#allocation26_spill] sm:$0xff] }
 0x3ff   : > { %3302 = vmatprep.subr.bf16.mxu1 %v8733_v50 }
 0x402   : > { %3303 = vmatpush1.bf16.msra.mxu1 %v8731_v17 }
 0x403   : > { %3304 = vmatprep.subr.bf16.mxu1 %v8736_v35 }
 0x406   : > { %3305 = vmatpush1.bf16.msra.mxu1 %v8734_v31 }
 0x407   : > { %3306 = vmatprep.subr.bf16.mxu1 %v8739_v19 }
 0x40a   : > { %3307 = vmatpush1.bf16.msra.mxu1 %v8737_v2 }
 0x40d   : > { %3309 = vmatmul.mubr.bf16.vlgmr.msra.gmra.mrb[40].mxu1 %v10779_v38  ;;  %v10920_v38 = vld [vmem:[#allocation5 + $0xa0] sm:$0x7f] }
 0x40e   : > { %3318 = vmatprep.mubr.bf16.mxu1 %v10805_v24  ;;  %6682 = vst [vmem:[#allocation5 + $0xa0] sm:$0xff] %v10915_v33  ;;  %v3573_v24 = vrot.slane %v3569_v10, 7 }
 0x415   : > { %3319 = vmatmul.mubr.bf16.gmra.mrb[44].mxu1 %v10803_v53  ;;  %v3512_v53 = vrot.slane %v3506_v22, 1 }
 0x416   : > { %3328 = vmatprep.mubr.bf16.mxu1 %v10829_v34 }
 0x41d   : > { %3329 = vmatmul.mubr.bf16.gmra.mrb[48].mxu1 %v10827_v49 }
 0x41e   : > { %3338 = vmatprep.mubr.bf16.mxu1 %v2818_v56 }
 0x425   : > { %3339 = vmatmul.mubr.bf16.gmra.mrb[52].mxu1 %v2817_v21 }
 0x426   : > { %4837 = vmatprep.mubr.bf16.mxu1 %v13209_v9 }
 0x4e0   : > { %v3310_v34 = vpop.f32.mrb[40].mxu1 }
 0x4e1   : > { %3373 = vst [vmem:[#allocation5 + $0x20] sm:$0xff] %v3310_v34  ;;  %v3312_v49 = vpop.f32.mrb[41].mxu1  ;;  %v3620_v39 = vmul.f32 %v3310_v34, %v13214_v6  ;;  %v3459_v21 = vmul.f32 %v3310_v34, %v13215_v0  ;;  %v3513_v55 = vrot.slane %v3310_v34, 1  ;;  %v10925_v56 = vrot.slane %v3310_v34, 7  ;;  %v13220_v34 = vld [vmem:[#allocation12_spill] sm:$0xff] }
 0x4e2   : > { %v3314_v20 = vpop.f32.mrb[42].mxu1 }
 0x4e3   : > { %v3316_v14 = vpop.f32.mrb[43].mxu1  ;;  %3636 = vrot.lane.b32.xlu1 %v3620_v39, %s13216_s0  ;;  %3476 = vrot.lane.b32.xlu0 %v3459_v21, %s13217_s3  ;;  %v3514_v61 = vsel %vm3511_vm2, %v3512_v53, %v3513_v55  ;;  %v3574_v1 = vsel %vm3415_vm13, %v3573_v24, %v10925_v56  ;;  %v3515_v11 = vrot.slane %v3314_v20, 1  ;;  %v3421_v32 = vrot.slane %v3314_v20, 7 }
 0x4e4   : > { %3376 = vst.msk [vmem:[#allocation5 + $0x38] sm:$0xff] %vm375_vm0, %v3316_v14  ;;  %v3770_v27 = vmul.f32 %v3314_v20, %v13218_v3  ;;  %v3460_v50 = vmul.f32 %v3314_v20, %v13219_v45  ;;  %v3621_v49 = vmul.f32 %v3314_v20, %v13220_v34 }
 0x4e5   : > { %v3516_v46 = vsel %vm3511_vm2, %v3513_v55, %v3515_v11  ;;  %v10936_v28 = vsel %vm3415_vm13, %v10925_v56, %v3421_v32 }
 0x4e7   : > { %3529 = vrot.lane.b32.xlu1 %v3514_v61, %s13032_s29  ;;  %3579 = vrot.lane.b32.xlu0 %v3574_v1, %s13030_s28 }
 0x4e8   : > { %v10940_v41 = vpop.f32.mrb[44].mxu1  ;;  %v3668_v19 = vld [vmem:[#allocation5 + $0x20] sm:$0xfe] }
 0x4e9   : > { %v3322_v48 = vpop.f32.mrb[45].mxu1  ;;  %v3517_v17 = vrot.slane %v10940_v41, 1  ;;  %v3423_v31 = vrot.slane %v10940_v41, 7  ;;  %v3673_v55 = vrot.slane %v3668_v19, 1  ;;  %v3719_v14 = vld [vmem:[#allocation5 + $0x20] sm:$0x80]  ;;  %v3461_v51 = vmul.f32 %v10940_v41, %v9581_v60 }
 0x4ea   : > { %3378 = vst.msk [vmem:[#allocation5 + $0x48] sm:$0xff] %vm375_vm0, %v3322_v48  ;;  %v10946_v35 = vpop.f32.mrb[46].mxu1  ;;  %v3723_v19 = vrot.slane %v3719_v14, 7  ;;  %v3771_v14 = vmul.f32 %v10940_v41, %v9533_v43  ;;  %v3622_v43 = vmul.f32 %v10940_v41, %v9525_v40 }
 0x4eb   : > { %v10949_v2 = vld [vmem:[#allocation5 + $0x38] sm:$0xfe]  ;;  %v3326_v22 = vpop.f32.mrb[47].mxu1  ;;  %3786 = vrot.lane.b32.xlu1 %v3770_v27, %s13180_s20  ;;  %3478 = vrot.lane.b32.xlu0 %v3460_v50, %s13217_s3  ;;  %v10954_v10 = vsel %vm3511_vm2, %v3515_v11, %v3517_v17  ;;  %v3519_v53 = vrot.slane %v10946_v35, 1  ;;  %v10961_v24 = vsel %vm3415_vm13, %v3421_v32, %v3423_v31  ;;  %v3425_v21 = vrot.slane %v10946_v35, 7 }
 0x4ec   : > { %6669 = vst.msk [vmem:[#allocation5 + $0x38] sm:$0xff] %vm375_vm0, %v10915_v33  ;;  %3380 = vst.msk [vmem:[#allocation5 + $0x58] sm:$0xff] %vm375_vm0, %v3326_v22  ;;  %v3724_v37 = vsel %vm3415_vm13, %v3723_v19, %v3421_v32  ;;  %v3727_v32 = vrot.slane %v10920_v38, 7 }
 0x4ed   : > { %v10965_v39 = vsel %vm3511_vm2, %v3517_v17, %v3519_v53  ;;  %v10971_v61 = vsel %vm3415_vm13, %v3423_v31, %v3425_v21 }
 0x4ef   : > { %3531 = vrot.lane.b32.xlu1 %v3516_v46, %s13032_s29  ;;  %3638 = vrot.lane.b32.xlu0 %v3621_v49, %s13216_s0  ;;  %v3674_v46 = vsel %vm3511_vm2, %v3673_v55, %v3515_v11 }
 0x4f0   : > { %v10973_v1 = vpop.f32.mrb[48].mxu1 }
 0x4f1   : > { %v3332_v48 = vpop.f32.mrb[49].mxu1  ;;  %v3521_v27 = vrot.slane %v10973_v1, 1  ;;  %v3427_v20 = vrot.slane %v10973_v1, 7  ;;  %v10977_v50 = vld [vmem:[#allocation5 + $0x48] sm:$0xff] }
 0x4f2   : > { %3382 = vst.msk [vmem:[#allocation5 + $0x68] sm:$0xff] %vm375_vm0, %v3332_v48  ;;  %v10980_v17 = vpop.f32.mrb[50].mxu1  ;;  %6671 = vst.msk [vmem:[#allocation5 + $0x48] sm:$0xff] %vm375_vm0, %v10915_v33 }
 0x4f3   : > { %v3336_v31 = vpop.f32.mrb[51].mxu1  ;;  %3679 = vrot.lane.b32.xlu0 %v3674_v46, %s13221_s15  ;;  %3581 = vrot.lane.b32.xlu1 %v10936_v28, %s13030_s28  ;;  %v10989_v22 = vsel %vm3511_vm2, %v3519_v53, %v3521_v27  ;;  %v10992_v49 = vsel %vm3415_vm13, %v3425_v21, %v3427_v20  ;;  %v3523_v48 = vrot.slane %v10980_v17, 1  ;;  %v10996_v11 = vrot.slane %v10980_v17, 7  ;;  %v3820_v55 = vld [vmem:[#allocation5 + $0x58] sm:$0xff] }
 0x4f4   : > { %3384 = vst.msk [vmem:[#allocation5 + $0x78] sm:$0xff] %vm375_vm0, %v3336_v31  ;;  %6673 = vst.msk [vmem:[#allocation5 + $0x58] sm:$0xff] %vm375_vm0, %v10915_v33  ;;  %v13021_v46 = vrot.slane %v10977_v50, 1  ;;  %v3839_v59 = vrot.slane %v3820_v55, 1 }
 0x4f5   : > { %v11004_v53 = vsel %vm3511_vm2, %v3521_v27, %v3523_v48  ;;  %v11008_v21 = vsel %vm3415_vm13, %v3427_v20, %v10996_v11 }
 0x4f6   : > { %v11017_v31 = vsel %vm3511_vm2, %v13021_v46, %v3839_v59 }
 0x4f7   : > { %3729 = vrot.lane.b32.xlu0 %v3724_v37, %s13222_s22  ;;  %3788 = vrot.lane.b32.xlu1 %v3771_v14, %s13180_s20  ;;  %v3677_v37 = vrot.slane %v10918_v15, 1 }
 0x4f8   : > { %v11019_v27 = vpop.f32.mrb[52].mxu1 }
 0x4f9   : > { %3385 = vst [vmem:[#allocation5 + $0x80] sm:$0xff] %v11019_v27  ;;  %v3342_v20 = vpop.f32.mrb[53].mxu1  ;;  %v11025_v55 = vrot.slane %v11019_v27, 1  ;;  %v3821_v19 = vld [vmem:[#allocation5 + $0x68] sm:$0xff]  ;;  %v11033_v46 = vrot.slane %v11019_v27, 7 }
 0x4fa   : > { %3386 = vst.msk [vmem:[#allocation5 + $0x88] sm:$0xff] %vm375_vm0, %v3342_v20  ;;  %v11030_v14 = vpop.f32.mrb[54].mxu1  ;;  %v3841_v52 = vrot.slane %v3821_v19, 1  ;;  %6675 = vst.msk [vmem:[#allocation5 + $0x68] sm:$0xff] %vm375_vm0, %v10915_v33 }
 0x4fb   : > { %3387 = vst [vmem:[#allocation5 + $0x90] sm:$0xff] %v11030_v14  ;;  %v3346_v60 = vpop.f32.mrb[55].mxu1  ;;  %3533 = vrot.lane.b32.xlu1 %v10954_v10, %s13032_s29  ;;  %3480 = vrot.lane.b32.xlu0 %v3461_v51, %s13217_s3  ;;  %v11043_v15 = vsel %vm3511_vm2, %v3523_v48, %v11025_v55  ;;  %v3675_v38 = vrot.slane %v11030_v14, 1  ;;  %v3725_v20 = vrot.slane %v11030_v14, 7  ;;  %v3822_v19 = vld [vmem:[#allocation5 + $0x78] sm:$0xff]  ;;  %v11053_v6 = vsel %vm3415_vm13, %v10996_v11, %v11033_v46 }
 0x4fc   : > { %3388 = vst.msk [vmem:[#allocation5 + $0x98] sm:$0xff] %vm375_vm0, %v3346_v60  ;;  %v11056_v51 = vsel %vm3511_vm2, %v3839_v59, %v3841_v52  ;;  %v3843_v48 = vrot.slane %v3822_v19, 1  ;;  %6677 = vst.msk [vmem:[#allocation5 + $0x78] sm:$0xff] %vm375_vm0, %v10915_v33 }
 0x4fd   : > { %v11062_v0 = vsel %vm3511_vm2, %v11025_v55, %v3675_v38  ;;  %v11065_v60 = vsel %vm3511_vm2, %v3675_v38, %v3677_v37  ;;  %v11069_v41 = vsel %vm3415_vm13, %v11033_v46, %v3725_v20  ;;  %v11072_v40 = vsel %vm3415_vm13, %v3725_v20, %v3727_v32  ;;  %v13223_v38 = vld [vmem:[#allocation41_spill] sm:$0xff] }
 0x4fe   : > { %v11075_v59 = vsel %vm3511_vm2, %v3841_v52, %v3843_v48  ;;  %v13224_v20 = vrot.slane %v13223_v38, 1  ;;  %v3775_v38 = vmul.f32 %v11019_v27, %v9901_v4  ;;  %v13231_v4 = vld [vmem:[#allocation27_spill] sm:$0xff] }
 0x4ff   : > { %3681 = vrot.lane.b32.xlu1 %v10954_v10, %s13221_s15  ;;  %3640 = vrot.lane.b32.xlu0 %v3622_v43, %s13216_s0  ;;  %v3623_v43 = vmul.f32 %v10946_v35, %v9608_v5 }
 0x501   : > { %v3823_v19 = vld [vmem:[#allocation5 + $0x88] sm:$0xff] }
 0x502   : > { %v3845_v45 = vrot.slane %v3823_v19, 1  ;;  %6679 = vst.msk [vmem:[#allocation5 + $0x88] sm:$0xff] %vm375_vm0, %v10915_v33 }
 0x503   : > { %3731 = vrot.lane.b32.xlu1 %v10961_v24, %s13222_s22  ;;  %3583 = vrot.lane.b32.xlu0 %v10961_v24, %s13030_s28  ;;  %v3824_v37 = vld [vmem:[#allocation5 + $0x98] sm:$0xff] }
 0x504   : > { %v11087_v52 = vsel %vm3511_vm2, %v3843_v48, %v3845_v45  ;;  %v3847_v32 = vrot.slane %v3824_v37, 1  ;;  %6681 = vst.msk [vmem:[#allocation5 + $0x98] sm:$0xff] %vm375_vm0, %v10915_v33  ;;  %v3772_v48 = vmul.f32 %v10946_v35, %v9536_v44  ;;  %v3773_v37 = vmul.f32 %v10973_v1, %v9653_v25 }
 0x506   : > { %v11094_v10 = vsel %vm3511_vm2, %v3845_v45, %v3847_v32  ;;  %v11099_v19 = vsel %vm3511_vm2, %v3847_v32, %v13224_v20  ;;  %v3462_v45 = vmul.f32 %v10946_v35, %v9665_v30  ;;  %v3463_v35 = vmul.f32 %v10973_v1, %v9676_v7  ;;  %v3507_v20 = vld [vmem:[#allocation5 + $0x90] sm:$0x1] }
 0x507   : > { %3642 = vrot.lane.b32.xlu0 %v3623_v43, %s13216_s0  ;;  %3535 = vrot.lane.b32.xlu1 %v10965_v39, %s13032_s29  ;;  %v3625_v32 = vmul.f32 %v10980_v17, %v9778_v16  ;;  %v3774_v43 = vmul.f32 %v10980_v17, %v9881_v36  ;;  %v13250_v16 = vld [vmem:[#allocation32_spill] sm:$0xff] }
 0x50b   : > { %3790 = vrot.lane.b32.xlu0 %v3772_v48, %s13180_s20  ;;  %3585 = vrot.lane.b32.xlu1 %v10971_v61, %s13030_s28 }
 0x50f   : > { %3482 = vrot.lane.b32.xlu0 %v3462_v45, %s13217_s3  ;;  %3683 = vrot.lane.b32.xlu1 %v10965_v39, %s13221_s15  ;;  %v3624_v39 = vmul.f32 %v10973_v1, %v9741_v18  ;;  %v3464_v1 = vmul.f32 %v10980_v17, %v9931_v42  ;;  %v3570_v17 = vld [vmem:[#allocation5 + $0x90] sm:$0x7f]  ;;  %v3527_v45 = vrot.slane %v3507_v20, 1 }
 0x510   : > { %v3577_v48 = vrot.slane %v3570_v17, 7 }
 0x513   : > { %3733 = vrot.lane.b32.xlu0 %v10971_v61, %s13222_s22  ;;  %3792 = vrot.lane.b32.xlu1 %v3773_v37, %s13180_s20  ;;  %v3578_v37 = vsel %vm3415_vm13, %v11033_v46, %v3577_v48  ;;  %v3777_v46 = vmul.f32 %v10915_v33, %v10022_v8  ;;  %v13230_v8 = vld [vmem:[#allocation15_spill] sm:$0xff] }
 0x517   : > { %3685 = vrot.lane.b32.xlu1 %v10989_v22, %s13221_s15  ;;  %3735 = vrot.lane.b32.xlu0 %v10992_v49, %s13222_s22 }
 0x51b   : > { %3537 = vrot.lane.b32.xlu1 %v10989_v22, %s13032_s29  ;;  %3484 = vrot.lane.b32.xlu0 %v3463_v35, %s13217_s3  ;;  %v3465_v22 = vmul.f32 %v11019_v27, %v9573_v57  ;;  %v3475_v35 = vpop.permute.xlu0 %3474 }
 0x51f   : > { %3644 = vrot.lane.b32.xlu0 %v3624_v39, %s13216_s0  ;;  %3539 = vrot.lane.b32.xlu1 %v11004_v53, %s13032_s29 }
 0x523   : > { %3587 = vrot.lane.b32.xlu0 %v10992_v49, %s13030_s28  ;;  %3589 = vrot.lane.b32.xlu1 %v11008_v21, %s13030_s28 }
 0x527   : > { %3646 = vrot.lane.b32.xlu0 %v3625_v32, %s13216_s0  ;;  %3687 = vrot.lane.b32.xlu1 %v11004_v53, %s13221_s15  ;;  %v3626_v53 = vmul.f32 %v11019_v27, %v9980_v23  ;;  %v3528_v27 = vsel %vm3511_vm2, %v11025_v55, %v3527_v45 }
 0x52b   : > { %3486 = vrot.lane.b32.xlu0 %v3464_v1, %s13217_s3  ;;  %3488 = vrot.lane.b32.xlu1 %v3465_v22, %s13217_s3 }
 0x52f   : > { %3794 = vrot.lane.b32.xlu0 %v3774_v43, %s13180_s20  ;;  %3796 = vrot.lane.b32.xlu1 %v3775_v38, %s13180_s20  ;;  %v13226_v38 = vld [vmem:[#allocation11_spill] sm:$0xff] }
 0x533   : > { %3737 = vrot.lane.b32.xlu0 %v11008_v21, %s13222_s22  ;;  %3689 = vrot.lane.b32.xlu1 %v11043_v15, %s13221_s15 }
 0x537   : > { %3648 = vrot.lane.b32.xlu0 %v3626_v53, %s13216_s0  ;;  %3541 = vrot.lane.b32.xlu1 %v11043_v15, %s13032_s29  ;;  %v3627_v15 = vmul.f32 %v11030_v14, %v9988_v63  ;;  %v13238_v63 = vld [vmem:[#allocation42_spill] sm:$0xff] }
 0x53b   : > { %3591 = vrot.lane.b32.xlu0 %v11053_v6, %s13030_s28  ;;  %3739 = vrot.lane.b32.xlu1 %v11053_v6, %s13222_s22  ;;  %v3776_v6 = vmul.f32 %v11030_v14, %v10014_v13 }
 0x53f   : > { %3593 = vrot.lane.b32.xlu1 %v3578_v37, %s13030_s28  ;;  %3543 = vrot.lane.b32.xlu0 %v3528_v27, %s13032_s29  ;;  %v13227_v27 = vld [vmem:[#allocation30_spill] sm:$0xff] }
 0x543   : > { %3691 = vrot.lane.b32.xlu1 %v11062_v0, %s13221_s15  ;;  %3650 = vrot.lane.b32.xlu0 %v3627_v15, %s13216_s0  ;;  %v13225_v0 = vld [vmem:[#allocation46_spill] sm:$0xff] }
 0x544   : > { %v3416_v55 = vrot.slane %v13225_v0, 7  ;;  %v7639_v0 = vld [vmem:[%s13102_s1 + $0x10] sm:$0xff] }
 0x547   : > { %3693 = vrot.lane.b32.xlu1 %v11065_v60, %s13221_s15  ;;  %3741 = vrot.lane.b32.xlu0 %v11069_v41, %s13222_s22  ;;  %v3417_v60 = vrot.slane %v10915_v33, 7 }
 0x549   : > { %v3418_v41 = vsel %vm3415_vm13, %v3416_v55, %v3417_v60  ;;  %v7640_v55 = vld [vmem:[%s13102_s1 + $0x18] sm:$0xff] }
 0x54a   : > { %v3441_v14 = vmul.f32 %v3418_v41, %v13208_v29 }
 0x54b   : > { %3743 = vrot.lane.b32.xlu1 %v11072_v40, %s13222_s22  ;;  %3798 = vrot.lane.b32.xlu0 %v3776_v6, %s13180_s20  ;;  %v3389_v40 = vld [vmem:[%s12886_s9] sm:$0xff]  ;;  %v3420_v6 = vsel %vm3415_vm13, %v3417_v60, %v10925_v56  ;;  %v3390_v56 = vld [vmem:[%s12886_s9 + $0x8] sm:$0xff] }
 0x54c   : > { %v3449_v43 = vadd.f32 %v3441_v14, %v3389_v40  ;;  %v3442_v40 = vmul.f32 %v3420_v6, %v9957_v26  ;;  %v13229_v6 = vrot.slane %v10977_v50, 1  ;;  %v13232_v50 = vld [vmem:[#allocation21_spill] sm:$0xff] }
 0x54e   : > { %v3498_v48 = vadd.f32 %v3475_v35, %v3449_v43  ;;  %v8156_v35 = vpack.c.bf16 %v7640_v55, %v7639_v0 }
 0x54f   : > { %3800 = vrot.lane.b32.xlu1 %v3777_v46, %s13180_s20 }
 0x550   : > { %8157 = vmatprep.subr.bf16.mxu0 %v8156_v35 }
 0x551   : > { %8159 = vmatpush3.bf16.msra.mxu0 %v8156_v35 }
 0x555   : > { %v3637_v39 = vpop.permute.xlu1 %3636  ;;  %v3477_v32 = vpop.permute.xlu0 %3476 }
 0x559   : > { %v3530_v1 = vpop.permute.xlu1 %3529  ;;  %v3580_v22 = vpop.permute.xlu0 %3579 }
 0x55a   : > { %v3553_v53 = vmul.f32 %v3530_v1, %v13226_v38  ;;  %v3603_v15 = vmul.f32 %v3580_v22, %v13227_v27  ;;  %v3836_v22 = vrot.slane %v10949_v2, 1 }
 0x55c   : > { %v3561_v33 = vadd.f32 %v3553_v53, %v3498_v48  ;;  %v3450_v48 = vadd.f32 %v3442_v40, %v3390_v56  ;;  %v3838_v55 = vsel %vm3511_vm2, %v3836_v22, %v13229_v6 }
 0x55d   : > { %v3787_v17 = vpop.permute.xlu1 %3786  ;;  %v3479_v20 = vpop.permute.xlu0 %3478  ;;  %v3861_v13 = vmul.f32 %v3838_v55, %v13231_v4 }
 0x55e   : > { %v3611_v46 = vadd.f32 %v3603_v15, %v3561_v33  ;;  %v13228_v33 = vld [vmem:[#allocation14_spill] sm:$0xff] }
 0x560   : > { %v3660_v60 = vadd.f32 %v3637_v39, %v3611_v46 }
 0x561   : > { %v3532_v45 = vpop.permute.xlu1 %3531  ;;  %v3639_v37 = vpop.permute.xlu0 %3638 }
 0x562   : > { %v3554_v15 = vmul.f32 %v3532_v45, %v13228_v33 }
 0x565   : > { %v3680_v41 = vpop.permute.xlu0 %3679  ;;  %v3582_v14 = vpop.permute.xlu1 %3581 }
 0x566   : > { %v3703_v1 = vmul.f32 %v3680_v41, %v9545_v47  ;;  %v3499_v41 = vadd.f32 %v3477_v32, %v3450_v48  ;;  %v3604_v57 = vmul.f32 %v3582_v14, %v13230_v8 }
 0x568   : > { %v3711_v29 = vadd.f32 %v3703_v1, %v3660_v60  ;;  %v3562_v35 = vadd.f32 %v3554_v15, %v3499_v41 }
 0x569   : > { %v3730_v43 = vpop.permute.xlu0 %3729  ;;  %v3789_v53 = vpop.permute.xlu1 %3788 }
 0x56a   : > { %v3753_v0 = vmul.f32 %v3730_v43, %v9618_v12  ;;  %v3612_v40 = vadd.f32 %v3604_v57, %v3562_v35  ;;  %v3391_v57 = vld [vmem:[%s12886_s9 + $0x10] sm:$0xff] }
 0x56c   : > { %v3761_v23 = vadd.f32 %v3753_v0, %v3711_v29  ;;  %v3661_v32 = vadd.f32 %v3639_v37, %v3612_v40  ;;  %v3443_v29 = vmul.f32 %v10936_v28, %v10049_v54  ;;  %v13234_v40 = vld [vmem:[#allocation68_spill] sm:$0xff] }
 0x56d   : > { %v3534_v39 = vpop.permute.xlu1 %3533  ;;  %v3481_v46 = vpop.permute.xlu0 %3480 }
 0x56e   : > { %v3810_v2 = vadd.f32 %v3787_v17, %v3761_v23  ;;  %v13233_v17 = vld [vmem:[#allocation22_spill] sm:$0xff]  ;;  %v3451_v41 = vadd.f32 %v3443_v29, %v3391_v57  ;;  %v3555_v37 = vmul.f32 %v3534_v39, %v9587_v62 }
 0x570   : > { %v11220_v56 = vadd.f32 %v3861_v13, %v3810_v2  ;;  %v3862_v2 = vmul.f32 %v11017_v31, %v9576_v58  ;;  %v3500_v28 = vadd.f32 %v3479_v20, %v3451_v41  ;;  %v13236_v20 = vld [vmem:[#allocation18_spill] sm:$0xff] }
 0x571   : > { %v3682_v45 = vpop.permute.xlu1 %3681  ;;  %v3641_v1 = vpop.permute.xlu0 %3640 }
 0x572   : > { %v3877_v60 = vadd.f32 2.0, %v11220_v56  ;;  %v3704_v43 = vmul.f32 %v3682_v45, %v13232_v50  ;;  %v3444_v45 = vmul.f32 %v10961_v24, %v13234_v40 }
 0x574   : > { %v3885_v22 = vsub.f32 0.0, %v3877_v60  ;;  %v3712_v23 = vadd.f32 %v3704_v43, %v3661_v32  ;;  %v13235_v43 = vld [vmem:[#allocation35_spill] sm:$0xff]  ;;  %v3392_v32 = vld [vmem:[%s12886_s9 + $0x18] sm:$0xff] }
 0x575   : > { %v3732_v48 = vpop.permute.xlu1 %3731  ;;  %v3584_v14 = vpop.permute.xlu0 %3583  ;;  %v3452_v39 = vadd.f32 %v3444_v45, %v3392_v32 }
 0x576   : > { %v3893_v15 = vmul.f32 1.442695, %v3885_v22  ;;  %v3754_v0 = vmul.f32 %v3732_v48, %v13233_v17  ;;  %v3605_v22 = vmul.f32 %v3584_v14, %v13235_v43  ;;  %v13237_v14 = vld [vmem:[#allocation37_spill] sm:$0xff] }
 0x577   : > { %v3501_v41 = vadd.f32 %v3481_v46, %v3452_v39  ;;  %v13240_v39 = vld [vmem:[#allocation53_spill] sm:$0xff] }
 0x578   : > { %9056 = vpow2.f32 %v3893_v15  ;;  %v3762_v13 = vadd.f32 %v3754_v0, %v3712_v23  ;;  %v3563_v15 = vadd.f32 %v3555_v37, %v3500_v28 }
 0x579   : > { %v3643_v6 = vpop.permute.xlu0 %3642  ;;  %v3536_v55 = vpop.permute.xlu1 %3535 }
 0x57a   : > { %v3811_v35 = vadd.f32 %v3789_v53, %v3762_v13  ;;  %v3613_v31 = vadd.f32 %v3605_v22, %v3563_v15  ;;  %v3556_v0 = vmul.f32 %v3536_v55, %v13236_v20  ;;  %v13239_v15 = vld [vmem:[#allocation45_spill] sm:$0xff] }
 0x57c   : > { %v11235_v60 = vadd.f32 %v3862_v2, %v3811_v35  ;;  %v3564_v25 = vadd.f32 %v3556_v0, %v3501_v41  ;;  %v3662_v37 = vadd.f32 %v3641_v1, %v3613_v31 }
 0x57d   : > { %v3791_v48 = vpop.permute.xlu0 %3790  ;;  %v3586_v29 = vpop.permute.xlu1 %3585 }
 0x57e   : > { %v3878_v53 = vadd.f32 2.0, %v11235_v60  ;;  %v3606_v2 = vmul.f32 %v3586_v29, %v13237_v14  ;;  %v3863_v29 = vmul.f32 %v11056_v51, %v13240_v39 }
 0x580   : > { %v3886_v23 = vsub.f32 0.0, %v3878_v53  ;;  %v3614_v32 = vadd.f32 %v3606_v2, %v3564_v25 }
 0x581   : > { %v3483_v57 = vpop.permute.xlu0 %3482  ;;  %v3684_v24 = vpop.permute.xlu1 %3683 }
 0x582   : > { %v9057_v13 = vpop.eup %9056  ;;  %v3895_v35 = vmul.f32 1.442695, %v3886_v23  ;;  %v3705_v18 = vmul.f32 %v3684_v24, %v13238_v63  ;;  %v3663_v23 = vadd.f32 %v3643_v6, %v3614_v32  ;;  %v13241_v24 = vld [vmem:[#allocation36_spill] sm:$0xff] }
 0x583   : > { %v3909_v7 = vadd.f32 1.0, %v9057_v13 }
 0x584   : > { %9058 = vpow2.f32 %v3895_v35  ;;  %v3713_v22 = vadd.f32 %v3705_v18, %v3662_v37 }
 0x585   : > { %9060 = vrcp.f32 %v3909_v7  ;;  %v3734_v28 = vpop.permute.xlu0 %3733  ;;  %v3793_v45 = vpop.permute.xlu1 %3792  ;;  %v13242_v7 = vld [vmem:[#allocation48_spill] sm:$0xff] }
 0x586   : > { %v3755_v55 = vmul.f32 %v3734_v28, %v13239_v15 }
 0x588   : > { %v3763_v53 = vadd.f32 %v3755_v55, %v3713_v22  ;;  %v13243_v55 = vld [vmem:[#allocation50_spill] sm:$0xff] }
 0x589   : > { %v3686_v42 = vpop.permute.xlu1 %3685  ;;  %v3736_v36 = vpop.permute.xlu0 %3735  ;;  %v3864_v51 = vmul.f32 %v11075_v59, %v13243_v55 }
 0x58a   : > { %v3812_v46 = vadd.f32 %v3791_v48, %v3763_v53  ;;  %v3706_v13 = vmul.f32 %v3686_v42, %v13241_v24  ;;  %v3756_v31 = vmul.f32 %v3736_v36, %v13242_v7  ;;  %v13244_v53 = vld [vmem:[#allocation76_spill] sm:$0xff]  ;;  %v13247_v7 = vld [vmem:[#allocation71_spill] sm:$0xff] }
 0x58c   : > { %v11249_v35 = vadd.f32 %v3863_v29, %v3812_v46  ;;  %v3714_v1 = vadd.f32 %v3706_v13, %v3663_v23  ;;  %v3445_v46 = vmul.f32 %v10971_v61, %v13244_v53 }
 0x58d   : > { %v3538_v0 = vpop.permute.xlu1 %3537  ;;  %v3485_v25 = vpop.permute.xlu0 %3484 }
 0x58e   : > { %v9059_v18 = vpop.eup %9058  ;;  %v3879_v41 = vadd.f32 2.0, %v11249_v35  ;;  %v3764_v2 = vadd.f32 %v3756_v31, %v3714_v1 }
 0x58f   : > { %v9061_v37 = vpop.eup %9060  ;;  %v3910_v28 = vadd.f32 1.0, %v9059_v18  ;;  %v13245_v18 = vld [vmem:[#allocation20_spill] sm:$0xff] }
 0x590   : > { %v3887_v48 = vsub.f32 0.0, %v3879_v41  ;;  %v3813_v22 = vadd.f32 %v3793_v45, %v3764_v2  ;;  %3957 = vrot.lane.b32.xlu0 %v9061_v37, %s13177_s11  ;;  %v3393_v45 = vld [vmem:[%s12886_s9 + $0x20] sm:$0xff]  ;;  %v3557_v41 = vmul.f32 %v3538_v0, %v13245_v18  ;;  %v3394_v0 = vld [vmem:[%s12886_s9 + $0x28] sm:$0xff] }
 0x591   : > { %9062 = vrcp.f32 %v3910_v28  ;;  %v3645_v42 = vpop.permute.xlu0 %3644  ;;  %v3540_v6 = vpop.permute.xlu1 %3539  ;;  %v3453_v1 = vadd.f32 %v3445_v46, %v3393_v45 }
 0x592   : > { %v3897_v32 = vmul.f32 1.442695, %v3887_v48  ;;  %v11256_v36 = vadd.f32 %v3864_v51, %v3813_v22  ;;  %v13246_v48 = vld [vmem:[#allocation64_spill] sm:$0xff] }
 0x593   : > { %v3502_v28 = vadd.f32 %v3483_v57, %v3453_v1  ;;  %v3405_v57 = vld [vmem:[#allocation5 + $0x80] sm:$0x7f] }
 0x594   : > { %9064 = vpow2.f32 %v3897_v32  ;;  %v3880_v29 = vadd.f32 2.0, %v11256_v36 }
 0x595   : > { %v3588_v23 = vpop.permute.xlu0 %3587  ;;  %v3590_v59 = vpop.permute.xlu1 %3589  ;;  %v3565_v51 = vadd.f32 %v3557_v41, %v3502_v28 }
 0x596   : > { %v3888_v13 = vsub.f32 0.0, %v3880_v29  ;;  %v3607_v61 = vmul.f32 %v3588_v23, %v13246_v48  ;;  %v3446_v29 = vmul.f32 %v10992_v49, %v13247_v7  ;;  %v3608_v49 = vmul.f32 %v3590_v59, %v13250_v16  ;;  %v3395_v59 = vld [vmem:[%s12886_s9 + $0x30] sm:$0xff] }
 0x598   : > { %v3899_v31 = vmul.f32 1.442695, %v3888_v13  ;;  %v3615_v46 = vadd.f32 %v3607_v61, %v3565_v51  ;;  %v3454_v1 = vadd.f32 %v3446_v29, %v3394_v0  ;;  %v3431_v61 = vrot.slane %v3405_v57, 7  ;;  %v13252_v29 = vld [vmem:[#allocation74_spill] sm:$0xff]  ;;  %v13254_v0 = vld [vmem:[#allocation75_spill] sm:$0xff] }
 0x599   : > { %v3647_v2 = vpop.permute.xlu0 %3646  ;;  %v3688_v37 = vpop.permute.xlu1 %3687 }
 0x59a   : > { %9066 = vpow2.f32 %v3899_v31  ;;  %v13248_v31 = vld [vmem:[#allocation60_spill] sm:$0xff]  ;;  %v3664_v28 = vadd.f32 %v3645_v42, %v3615_v46  ;;  %v3503_v24 = vadd.f32 %v3485_v25, %v3454_v1 }
 0x59b   : > { %v9063_v22 = vpop.eup %9062  ;;  %v3558_v41 = vmul.f32 %v3540_v6, %v13248_v31  ;;  %v3432_v6 = vsel %vm3415_vm13, %v10996_v11, %v3431_v61  ;;  %v13255_v1 = vld [vmem:[#allocation72_spill] sm:$0xff]  ;;  %v13256_v61 = vld [vmem:[#allocation82_spill] sm:$0xff] }
 0x59c   : > { %3959 = vrot.lane.b32.xlu1 %v9063_v22, %s13177_s11  ;;  %v13249_v22 = vld [vmem:[#allocation38_spill] sm:$0xff] }
 0x59d   : > { %v3487_v32 = vpop.permute.xlu0 %3486  ;;  %v3489_v55 = vpop.permute.xlu1 %3488  ;;  %v3707_v48 = vmul.f32 %v3688_v37, %v13249_v22  ;;  %v3566_v15 = vadd.f32 %v3558_v41, %v3503_v24  ;;  %v3447_v37 = vmul.f32 %v11008_v21, %v13252_v29  ;;  %v13253_v24 = vld [vmem:[#allocation52_spill] sm:$0xff]  ;;  %v3448_v41 = vmul.f32 %v3432_v6, %v13255_v1 }
 0x59e   : > { %v9065_v39 = vpop.eup %9064 }
 0x59f   : > { %v3911_v45 = vadd.f32 1.0, %v9065_v39  ;;  %v3715_v63 = vadd.f32 %v3707_v48, %v3664_v28  ;;  %v3616_v20 = vadd.f32 %v3608_v49, %v3566_v15  ;;  %v3865_v48 = vmul.f32 %v11087_v52, %v13253_v24 }
 0x5a1   : > { %9068 = vrcp.f32 %v3911_v45  ;;  %v3795_v13 = vpop.permute.xlu0 %3794  ;;  %v3797_v23 = vpop.permute.xlu1 %3796  ;;  %v13251_v45 = vld [vmem:[#allocation77_spill] sm:$0xff]  ;;  %v3665_v11 = vadd.f32 %v3647_v2, %v3616_v20 }
 0x5a4   : > { %v9067_v18 = vpop.eup %9066 }
 0x5a5   : > { %v3912_v39 = vadd.f32 1.0, %v9067_v18  ;;  %v3738_v51 = vpop.permute.xlu0 %3737  ;;  %v3690_v7 = vpop.permute.xlu1 %3689 }
 0x5a6   : > { %v3757_v14 = vmul.f32 %v3738_v51, %v13251_v45  ;;  %v3708_v57 = vmul.f32 %v3690_v7, %v13254_v0  ;;  %v13259_v45 = vld [vmem:[#allocation80_spill] sm:$0xff] }
 0x5a7   : > { %9070 = vrcp.f32 %v3912_v39  ;;  %v13257_v39 = vld [vmem:[#allocation44_spill] sm:$0xff] }
 0x5a8   : > { %v3765_v42 = vadd.f32 %v3757_v14, %v3715_v63  ;;  %v3396_v63 = vld [vmem:[%s12886_s9 + $0x38] sm:$0xff]  ;;  %v3455_v14 = vadd.f32 %v3447_v37, %v3395_v59  ;;  %v3716_v52 = vadd.f32 %v3708_v57, %v3665_v11  ;;  %v3866_v37 = vmul.f32 %v11094_v10, %v13259_v45  ;;  %v13260_v11 = vld [vmem:[#allocation83_spill] sm:$0xff] }
 0x5a9   : > { %v3649_v25 = vpop.permute.xlu0 %3648  ;;  %v3542_v46 = vpop.permute.xlu1 %3541  ;;  %v3456_v6 = vadd.f32 %v3448_v41, %v3396_v63 }
 0x5aa   : > { %v3814_v18 = vadd.f32 %v3795_v13, %v3765_v42  ;;  %v3559_v7 = vmul.f32 %v3542_v46, %v13256_v61  ;;  %v3504_v20 = vadd.f32 %v3487_v32, %v3455_v14  ;;  %v13258_v42 = vld [vmem:[#allocation84_spill] sm:$0xff] }
 0x5ab   : > { %v9069_v15 = vpop.eup %9068 }
 0x5ac   : > { %v11290_v21 = vadd.f32 %v3865_v48, %v3814_v18  ;;  %3961 = vrot.lane.b32.xlu0 %v9069_v15, %s13177_s11  ;;  %v3505_v48 = vadd.f32 %v3489_v55, %v3456_v6  ;;  %v3567_v22 = vadd.f32 %v3559_v7, %v3504_v20 }
 0x5ad   : > { %v3592_v28 = vpop.permute.xlu0 %3591  ;;  %v3740_v13 = vpop.permute.xlu1 %3739 }
 0x5ae   : > { %v3881_v49 = vadd.f32 2.0, %v11290_v21  ;;  %v3758_v51 = vmul.f32 %v3740_v13, %v13257_v39  ;;  %v3609_v0 = vmul.f32 %v3592_v28, %v13258_v42  ;;  %v13261_v13 = vld [vmem:[#allocation34_spill] sm:$0xff] }
 0x5b0   : > { %v3889_v2 = vsub.f32 0.0, %v3881_v49  ;;  %v3766_v24 = vadd.f32 %v3758_v51, %v3716_v52  ;;  %v3617_v32 = vadd.f32 %v3609_v0, %v3567_v22  ;;  %v13262_v49 = vld [vmem:[#allocation40_spill] sm:$0xff] }
 0x5b1   : > { %v9071_v18 = vpop.eup %9070  ;;  %v3594_v59 = vpop.permute.xlu1 %3593  ;;  %v13264_v0 = vld [vmem:[#allocation88_spill] sm:$0xff] }
 0x5b2   : > { %v3544_v15 = vpop.permute.xlu0 %3543  ;;  %v3901_v16 = vmul.f32 1.442695, %v3889_v2  ;;  %v3815_v57 = vadd.f32 %v3797_v23, %v3766_v24  ;;  %3963 = vrot.lane.b32.xlu1 %v9071_v18, %s13177_s11  ;;  %v3610_v10 = vmul.f32 %v3594_v59, %v13261_v13  ;;  %v3666_v7 = vadd.f32 %v3649_v25, %v3617_v32  ;;  %v13265_v13 = vld [vmem:[#allocation47_spill] sm:$0xff]  ;;  %v13266_v25 = vld [vmem:[#allocation54_spill] sm:$0xff] }
 0x5b3   : > { %v3560_v46 = vmul.f32 %v3544_v15, %v13260_v11  ;;  %v3867_v32 = vmul.f32 %v11099_v19, %v13266_v25 }
 0x5b4   : > { %9072 = vpow2.f32 %v3901_v16  ;;  %v11301_v41 = vadd.f32 %v3866_v37, %v3815_v57  ;;  %v13263_v16 = vld [vmem:[#allocation87_spill] sm:$0xff] }
 0x5b5   : > { %v3568_v63 = vadd.f32 %v3560_v46, %v3505_v48  ;;  %v3692_v14 = vpop.permute.xlu1 %3691 }
 0x5b6   : > { %v3651_v28 = vpop.permute.xlu0 %3650  ;;  %v3882_v55 = vadd.f32 2.0, %v11301_v41  ;;  %v3709_v52 = vmul.f32 %v3692_v14, %v13262_v49 }
 0x5b7   : > { %v3618_v23 = vadd.f32 %v3610_v10, %v3568_v63 }
 0x5b8   : > { %v3890_v51 = vsub.f32 0.0, %v3882_v55  ;;  %v3717_v2 = vadd.f32 %v3709_v52, %v3666_v7 }
 0x5b9   : > { %v3694_v24 = vpop.permute.xlu1 %3693  ;;  %v3667_v48 = vadd.f32 %v3651_v28, %v3618_v23  ;;  %v13267_v28 = vld [vmem:[#allocation91_spill] sm:$0xff]  ;;  %v13268_v23 = vld [vmem:[#allocation49_spill] sm:$0xff] }
 0x5ba   : > { %v3742_v6 = vpop.permute.xlu0 %3741  ;;  %v3903_v20 = vmul.f32 1.442695, %v3890_v51  ;;  %v3710_v22 = vmul.f32 %v3694_v24, %v13263_v16  ;;  %v3868_v24 = vmul.f32 %v13268_v23, %v13267_v28 }
 0x5bb   : > { %v3759_v18 = vmul.f32 %v3742_v6, %v13264_v0 }
 0x5bc   : > { %9074 = vpow2.f32 %v3903_v20  ;;  %v3718_v59 = vadd.f32 %v3710_v22, %v3667_v48 }
 0x5bd   : > { %v3767_v37 = vadd.f32 %v3759_v18, %v3717_v2  ;;  %v3744_v15 = vpop.permute.xlu1 %3743 }
 0x5be   : > { %v3799_v57 = vpop.permute.xlu0 %3798  ;;  %v9073_v46 = vpop.eup %9072  ;;  %v3760_v14 = vmul.f32 %v3744_v15, %v13265_v13 }
 0x5bf   : > { %v3816_v55 = vadd.f32 %v3799_v57, %v3767_v37  ;;  %v3913_v63 = vadd.f32 1.0, %v9073_v46 }
 0x5c0   : > { %v3768_v52 = vadd.f32 %v3760_v14, %v3718_v59 }
 0x5c1   : > { %v11311_v10 = vadd.f32 %v3867_v32, %v3816_v55  ;;  %9076 = vrcp.f32 %v3913_v63  ;;  %v3801_v51 = vpop.permute.xlu1 %3800 }
 0x5c2   : > { %v3817_v6 = vadd.f32 %v3801_v51, %v3768_v52  ;;  %v4189_v52 = vld [vmem:[#allocation3 + $0x8] sm:$0xff]  ;;  %v13269_v51 = vld [vmem:[#allocation23_spill] sm:$0xff] }
 0x5c3   : > { %v3883_v7 = vadd.f32 2.0, %v11311_v10 }
 0x5c4   : > { %v11316_v2 = vadd.f32 %v3868_v24, %v3817_v6  ;;  %v13270_v24 = vld [vmem:[#allocation58_spill] sm:$0xff] }
 0x5c5   : > { %v3891_v20 = vsub.f32 0.0, %v3883_v7  ;;  %v4197_v7 = vmul.f32 %v4189_v52, %v13269_v51  ;;  %v3941_v6 = vadd.f32 %v11220_v56, %v13270_v24 }
 0x5c6   : > { %v9075_v22 = vpop.eup %9074  ;;  %v3884_v48 = vadd.f32 2.0, %v11316_v2 }
 0x5c7   : > { %v3905_v18 = vmul.f32 1.442695, %v3891_v20  ;;  %v3914_v19 = vadd.f32 1.0, %v9075_v22 }
 0x5c8   : > { %v3892_v37 = vsub.f32 0.0, %v3884_v48  ;;  %v13271_v48 = vld [vmem:[#allocation56_spill] sm:$0xff] }
 0x5c9   : > { %9078 = vpow2.f32 %v3905_v18 }
 0x5ca   : > { %9080 = vrcp.f32 %v3914_v19  ;;  %v3907_v15 = vmul.f32 1.442695, %v3892_v37  ;;  %v3942_v19 = vadd.f32 %v11235_v60, %v13271_v48 }
 0x5cb   : > { %v9077_v57 = vpop.eup %9076 }
 0x5cc   : > { %9082 = vpow2.f32 %v3907_v15  ;;  %3965 = vrot.lane.b32.xlu0 %v9077_v57, %s13177_s11 }
 0x5d3   : > { %v9079_v46 = vpop.eup %9078 }
 0x5d4   : > { %v9081_v59 = vpop.eup %9080  ;;  %v3915_v14 = vadd.f32 1.0, %v9079_v46  ;;  %v13272_v46 = vld [vmem:[#allocation61_spill] sm:$0xff] }
 0x5d5   : > { %3967 = vrot.lane.b32.xlu1 %v9081_v59, %s13177_s11  ;;  %v3943_v56 = vadd.f32 %v11249_v35, %v13272_v46  ;;  %v13277_v46 = vld [vmem:[#allocation65_spill] sm:$0xff] }
 0x5d6   : > { %9084 = vrcp.f32 %v3915_v14  ;;  %v9083_v55 = vpop.eup %9082 }
 0x5d7   : > { %v3916_v32 = vadd.f32 1.0, %v9083_v55  ;;  %v13273_v55 = vld [vmem:[#allocation59_spill] sm:$0xff] }
 0x5d9   : > { %9086 = vrcp.f32 %v3916_v32  ;;  %v3944_v32 = vadd.f32 %v11256_v36, %v13273_v55 }
 0x5e0   : > { %v9085_v63 = vpop.eup %9084 }
 0x5e1   : > { %3969 = vrot.lane.b32.xlu0 %v9085_v63, %s13177_s11 }
 0x5e3   : > { %v9087_v23 = vpop.eup %9086 }
 0x5e4   : > { %3971 = vrot.lane.b32.xlu1 %v9087_v23, %s13177_s11  ;;  %v13274_v23 = vld [vmem:[#allocation63_spill] sm:$0xff] }
 0x5e5   : > { %4213 = vrot.lane.b32.xlu0 %v4197_v7, %s13177_s11  ;;  %v3945_v35 = vadd.f32 %v11290_v21, %v13274_v23 }
 0x602   : > { %v3958_v20 = vpop.permute.xlu0 %3957 }
 0x603   : > { %v3981_v22 = vmul.f32 %v3958_v20, %v3941_v6  ;;  %v13275_v20 = vld [vmem:[#allocation62_spill] sm:$0xff] }
 0x604   : > { %v3946_v36 = vadd.f32 %v11301_v41, %v13275_v20  ;;  %v3948_v41 = vadd.f32 %v11316_v2, %v13277_v46 }
 0x605   : > { %3989 = vst.msk [vmem:[#allocation2] sm:$0xff] %vm695_vm4, %v3981_v22 }
 0x60c   : > { %v3997_v18 = vld [vmem:[#allocation2] sm:$0xff] }
 0x60d   : > { %8140 = vmatprep.mubr.msk.f32.mxu0 %vm375_vm0, %v3997_v18 }
 0x60e   : > { %v3960_v37 = vpop.permute.xlu1 %3959 }
 0x60f   : > { %v3982_v15 = vmul.f32 %v3960_v37, %v3942_v19  ;;  %v13276_v37 = vld [vmem:[#allocation66_spill] sm:$0xff] }
 0x610   : > { %v3947_v21 = vadd.f32 %v11311_v10, %v13276_v37  ;;  %v11362_v10 = vld [vmem:[%s13148_s2 + $0x1] ss:$0 sm:$0xff]  ;;  %s13325_s2 = smov 96  }
 0x611   : > { %3990 = vst.msk [vmem:[#allocation2 + $0x8] sm:$0xff] %vm695_vm4, %v3982_v15 }
 0x618   : > { %v3998_v57 = vld [vmem:[#allocation2 + $0x8] sm:$0xff] }
 0x619   : > { %8141 = vmatmul.mubr.msk.f32.vlgmr.msra.gmra.mrb[32].mxu0 %vm375_vm0, %v3998_v57 }
 0x61e   : > { %v3962_v59 = vpop.permute.xlu0 %3961 }
 0x61f   : > { %v3983_v14 = vmul.f32 %v3962_v59, %v3943_v56 }
 0x621   : > { %3991 = vst.msk [vmem:[#allocation2 + $0x10] sm:$0xff] %vm695_vm4, %v3983_v14 }
 0x624   : > { %v3964_v63 = vpop.permute.xlu1 %3963 }
 0x625   : > { %v3984_v52 = vmul.f32 %v3964_v63, %v3944_v32 }
 0x627   : > { %3992 = vst.msk [vmem:[#allocation2 + $0x18] sm:$0xff] %vm695_vm4, %v3984_v52 }
 0x628   : > { %v3999_v60 = vld [vmem:[#allocation2 + $0x10] sm:$0xff] }
 0x629   : > { %8143 = vmatprep.mubr.msk.f32.mxu0 %vm375_vm0, %v3999_v60 }
 0x62e   : > { %v4000_v7 = vld [vmem:[#allocation2 + $0x18] sm:$0xff] }
 0x62f   : > { %8144 = vmatmul.mubr.msk.f32.gmra.mrb[34].mxu0 %vm375_vm0, %v4000_v7 }
 0x63e   : > { %v3966_v24 = vpop.permute.xlu0 %3965 }
 0x63f   : > { %v3985_v6 = vmul.f32 %v3966_v24, %v3945_v35 }
 0x641   : > { %3993 = vst.msk [vmem:[#allocation2 + $0x20] sm:$0xff] %vm695_vm4, %v3985_v6 }
 0x647   : > { %v3968_v22 = vpop.permute.xlu1 %3967 }
 0x648   : > { %v3986_v18 = vmul.f32 %v3968_v22, %v3946_v36  ;;  %v4001_v48 = vld [vmem:[#allocation2 + $0x20] sm:$0xff] }
 0x649   : > { %8146 = vmatprep.mubr.msk.f32.mxu0 %vm375_vm0, %v4001_v48 }
 0x64a   : > { %3994 = vst.msk [vmem:[#allocation2 + $0x28] sm:$0xff] %vm695_vm4, %v3986_v18  ;;  %v13280_v18 = vld [vmem:[#allocation26_spill] sm:$0xff] }
 0x651   : > { %v4002_v19 = vld [vmem:[#allocation2 + $0x28] sm:$0xff] }
 0x652   : > { %8147 = vmatmul.mubr.msk.f32.gmra.mrb[36].mxu0 %vm375_vm0, %v4002_v19  ;;  %v13281_v19 = vld [vmem:[#allocation24_spill] sm:$0xff] }
 0x653   : > { %v3970_v15 = vpop.permute.xlu0 %3969 }
 0x654   : > { %v3987_v57 = vmul.f32 %v3970_v15, %v3947_v21 }
 0x656   : > { %3995 = vst.msk [vmem:[#allocation2 + $0x30] sm:$0xff] %vm695_vm4, %v3987_v57  ;;  %v3972_v59 = vpop.permute.xlu1 %3971 }
 0x657   : > { %v4214_v56 = vpop.permute.xlu0 %4213  ;;  %v3988_v14 = vmul.f32 %v3972_v59, %v3948_v41 }
 0x658   : > { %4237 = vst.msk [vmem:[#allocation4] sm:$0xff] %vm695_vm4, %v4214_v56 }
 0x659   : > { %3996 = vst.msk [vmem:[#allocation2 + $0x38] sm:$0xff] %vm695_vm4, %v3988_v14 }
 0x65d   : > { %v4003_v55 = vld [vmem:[#allocation2 + $0x30] sm:$0xff] }
 0x65e   : > { %8149 = vmatprep.mubr.msk.f32.mxu0 %vm375_vm0, %v4003_v55 }
 0x660   : > { %v4004_v32 = vld [vmem:[#allocation2 + $0x38] sm:$0xff] }
 0x661   : > { %8150 = vmatmul.mubr.msk.f32.gmra.mrb[38].mxu0 %vm375_vm0, %v4004_v32 }
 0x662   : > { %4910 = vmatprep.mubr.bf16.mxu0 %v13209_v9 }
 0x6ec   : > { %v8142_v2 = vpop.f32.mrb[32].mxu0 }
 0x6ed   : > { %v11365_v63 = vadd.f32 %v8142_v2, %v11362_v10  ;;  %v4106_v52 = vpop.f32.mrb[33].mxu0  ;;  %v13284_v2 = vld [vmem:[#allocation17_spill] sm:$0xff] }
 0x6ee   : > { %v11368_v60 = vadd.f32 %v11362_v10, %v4106_v52 }
 0x6ef   : > { %13278 = vst [vmem:[#allocation25_spill] sm:$0xff] %v11365_v63  ;;  %4158 = vst.msk [vmem:[#allocation3 + $0x18] sm:$0xff] %vm530_vm1, %v11365_v63 }
 0x6f0   : > { %13279 = vst [vmem:[#allocation12_spill] sm:$0xff] %v11368_v60  ;;  %7246 = vst.msk [vmem:[#allocation2 + $0x8] sm:$0xff] %vm530_vm1, %v11365_v63 }
 0x6f1   : > { %4157 = vst.msk [vmem:[#allocation3 + $0x10] sm:$0xff] %vm530_vm1, %v11368_v60  ;;  %7245 = vst.msk [vmem:[#allocation2] sm:$0xff] %vm530_vm1, %v11368_v60 }
 0x6f6   : > { %v4525_v7 = vld [vmem:[#allocation3 + $0x18] sm:$0xff] }
 0x6f7   : > { %v4533_v23 = vmul.f32 %v4525_v7, %v13218_v3  ;;  %v4366_v35 = vmul.f32 %v4525_v7, %v13220_v34  ;;  %v4199_v48 = vmul.f32 %v4525_v7, %v13280_v18  ;;  %v8740_v7 = vld [vmem:[%s12881_s4 + $0x90] ss:$16 sps:$4 sm:$0xff]  }
 0x6f8   : > { %v4190_v24 = vld [vmem:[#allocation3 + $0x10] sm:$0xff] }
 0x6f9   : > { %v4301_v6 = vld [vmem:[#allocation3 + $0xf] sm:$0xff]  ;;  %v4302_v20 = vld [vmem:[#allocation3 + $0x17] sm:$0xff]  ;;  %4549 = vrot.lane.b32.xlu0 %v4533_v23, %s13178_s12  ;;  %4383 = vrot.lane.b32.xlu1 %v4366_v35, %s13222_s22  ;;  %v4198_v37 = vmul.f32 %v4190_v24, %v13281_v19  ;;  %v4365_v52 = vmul.f32 %v4190_v24, %v13284_v2 }
 0x6fa   : > { %v4175_v36 = vmul.f32 %v4302_v20, %v10049_v54  ;;  %v4174_v22 = vmul.f32 %v4301_v6, %v9957_v26  ;;  %v4245_v21 = vld [vmem:[#allocation3 + $0x9] sm:$0xff]  ;;  %v4246_v15 = vld [vmem:[#allocation3 + $0x11] sm:$0xff]  ;;  %v4309_v14 = vmul.f32 %v4301_v6, %v13227_v27  ;;  %v4310_v55 = vmul.f32 %v4302_v20, %v13230_v8 }
 0x6fb   : > { %v4253_v57 = vmul.f32 %v4245_v21, %v13226_v38  ;;  %v4254_v46 = vmul.f32 %v4246_v15, %v13228_v33  ;;  %v8742_v23 = vld [vmem:[%s12881_s4 + $0x94] ss:$16 sps:$4 sm:$0xff]   ;;  %v8743_v35 = vld [vmem:[%s12881_s4 + $0x98] ss:$16 sps:$4 sm:$0xff]   ;;  %v8745_v6 = vld [vmem:[%s12881_s4 + $0x9c] ss:$16 sps:$4 sm:$0xff]   ;;  %v4421_v24 = vmul.f32 %v4246_v15, %v9545_v47 }
 0x6fc   : > { %4183 = vst.msk [vmem:[#allocation4 + $0x10] sm:$0xff] %vm530_vm1, %v4175_v36  ;;  %4182 = vst.msk [vmem:[#allocation4 + $0x8] sm:$0xff] %vm530_vm1, %v4174_v22  ;;  %4805 = vmatprep.subr.bf16.mxu1 %v8742_v23  ;;  %4878 = vmatprep.subr.bf16.mxu0 %v8745_v6  ;;  %v8746_v22 = vld [vmem:[%s12881_s4 + $0xb0] ss:$16 sps:$4 sm:$0xff]   ;;  %v8749_v15 = vld [vmem:[%s12881_s4 + $0xb8] ss:$16 sps:$4 sm:$0xff]  }
 0x6fd   : > { %4217 = vrot.lane.b32.xlu0 %v4199_v48, %s13177_s11  ;;  %4215 = vrot.lane.b32.xlu1 %v4198_v37, %s13177_s11  ;;  %v8748_v48 = vld [vmem:[%s12881_s4 + $0xb4] ss:$16 sps:$4 sm:$0xff]  }
 0x6fe   : > { %4806 = vmatpush1.bf16.msra.mxu1 %v8740_v7  ;;  %4879 = vmatpush1.bf16.msra.mxu0 %v8743_v35  ;;  %v8757_v7 = vld [vmem:[%s12881_s4 + $0xdc] ss:$16 sps:$4 sm:$0xff]   ;;  %v8755_v35 = vld [vmem:[%s12881_s4 + $0xd8] ss:$16 sps:$4 sm:$0xff]  }
 0x6ff   : > { %4807 = vmatprep.subr.bf16.mxu1 %v8748_v48 }
 0x701   : > { %4269 = vrot.lane.b32.xlu0 %v4253_v57, %s13180_s20  ;;  %4271 = vrot.lane.b32.xlu1 %v4254_v46, %s13180_s20 }
 0x702   : > { %v8145_v41 = vpop.f32.mrb[34].mxu0  ;;  %4808 = vmatpush1.bf16.msra.mxu1 %v8746_v22  ;;  %v8760_v22 = vld [vmem:[%s12881_s4 + $0xf4] ss:$16 sps:$4 sm:$0xff]  }
 0x703   : > { %v11395_v56 = vadd.f32 %v8145_v41, %v11362_v10  ;;  %v4116_v59 = vpop.f32.mrb[35].mxu0  ;;  %v4477_v41 = vmul.f32 %v4302_v20, %v9618_v12 }
 0x704   : > { %v11400_v32 = vadd.f32 %v11362_v10, %v4116_v59  ;;  %v8751_v59 = vld [vmem:[%s12881_s4 + $0xbc] ss:$16 sps:$4 sm:$0xff]  }
 0x705   : > { %13282 = vst [vmem:[#allocation41_spill] sm:$0xff] %v11395_v56  ;;  %4160 = vst.msk [vmem:[#allocation3 + $0x28] sm:$0xff] %vm530_vm1, %v11395_v56  ;;  %4325 = vrot.lane.b32.xlu0 %v4309_v14, %s13181_s26  ;;  %4327 = vrot.lane.b32.xlu1 %v4310_v55, %s13181_s26  ;;  %v8752_v14 = vld [vmem:[%s12881_s4 + $0xd0] ss:$16 sps:$4 sm:$0xff]   ;;  %v8754_v55 = vld [vmem:[%s12881_s4 + $0xd4] ss:$16 sps:$4 sm:$0xff]  }
 0x706   : > { %13283 = vst [vmem:[#allocation46_spill] sm:$0xff] %v11400_v32  ;;  %7248 = vst.msk [vmem:[#allocation2 + $0x18] sm:$0xff] %vm530_vm1, %v11395_v56  ;;  %4880 = vmatprep.subr.bf16.mxu0 %v8751_v59  ;;  %4809 = vmatprep.subr.bf16.mxu1 %v8754_v55 }
 0x707   : > { %4159 = vst.msk [vmem:[#allocation3 + $0x20] sm:$0xff] %vm530_vm1, %v11400_v32  ;;  %7247 = vst.msk [vmem:[#allocation2 + $0x10] sm:$0xff] %vm530_vm1, %v11400_v32  ;;  %4881 = vmatpush1.bf16.msra.mxu0 %v8749_v15  ;;  %4810 = vmatpush1.bf16.msra.mxu1 %v8752_v14  ;;  %v8763_v15 = vld [vmem:[%s12881_s4 + $0xfc] ss:$16 sps:$4 sm:$0xff]  }
 0x708   : > { %4882 = vmatprep.subr.bf16.mxu0 %v8757_v7  ;;  %4811 = vmatprep.subr.bf16.mxu1 %v8760_v22  ;;  %v13285_v14 = vld [vmem:[#allocation16_spill] sm:$0xff] }
 0x709   : > { %4381 = vrot.lane.b32.xlu0 %v4365_v52, %s13222_s22 }
 0x70b   : > { %4883 = vmatpush1.bf16.msra.mxu0 %v8755_v35 }
 0x70c   : > { %v4360_v36 = vld [vmem:[#allocation3 + $0x28] sm:$0xff]  ;;  %4884 = vmatprep.subr.bf16.mxu0 %v8763_v15 }
 0x70d   : > { %4437 = vrot.lane.b32.xlu0 %v4421_v24, %s13174_s30  ;;  %v4368_v37 = vmul.f32 %v4360_v36, %v9608_v5  ;;  %v4535_v6 = vmul.f32 %v4360_v36, %v9536_v44  ;;  %v8758_v24 = vld [vmem:[%s12881_s4 + $0xf0] ss:$16 sps:$4 sm:$0xff]   ;;  %v4201_v59 = vmul.f32 %v4360_v36, %v9665_v30 }
 0x70e   : > { %v4414_v21 = vld [vmem:[#allocation3 + $0x19] sm:$0xff]  ;;  %v11437_v46 = vld [vmem:[#allocation3 + $0x27] sm:$0xff]  ;;  %4812 = vmatpush1.bf16.msra.mxu1 %v8758_v24 }
 0x70f   : > { %v11435_v57 = vld [vmem:[#allocation3 + $0x1f] sm:$0xff]  ;;  %4387 = vrot.lane.b32.xlu1 %v4368_v37, %s13222_s22  ;;  %v4422_v52 = vmul.f32 %v4414_v21, %v13232_v50  ;;  %v4177_v20 = vmul.f32 %v11437_v46, %v13244_v53  ;;  %v4589_v36 = vmul.f32 %v4414_v21, %v13231_v4 }
 0x710   : > { %v4176_v23 = vmul.f32 %v11435_v57, %v13234_v40  ;;  %v4478_v48 = vmul.f32 %v11435_v57, %v13233_v17  ;;  %v4526_v37 = vld [vmem:[#allocation3 + $0x20] sm:$0xff] }
 0x711   : > { %4493 = vrot.lane.b32.xlu0 %v4477_v41, %s13221_s15  ;;  %4185 = vst.msk [vmem:[#allocation4 + $0x20] sm:$0xff] %vm530_vm1, %v4177_v20  ;;  %v8761_v41 = vld [vmem:[%s12881_s4 + $0xf8] ss:$16 sps:$4 sm:$0xff]   ;;  %v4534_v55 = vmul.f32 %v4526_v37, %v13285_v14 }
 0x712   : > { %4184 = vst.msk [vmem:[#allocation4 + $0x18] sm:$0xff] %vm530_vm1, %v4176_v23  ;;  %v7668_v20 = vld [vmem:[%s12881_s4 + $0x118] sm:$0xff]  ;;  %v4582_v22 = vld [vmem:[#allocation3 + $0x21] sm:$0xff]  ;;  %4885 = vmatpush1.bf16.msra.mxu0 %v8761_v41  ;;  %v4255_v41 = vmul.f32 %v4414_v21, %v9587_v62 }
 0x713   : > { %4439 = vrot.lane.b32.xlu1 %v4422_v52, %s13174_s30  ;;  %v7667_v52 = vld [vmem:[%s12881_s4 + $0x110] sm:$0xff]  ;;  %v7689_v23 = vcombine.high %v7668_v20, %v7668_v20  ;;  %v4590_v15 = vmul.f32 %v4582_v22, %v9576_v58 }
 0x714   : > { %v7687_v7 = vcombine.high %v7667_v52, %v7667_v52  ;;  %v7686_v35 = vcombine.low %v7667_v52, %v7667_v52  ;;  %v4311_v52 = vmul.f32 %v11435_v57, %v13235_v43  ;;  %v13290_v57 = vld [vmem:[#allocation13_spill] sm:$0xff] }
 0x715   : > { %4553 = vrot.lane.b32.xlu0 %v4535_v6, %s13178_s12  ;;  %v7688_v6 = vcombine.low %v7668_v20, %v7668_v20  ;;  %7695 = vmatprep.subr.msk.bf16.mxu0 %vm1482_vm3, %v7689_v23 }
 0x716   : > { %7690 = vmatprep.subr.msk.bf16.mxu1 %vm1482_vm3, %v7687_v7  ;;  %v4794_v24 = vsel %vm1482_vm3, %v7686_v35, 0  ;;  %v13288_v35 = vld [vmem:[#allocation18_spill] sm:$0xff] }
 0x717   : > { %4495 = vrot.lane.b32.xlu1 %v4478_v48, %s13221_s15  ;;  %v4800_v48 = vsel %vm1482_vm3, %v7688_v6, 0  ;;  %4814 = vmatpush1.bf16.msra.mxu1 %v4794_v24  ;;  %v4256_v6 = vmul.f32 %v4582_v22, %v13288_v35  ;;  %v13291_v24 = vld [vmem:[#allocation37_spill] sm:$0xff] }
 0x718   : > { %4887 = vmatpush1.bf16.msra.mxu0 %v4800_v48  ;;  %v4312_v48 = vmul.f32 %v11437_v46, %v13291_v24 }
 0x719   : > { %4221 = vrot.lane.b32.xlu0 %v4201_v59, %s13177_s11  ;;  %v13286_v59 = vld [vmem:[#allocation31_spill] sm:$0xff] }
 0x71b   : > { %4551 = vrot.lane.b32.xlu1 %v4534_v55, %s13178_s12  ;;  %v4200_v55 = vmul.f32 %v4526_v37, %v13286_v59 }
 0x71d   : > { %4605 = vrot.lane.b32.xlu0 %v4589_v36, %s13216_s0  ;;  %v4367_v36 = vmul.f32 %v4526_v37, %v13290_v57 }
 0x71f   : > { %4607 = vrot.lane.b32.xlu1 %v4590_v15, %s13216_s0  ;;  %v13292_v15 = vld [vmem:[#allocation42_spill] sm:$0xff] }
 0x721   : > { %4273 = vrot.lane.b32.xlu0 %v4255_v41, %s13180_s20  ;;  %v4423_v41 = vmul.f32 %v4582_v22, %v13292_v15 }
 0x723   : > { %4219 = vrot.lane.b32.xlu1 %v4200_v55, %s13177_s11 }
 0x725   : > { %v8148_v20 = vpop.f32.mrb[36].mxu0  ;;  %4329 = vrot.lane.b32.xlu0 %v4311_v52, %s13181_s26  ;;  %v13293_v52 = vld [vmem:[#allocation45_spill] sm:$0xff] }
 0x726   : > { %v11510_v7 = vadd.f32 %v8148_v20, %v11362_v10  ;;  %v4126_v23 = vpop.f32.mrb[37].mxu0  ;;  %v4479_v37 = vmul.f32 %v11437_v46, %v13293_v52  ;;  %v13294_v20 = vld [vmem:[#allocation70_spill] sm:$0xff] }
 0x727   : > { %v11515_v21 = vadd.f32 %v11362_v10, %v4126_v23  ;;  %4275 = vrot.lane.b32.xlu1 %v4256_v6, %s13180_s20 }
 0x728   : > { %13287 = vst [vmem:[#allocation11_spill] sm:$0xff] %v11510_v7  ;;  %4162 = vst.msk [vmem:[#allocation3 + $0x38] sm:$0xff] %vm530_vm1, %v11510_v7 }
 0x729   : > { %13289 = vst [vmem:[#allocation30_spill] sm:$0xff] %v11515_v21  ;;  %7250 = vst.msk [vmem:[#allocation2 + $0x28] sm:$0xff] %vm530_vm1, %v11510_v7  ;;  %4385 = vrot.lane.b32.xlu0 %v4367_v36, %s13222_s22  ;;  %v13295_v36 = vld [vmem:[#allocation78_spill] sm:$0xff] }
 0x72a   : > { %4161 = vst.msk [vmem:[#allocation3 + $0x30] sm:$0xff] %vm530_vm1, %v11515_v21  ;;  %7249 = vst.msk [vmem:[#allocation2 + $0x20] sm:$0xff] %vm530_vm1, %v11515_v21 }
 0x72b   : > { %4331 = vrot.lane.b32.xlu1 %v4312_v48, %s13181_s26  ;;  %v13296_v48 = vld [vmem:[#allocation36_spill] sm:$0xff] }
 0x72d   : > { %4441 = vrot.lane.b32.xlu0 %v4423_v41, %s13174_s30  ;;  %v13297_v41 = vld [vmem:[#allocation71_spill] sm:$0xff] }
 0x72f   : > { %v4362_v55 = vld [vmem:[#allocation3 + $0x38] sm:$0xff] }
 0x730   : > { %v4370_v23 = vmul.f32 %v4362_v55, %v13294_v20  ;;  %v4537_v56 = vmul.f32 %v4362_v55, %v13295_v36 }
 0x731   : > { %v4416_v6 = vld [vmem:[#allocation3 + $0x29] sm:$0xff]  ;;  %v4306_v21 = vld [vmem:[#allocation3 + $0x37] sm:$0xff]  ;;  %4497 = vrot.lane.b32.xlu0 %v4479_v37, %s13221_s15 }
 0x732   : > { %v4472_v7 = vld [vmem:[#allocation3 + $0x2f] sm:$0xff]  ;;  %4391 = vrot.lane.b32.xlu1 %v4370_v23, %s13222_s22  ;;  %v4424_v32 = vmul.f32 %v4416_v6, %v13296_v48  ;;  %v4179_v22 = vmul.f32 %v4306_v21, %v13252_v29 }
 0x733   : > { %v4178_v63 = vmul.f32 %v4472_v7, %v13297_v41  ;;  %v13301_v29 = vld [vmem:[#allocation48_spill] sm:$0xff] }
 0x734   : > { %v8151_v60 = vpop.f32.mrb[38].mxu0  ;;  %4187 = vst.msk [vmem:[#allocation4 + $0x30] sm:$0xff] %vm530_vm1, %v4179_v22 }
 0x735   : > { %v11543_v46 = vadd.f32 %v8151_v60, %v11362_v10  ;;  %4557 = vrot.lane.b32.xlu0 %v4537_v56, %s13178_s12  ;;  %v4136_v53 = vpop.f32.mrb[39].mxu0  ;;  %4186 = vst.msk [vmem:[#allocation4 + $0x28] sm:$0xff] %vm530_vm1, %v4178_v63  ;;  %v13300_v60 = vld [vmem:[#allocation81_spill] sm:$0xff]  ;;  %v4480_v56 = vmul.f32 %v4472_v7, %v13301_v29  ;;  %v13305_v29 = vld [vmem:[#allocation20_spill] sm:$0xff] }
 0x736   : > { %4443 = vrot.lane.b32.xlu1 %v4424_v32, %s13174_s30  ;;  %v11550_v37 = vadd.f32 %v11362_v10, %v4136_v53  ;;  %v4203_v23 = vmul.f32 %v4362_v55, %v13300_v60  ;;  %v4528_v63 = vld [vmem:[#allocation3 + $0x30] sm:$0xff]  ;;  %v13303_v32 = vld [vmem:[#allocation51_spill] sm:$0xff]  ;;  %v13304_v55 = vld [vmem:[#allocation50_spill] sm:$0xff]  ;;  %v4257_v48 = vmul.f32 %v4416_v6, %v13305_v29 }
 0x737   : > { %13298 = vst [vmem:[#allocation14_spill] sm:$0xff] %v11543_v46  ;;  %4164 = vst.msk [vmem:[#allocation3 + $0x48] sm:$0xff] %vm530_vm1, %v11543_v46  ;;  %v13302_v53 = vld [vmem:[#allocation53_spill] sm:$0xff]  ;;  %v4536_v22 = vmul.f32 %v4528_v63, %v13303_v32 }
 0x738   : > { %13299 = vst [vmem:[#allocation49_spill] sm:$0xff] %v11550_v37  ;;  %7252 = vst.msk [vmem:[#allocation2 + $0x38] sm:$0xff] %vm530_vm1, %v11543_v46  ;;  %v4591_v10 = vmul.f32 %v4416_v6, %v13302_v53  ;;  %v4584_v46 = vld [vmem:[#allocation3 + $0x31] sm:$0xff] }
 0x739   : > { %4163 = vst.msk [vmem:[#allocation3 + $0x40] sm:$0xff] %vm530_vm1, %v11550_v37  ;;  %7251 = vst.msk [vmem:[#allocation2 + $0x30] sm:$0xff] %vm530_vm1, %v11550_v37  ;;  %4225 = vrot.lane.b32.xlu0 %v4203_v23, %s13177_s11  ;;  %v4592_v41 = vmul.f32 %v4584_v46, %v13304_v55  ;;  %v13306_v23 = vld [vmem:[#allocation64_spill] sm:$0xff]  ;;  %v13307_v37 = vld [vmem:[#allocation57_spill] sm:$0xff]  ;;  %v4258_v6 = vmul.f32 %v4584_v46, %v13248_v31 }
 0x73a   : > { %4499 = vrot.lane.b32.xlu1 %v4480_v56, %s13221_s15  ;;  %v4313_v56 = vmul.f32 %v4472_v7, %v13306_v23  ;;  %v4202_v53 = vmul.f32 %v4528_v63, %v13307_v37 }
 0x73d   : > { %4609 = vrot.lane.b32.xlu0 %v4591_v10, %s13216_s0  ;;  %v13308_v10 = vld [vmem:[#allocation67_spill] sm:$0xff] }
 0x73e   : > { %4555 = vrot.lane.b32.xlu1 %v4536_v22, %s13178_s12  ;;  %v4369_v22 = vmul.f32 %v4528_v63, %v13308_v10  ;;  %v4364_v29 = vld [vmem:[#allocation3 + $0x48] sm:$0xff] }
 0x73f   : > { %v4420_v63 = vld [vmem:[#allocation3 + $0x49] sm:$0xff] }
 0x740   : > { %v4474_v52 = vld [vmem:[#allocation3 + $0x3f] sm:$0xff] }
 0x741   : > { %4277 = vrot.lane.b32.xlu0 %v4257_v48, %s13180_s20  ;;  %v4180_v15 = vmul.f32 %v4474_v52, %v13255_v1  ;;  %v13309_v48 = vld [vmem:[#allocation38_spill] sm:$0xff] }
 0x742   : > { %4611 = vrot.lane.b32.xlu1 %v4592_v41, %s13216_s0  ;;  %v4425_v7 = vmul.f32 %v4584_v46, %v13309_v48  ;;  %v13310_v41 = vld [vmem:[#allocation32_spill] sm:$0xff]  ;;  %v4428_v46 = vmul.f32 %v4420_v63, %v13263_v16  ;;  %v4530_v16 = vld [vmem:[#allocation3 + $0x40] sm:$0xff] }
 0x743   : > { %4188 = vst.msk [vmem:[#allocation4 + $0x38] sm:$0xff] %vm530_vm1, %v4180_v15  ;;  %v4314_v23 = vmul.f32 %v4306_v21, %v13310_v41  ;;  %v13312_v15 = vld [vmem:[#allocation86_spill] sm:$0xff]  ;;  %v4476_v48 = vld [vmem:[#allocation3 + $0x4f] sm:$0xff] }
 0x744   : > { %v4372_v1 = vmul.f32 %v4364_v29, %v13312_v15  ;;  %v4585_v41 = vld [vmem:[#allocation3 + $0x39] sm:$0xff] }
 0x745   : > { %4333 = vrot.lane.b32.xlu0 %v4313_v56, %s13181_s26 }
 0x746   : > { %4223 = vrot.lane.b32.xlu1 %v4202_v53, %s13177_s11  ;;  %v13311_v53 = vld [vmem:[#allocation77_spill] sm:$0xff] }
 0x747   : > { %v4481_v56 = vmul.f32 %v4306_v21, %v13311_v53  ;;  %v13314_v21 = vld [vmem:[#allocation52_spill] sm:$0xff] }
 0x749   : > { %4389 = vrot.lane.b32.xlu0 %v4369_v22, %s13222_s22  ;;  %v13313_v22 = vld [vmem:[#allocation89_spill] sm:$0xff] }
 0x74a   : > { %4279 = vrot.lane.b32.xlu1 %v4258_v6, %s13180_s20  ;;  %v4539_v6 = vmul.f32 %v4364_v29, %v13313_v22  ;;  %v4259_v29 = vmul.f32 %v4585_v41, %v13256_v61 }
 0x74d   : > { %4445 = vrot.lane.b32.xlu0 %v4425_v7, %s13174_s30  ;;  %v4593_v7 = vmul.f32 %v4585_v41, %v13314_v21  ;;  %v4586_v21 = vld [vmem:[#allocation3 + $0x41] sm:$0xff] }
 0x74e   : > { %4335 = vrot.lane.b32.xlu1 %v4314_v23, %s13181_s26  ;;  %v4484_v23 = vmul.f32 %v4476_v48, %v13265_v13  ;;  %v13316_v48 = vld [vmem:[#allocation79_spill] sm:$0xff] }
 0x751   : > { %4501 = vrot.lane.b32.xlu0 %v4481_v56, %s13221_s15  ;;  %v13315_v56 = vld [vmem:[#allocation75_spill] sm:$0xff] }
 0x752   : > { %4395 = vrot.lane.b32.xlu1 %v4372_v1, %s13222_s22  ;;  %v4426_v1 = vmul.f32 %v4585_v41, %v13315_v56  ;;  %v4594_v41 = vmul.f32 %v4586_v21, %v13259_v45  ;;  %v4595_v45 = vmul.f32 %v4420_v63, %v13266_v25  ;;  %v4532_v63 = vld [vmem:[#allocation3 + $0x50] sm:$0xff] }
 0x755   : > { %4561 = vrot.lane.b32.xlu0 %v4539_v6, %s13178_s12  ;;  %v4482_v6 = vmul.f32 %v4474_v52, %v13257_v39 }
 0x756   : > { %4451 = vrot.lane.b32.xlu1 %v4428_v46, %s13174_s30  ;;  %v4315_v46 = vmul.f32 %v4474_v52, %v13258_v42  ;;  %v13318_v42 = vld [vmem:[#allocation28_spill] sm:$0xff] }
 0x757   : > { %v4204_v61 = vmul.f32 %v4530_v16, %v13318_v42 }
 0x759   : > { %4613 = vrot.lane.b32.xlu0 %v4593_v7, %s13216_s0  ;;  %v13317_v7 = vld [vmem:[#allocation85_spill] sm:$0xff] }
 0x75a   : > { %4507 = vrot.lane.b32.xlu1 %v4484_v23, %s13221_s15  ;;  %v4538_v23 = vmul.f32 %v4530_v16, %v13316_v48  ;;  %v4371_v13 = vmul.f32 %v4530_v16, %v13317_v7 }
 0x75d   : > { %4281 = vrot.lane.b32.xlu0 %v4259_v29, %s13180_s20  ;;  %v4475_v29 = vld [vmem:[#allocation3 + $0x47] sm:$0xff] }
 0x75e   : > { %4447 = vrot.lane.b32.xlu1 %v4426_v1, %s13174_s30  ;;  %v4427_v1 = vmul.f32 %v4586_v21, %v13262_v49  ;;  %v4260_v49 = vmul.f32 %v4586_v21, %v13260_v11 }
 0x761   : > { %4337 = vrot.lane.b32.xlu0 %v4315_v46, %s13181_s26  ;;  %v4483_v46 = vmul.f32 %v4475_v29, %v13264_v0 }
 0x762   : > { %4503 = vrot.lane.b32.xlu1 %v4482_v6, %s13221_s15 }
 0x765   : > { %4393 = vrot.lane.b32.xlu0 %v4371_v13, %s13222_s22 }
 0x766   : > { %4559 = vrot.lane.b32.xlu1 %v4538_v23, %s13178_s12 }
 0x769   : > { %4449 = vrot.lane.b32.xlu0 %v4427_v1, %s13174_s30  ;;  %v9126_v1 = vld [vmem:[#allocation5 + $0xb0] sm:$0xff]  ;;  %s9134_s30 = scalar_lea.vmem %s9133_s18, 2048 }
 0x76a   : > { %4615 = vrot.lane.b32.xlu1 %v4594_v41, %s13216_s0 }
 0x76b   : > { %v4550_v52 = vpop.permute.xlu0 %4549  ;;  %v4384_v6 = vpop.permute.xlu1 %4383 }
 0x76d   : > { %4505 = vrot.lane.b32.xlu0 %v4483_v46, %s13221_s15  ;;  %v6771_v46 = vmul.f32 %v9126_v1, %v13269_v51  ;;  %v4588_v51 = vld [vmem:[#allocation3 + $0x51] sm:$0xff] }
 0x76e   : > { %4227 = vrot.lane.b32.xlu1 %v4204_v61, %s13177_s11  ;;  %v13319_v61 = vld [vmem:[#allocation34_spill] sm:$0xff] }
 0x76f   : > { %v4218_v13 = vpop.permute.xlu0 %4217  ;;  %v4216_v23 = vpop.permute.xlu1 %4215  ;;  %v4316_v0 = vmul.f32 %v4475_v29, %v13319_v61  ;;  %v8770_v29 = vld [vmem:[%s12883_s6 + $0x404] ss:$16 sps:$4 sm:$0xff]  }
 0x770   : > { %4239 = vst.msk [vmem:[#allocation4 + $0x10] sm:$0xff] %vm695_vm4, %v4218_v13  ;;  %4238 = vst.msk [vmem:[#allocation4 + $0x8] sm:$0xff] %vm695_vm4, %v4216_v23  ;;  %v13320_v13 = vld [vmem:[#allocation90_spill] sm:$0xff]  ;;  %5791 = vmatprep.subr.bf16.mxu0 %v8770_v29 }
 0x771   : > { %4617 = vrot.lane.b32.xlu0 %v4595_v45, %s13216_s0 }
 0x772   : > { %4283 = vrot.lane.b32.xlu1 %v4260_v49, %s13180_s20  ;;  %v4540_v49 = vmul.f32 %v4532_v63, %v13320_v13 }
 0x773   : > { %v4270_v41 = vpop.permute.xlu0 %4269  ;;  %v4272_v16 = vpop.permute.xlu1 %4271 }
 0x774   : > { %4293 = vst.msk [vmem:[#allocation4] sm:$0xff] %vm784_vm5, %v4270_v41  ;;  %4294 = vst.msk [vmem:[#allocation4 + $0x8] sm:$0xff] %vm784_vm5, %v4272_v16  ;;  %v8773_v41 = vld [vmem:[%s12883_s6 + $0x40c] ss:$16 sps:$4 sm:$0xff]  }
 0x775   : > { %6787 = vrot.lane.b32.xlu0 %v6771_v46, %s13217_s3  ;;  %5937 = vmatprep.subr.bf16.mxu1 %v8773_v41 }
 0x776   : > { %4339 = vrot.lane.b32.xlu1 %v4316_v0, %s13181_s26  ;;  %v4596_v0 = vmul.f32 %v4588_v51, %v13267_v28 }
 0x777   : > { %v4326_v21 = vpop.permute.xlu0 %4325  ;;  %v4328_v45 = vpop.permute.xlu1 %4327 }
 0x778   : > { %4349 = vst.msk [vmem:[#allocation4] sm:$0xff] %vm873_vm6, %v4326_v21  ;;  %4350 = vst.msk [vmem:[#allocation4 + $0x8] sm:$0xff] %vm873_vm6, %v4328_v45 }
 0x779   : > { %4406 = vst.msk [vmem:[#allocation4 + $0x8] sm:$0xff] %vm962_vm7, %v4384_v6 }
 0x77a   : > { %4563 = vrot.lane.b32.xlu1 %v4540_v49, %s13178_s12  ;;  %s13326_s12 = smov 80  }
 0x77b   : > { %v4382_v23 = vpop.permute.xlu0 %4381 }
 0x77c   : > { %4405 = vst.msk [vmem:[#allocation4] sm:$0xff] %vm962_vm7, %v4382_v23 }
 0x77e   : > { %4619 = vrot.lane.b32.xlu1 %v4596_v0, %s13216_s0 }
 0x77f   : > { %v4438_v6 = vpop.permute.xlu0 %4437 }
 0x780   : > { %4461 = vst.msk [vmem:[#allocation4] sm:$0xff] %vm1051_vm8, %v4438_v6 }
 0x781   : > { %v4388_v16 = vpop.permute.xlu1 %4387 }
 0x783   : > { %v4494_v1 = vpop.permute.xlu0 %4493 }
 0x784   : > { %4517 = vst.msk [vmem:[#allocation4] sm:$0xff] %vm1140_vm9, %v4494_v1 }
 0x785   : > { %4573 = vst.msk [vmem:[#allocation4] sm:$0xff] %vm1229_vm10, %v4550_v52  ;;  %v4440_v46 = vpop.permute.xlu1 %4439 }
 0x786   : > { %4462 = vst.msk [vmem:[#allocation4 + $0x8] sm:$0xff] %vm1051_vm8, %v4440_v46 }
 0x787   : > { %v4554_v63 = vpop.permute.xlu0 %4553 }
 0x789   : > { %v4496_v21 = vpop.permute.xlu1 %4495 }
 0x78a   : > { %4518 = vst.msk [vmem:[#allocation4 + $0x8] sm:$0xff] %vm1140_vm9, %v4496_v21  ;;  %v8768_v21 = vld [vmem:[%s12883_s6 + $0x400] ss:$16 sps:$4 sm:$0xff]  }
 0x78b   : > { %v4222_v45 = vpop.permute.xlu0 %4221 }
 0x78c   : > { %4241 = vst.msk [vmem:[#allocation4 + $0x20] sm:$0xff] %vm695_vm4, %v4222_v45  ;;  %v8771_v45 = vld [vmem:[%s12883_s6 + $0x408] ss:$16 sps:$4 sm:$0xff]  }
 0x78d   : > { %v4552_v49 = vpop.permute.xlu1 %4551 }
 0x78e   : > { %4574 = vst.msk [vmem:[#allocation4 + $0x8] sm:$0xff] %vm1229_vm10, %v4552_v49 }
 0x78f   : > { %v4606_v51 = vpop.permute.xlu0 %4605 }
 0x790   : > { %4629 = vst.msk [vmem:[#allocation4] sm:$0xff] %vm1318_vm11, %v4606_v51  ;;  %v8776_v51 = vld [vmem:[%s12883_s6 + $0x424] ss:$16 sps:$4 sm:$0xff]  }
 0x791   : > { %v4608_v29 = vpop.permute.xlu1 %4607 }
 0x792   : > { %4630 = vst.msk [vmem:[#allocation4 + $0x8] sm:$0xff] %vm1318_vm11, %v4608_v29  ;;  %v8779_v29 = vld [vmem:[%s12883_s6 + $0x42c] ss:$16 sps:$4 sm:$0xff]  }
 0x793   : > { %v4274_v52 = vpop.permute.xlu0 %4273 }
 0x794   : > { %4295 = vst.msk [vmem:[#allocation4 + $0x10] sm:$0xff] %vm784_vm5, %v4274_v52 }
 0x795   : > { %v4220_v23 = vpop.permute.xlu1 %4219 }
 0x796   : > { %4240 = vst.msk [vmem:[#allocation4 + $0x18] sm:$0xff] %vm695_vm4, %v4220_v23  ;;  %v8774_v23 = vld [vmem:[%s12883_s6 + $0x420] ss:$16 sps:$4 sm:$0xff]  }
 0x797   : > { %v4330_v0 = vpop.permute.xlu0 %4329  ;;  %v4637_v6 = vld [vmem:[#allocation4] sm:$0xff] }
 0x798   : > { %4351 = vst.msk [vmem:[#allocation4 + $0x10] sm:$0xff] %vm873_vm6, %v4330_v0  ;;  %v8777_v0 = vld [vmem:[%s12883_s6 + $0x428] ss:$16 sps:$4 sm:$0xff]  }
 0x799   : > { %v4276_v41 = vpop.permute.xlu1 %4275  ;;  %v4638_v1 = vld [vmem:[#allocation4 + $0x8] sm:$0xff] }
 0x79a   : > { %4296 = vst.msk [vmem:[#allocation4 + $0x18] sm:$0xff] %vm784_vm5, %v4276_v41  ;;  %v4645_v46 = vpack.c.bf16 %v4638_v1, %v4637_v6  ;;  %v8782_v6 = vld [vmem:[%s12883_s6 + $0x444] ss:$16 sps:$4 sm:$0xff]   ;;  %v8785_v1 = vld [vmem:[%s12883_s6 + $0x44c] ss:$16 sps:$4 sm:$0xff]  }
 0x79b   : > { %v4386_v49 = vpop.permute.xlu0 %4385 }
 0x79c   : > { %4407 = vst.msk [vmem:[#allocation4 + $0x10] sm:$0xff] %vm962_vm7, %v4386_v49  ;;  %7691 = vmatmul.mubr.msk.bf16.vlgmr.msra.gmra.mrb[56].mxu1 %vm1469_vm12, %v4645_v46  ;;  %7696 = vmatmul.mubr.msk.bf16.vlgmr.msra.gmra.mrb[40].mxu0 %vm1469_vm12, %v4645_v46  ;;  %v8780_v46 = vld [vmem:[%s12883_s6 + $0x440] ss:$16 sps:$4 sm:$0xff]   ;;  %v8788_v49 = vld [vmem:[%s12883_s6 + $0x464] ss:$16 sps:$4 sm:$0xff]  }
 0x79d   : > { %v4332_v52 = vpop.permute.xlu1 %4331  ;;  %4847 = vmatprep.mubr.bf16.mxu1 %v13209_v9  ;;  %4920 = vmatprep.mubr.bf16.mxu0 %v13209_v9 }
 0x79e   : > { %4352 = vst.msk [vmem:[#allocation4 + $0x18] sm:$0xff] %vm873_vm6, %v4332_v52  ;;  %5792 = vmatpush1.bf16.msra.mxu0 %v8768_v21  ;;  %5938 = vmatpush1.bf16.msra.mxu1 %v8771_v45  ;;  %v8789_v52 = vld [vmem:[%s12883_s6 + $0x468] ss:$16 sps:$4 sm:$0xff]  }
 0x79f   : > { %4408 = vst.msk [vmem:[#allocation4 + $0x18] sm:$0xff] %vm962_vm7, %v4388_v16  ;;  %v4442_v41 = vpop.permute.xlu0 %4441  ;;  %5793 = vmatprep.subr.bf16.mxu0 %v8776_v51  ;;  %5939 = vmatprep.subr.bf16.mxu1 %v8779_v29  ;;  %v8783_v16 = vld [vmem:[%s12883_s6 + $0x448] ss:$16 sps:$4 sm:$0xff]   ;;  %v8791_v51 = vld [vmem:[%s12883_s6 + $0x46c] ss:$16 sps:$4 sm:$0xff]  }
 0x7a0   : > { %4463 = vst.msk [vmem:[#allocation4 + $0x10] sm:$0xff] %vm1051_vm8, %v4442_v41  ;;  %v8786_v29 = vld [vmem:[%s12883_s6 + $0x460] ss:$16 sps:$4 sm:$0xff]   ;;  %v8794_v41 = vld [vmem:[%s12883_s6 + $0x484] ss:$16 sps:$4 sm:$0xff]  }
 0x7a2   : > { %5794 = vmatpush1.bf16.msra.mxu0 %v8774_v23  ;;  %5940 = vmatpush1.bf16.msra.mxu1 %v8777_v0 }
 0x7a3   : > { %v4498_v21 = vpop.permute.xlu0 %4497  ;;  %5795 = vmatprep.subr.bf16.mxu0 %v8782_v6  ;;  %5941 = vmatprep.subr.bf16.mxu1 %v8785_v1  ;;  %v8792_v6 = vld [vmem:[%s12883_s6 + $0x480] ss:$16 sps:$4 sm:$0xff]   ;;  %v8795_v1 = vld [vmem:[%s12883_s6 + $0x488] ss:$16 sps:$4 sm:$0xff]  }
 0x7a4   : > { %v11695_v45 = vpop.permute.xlu1 %4391  ;;  %4519 = vst.msk [vmem:[#allocation4 + $0x10] sm:$0xff] %vm1140_vm9, %v4498_v21  ;;  %v8800_v21 = vld [vmem:[%s12883_s6 + $0x4a4] ss:$16 sps:$4 sm:$0xff]  }
 0x7a5   : > { %4575 = vst.msk [vmem:[#allocation4 + $0x10] sm:$0xff] %vm1229_vm10, %v4554_v63  ;;  %v8797_v63 = vld [vmem:[%s12883_s6 + $0x48c] ss:$16 sps:$4 sm:$0xff]  }
 0x7a6   : > { %5796 = vmatpush1.bf16.msra.mxu0 %v8780_v46  ;;  %5942 = vmatpush1.bf16.msra.mxu1 %v8783_v16 }
 0x7a7   : > { %v11711_v23 = vpop.permute.xlu0 %4557  ;;  %5797 = vmatprep.subr.bf16.mxu0 %v8788_v49  ;;  %5943 = vmatprep.subr.bf16.mxu1 %v8791_v51  ;;  %v8803_v49 = vld [vmem:[%s12883_s6 + $0x4ac] ss:$16 sps:$4 sm:$0xff]   ;;  %v8798_v51 = vld [vmem:[%s12883_s6 + $0x4a0] ss:$16 sps:$4 sm:$0xff]  }
 0x7a8   : > { %v4444_v0 = vpop.permute.xlu1 %4443 }
 0x7a9   : > { %4464 = vst.msk [vmem:[#allocation4 + $0x18] sm:$0xff] %vm1051_vm8, %v4444_v0 }
 0x7aa   : > { %5798 = vmatpush1.bf16.msra.mxu0 %v8786_v29  ;;  %5944 = vmatpush1.bf16.msra.mxu1 %v8789_v52  ;;  %v8801_v29 = vld [vmem:[%s12883_s6 + $0x4a8] ss:$16 sps:$4 sm:$0xff]  }
 0x7ab   : > { %v4226_v46 = vpop.permute.xlu0 %4225  ;;  %5799 = vmatprep.subr.bf16.mxu0 %v8794_v41  ;;  %5945 = vmatprep.subr.bf16.mxu1 %v8797_v63  ;;  %v8806_v41 = vld [vmem:[%s12883_s6 + $0x4c4] ss:$16 sps:$4 sm:$0xff]   ;;  %v8809_v63 = vld [vmem:[%s12883_s6 + $0x4cc] ss:$16 sps:$4 sm:$0xff]  }
 0x7ac   : > { %v4500_v16 = vpop.permute.xlu1 %4499  ;;  %4243 = vst.msk [vmem:[#allocation4 + $0x30] sm:$0xff] %vm695_vm4, %v4226_v46 }
 0x7ad   : > { %4520 = vst.msk [vmem:[#allocation4 + $0x18] sm:$0xff] %vm1140_vm9, %v4500_v16 }
 0x7ae   : > { %5800 = vmatpush1.bf16.msra.mxu0 %v8792_v6  ;;  %5946 = vmatpush1.bf16.msra.mxu1 %v8795_v1  ;;  %v8804_v6 = vld [vmem:[%s12883_s6 + $0x4c0] ss:$16 sps:$4 sm:$0xff]   ;;  %v8807_v1 = vld [vmem:[%s12883_s6 + $0x4c8] ss:$16 sps:$4 sm:$0xff]  }
 0x7af   : > { %v4610_v52 = vpop.permute.xlu0 %4609  ;;  %5801 = vmatprep.subr.bf16.mxu0 %v8800_v21  ;;  %5947 = vmatprep.subr.bf16.mxu1 %v8803_v49  ;;  %v8812_v21 = vld [vmem:[%s12883_s6 + $0x4e4] ss:$16 sps:$4 sm:$0xff]   ;;  %v8815_v49 = vld [vmem:[%s12883_s6 + $0x4ec] ss:$16 sps:$4 sm:$0xff]  }
 0x7b0   : > { %v4556_v0 = vpop.permute.xlu1 %4555  ;;  %4631 = vst.msk [vmem:[#allocation4 + $0x10] sm:$0xff] %vm1318_vm11, %v4610_v52 }
 0x7b1   : > { %4576 = vst.msk [vmem:[#allocation4 + $0x18] sm:$0xff] %vm1229_vm10, %v4556_v0 }
 0x7b2   : > { %5802 = vmatpush1.bf16.msra.mxu0 %v8798_v51  ;;  %5948 = vmatpush1.bf16.msra.mxu1 %v8801_v29  ;;  %v8810_v51 = vld [vmem:[%s12883_s6 + $0x4e0] ss:$16 sps:$4 sm:$0xff]   ;;  %v8813_v29 = vld [vmem:[%s12883_s6 + $0x4e8] ss:$16 sps:$4 sm:$0xff]  }
 0x7b3   : > { %v4278_v46 = vpop.permute.xlu0 %4277  ;;  %5803 = vmatprep.subr.bf16.mxu0 %v8806_v41  ;;  %5949 = vmatprep.subr.bf16.mxu1 %v8809_v63  ;;  %v8818_v41 = vld [vmem:[%s12883_s6 + $0x504] ss:$16 sps:$4 sm:$0xff]   ;;  %v8821_v63 = vld [vmem:[%s12883_s6 + $0x50c] ss:$16 sps:$4 sm:$0xff]  }
 0x7b4   : > { %v4612_v16 = vpop.permute.xlu1 %4611  ;;  %4297 = vst.msk [vmem:[#allocation4 + $0x20] sm:$0xff] %vm784_vm5, %v4278_v46 }
 0x7b5   : > { %4632 = vst.msk [vmem:[#allocation4 + $0x18] sm:$0xff] %vm1318_vm11, %v4612_v16 }
 0x7b6   : > { %5804 = vmatpush1.bf16.msra.mxu0 %v8804_v6  ;;  %5950 = vmatpush1.bf16.msra.mxu1 %v8807_v1 }
 0x7b7   : > { %v4334_v52 = vpop.permute.xlu0 %4333  ;;  %5805 = vmatprep.subr.bf16.mxu0 %v8812_v21  ;;  %5951 = vmatprep.subr.bf16.mxu1 %v8815_v49  ;;  %v4639_v46 = vld [vmem:[#allocation4 + $0x10] sm:$0xff] }
 0x7b8   : > { %v4224_v0 = vpop.permute.xlu1 %4223  ;;  %4353 = vst.msk [vmem:[#allocation4 + $0x20] sm:$0xff] %vm873_vm6, %v4334_v52  ;;  %v8816_v49 = vld [vmem:[%s12883_s6 + $0x500] ss:$16 sps:$4 sm:$0xff]   ;;  %v8827_v52 = vld [vmem:[%s12883_s6 + $0x52c] ss:$16 sps:$4 sm:$0xff]  }
 0x7b9   : > { %4242 = vst.msk [vmem:[#allocation4 + $0x28] sm:$0xff] %vm695_vm4, %v4224_v0 }
 0x7ba   : > { %5806 = vmatpush1.bf16.msra.mxu0 %v8810_v51  ;;  %5952 = vmatpush1.bf16.msra.mxu1 %v8813_v29  ;;  %v8819_v51 = vld [vmem:[%s12883_s6 + $0x508] ss:$16 sps:$4 sm:$0xff]   ;;  %v8824_v29 = vld [vmem:[%s12883_s6 + $0x524] ss:$16 sps:$4 sm:$0xff]  }
 0x7bb   : > { %v4390_v6 = vpop.permute.xlu0 %4389  ;;  %5807 = vmatprep.subr.bf16.mxu0 %v8818_v41  ;;  %5953 = vmatprep.subr.bf16.mxu1 %v8821_v63  ;;  %v8822_v63 = vld [vmem:[%s12883_s6 + $0x520] ss:$16 sps:$4 sm:$0xff]  }
 0x7bc   : > { %v4280_v1 = vpop.permute.xlu1 %4279  ;;  %v4640_v16 = vld [vmem:[#allocation4 + $0x18] sm:$0xff]  ;;  %4409 = vst.msk [vmem:[#allocation4 + $0x20] sm:$0xff] %vm962_vm7, %v4390_v6 }
 0x7bd   : > { %4298 = vst.msk [vmem:[#allocation4 + $0x28] sm:$0xff] %vm784_vm5, %v4280_v1  ;;  %v4646_v21 = vpack.c.bf16 %v4640_v16, %v4639_v46  ;;  %v8825_v6 = vld [vmem:[%s12883_s6 + $0x528] ss:$16 sps:$4 sm:$0xff]   ;;  %v8830_v1 = vld [vmem:[%s12883_s6 + $0x544] ss:$16 sps:$4 sm:$0xff]  }
 0x7be   : > { %5808 = vmatpush1.bf16.msra.mxu0 %v8816_v49  ;;  %5954 = vmatpush1.bf16.msra.mxu1 %v8819_v51  ;;  %v8833_v46 = vld [vmem:[%s12883_s6 + $0x54c] ss:$16 sps:$4 sm:$0xff]   ;;  %v8831_v49 = vld [vmem:[%s12883_s6 + $0x548] ss:$16 sps:$4 sm:$0xff]   ;;  %v8836_v51 = vld [vmem:[%s12883_s6 + $0x564] ss:$16 sps:$4 sm:$0xff]  }
 0x7bf   : > { %7692 = vmatmul.mubr.msk.bf16.gmra.mrb[60].mxu1 %vm1469_vm12, %v4646_v21  ;;  %7697 = vmatmul.mubr.msk.bf16.gmra.mrb[44].mxu0 %vm1469_vm12, %v4646_v21  ;;  %v4446_v0 = vpop.permute.xlu0 %4445 }
 0x7c0   : > { %v4336_v41 = vpop.permute.xlu1 %4335  ;;  %4857 = vmatprep.mubr.bf16.mxu1 %v13209_v9  ;;  %4930 = vmatprep.mubr.bf16.mxu0 %v13209_v9  ;;  %4465 = vst.msk [vmem:[#allocation4 + $0x20] sm:$0xff] %vm1051_vm8, %v4446_v0 }
 0x7c1   : > { %4354 = vst.msk [vmem:[#allocation4 + $0x28] sm:$0xff] %vm873_vm6, %v4336_v41  ;;  %5809 = vmatprep.subr.bf16.mxu0 %v8824_v29  ;;  %5955 = vmatprep.subr.bf16.mxu1 %v8827_v52  ;;  %v8839_v29 = vld [vmem:[%s12883_s6 + $0x56c] ss:$16 sps:$4 sm:$0xff]   ;;  %v8834_v41 = vld [vmem:[%s12883_s6 + $0x560] ss:$16 sps:$4 sm:$0xff]  }
 0x7c2   : > { %4410 = vst.msk [vmem:[#allocation4 + $0x28] sm:$0xff] %vm962_vm7, %v11695_v45  ;;  %5810 = vmatpush1.bf16.msra.mxu0 %v8822_v63  ;;  %5956 = vmatpush1.bf16.msra.mxu1 %v8825_v6  ;;  %v8828_v45 = vld [vmem:[%s12883_s6 + $0x540] ss:$16 sps:$4 sm:$0xff]   ;;  %v8842_v63 = vld [vmem:[%s12883_s6 + $0x584] ss:$16 sps:$4 sm:$0xff]  }
 0x7c3   : > { %v4502_v16 = vpop.permute.xlu0 %4501  ;;  %5811 = vmatprep.subr.bf16.mxu0 %v8830_v1  ;;  %5957 = vmatprep.subr.bf16.mxu1 %v8833_v46  ;;  %v8845_v6 = vld [vmem:[%s12883_s6 + $0x58c] ss:$16 sps:$4 sm:$0xff]  }
 0x7c4   : > { %v11810_v21 = vpop.permute.xlu1 %4395  ;;  %4521 = vst.msk [vmem:[#allocation4 + $0x20] sm:$0xff] %vm1140_vm9, %v4502_v16  ;;  %v8840_v16 = vld [vmem:[%s12883_s6 + $0x580] ss:$16 sps:$4 sm:$0xff]  }
 0x7c5   : > { %4577 = vst.msk [vmem:[#allocation4 + $0x20] sm:$0xff] %vm1229_vm10, %v11711_v23  ;;  %v8837_v23 = vld [vmem:[%s12883_s6 + $0x568] ss:$16 sps:$4 sm:$0xff]  }
 0x7c6   : > { %5812 = vmatpush1.bf16.msra.mxu0 %v8828_v45  ;;  %5958 = vmatpush1.bf16.msra.mxu1 %v8831_v49  ;;  %v8843_v45 = vld [vmem:[%s12883_s6 + $0x588] ss:$16 sps:$4 sm:$0xff]   ;;  %v8848_v49 = vld [vmem:[%s12883_s6 + $0x5a4] ss:$16 sps:$4 sm:$0xff]  }
 0x7c7   : > { %v4562_v52 = vpop.permute.xlu0 %4561  ;;  %5813 = vmatprep.subr.bf16.mxu0 %v8836_v51  ;;  %5959 = vmatprep.subr.bf16.mxu1 %v8839_v29  ;;  %v8851_v51 = vld [vmem:[%s12883_s6 + $0x5ac] ss:$16 sps:$4 sm:$0xff]  }
 0x7c8   : > { %v11827_v0 = vpop.permute.xlu1 %4451 }
 0x7ca   : > { %5814 = vmatpush1.bf16.msra.mxu0 %v8834_v41  ;;  %5960 = vmatpush1.bf16.msra.mxu1 %v8837_v23  ;;  %v8846_v23 = vld [vmem:[%s12883_s6 + $0x5a0] ss:$16 sps:$4 sm:$0xff]  }
 0x7cb   : > { %v4614_v1 = vpop.permute.xlu0 %4613  ;;  %5815 = vmatprep.subr.bf16.mxu0 %v8842_v63  ;;  %5961 = vmatprep.subr.bf16.mxu1 %v8845_v6  ;;  %v8849_v63 = vld [vmem:[%s12883_s6 + $0x5a8] ss:$16 sps:$4 sm:$0xff]  }
 0x7cc   : > { %v4508_v46 = vpop.permute.xlu1 %4507  ;;  %4633 = vst.msk [vmem:[#allocation4 + $0x20] sm:$0xff] %vm1318_vm11, %v4614_v1 }
 0x7ce   : > { %5816 = vmatpush1.bf16.msra.mxu0 %v8840_v16  ;;  %5962 = vmatpush1.bf16.msra.mxu1 %v8843_v45 }
 0x7cf   : > { %v4282_v29 = vpop.permute.xlu0 %4281  ;;  %5817 = vmatprep.subr.bf16.mxu0 %v8848_v49  ;;  %5963 = vmatprep.subr.bf16.mxu1 %v8851_v51 }
 0x7d0   : > { %v4448_v41 = vpop.permute.xlu1 %4447  ;;  %4299 = vst.msk [vmem:[#allocation4 + $0x30] sm:$0xff] %vm784_vm5, %v4282_v29 }
 0x7d1   : > { %4466 = vst.msk [vmem:[#allocation4 + $0x28] sm:$0xff] %vm1051_vm8, %v4448_v41 }
 0x7d2   : > { %5818 = vmatpush1.bf16.msra.mxu0 %v8846_v23  ;;  %5964 = vmatpush1.bf16.msra.mxu1 %v8849_v63 }
 0x7d3   : > { %v4338_v6 = vpop.permute.xlu0 %4337 }
 0x7d4   : > { %v4504_v1 = vpop.permute.xlu1 %4503  ;;  %4355 = vst.msk [vmem:[#allocation4 + $0x30] sm:$0xff] %vm873_vm6, %v4338_v6  ;;  %v4641_v6 = vld [vmem:[#allocation4 + $0x20] sm:$0xff] }
 0x7d5   : > { %4522 = vst.msk [vmem:[#allocation4 + $0x28] sm:$0xff] %vm1140_vm9, %v4504_v1 }
 0x7d7   : > { %v4394_v16 = vpop.permute.xlu0 %4393 }
 0x7d8   : > { %v4560_v45 = vpop.permute.xlu1 %4559  ;;  %4411 = vst.msk [vmem:[#allocation4 + $0x30] sm:$0xff] %vm962_vm7, %v4394_v16 }
 0x7d9   : > { %4578 = vst.msk [vmem:[#allocation4 + $0x28] sm:$0xff] %vm1229_vm10, %v4560_v45 }
 0x7db   : > { %v4450_v29 = vpop.permute.xlu0 %4449 }
 0x7dc   : > { %v4616_v41 = vpop.permute.xlu1 %4615  ;;  %4467 = vst.msk [vmem:[#allocation4 + $0x30] sm:$0xff] %vm1051_vm8, %v4450_v29 }
 0x7dd   : > { %4634 = vst.msk [vmem:[#allocation4 + $0x28] sm:$0xff] %vm1318_vm11, %v4616_v41  ;;  %v8857_v41 = vld [vmem:[%s12883_s6 + $0x5cc] ss:$16 sps:$4 sm:$0xff]  }
 0x7de   : > { %5965 = vmatprep.subr.bf16.mxu1 %v8857_v41  ;;  %v13322_v41 = vld [vmem:[#allocation69_spill] sm:$0xff] }
 0x7df   : > { %v4506_v49 = vpop.permute.xlu0 %4505 }
 0x7e0   : > { %v4228_v51 = vpop.permute.xlu1 %4227  ;;  %4523 = vst.msk [vmem:[#allocation4 + $0x30] sm:$0xff] %vm1140_vm9, %v4506_v49 }
 0x7e1   : > { %4244 = vst.msk [vmem:[#allocation4 + $0x38] sm:$0xff] %vm695_vm4, %v4228_v51  ;;  %v8860_v51 = vld [vmem:[%s12883_s6 + $0x5e4] ss:$16 sps:$4 sm:$0xff]  }
 0x7e2   : > { %4579 = vst.msk [vmem:[#allocation4 + $0x30] sm:$0xff] %vm1229_vm10, %v4562_v52 }
 0x7e3   : > { %v4618_v23 = vpop.permute.xlu0 %4617 }
 0x7e4   : > { %v4284_v63 = vpop.permute.xlu1 %4283  ;;  %v4642_v1 = vld [vmem:[#allocation4 + $0x28] sm:$0xff]  ;;  %4635 = vst.msk [vmem:[#allocation4 + $0x30] sm:$0xff] %vm1318_vm11, %v4618_v23 }
 0x7e5   : > { %4300 = vst.msk [vmem:[#allocation4 + $0x38] sm:$0xff] %vm784_vm5, %v4284_v63  ;;  %v4647_v16 = vpack.c.bf16 %v4642_v1, %v4641_v6  ;;  %v8858_v63 = vld [vmem:[%s12883_s6 + $0x5e0] ss:$16 sps:$4 sm:$0xff]   ;;  %v8861_v6 = vld [vmem:[%s12883_s6 + $0x5e8] ss:$16 sps:$4 sm:$0xff]  }
 0x7e6   : > { %v8863_v1 = vld [vmem:[%s12883_s6 + $0x5ec] ss:$16 sps:$4 sm:$0xff]  }
 0x7e7   : > { %7693 = vmatmul.mubr.msk.bf16.gmra.mrb[64].mxu1 %vm1469_vm12, %v4647_v16  ;;  %7698 = vmatmul.mubr.msk.bf16.gmra.mrb[48].mxu0 %vm1469_vm12, %v4647_v16  ;;  %v8866_v16 = vld [vmem:[%s12883_s6 + $0x604] ss:$16 sps:$4 sm:$0xff]  }
 0x7e8   : > { %v4340_v45 = vpop.permute.xlu1 %4339  ;;  %4867 = vmatprep.mubr.bf16.mxu1 %v13209_v9  ;;  %4940 = vmatprep.mubr.bf16.mxu0 %v13209_v9  ;;  %v8854_v9 = vld [vmem:[%s12883_s6 + $0x5c4] ss:$16 sps:$4 sm:$0xff]  }
 0x7e9   : > { %4356 = vst.msk [vmem:[#allocation4 + $0x38] sm:$0xff] %vm873_vm6, %v4340_v45  ;;  %5819 = vmatprep.subr.bf16.mxu0 %v8854_v9  ;;  %v8869_v45 = vld [vmem:[%s12883_s6 + $0x60c] ss:$16 sps:$4 sm:$0xff]  }
 0x7ea   : > { %4412 = vst.msk [vmem:[#allocation4 + $0x38] sm:$0xff] %vm962_vm7, %v11810_v21  ;;  %v8852_v21 = vld [vmem:[%s12883_s6 + $0x5c0] ss:$16 sps:$4 sm:$0xff]  }
 0x7eb   : > { %4468 = vst.msk [vmem:[#allocation4 + $0x38] sm:$0xff] %vm1051_vm8, %v11827_v0  ;;  %v8855_v0 = vld [vmem:[%s12883_s6 + $0x5c8] ss:$16 sps:$4 sm:$0xff]   ;;  %5820 = vmatpush1.bf16.msra.mxu0 %v8852_v21 }
 0x7ec   : > { %4524 = vst.msk [vmem:[#allocation4 + $0x38] sm:$0xff] %vm1140_vm9, %v4508_v46  ;;  %v4564_v52 = vpop.permute.xlu1 %4563  ;;  %v4643_v46 = vld [vmem:[#allocation4 + $0x30] sm:$0xff]  ;;  %5966 = vmatpush1.bf16.msra.mxu1 %v8855_v0  ;;  %5821 = vmatprep.subr.bf16.mxu0 %v8860_v51  ;;  %v13323_v0 = vld [vmem:[#allocation39_spill] sm:$0xff] }
 0x7ed   : > { %4580 = vst.msk [vmem:[#allocation4 + $0x38] sm:$0xff] %vm1229_vm10, %v4564_v52  ;;  %5967 = vmatprep.subr.bf16.mxu1 %v8863_v1  ;;  %v7669_v52 = vld [vmem:[%s12882_s5 + $0x4] sm:$0xf] }
 0x7ee   : > { %v11924_v21 = vrot.slane %v7669_v52, %v13322_v41 }
 0x7ef   : > { %5822 = vmatpush1.bf16.msra.mxu0 %v8858_v63 }
 0x7f0   : > { %v4620_v29 = vpop.permute.xlu1 %4619  ;;  %5968 = vmatpush1.bf16.msra.mxu1 %v8861_v6  ;;  %5864 = vmatprep.subr.bf16.mxu0 %v8866_v16 }
 0x7f1   : > { %4636 = vst.msk [vmem:[#allocation4 + $0x38] sm:$0xff] %vm1318_vm11, %v4620_v29  ;;  %6010 = vmatprep.subr.bf16.mxu1 %v8869_v45  ;;  %v13321_v29 = vld [vmem:[#allocation73_spill] sm:$0xff] }
 0x7f2   : > { %v11921_v9 = vrot.slane %v7669_v52, %v13321_v29 }
 0x7f8   : > { %v4644_v49 = vld [vmem:[#allocation4 + $0x38] sm:$0xff] }
 0x7f9   : > { %v4648_v23 = vpack.c.bf16 %v4644_v49, %v4643_v46  ;;  %v11927_v46 = vrot.slane %v7669_v52, %v13323_v0  ;;  %v13324_v49 = vld [vmem:[#allocation93_spill] sm:$0xff] }
 0x7fa   : > { %v11930_v51 = vrot.slane %v7669_v52, %v13324_v49 }
 0x7fb   : > { %7694 = vmatmul.mubr.msk.bf16.gmra.mrb[68].mxu1 %vm1469_vm12, %v4648_v23  ;;  %7699 = vmatmul.mubr.msk.bf16.gmra.mrb[52].mxu0 %vm1469_vm12, %v4648_v23 }
 0x86f   : > { %v4839_v23 = vpop.f32.mrb[56].mxu1  ;;  %v4912_v63 = vpop.f32.mrb[40].mxu0 }
 0x870   : > { %v4840_v6 = vadd.f32 %v4839_v23, %v11921_v9  ;;  %v4913_v1 = vadd.f32 %v4912_v63, %v11924_v21  ;;  %v4841_v16 = vpop.f32.mrb[57].mxu1  ;;  %v4914_v45 = vpop.f32.mrb[41].mxu0 }
 0x871   : > { %v4842_v28 = vadd.f32 %v4841_v16, %v11927_v46  ;;  %v4915_v25 = vadd.f32 %v4914_v45, %v11930_v51  ;;  %v4843_v61 = vpop.f32.mrb[58].mxu1  ;;  %v4916_v11 = vpop.f32.mrb[42].mxu0 }
 0x872   : > { %v4844_v39 = vadd.f32 %v4843_v61, %v11921_v9  ;;  %v4917_v56 = vadd.f32 %v4916_v11, %v11924_v21  ;;  %v4845_v52 = vpop.f32.mrb[59].mxu1  ;;  %v4918_v53 = vpop.f32.mrb[43].mxu0  ;;  %v4951_v55 = vmax.f32 %v4840_v6, 0.0  ;;  %v4953_v63 = vmax.f32 %v4913_v1, 0.0  ;;  %v8864_v11 = vld [vmem:[%s12883_s6 + $0x600] ss:$16 sps:$4 sm:$0xff]  }
 0x873   : > { %v4846_v31 = vadd.f32 %v4845_v52, %v11927_v46  ;;  %v4919_v23 = vadd.f32 %v4918_v53, %v11930_v51  ;;  %v4952_v43 = vmax.f32 %v4842_v28, 0.0  ;;  %v4954_v16 = vmax.f32 %v4915_v25, 0.0  ;;  %v8867_v53 = vld [vmem:[%s12883_s6 + $0x608] ss:$16 sps:$4 sm:$0xff]   ;;  %v8878_v25 = vld [vmem:[%s12883_s6 + $0x644] ss:$16 sps:$4 sm:$0xff]  }
 0x874   : > { %v4955_v24 = vmax.f32 %v4844_v39, 0.0  ;;  %v4957_v35 = vmax.f32 %v4917_v56, 0.0  ;;  %v8872_v39 = vld [vmem:[%s12883_s6 + $0x624] ss:$16 sps:$4 sm:$0xff]   ;;  %v8876_v28 = vld [vmem:[%s12883_s6 + $0x640] ss:$16 sps:$4 sm:$0xff]  }
 0x875   : > { %v4956_v62 = vmax.f32 %v4846_v31, 0.0  ;;  %v4958_v45 = vmax.f32 %v4919_v23, 0.0  ;;  %v8875_v31 = vld [vmem:[%s12883_s6 + $0x62c] ss:$16 sps:$4 sm:$0xff]   ;;  %v8882_v56 = vld [vmem:[%s12883_s6 + $0x660] ss:$16 sps:$4 sm:$0xff]  }
 0x876   : > { %v4983_v40 = vpack.c.bf16 %v4955_v24, %v4951_v55  ;;  %v11940_v54 = vpack.c.bf16 %v4957_v35, %v4953_v63  ;;  %v8879_v35 = vld [vmem:[%s12883_s6 + $0x648] ss:$16 sps:$4 sm:$0xff]   ;;  %v8884_v24 = vld [vmem:[%s12883_s6 + $0x664] ss:$16 sps:$4 sm:$0xff]   ;;  %v8887_v55 = vld [vmem:[%s12883_s6 + $0x66c] ss:$16 sps:$4 sm:$0xff]  }
 0x877   : > { %v4984_v61 = vpack.c.bf16 %v4956_v62, %v4952_v43  ;;  %v11942_v58 = vpack.c.bf16 %v4958_v45, %v4954_v16  ;;  %v8870_v62 = vld [vmem:[%s12883_s6 + $0x620] ss:$16 sps:$4 sm:$0xff]   ;;  %v8873_v43 = vld [vmem:[%s12883_s6 + $0x628] ss:$16 sps:$4 sm:$0xff]   ;;  %v8890_v1 = vld [vmem:[%s12883_s6 + $0x684] ss:$16 sps:$4 sm:$0xff]  }
 0x878   : > { %v8885_v6 = vld [vmem:[%s12883_s6 + $0x668] ss:$16 sps:$4 sm:$0xff]   ;;  %v8893_v52 = vld [vmem:[%s12883_s6 + $0x68c] ss:$16 sps:$4 sm:$0xff]   ;;  %v8888_v23 = vld [vmem:[%s12883_s6 + $0x680] ss:$16 sps:$4 sm:$0xff]  }
 0x879   : > { %5823 = vmatprep.mubr.bf16.mxu0 %v4984_v61  ;;  %5969 = vmatprep.mubr.bf16.mxu1 %v4984_v61  ;;  %v8891_v63 = vld [vmem:[%s12883_s6 + $0x688] ss:$16 sps:$4 sm:$0xff]   ;;  %v8896_v16 = vld [vmem:[%s12883_s6 + $0x6a4] ss:$16 sps:$4 sm:$0xff]   ;;  %v8899_v45 = vld [vmem:[%s12883_s6 + $0x6ac] ss:$16 sps:$4 sm:$0xff]  }
 0x87a   : > { %5824 = vmatmul.mubr.bf16.vlgmr.msra.gmra.mrb[56].mxu0 %v4983_v40  ;;  %5970 = vmatmul.mubr.bf16.vlgmr.msra.gmra.mrb[72].mxu1 %v4983_v40  ;;  %v8881_v40 = vld [vmem:[%s12883_s6 + $0x64c] ss:$16 sps:$4 sm:$0xff]   ;;  %v8894_v61 = vld [vmem:[%s12883_s6 + $0x6a0] ss:$16 sps:$4 sm:$0xff]  }
 0x87b   : > { %5865 = vmatpush1.bf16.msra.mxu0 %v8864_v11  ;;  %6011 = vmatpush1.bf16.msra.mxu1 %v8867_v53  ;;  %v8897_v11 = vld [vmem:[%s12883_s6 + $0x6a8] ss:$16 sps:$4 sm:$0xff]   ;;  %v8902_v53 = vld [vmem:[%s12883_s6 + $0x6c4] ss:$16 sps:$4 sm:$0xff]  }
 0x87c   : > { %5866 = vmatprep.subr.bf16.mxu0 %v8872_v39  ;;  %6012 = vmatprep.subr.bf16.mxu1 %v8875_v31  ;;  %v8905_v39 = vld [vmem:[%s12883_s6 + $0x6cc] ss:$16 sps:$4 sm:$0xff]   ;;  %v8900_v31 = vld [vmem:[%s12883_s6 + $0x6c0] ss:$16 sps:$4 sm:$0xff]  }
 0x87f   : > { %5867 = vmatpush1.bf16.msra.mxu0 %v8870_v62  ;;  %6013 = vmatpush1.bf16.msra.mxu1 %v8873_v43  ;;  %v8903_v62 = vld [vmem:[%s12883_s6 + $0x6c8] ss:$16 sps:$4 sm:$0xff]   ;;  %v8908_v43 = vld [vmem:[%s12883_s6 + $0x6e4] ss:$16 sps:$4 sm:$0xff]  }
 0x880   : > { %5868 = vmatprep.subr.bf16.mxu0 %v8878_v25  ;;  %6014 = vmatprep.subr.bf16.mxu1 %v8881_v40  ;;  %v8911_v25 = vld [vmem:[%s12883_s6 + $0x6ec] ss:$16 sps:$4 sm:$0xff]  }
 0x883   : > { %5869 = vmatpush1.bf16.msra.mxu0 %v8876_v28  ;;  %6015 = vmatpush1.bf16.msra.mxu1 %v8879_v35 }
 0x884   : > { %5870 = vmatprep.subr.bf16.mxu0 %v8884_v24  ;;  %6016 = vmatprep.subr.bf16.mxu1 %v8887_v55 }
 0x887   : > { %5871 = vmatpush1.bf16.msra.mxu0 %v8882_v56  ;;  %6017 = vmatpush1.bf16.msra.mxu1 %v8885_v6 }
 0x888   : > { %5872 = vmatprep.subr.bf16.mxu0 %v8890_v1  ;;  %6018 = vmatprep.subr.bf16.mxu1 %v8893_v52 }
 0x88b   : > { %5873 = vmatpush1.bf16.msra.mxu0 %v8888_v23  ;;  %6019 = vmatpush1.bf16.msra.mxu1 %v8891_v63  ;;  %v8906_v63 = vld [vmem:[%s12883_s6 + $0x6e0] ss:$16 sps:$4 sm:$0xff]  }
 0x88c   : > { %5874 = vmatprep.subr.bf16.mxu0 %v8896_v16  ;;  %6020 = vmatprep.subr.bf16.mxu1 %v8899_v45  ;;  %v8909_v16 = vld [vmem:[%s12883_s6 + $0x6e8] ss:$16 sps:$4 sm:$0xff]  }
 0x88f   : > { %5875 = vmatpush1.bf16.msra.mxu0 %v8894_v61  ;;  %6021 = vmatpush1.bf16.msra.mxu1 %v8897_v11 }
 0x890   : > { %5876 = vmatprep.subr.bf16.mxu0 %v8902_v53  ;;  %6022 = vmatprep.subr.bf16.mxu1 %v8905_v39  ;;  %v8914_v39 = vld [vmem:[%s12883_s6 + $0x704] ss:$16 sps:$4 sm:$0xff]  }
 0x892   : > { %v4849_v40 = vpop.f32.mrb[60].mxu1  ;;  %v4922_v28 = vpop.f32.mrb[44].mxu0 }
 0x893   : > { %v4850_v35 = vadd.f32 %v4849_v40, %v11921_v9  ;;  %v4923_v24 = vadd.f32 %v4922_v28, %v11924_v21  ;;  %v4851_v55 = vpop.f32.mrb[61].mxu1  ;;  %v4924_v56 = vpop.f32.mrb[45].mxu0  ;;  %5877 = vmatpush1.bf16.msra.mxu0 %v8900_v31  ;;  %6023 = vmatpush1.bf16.msra.mxu1 %v8903_v62  ;;  %v8917_v31 = vld [vmem:[%s12883_s6 + $0x70c] ss:$16 sps:$4 sm:$0xff]  }
 0x894   : > { %v4852_v6 = vadd.f32 %v4851_v55, %v11927_v46  ;;  %v4925_v1 = vadd.f32 %v4924_v56, %v11930_v51  ;;  %v4853_v52 = vpop.f32.mrb[62].mxu1  ;;  %v4926_v23 = vpop.f32.mrb[46].mxu0  ;;  %5878 = vmatprep.subr.bf16.mxu0 %v8908_v43  ;;  %6024 = vmatprep.subr.bf16.mxu1 %v8911_v25 }
 0x895   : > { %v4854_v45 = vadd.f32 %v4853_v52, %v11921_v9  ;;  %v4927_v61 = vadd.f32 %v4926_v23, %v11924_v21  ;;  %v4855_v11 = vpop.f32.mrb[63].mxu1  ;;  %v4928_v53 = vpop.f32.mrb[47].mxu0  ;;  %v4959_v28 = vmax.f32 %v4850_v35, 0.0  ;;  %v4961_v55 = vmax.f32 %v4923_v24, 0.0  ;;  %v8912_v35 = vld [vmem:[%s12883_s6 + $0x700] ss:$16 sps:$4 sm:$0xff]  }
 0x896   : > { %v4856_v62 = vadd.f32 %v4855_v11, %v11927_v46  ;;  %v4929_v40 = vadd.f32 %v4928_v53, %v11930_v51  ;;  %v4960_v23 = vmax.f32 %v4852_v6, 0.0  ;;  %v4962_v17 = vmax.f32 %v4925_v1, 0.0  ;;  %v8915_v24 = vld [vmem:[%s12883_s6 + $0x708] ss:$16 sps:$4 sm:$0xff]   ;;  %v8920_v6 = vld [vmem:[%s12883_s6 + $0x724] ss:$16 sps:$4 sm:$0xff]  }
 0x897   : > { %v4963_v56 = vmax.f32 %v4854_v45, 0.0  ;;  %v4965_v52 = vmax.f32 %v4927_v61, 0.0  ;;  %5879 = vmatpush1.bf16.msra.mxu0 %v8906_v63  ;;  %6025 = vmatpush1.bf16.msra.mxu1 %v8909_v16  ;;  %v8923_v1 = vld [vmem:[%s12883_s6 + $0x72c] ss:$16 sps:$4 sm:$0xff]   ;;  %v8921_v63 = vld [vmem:[%s12883_s6 + $0x728] ss:$16 sps:$4 sm:$0xff]  }
 0x898   : > { %v4964_v43 = vmax.f32 %v4856_v62, 0.0  ;;  %v4966_v25 = vmax.f32 %v4929_v40, 0.0  ;;  %5880 = vmatprep.subr.bf16.mxu0 %v8914_v39  ;;  %6026 = vmatprep.subr.bf16.mxu1 %v8917_v31  ;;  %v8926_v16 = vld [vmem:[%s12883_s6 + $0x744] ss:$16 sps:$4 sm:$0xff]   ;;  %v8927_v45 = vld [vmem:[%s12883_s6 + $0x748] ss:$16 sps:$4 sm:$0xff]  }
 0x899   : > { %v4987_v4 = vpack.c.bf16 %v4963_v56, %v4959_v28  ;;  %v12048_v50 = vpack.c.bf16 %v4965_v52, %v4961_v55  ;;  %v8932_v61 = vld [vmem:[%s12883_s6 + $0x764] ss:$16 sps:$4 sm:$0xff]   ;;  %v8935_v11 = vld [vmem:[%s12883_s6 + $0x76c] ss:$16 sps:$4 sm:$0xff]   ;;  %v8930_v53 = vld [vmem:[%s12883_s6 + $0x760] ss:$16 sps:$4 sm:$0xff]  }
 0x89a   : > { %v4988_v12 = vpack.c.bf16 %v4964_v43, %v4960_v23  ;;  %v12050_v47 = vpack.c.bf16 %v4966_v25, %v4962_v17  ;;  %v8918_v17 = vld [vmem:[%s12883_s6 + $0x720] ss:$16 sps:$4 sm:$0xff]   ;;  %v8933_v39 = vld [vmem:[%s12883_s6 + $0x768] ss:$16 sps:$4 sm:$0xff]   ;;  %v8938_v31 = vld [vmem:[%s12883_s6 + $0x784] ss:$16 sps:$4 sm:$0xff]  }
 0x89b   : > { %5881 = vmatpush1.bf16.msra.mxu0 %v8912_v35  ;;  %6027 = vmatpush1.bf16.msra.mxu1 %v8915_v24  ;;  %v8941_v62 = vld [vmem:[%s12883_s6 + $0x78c] ss:$16 sps:$4 sm:$0xff]   ;;  %v8936_v40 = vld [vmem:[%s12883_s6 + $0x780] ss:$16 sps:$4 sm:$0xff]   ;;  %v8939_v28 = vld [vmem:[%s12883_s6 + $0x788] ss:$16 sps:$4 sm:$0xff]  }
 0x89c   : > { %5833 = vmatprep.mubr.bf16.mxu0 %v4988_v12  ;;  %5979 = vmatprep.mubr.bf16.mxu1 %v4988_v12  ;;  %v8929_v12 = vld [vmem:[%s12883_s6 + $0x74c] ss:$16 sps:$4 sm:$0xff]   ;;  %v8944_v55 = vld [vmem:[%s12883_s6 + $0x7a4] ss:$16 sps:$4 sm:$0xff]   ;;  %v8942_v52 = vld [vmem:[%s12883_s6 + $0x7a0] ss:$16 sps:$4 sm:$0xff]  }
 0x89d   : > { %5834 = vmatmul.mubr.bf16.gmra.mrb[60].mxu0 %v4987_v4  ;;  %5980 = vmatmul.mubr.bf16.gmra.mrb[76].mxu1 %v4987_v4  ;;  %v8924_v4 = vld [vmem:[%s12883_s6 + $0x740] ss:$16 sps:$4 sm:$0xff]   ;;  %v8947_v56 = vld [vmem:[%s12883_s6 + $0x7ac] ss:$16 sps:$4 sm:$0xff]   ;;  %v8945_v23 = vld [vmem:[%s12883_s6 + $0x7a8] ss:$16 sps:$4 sm:$0xff]  }
 0x89e   : > { %5882 = vmatprep.subr.bf16.mxu0 %v8920_v6  ;;  %6028 = vmatprep.subr.bf16.mxu1 %v8923_v1  ;;  %v8950_v43 = vld [vmem:[%s12883_s6 + $0x7c4] ss:$16 sps:$4 sm:$0xff]   ;;  %v8953_v25 = vld [vmem:[%s12883_s6 + $0x7cc] ss:$16 sps:$4 sm:$0xff]   ;;  %v8948_v35 = vld [vmem:[%s12883_s6 + $0x7c0] ss:$16 sps:$4 sm:$0xff]  }
 0x89f   : > { %5883 = vmatpush1.bf16.msra.mxu0 %v8918_v17  ;;  %6029 = vmatpush1.bf16.msra.mxu1 %v8921_v63  ;;  %v8951_v24 = vld [vmem:[%s12883_s6 + $0x7c8] ss:$16 sps:$4 sm:$0xff]   ;;  %v8956_v6 = vld [vmem:[%s12883_s6 + $0x7e4] ss:$16 sps:$4 sm:$0xff]   ;;  %v8959_v1 = vld [vmem:[%s12883_s6 + $0x7ec] ss:$16 sps:$4 sm:$0xff]  }
 0x8a0   : > { %5884 = vmatprep.subr.bf16.mxu0 %v8926_v16  ;;  %6030 = vmatprep.subr.bf16.mxu1 %v8929_v12  ;;  %v8954_v17 = vld [vmem:[%s12883_s6 + $0x7e0] ss:$16 sps:$4 sm:$0xff]   ;;  %v8957_v63 = vld [vmem:[%s12883_s6 + $0x7e8] ss:$16 sps:$4 sm:$0xff]   ;;  %v8962_v16 = vld [vmem:[%s12885_s8 + $0x204] ss:$8 sps:$4 sm:$0xff]  }
 0x8a3   : > { %5885 = vmatpush1.bf16.msra.mxu0 %v8924_v4  ;;  %6031 = vmatpush1.bf16.msra.mxu1 %v8927_v45 }
 0x8a4   : > { %5886 = vmatprep.subr.bf16.mxu0 %v8932_v61  ;;  %6032 = vmatprep.subr.bf16.mxu1 %v8935_v11 }
 0x8a7   : > { %5887 = vmatpush1.bf16.msra.mxu0 %v8930_v53  ;;  %6033 = vmatpush1.bf16.msra.mxu1 %v8933_v39 }
 0x8a8   : > { %5888 = vmatprep.subr.bf16.mxu0 %v8938_v31  ;;  %6034 = vmatprep.subr.bf16.mxu1 %v8941_v62 }
 0x8ab   : > { %5889 = vmatpush1.bf16.msra.mxu0 %v8936_v40  ;;  %6035 = vmatpush1.bf16.msra.mxu1 %v8939_v28 }
 0x8ac   : > { %5890 = vmatprep.subr.bf16.mxu0 %v8944_v55  ;;  %6036 = vmatprep.subr.bf16.mxu1 %v8947_v56 }
 0x8af   : > { %5891 = vmatpush1.bf16.msra.mxu0 %v8942_v52  ;;  %6037 = vmatpush1.bf16.msra.mxu1 %v8945_v23 }
 0x8b0   : > { %5892 = vmatprep.subr.bf16.mxu0 %v8950_v43  ;;  %6038 = vmatprep.subr.bf16.mxu1 %v8953_v25 }
 0x8b3   : > { %5893 = vmatpush1.bf16.msra.mxu0 %v8948_v35  ;;  %6039 = vmatpush1.bf16.msra.mxu1 %v8951_v24 }
 0x8b4   : > { %5894 = vmatprep.subr.bf16.mxu0 %v8956_v6  ;;  %6040 = vmatprep.subr.bf16.mxu1 %v8959_v1 }
 0x8b7   : > { %5895 = vmatpush1.bf16.msra.mxu0 %v8954_v17  ;;  %6041 = vmatpush1.bf16.msra.mxu1 %v8957_v63 }
 0x8b8   : > { %6516 = vmatprep.subr.bf16.mxu0 %v8962_v16 }
 0x8ba   : > { %v4859_v12 = vpop.f32.mrb[64].mxu1  ;;  %v4932_v4 = vpop.f32.mrb[48].mxu0 }
 0x8bb   : > { %v4860_v45 = vadd.f32 %v4859_v12, %v11921_v9  ;;  %v4933_v61 = vadd.f32 %v4932_v4, %v11924_v21  ;;  %v4861_v11 = vpop.f32.mrb[65].mxu1  ;;  %v4934_v53 = vpop.f32.mrb[49].mxu0 }
 0x8bc   : > { %v4862_v39 = vadd.f32 %v4861_v11, %v11927_v46  ;;  %v4935_v31 = vadd.f32 %v4934_v53, %v11930_v51  ;;  %v4863_v62 = vpop.f32.mrb[66].mxu1  ;;  %v4936_v40 = vpop.f32.mrb[50].mxu0 }
 0x8bd   : > { %v4864_v28 = vadd.f32 %v4863_v62, %v11921_v9  ;;  %v4937_v55 = vadd.f32 %v4936_v40, %v11924_v21  ;;  %v4865_v56 = vpop.f32.mrb[67].mxu1  ;;  %v4938_v52 = vpop.f32.mrb[51].mxu0  ;;  %v4967_v25 = vmax.f32 %v4860_v45, 0.0  ;;  %v4969_v35 = vmax.f32 %v4933_v61, 0.0 }
 0x8be   : > { %v4866_v23 = vadd.f32 %v4865_v56, %v11927_v46  ;;  %v4939_v43 = vadd.f32 %v4938_v52, %v11930_v51  ;;  %v4968_v1 = vmax.f32 %v4862_v39, 0.0  ;;  %v4970_v17 = vmax.f32 %v4935_v31, 0.0 }
 0x8bf   : > { %v4971_v24 = vmax.f32 %v4864_v28, 0.0  ;;  %v4973_v6 = vmax.f32 %v4937_v55, 0.0 }
 0x8c0   : > { %v4972_v63 = vmax.f32 %v4866_v23, 0.0  ;;  %v4974_v16 = vmax.f32 %v4939_v43, 0.0 }
 0x8c1   : > { %v4991_v12 = vpack.c.bf16 %v4971_v24, %v4967_v25  ;;  %v12153_v4 = vpack.c.bf16 %v4973_v6, %v4969_v35 }
 0x8c2   : > { %v4992_v11 = vpack.c.bf16 %v4972_v63, %v4968_v1  ;;  %v4994_v53 = vpack.c.bf16 %v4974_v16, %v4970_v17 }
 0x8c4   : > { %5843 = vmatprep.mubr.bf16.mxu0 %v4992_v11  ;;  %5989 = vmatprep.mubr.bf16.mxu1 %v4992_v11 }
 0x8c5   : > { %5844 = vmatmul.mubr.bf16.gmra.mrb[64].mxu0 %v4991_v12  ;;  %5990 = vmatmul.mubr.bf16.gmra.mrb[80].mxu1 %v4991_v12 }
 0x8ce   : > { %v4869_v62 = vpop.f32.mrb[68].mxu1  ;;  %v4942_v40 = vpop.f32.mrb[52].mxu0 }
 0x8cf   : > { %v4870_v45 = vadd.f32 %v4869_v62, %v11921_v9  ;;  %v4943_v61 = vadd.f32 %v4942_v40, %v11924_v21  ;;  %v4871_v28 = vpop.f32.mrb[69].mxu1  ;;  %v4944_v39 = vpop.f32.mrb[53].mxu0 }
 0x8d0   : > { %v4872_v31 = vadd.f32 %v4871_v28, %v11927_v46  ;;  %v4945_v55 = vadd.f32 %v4944_v39, %v11930_v51  ;;  %v4873_v56 = vpop.f32.mrb[70].mxu1  ;;  %v4946_v52 = vpop.f32.mrb[54].mxu0 }
 0x8d1   : > { %v4874_v23 = vadd.f32 %v4873_v56, %v11921_v9  ;;  %v4947_v43 = vadd.f32 %v4946_v52, %v11924_v21  ;;  %v4875_v25 = vpop.f32.mrb[71].mxu1  ;;  %v4948_v35 = vpop.f32.mrb[55].mxu0  ;;  %v4975_v1 = vmax.f32 %v4870_v45, 0.0  ;;  %v4977_v17 = vmax.f32 %v4943_v61, 0.0  ;;  %v8960_v21 = vld [vmem:[%s12885_s8 + $0x200] ss:$8 sps:$4 sm:$0xff]  }
 0x8d2   : > { %v4876_v24 = vadd.f32 %v4875_v25, %v11927_v46  ;;  %v4949_v6 = vadd.f32 %v4948_v35, %v11930_v51  ;;  %v4976_v12 = vmax.f32 %v4872_v31, 0.0  ;;  %v4978_v11 = vmax.f32 %v4945_v55, 0.0  ;;  %v8965_v46 = vld [vmem:[%s12885_s8 + $0x214] ss:$8 sps:$4 sm:$0xff]   ;;  %v8966_v51 = vld [vmem:[%s12885_s8 + $0x220] ss:$8 sps:$4 sm:$0xff]  }
 0x8d3   : > { %v4979_v63 = vmax.f32 %v4874_v23, 0.0  ;;  %v4981_v16 = vmax.f32 %v4947_v43, 0.0  ;;  %v8974_v45 = vld [vmem:[%s12885_s8 + $0x244] ss:$8 sps:$4 sm:$0xff]   ;;  %v8972_v61 = vld [vmem:[%s12885_s8 + $0x240] ss:$8 sps:$4 sm:$0xff]  }
 0x8d4   : > { %v4980_v62 = vmax.f32 %v4876_v24, 0.0  ;;  %v4982_v40 = vmax.f32 %v4949_v6, 0.0  ;;  %v8980_v31 = vld [vmem:[%s12885_s8 + $0x264] ss:$8 sps:$4 sm:$0xff]   ;;  %v8978_v55 = vld [vmem:[%s12885_s8 + $0x260] ss:$8 sps:$4 sm:$0xff]  }
 0x8d5   : > { %v4995_v28 = vpack.c.bf16 %v4979_v63, %v4975_v1  ;;  %v4997_v39 = vpack.c.bf16 %v4981_v16, %v4977_v17  ;;  %v8981_v56 = vld [vmem:[%s12885_s8 + $0x270] ss:$8 sps:$4 sm:$0xff]   ;;  %v8986_v52 = vld [vmem:[%s12885_s8 + $0x284] ss:$8 sps:$4 sm:$0xff]   ;;  %v8984_v23 = vld [vmem:[%s12885_s8 + $0x280] ss:$8 sps:$4 sm:$0xff]  }
 0x8d6   : > { %v4996_v8 = vpack.c.bf16 %v4980_v62, %v4976_v12  ;;  %v4998_v9 = vpack.c.bf16 %v4982_v40, %v4978_v11  ;;  %v8989_v43 = vld [vmem:[%s12885_s8 + $0x294] ss:$8 sps:$4 sm:$0xff]   ;;  %v8987_v25 = vld [vmem:[%s12885_s8 + $0x290] ss:$8 sps:$4 sm:$0xff]   ;;  %v8992_v35 = vld [vmem:[%s12885_s8 + $0x2a4] ss:$8 sps:$4 sm:$0xff]  }
 0x8d7   : > { %v8990_v24 = vld [vmem:[%s12885_s8 + $0x2a0] ss:$8 sps:$4 sm:$0xff]   ;;  %v8995_v6 = vld [vmem:[%s12885_s8 + $0x2b4] ss:$8 sps:$4 sm:$0xff]   ;;  %v8993_v1 = vld [vmem:[%s12885_s8 + $0x2b0] ss:$8 sps:$4 sm:$0xff]  }
 0x8d8   : > { %5853 = vmatprep.mubr.bf16.mxu0 %v4996_v8  ;;  %5999 = vmatprep.mubr.bf16.mxu1 %v4996_v8  ;;  %v8968_v8 = vld [vmem:[%s12885_s8 + $0x224] ss:$8 sps:$4 sm:$0xff]   ;;  %v8996_v63 = vld [vmem:[%s12885_s8 + $0x2c0] ss:$8 sps:$4 sm:$0xff]   ;;  %v9001_v16 = vld [vmem:[%s12885_s8 + $0x2d4] ss:$8 sps:$4 sm:$0xff]  }
 0x8d9   : > { %5854 = vmatmul.mubr.bf16.gmra.mrb[68].mxu0 %v4995_v28  ;;  %6000 = vmatmul.mubr.bf16.gmra.mrb[84].mxu1 %v4995_v28  ;;  %v8998_v17 = vld [vmem:[%s12885_s8 + $0x2c4] ss:$8 sps:$4 sm:$0xff]   ;;  %v8999_v12 = vld [vmem:[%s12885_s8 + $0x2d0] ss:$8 sps:$4 sm:$0xff]   ;;  %v9002_v62 = vld [vmem:[%s12885_s8 + $0x2e0] ss:$8 sps:$4 sm:$0xff]  }
 0x8da   : > { %5896 = vmatprep.mubr.bf16.mxu0 %v11942_v58  ;;  %6042 = vmatprep.mubr.bf16.mxu1 %v11942_v58  ;;  %v8963_v58 = vld [vmem:[%s12885_s8 + $0x210] ss:$8 sps:$4 sm:$0xff]   ;;  %v9004_v11 = vld [vmem:[%s12885_s8 + $0x2e4] ss:$8 sps:$4 sm:$0xff]   ;;  %v9007_v28 = vld [vmem:[%s12885_s8 + $0x2f4] ss:$8 sps:$4 sm:$0xff]  }
 0x8db   : > { %v9005_v40 = vld [vmem:[%s12885_s8 + $0x2f0] ss:$8 sps:$4 sm:$0xff]  }
 0x8e1   : > { %5897 = vmatmul.mubr.bf16.vlgmr.msra.gmra.mrb[56].mxu0 %v11940_v54  ;;  %6043 = vmatmul.mubr.bf16.vlgmr.msra.gmra.mrb[72].mxu1 %v11940_v54  ;;  %v8969_v54 = vld [vmem:[%s12885_s8 + $0x230] ss:$8 sps:$4 sm:$0xff]  }
 0x8e2   : > { %5906 = vmatprep.mubr.bf16.mxu0 %v12050_v47  ;;  %6052 = vmatprep.mubr.bf16.mxu1 %v12050_v47  ;;  %v8971_v47 = vld [vmem:[%s12885_s8 + $0x234] ss:$8 sps:$4 sm:$0xff]  }
 0x8e3   : > { %6517 = vmatpush1.bf16.msra.mxu0 %v8960_v21 }
 0x8e4   : > { %6518 = vmatprep.subr.bf16.mxu0 %v8965_v46 }
 0x8e7   : > { %6519 = vmatpush1.bf16.msra.mxu0 %v8963_v58 }
 0x8e8   : > { %6520 = vmatprep.subr.bf16.mxu0 %v8968_v8 }
 0x8e9   : > { %5907 = vmatmul.mubr.bf16.gmra.mrb[60].mxu0 %v12048_v50  ;;  %6053 = vmatmul.mubr.bf16.gmra.mrb[76].mxu1 %v12048_v50  ;;  %v8977_v50 = vld [vmem:[%s12885_s8 + $0x254] ss:$8 sps:$4 sm:$0xff]  }
 0x8ea   : > { %5916 = vmatprep.mubr.bf16.mxu0 %v4994_v53  ;;  %6062 = vmatprep.mubr.bf16.mxu1 %v4994_v53  ;;  %v8975_v53 = vld [vmem:[%s12885_s8 + $0x250] ss:$8 sps:$4 sm:$0xff]  }
 0x8eb   : > { %6521 = vmatpush1.bf16.msra.mxu0 %v8966_v51 }
 0x8ec   : > { %6522 = vmatprep.subr.bf16.mxu0 %v8971_v47 }
 0x8ef   : > { %6523 = vmatpush1.bf16.msra.mxu0 %v8969_v54 }
 0x8f0   : > { %6524 = vmatprep.subr.bf16.mxu0 %v8974_v45 }
 0x8f1   : > { %5917 = vmatmul.mubr.bf16.gmra.mrb[64].mxu0 %v12153_v4  ;;  %6063 = vmatmul.mubr.bf16.gmra.mrb[80].mxu1 %v12153_v4  ;;  %v8983_v4 = vld [vmem:[%s12885_s8 + $0x274] ss:$8 sps:$4 sm:$0xff]  }
 0x8f2   : > { %5926 = vmatprep.mubr.bf16.mxu0 %v4998_v9  ;;  %6072 = vmatprep.mubr.bf16.mxu1 %v4998_v9  ;;  %v7828_v9 = vld [vmem:[%s12884_s7 + $0x4] sm:$0xf] }
 0x8f3   : > { %6525 = vmatpush1.bf16.msra.mxu0 %v8972_v61  ;;  %v12273_v21 = vrot.slane %v7828_v9, %v13321_v29  ;;  %v12276_v46 = vrot.slane %v7828_v9, %v13322_v41  ;;  %v12279_v58 = vrot.slane %v7828_v9, %v13323_v0  ;;  %v12282_v8 = vrot.slane %v7828_v9, %v13324_v49 }
 0x8f4   : > { %6526 = vmatprep.subr.bf16.mxu0 %v8977_v50 }
 0x8f7   : > { %6527 = vmatpush1.bf16.msra.mxu0 %v8975_v53 }
 0x8f8   : > { %6528 = vmatprep.subr.bf16.mxu0 %v8980_v31 }
 0x8f9   : > { %5927 = vmatmul.mubr.bf16.gmra.mrb[68].mxu0 %v4997_v39  ;;  %6073 = vmatmul.mubr.bf16.gmra.mrb[84].mxu1 %v4997_v39  ;;  %v9010_v39 = vld [vmem:[%s12885_s8 + $0x304] ss:$8 sps:$4 sm:$0xff]  }
 0x8fb   : > { %6529 = vmatpush1.bf16.msra.mxu0 %v8978_v55 }
 0x8fc   : > { %6530 = vmatprep.subr.bf16.mxu0 %v8983_v4 }
 0x8ff   : > { %6531 = vmatpush1.bf16.msra.mxu0 %v8981_v56 }
 0x900   : > { %6532 = vmatprep.subr.bf16.mxu0 %v8986_v52 }
 0x903   : > { %6533 = vmatpush1.bf16.msra.mxu0 %v8984_v23 }
 0x904   : > { %6534 = vmatprep.subr.bf16.mxu0 %v8989_v43 }
 0x907   : > { %6535 = vmatpush1.bf16.msra.mxu0 %v8987_v25 }
 0x908   : > { %6536 = vmatprep.subr.bf16.mxu0 %v8992_v35 }
 0x90b   : > { %6537 = vmatpush1.bf16.msra.mxu0 %v8990_v24 }
 0x90c   : > { %6538 = vmatprep.subr.bf16.mxu0 %v8995_v6 }
 0x90f   : > { %6539 = vmatpush1.bf16.msra.mxu0 %v8993_v1 }
 0x910   : > { %6540 = vmatprep.subr.bf16.mxu0 %v8998_v17 }
 0x913   : > { %6541 = vmatpush1.bf16.msra.mxu0 %v8996_v63 }
 0x914   : > { %6542 = vmatprep.subr.bf16.mxu0 %v9001_v16 }
 0x917   : > { %6543 = vmatpush1.bf16.msra.mxu0 %v8999_v12 }
 0x918   : > { %6544 = vmatprep.subr.bf16.mxu0 %v9004_v11 }
 0x91b   : > { %6545 = vmatpush1.bf16.msra.mxu0 %v9002_v62 }
 0x91c   : > { %6546 = vmatprep.subr.bf16.mxu0 %v9007_v28  ;;  %v9008_v28 = vld [vmem:[%s12885_s8 + $0x300] ss:$8 sps:$4 sm:$0xff]  }
 0x91f   : > { %6547 = vmatpush1.bf16.msra.mxu0 %v9005_v40 }
 0x920   : > { %6589 = vmatprep.subr.bf16.mxu0 %v9010_v39 }
 0x9b4   : > { %v5898_v51 = vpop.f32.mrb[56].mxu0  ;;  %v6044_v47 = vpop.f32.mrb[72].mxu1 }
 0x9b5   : > { %v8192_v54 = vadd.f32 %v5898_v51, %v12273_v21  ;;  %v8208_v45 = vadd.f32 %v6044_v47, %v12276_v46  ;;  %v5900_v61 = vpop.f32.mrb[57].mxu0  ;;  %v6046_v50 = vpop.f32.mrb[73].mxu1 }
 0x9b6   : > { %v8193_v29 = vadd.f32 %v5900_v61, %v12279_v58  ;;  %v8209_v53 = vadd.f32 %v6046_v50, %v12282_v8  ;;  %v5902_v41 = vpop.f32.mrb[58].mxu0  ;;  %v6048_v31 = vpop.f32.mrb[74].mxu1 }
 0x9b7   : > { %v8194_v0 = vadd.f32 %v5902_v41, %v12273_v21  ;;  %v8210_v55 = vadd.f32 %v6048_v31, %v12276_v46  ;;  %v5904_v49 = vpop.f32.mrb[59].mxu0  ;;  %v6050_v4 = vpop.f32.mrb[75].mxu1  ;;  %v6083_v23 = vmax.f32 %v8192_v54, 0.0  ;;  %v6085_v43 = vmax.f32 %v8208_v45, 0.0  ;;  %v9013_v54 = vld [vmem:[%s12885_s8 + $0x314] ss:$8 sps:$4 sm:$0xff]  }
 0x9b8   : > { %v8195_v56 = vadd.f32 %v5904_v49, %v12279_v58  ;;  %v8211_v52 = vadd.f32 %v6050_v4, %v12282_v8  ;;  %v6084_v24 = vmax.f32 %v8193_v29, 0.0  ;;  %v6086_v6 = vmax.f32 %v8209_v53, 0.0  ;;  %v9011_v4 = vld [vmem:[%s12885_s8 + $0x310] ss:$8 sps:$4 sm:$0xff]  }
 0x9b9   : > { %v6087_v25 = vmax.f32 %v8194_v0, 0.0  ;;  %v6089_v35 = vmax.f32 %v8210_v55, 0.0 }
 0x9ba   : > { %v6088_v1 = vmax.f32 %v8195_v56, 0.0  ;;  %v6090_v17 = vmax.f32 %v8211_v52, 0.0 }
 0x9bb   : > { %v6115_v63 = vpack.c.bf16 %v6087_v25, %v6083_v23  ;;  %v12292_v16 = vpack.c.bf16 %v6089_v35, %v6085_v43  ;;  %v9016_v25 = vld [vmem:[%s12885_s8 + $0x324] ss:$8 sps:$4 sm:$0xff]  }
 0x9bc   : > { %v6116_v12 = vpack.c.bf16 %v6088_v1, %v6084_v24  ;;  %v12294_v11 = vpack.c.bf16 %v6090_v17, %v6086_v6  ;;  %v5908_v62 = vpop.f32.mrb[60].mxu0  ;;  %v6054_v40 = vpop.f32.mrb[76].mxu1 }
 0x9bd   : > { %v8196_v39 = vadd.f32 %v5908_v62, %v12273_v21  ;;  %v8212_v9 = vadd.f32 %v6054_v40, %v12276_v46  ;;  %v5910_v51 = vpop.f32.mrb[61].mxu0  ;;  %v6056_v47 = vpop.f32.mrb[77].mxu1 }
 0x9be   : > { %v8197_v45 = vadd.f32 %v5910_v51, %v12279_v58  ;;  %v8213_v61 = vadd.f32 %v6056_v47, %v12282_v8  ;;  %v5912_v50 = vpop.f32.mrb[62].mxu0  ;;  %v6058_v29 = vpop.f32.mrb[78].mxu1  ;;  %6548 = vmatprep.mubr.bf16.mxu0 %v6116_v12 }
 0x9bf   : > { %v8198_v53 = vadd.f32 %v5912_v50, %v12273_v21  ;;  %v8214_v41 = vadd.f32 %v6058_v29, %v12276_v46  ;;  %v5914_v31 = vpop.f32.mrb[63].mxu0  ;;  %v6060_v0 = vpop.f32.mrb[79].mxu1  ;;  %6549 = vmatmul.mubr.bf16.vlgmr.msra.gmra.mrb[72].mxu0 %v6115_v63  ;;  %v6091_v56 = vmax.f32 %v8196_v39, 0.0  ;;  %v6093_v52 = vmax.f32 %v8212_v9, 0.0  ;;  %v9014_v39 = vld [vmem:[%s12885_s8 + $0x320] ss:$8 sps:$4 sm:$0xff]  }
 0x9c0   : > { %v8199_v55 = vadd.f32 %v5914_v31, %v12279_v58  ;;  %v8215_v49 = vadd.f32 %v6060_v0, %v12282_v8  ;;  %6590 = vmatpush1.bf16.msra.mxu0 %v9008_v28  ;;  %v6092_v35 = vmax.f32 %v8197_v45, 0.0  ;;  %v6094_v24 = vmax.f32 %v8213_v61, 0.0  ;;  %v9019_v45 = vld [vmem:[%s12885_s8 + $0x334] ss:$8 sps:$4 sm:$0xff]  }
 0x9c1   : > { %v6095_v23 = vmax.f32 %v8198_v53, 0.0  ;;  %v6097_v43 = vmax.f32 %v8214_v41, 0.0  ;;  %6591 = vmatprep.subr.bf16.mxu0 %v9013_v54 }
 0x9c2   : > { %v6096_v6 = vmax.f32 %v8199_v55, 0.0  ;;  %v6098_v1 = vmax.f32 %v8215_v49, 0.0 }
 0x9c3   : > { %v6119_v17 = vpack.c.bf16 %v6095_v23, %v6091_v56  ;;  %v12316_v63 = vpack.c.bf16 %v6097_v43, %v6093_v52  ;;  %v9017_v56 = vld [vmem:[%s12885_s8 + $0x330] ss:$8 sps:$4 sm:$0xff]  }
 0x9c4   : > { %v6120_v12 = vpack.c.bf16 %v6096_v6, %v6092_v35  ;;  %v12318_v62 = vpack.c.bf16 %v6098_v1, %v6094_v24  ;;  %6592 = vmatpush1.bf16.msra.mxu0 %v9011_v4  ;;  %v5918_v40 = vpop.f32.mrb[64].mxu0  ;;  %v6064_v28 = vpop.f32.mrb[80].mxu1  ;;  %v9022_v35 = vld [vmem:[%s12885_s8 + $0x344] ss:$8 sps:$4 sm:$0xff]  }
 0x9c5   : > { %v8200_v9 = vadd.f32 %v5918_v40, %v12273_v21  ;;  %v8216_v51 = vadd.f32 %v6064_v28, %v12276_v46  ;;  %v5920_v47 = vpop.f32.mrb[65].mxu0  ;;  %v6066_v54 = vpop.f32.mrb[81].mxu1  ;;  %6593 = vmatprep.subr.bf16.mxu0 %v9016_v25 }
 0x9c6   : > { %v8201_v61 = vadd.f32 %v5920_v47, %v12279_v58  ;;  %v8217_v50 = vadd.f32 %v6066_v54, %v12282_v8  ;;  %v5922_v29 = vpop.f32.mrb[66].mxu0  ;;  %v6068_v53 = vpop.f32.mrb[82].mxu1  ;;  %6558 = vmatprep.mubr.bf16.mxu0 %v6120_v12  ;;  %v9020_v47 = vld [vmem:[%s12885_s8 + $0x340] ss:$8 sps:$4 sm:$0xff]  }
 0x9c7   : > { %v8202_v41 = vadd.f32 %v5922_v29, %v12273_v21  ;;  %v8218_v31 = vadd.f32 %v6068_v53, %v12276_v46  ;;  %v5924_v0 = vpop.f32.mrb[67].mxu0  ;;  %v6070_v55 = vpop.f32.mrb[83].mxu1  ;;  %6559 = vmatmul.mubr.bf16.gmra.mrb[76].mxu0 %v6119_v17  ;;  %v6099_v52 = vmax.f32 %v8200_v9, 0.0  ;;  %v6101_v23 = vmax.f32 %v8216_v51, 0.0  ;;  %v9025_v29 = vld [vmem:[%s12885_s8 + $0x354] ss:$8 sps:$4 sm:$0xff]  }
 0x9c8   : > { %v8203_v49 = vadd.f32 %v5924_v0, %v12279_v58  ;;  %v8219_v4 = vadd.f32 %v6070_v55, %v12282_v8  ;;  %6594 = vmatpush1.bf16.msra.mxu0 %v9014_v39  ;;  %v6100_v24 = vmax.f32 %v8201_v61, 0.0  ;;  %v6102_v6 = vmax.f32 %v8217_v50, 0.0 }
 0x9c9   : > { %v6103_v43 = vmax.f32 %v8202_v41, 0.0  ;;  %v6105_v25 = vmax.f32 %v8218_v31, 0.0  ;;  %6595 = vmatprep.subr.bf16.mxu0 %v9019_v45 }
 0x9ca   : > { %v6104_v1 = vmax.f32 %v8203_v49, 0.0  ;;  %v6106_v17 = vmax.f32 %v8219_v4, 0.0 }
 0x9cb   : > { %v6123_v12 = vpack.c.bf16 %v6103_v43, %v6099_v52  ;;  %v12340_v40 = vpack.c.bf16 %v6105_v25, %v6101_v23  ;;  %v9023_v43 = vld [vmem:[%s12885_s8 + $0x350] ss:$8 sps:$4 sm:$0xff]  }
 0x9cc   : > { %v6124_v28 = vpack.c.bf16 %v6104_v1, %v6100_v24  ;;  %v12342_v39 = vpack.c.bf16 %v6106_v17, %v6102_v6  ;;  %6596 = vmatpush1.bf16.msra.mxu0 %v9017_v56  ;;  %v5928_v9 = vpop.f32.mrb[68].mxu0  ;;  %v6074_v51 = vpop.f32.mrb[84].mxu1 }
 0x9cd   : > { %v8204_v54 = vadd.f32 %v5928_v9, %v12273_v21  ;;  %v8220_v45 = vadd.f32 %v6074_v51, %v12276_v46  ;;  %v5930_v61 = vpop.f32.mrb[69].mxu0  ;;  %v6076_v50 = vpop.f32.mrb[85].mxu1  ;;  %6597 = vmatprep.subr.bf16.mxu0 %v9022_v35  ;;  %v9026_v51 = vld [vmem:[%s12885_s8 + $0x360] ss:$8 sps:$4 sm:$0xff]  }
 0x9ce   : > { %v8205_v53 = vadd.f32 %v5930_v61, %v12279_v58  ;;  %v8221_v41 = vadd.f32 %v6076_v50, %v12282_v8  ;;  %v5932_v31 = vpop.f32.mrb[70].mxu0  ;;  %v6078_v0 = vpop.f32.mrb[86].mxu1  ;;  %6568 = vmatprep.mubr.bf16.mxu0 %v6124_v28  ;;  %v9032_v61 = vld [vmem:[%s12885_s8 + $0x380] ss:$8 sps:$4 sm:$0xff]   ;;  %v9037_v50 = vld [vmem:[%s12885_s8 + $0x394] ss:$8 sps:$4 sm:$0xff]  }
 0x9cf   : > { %v8206_v55 = vadd.f32 %v5932_v31, %v12273_v21  ;;  %v8222_v49 = vadd.f32 %v6078_v0, %v12276_v46  ;;  %v5934_v4 = vpop.f32.mrb[71].mxu0  ;;  %v6080_v56 = vpop.f32.mrb[87].mxu1  ;;  %6569 = vmatmul.mubr.bf16.gmra.mrb[80].mxu0 %v6123_v12  ;;  %v6107_v25 = vmax.f32 %v8204_v54, 0.0  ;;  %v6109_v35 = vmax.f32 %v8220_v45, 0.0  ;;  %v9028_v21 = vld [vmem:[%s12885_s8 + $0x364] ss:$8 sps:$4 sm:$0xff]  }
 0x9d0   : > { %v8207_v52 = vadd.f32 %v5934_v4, %v12279_v58  ;;  %v8223_v23 = vadd.f32 %v6080_v56, %v12282_v8  ;;  %6598 = vmatpush1.bf16.msra.mxu0 %v9020_v47  ;;  %v6108_v46 = vmax.f32 %v8205_v53, 0.0  ;;  %v6110_v1 = vmax.f32 %v8221_v41, 0.0  ;;  %v9031_v47 = vld [vmem:[%s12885_s8 + $0x374] ss:$8 sps:$4 sm:$0xff]   ;;  %v9029_v54 = vld [vmem:[%s12885_s8 + $0x370] ss:$8 sps:$4 sm:$0xff]  }
 0x9d1   : > { %v6111_v24 = vmax.f32 %v8206_v55, 0.0  ;;  %v6113_v6 = vmax.f32 %v8222_v49, 0.0  ;;  %6599 = vmatprep.subr.bf16.mxu0 %v9025_v29  ;;  %v9034_v45 = vld [vmem:[%s12885_s8 + $0x384] ss:$8 sps:$4 sm:$0xff]   ;;  %v9038_v53 = vld [vmem:[%s12885_s8 + $0x3a0] ss:$8 sps:$4 sm:$0xff]  }
 0x9d2   : > { %v6112_v17 = vmax.f32 %v8207_v52, 0.0  ;;  %v6114_v58 = vmax.f32 %v8223_v23, 0.0  ;;  %v9040_v29 = vld [vmem:[%s12885_s8 + $0x3a4] ss:$8 sps:$4 sm:$0xff]   ;;  %v9043_v41 = vld [vmem:[%s12885_s8 + $0x3b4] ss:$8 sps:$4 sm:$0xff]  }
 0x9d3   : > { %v6127_v12 = vpack.c.bf16 %v6111_v24, %v6107_v25  ;;  %v6129_v8 = vpack.c.bf16 %v6113_v6, %v6109_v35  ;;  %v9041_v31 = vld [vmem:[%s12885_s8 + $0x3b0] ss:$8 sps:$4 sm:$0xff]   ;;  %v9046_v0 = vld [vmem:[%s12885_s8 + $0x3c4] ss:$8 sps:$4 sm:$0xff]   ;;  %v9044_v55 = vld [vmem:[%s12885_s8 + $0x3c0] ss:$8 sps:$4 sm:$0xff]  }
 0x9d4   : > { %v6128_v28 = vpack.c.bf16 %v6112_v17, %v6108_v46  ;;  %v6130_v9 = vpack.c.bf16 %v6114_v58, %v6110_v1  ;;  %6600 = vmatpush1.bf16.msra.mxu0 %v9023_v43  ;;  %v9049_v49 = vld [vmem:[%s12885_s8 + $0x3d4] ss:$8 sps:$4 sm:$0xff]   ;;  %v9047_v4 = vld [vmem:[%s12885_s8 + $0x3d0] ss:$8 sps:$4 sm:$0xff]   ;;  %v9052_v56 = vld [vmem:[%s12885_s8 + $0x3e4] ss:$8 sps:$4 sm:$0xff]  }
 0x9d5   : > { %6601 = vmatprep.subr.bf16.mxu0 %v9028_v21  ;;  %v9050_v52 = vld [vmem:[%s12885_s8 + $0x3e0] ss:$8 sps:$4 sm:$0xff]   ;;  %v9055_v23 = vld [vmem:[%s12885_s8 + $0x3f4] ss:$8 sps:$4 sm:$0xff]   ;;  %v9053_v43 = vld [vmem:[%s12885_s8 + $0x3f0] ss:$8 sps:$4 sm:$0xff]  }
 0x9d6   : > { %6578 = vmatprep.mubr.bf16.mxu0 %v6128_v28  ;;  %v6819_v25 = vld [vmem:[#allocation5 + $0x10] sm:$0xfe] }
 0x9d7   : > { %6579 = vmatmul.mubr.bf16.gmra.mrb[84].mxu0 %v6127_v12 }
 0x9d8   : > { %6602 = vmatpush1.bf16.msra.mxu0 %v9026_v51  ;;  %6621 = vmatprep.mubr.bf16.mxu0 %v12294_v11  ;;  %v9035_v11 = vld [vmem:[%s12885_s8 + $0x390] ss:$8 sps:$4 sm:$0xff]  }
 0x9d9   : > { %6603 = vmatprep.subr.bf16.mxu0 %v9031_v47 }
 0x9dc   : > { %6604 = vmatpush1.bf16.msra.mxu0 %v9029_v54 }
 0x9dd   : > { %6605 = vmatprep.subr.bf16.mxu0 %v9034_v45 }
 0x9e0   : > { %6606 = vmatpush1.bf16.msra.mxu0 %v9032_v61 }
 0x9e1   : > { %6607 = vmatprep.subr.bf16.mxu0 %v9037_v50 }
 0x9e4   : > { %6608 = vmatpush1.bf16.msra.mxu0 %v9035_v11 }
 0x9e5   : > { %6609 = vmatprep.subr.bf16.mxu0 %v9040_v29 }
 0x9e8   : > { %6610 = vmatpush1.bf16.msra.mxu0 %v9038_v53 }
 0x9e9   : > { %6611 = vmatprep.subr.bf16.mxu0 %v9043_v41 }
 0x9ec   : > { %6612 = vmatpush1.bf16.msra.mxu0 %v9041_v31 }
 0x9ed   : > { %6613 = vmatprep.subr.bf16.mxu0 %v9046_v0 }
 0x9f0   : > { %6614 = vmatpush1.bf16.msra.mxu0 %v9044_v55 }
 0x9f1   : > { %6615 = vmatprep.subr.bf16.mxu0 %v9049_v49 }
 0x9f4   : > { %6616 = vmatpush1.bf16.msra.mxu0 %v9047_v4 }
 0x9f5   : > { %6617 = vmatprep.subr.bf16.mxu0 %v9052_v56 }
 0x9f8   : > { %6618 = vmatpush1.bf16.msra.mxu0 %v9050_v52 }
 0x9f9   : > { %6619 = vmatprep.subr.bf16.mxu0 %v9055_v23 }
 0x9fc   : > { %6620 = vmatpush1.bf16.msra.mxu0 %v9053_v43 }
 0x9ff   : > { %6622 = vmatmul.mubr.bf16.vlgmr.msra.gmra.mrb[72].mxu0 %v12292_v16  ;;  %v6824_v16 = vrot.slane %v6819_v25, 1 }
 0xa00   : > { %6631 = vmatprep.mubr.bf16.mxu0 %v12318_v62 }
 0xa07   : > { %6632 = vmatmul.mubr.bf16.gmra.mrb[76].mxu0 %v12316_v63  ;;  %v6881_v63 = vld [vmem:[#allocation5 + $0x10] sm:$0x80] }
 0xa08   : > { %6641 = vmatprep.mubr.bf16.mxu0 %v12342_v39  ;;  %v6885_v12 = vrot.slane %v6881_v63, 7 }
 0xa0f   : > { %6642 = vmatmul.mubr.bf16.gmra.mrb[80].mxu0 %v12340_v40 }
 0xa10   : > { %6651 = vmatprep.mubr.bf16.mxu0 %v6130_v9 }
 0xa17   : > { %6652 = vmatmul.mubr.bf16.gmra.mrb[84].mxu0 %v6129_v8 }
 0xad2   : > { %v6623_v35 = vpop.f32.mrb[72].mxu0 }
 0xad3   : > { %6686 = vst [vmem:[#allocation5 + $0x20] sm:$0xff] %v6623_v35  ;;  %v6625_v24 = vpop.f32.mrb[73].mxu0  ;;  %v6932_v6 = vmul.f32 %v6623_v35, %v13284_v2  ;;  %v6772_v21 = vmul.f32 %v6623_v35, %v13281_v19  ;;  %v6825_v1 = vrot.slane %v6623_v35, 1  ;;  %v12432_v39 = vrot.slane %v6623_v35, 7 }
 0xad4   : > { %v6627_v46 = vpop.f32.mrb[74].mxu0 }
 0xad5   : > { %v6629_v62 = vpop.f32.mrb[75].mxu0  ;;  %6948 = vrot.lane.b32.xlu0 %v6932_v6, %s13216_s0  ;;  %6789 = vrot.lane.b32.xlu1 %v6772_v21, %s13217_s3  ;;  %v6827_v40 = vrot.slane %v6627_v46, 1  ;;  %v6734_v17 = vrot.slane %v6627_v46, 7  ;;  %v6933_v58 = vmul.f32 %v6627_v46, %v13220_v34  ;;  %v6826_v19 = vsel %vm3511_vm2, %v6824_v16, %v6825_v1 }
 0xad6   : > { %6689 = vst.msk [vmem:[#allocation5 + $0x38] sm:$0xff] %vm375_vm0, %v6629_v62  ;;  %v6886_v34 = vsel %vm3415_vm13, %v6885_v12, %v12432_v39  ;;  %v6773_v53 = vmul.f32 %v6627_v46, %v13280_v18  ;;  %v7082_v4 = vmul.f32 %v6627_v46, %v13218_v3 }
 0xad7   : > { %v6828_v2 = vsel %vm3511_vm2, %v6825_v1, %v6827_v40  ;;  %v12439_v8 = vsel %vm3415_vm13, %v12432_v39, %v6734_v17 }
 0xad9   : > { %6841 = vrot.lane.b32.xlu0 %v6826_v19, %s13325_s2  ;;  %6950 = vrot.lane.b32.xlu1 %v6933_v58, %s13216_s0 }
 0xada   : > { %v12443_v28 = vpop.f32.mrb[76].mxu0  ;;  %v6980_v0 = vld [vmem:[#allocation5 + $0x20] sm:$0xfe] }
 0xadb   : > { %v6635_v9 = vpop.f32.mrb[77].mxu0  ;;  %v6829_v47 = vrot.slane %v12443_v28, 1  ;;  %v6736_v54 = vrot.slane %v12443_v28, 7  ;;  %v6774_v18 = vmul.f32 %v12443_v28, %v13286_v59  ;;  %v6985_v23 = vrot.slane %v6980_v0, 1  ;;  %v7031_v35 = vld [vmem:[#allocation5 + $0x20] sm:$0x80] }
 0xadc   : > { %6691 = vst.msk [vmem:[#allocation5 + $0x48] sm:$0xff] %vm375_vm0, %v6635_v9  ;;  %v12446_v51 = vpop.f32.mrb[78].mxu0  ;;  %v7083_v21 = vmul.f32 %v12443_v28, %v13285_v14  ;;  %v7035_v1 = vrot.slane %v7031_v35, 7 }
 0xadd   : > { %v6639_v45 = vpop.f32.mrb[79].mxu0  ;;  %6891 = vrot.lane.b32.xlu0 %v6886_v34, %s13326_s12  ;;  %6843 = vrot.lane.b32.xlu1 %v6828_v2, %s13325_s2  ;;  %v6831_v61 = vrot.slane %v12446_v51, 1  ;;  %v6830_v50 = vsel %vm3511_vm2, %v6827_v40, %v6829_v47  ;;  %v12458_v11 = vsel %vm3415_vm13, %v6734_v17, %v6736_v54  ;;  %v6738_v29 = vrot.slane %v12446_v51, 7 }
 0xade   : > { %6693 = vst.msk [vmem:[#allocation5 + $0x58] sm:$0xff] %vm375_vm0, %v6639_v45  ;;  %v6986_v16 = vsel %vm3511_vm2, %v6985_v23, %v6827_v40  ;;  %v7036_v40 = vsel %vm3415_vm13, %v7035_v1, %v6734_v17 }
 0xadf   : > { %v12463_v41 = vsel %vm3511_vm2, %v6829_v47, %v6831_v61  ;;  %v12466_v31 = vsel %vm3415_vm13, %v6736_v54, %v6738_v29  ;;  %v6934_v54 = vmul.f32 %v12443_v28, %v13290_v57  ;;  %v6775_v57 = vmul.f32 %v12446_v51, %v9665_v30 }
 0xae1   : > { %6791 = vrot.lane.b32.xlu0 %v6773_v53, %s13217_s3  ;;  %6893 = vrot.lane.b32.xlu1 %v12439_v8, %s13326_s12 }
 0xae2   : > { %v12471_v55 = vpop.f32.mrb[80].mxu0 }
 0xae3   : > { %v6645_v49 = vpop.f32.mrb[81].mxu0  ;;  %v6833_v56 = vrot.slane %v12471_v55, 1  ;;  %v6740_v43 = vrot.slane %v12471_v55, 7  ;;  %v6776_v28 = vmul.f32 %v12471_v55, %v13307_v37 }
 0xae4   : > { %6695 = vst.msk [vmem:[#allocation5 + $0x68] sm:$0xff] %vm375_vm0, %v6645_v49  ;;  %v12478_v52 = vpop.f32.mrb[82].mxu0 }
 0xae5   : > { %v6649_v25 = vpop.f32.mrb[83].mxu0  ;;  %7098 = vrot.lane.b32.xlu0 %v7082_v4, %s13180_s20  ;;  %6793 = vrot.lane.b32.xlu1 %v6774_v18, %s13217_s3  ;;  %v6834_v3 = vsel %vm3511_vm2, %v6831_v61, %v6833_v56  ;;  %v6835_v24 = vrot.slane %v12478_v52, 1  ;;  %v12487_v59 = vsel %vm3415_vm13, %v6738_v29, %v6740_v43  ;;  %v12490_v6 = vrot.slane %v12478_v52, 7 }
 0xae6   : > { %6697 = vst.msk [vmem:[#allocation5 + $0x78] sm:$0xff] %vm375_vm0, %v6649_v25  ;;  %v6935_v29 = vmul.f32 %v12446_v51, %v9608_v5  ;;  %v7084_v5 = vmul.f32 %v12446_v51, %v9536_v44  ;;  %v6936_v44 = vmul.f32 %v12471_v55, %v13308_v10  ;;  %v6937_v30 = vmul.f32 %v12478_v52, %v13294_v20  ;;  %v6711_v25 = vld [vmem:[#allocation5] sm:$0x80] }
 0xae7   : > { %v6836_v46 = vsel %vm3511_vm2, %v6833_v56, %v6835_v24  ;;  %v12498_v62 = vsel %vm3415_vm13, %v6740_v43, %v12490_v6  ;;  %v6777_v37 = vmul.f32 %v12478_v52, %v13300_v60  ;;  %v7086_v20 = vmul.f32 %v12478_v52, %v13295_v36  ;;  %v9127_v52 = vld [vmem:[#allocation5 + $0xb0] sm:$0xff]  ;;  %v6788_v43 = vpop.permute.xlu0 %6787 }
 0xae8   : > { %v7089_v23 = vmul.f32 %v9127_v52, %v13320_v13  ;;  %v8085_v13 = vld [vmem:[%s12886_s9 + $0x40] sm:$0xff] }
 0xae9   : > { %6991 = vrot.lane.b32.xlu0 %v6986_v16, %s13221_s15  ;;  %7100 = vrot.lane.b32.xlu1 %v7083_v21, %s13180_s20  ;;  %v6729_v21 = vrot.slane %v6711_v25, 7 }
 0xaea   : > { %v6653_v63 = vpop.f32.mrb[84].mxu0 }
 0xaeb   : > { %6698 = vst [vmem:[#allocation5 + $0x80] sm:$0xff] %v6653_v63  ;;  %v6655_v58 = vpop.f32.mrb[85].mxu0  ;;  %v12502_v2 = vrot.slane %v6653_v63, 1  ;;  %v12508_v19 = vrot.slane %v6653_v63, 7  ;;  %v7087_v10 = vmul.f32 %v6653_v63, %v13316_v48  ;;  %v6938_v60 = vmul.f32 %v6653_v63, %v13317_v7  ;;  %v6981_v7 = vld [vmem:[#allocation5 + $0xa0] sm:$0x1] }
 0xaec   : > { %6699 = vst.msk [vmem:[#allocation5 + $0x88] sm:$0xff] %vm375_vm0, %v6655_v58  ;;  %v12505_v14 = vpop.f32.mrb[86].mxu0  ;;  %v13327_v58 = vld [vmem:[#allocation55_spill] sm:$0xff] }
 0xaed   : > { %6700 = vst [vmem:[#allocation5 + $0x90] sm:$0xff] %v12505_v14  ;;  %v6659_v12 = vpop.f32.mrb[87].mxu0  ;;  %7041 = vrot.lane.b32.xlu0 %v7036_v40, %s13222_s22  ;;  %6993 = vrot.lane.b32.xlu1 %v6830_v50, %s13221_s15  ;;  %v6838_v9 = vsel %vm3511_vm2, %v6835_v24, %v12502_v2  ;;  %v6987_v34 = vrot.slane %v12505_v14, 1  ;;  %v7037_v47 = vrot.slane %v12505_v14, 7  ;;  %v6888_v17 = vsel %vm3415_vm13, %v12490_v6, %v12508_v19 }
 0xaee   : > { %6701 = vst.msk [vmem:[#allocation5 + $0x98] sm:$0xff] %vm375_vm0, %v6659_v12  ;;  %v6939_v36 = vmul.f32 %v12505_v14, %v13312_v15  ;;  %v7032_v15 = vld [vmem:[#allocation5 + $0xa0] sm:$0x7f]  ;;  %v7088_v18 = vmul.f32 %v12505_v14, %v13313_v22  ;;  %v6730_v24 = vrot.slane %v9127_v52, 7 }
 0xaef   : > { %v6988_v45 = vsel %vm3511_vm2, %v12502_v2, %v6987_v34  ;;  %v7038_v61 = vsel %vm3415_vm13, %v12508_v19, %v7037_v47  ;;  %v7039_v4 = vrot.slane %v7032_v15, 7 }
 0xaf0   : > { %v6731_v16 = vsel %vm3415_vm13, %v6729_v21, %v6730_v24  ;;  %v6733_v14 = vsel %vm3415_vm13, %v6730_v24, %v12432_v39 }
 0xaf1   : > { %6952 = vrot.lane.b32.xlu0 %v6934_v54, %s13216_s0  ;;  %7043 = vrot.lane.b32.xlu1 %v12458_v11, %s13222_s22  ;;  %v7040_v56 = vsel %vm3415_vm13, %v7037_v47, %v7039_v4  ;;  %v8086_v47 = vld [vmem:[%s12886_s9 + $0x48] sm:$0xff] }
 0xaf4   : > { %v6882_v51 = vld [vmem:[#allocation5 + $0x90] sm:$0x7f] }
 0xaf5   : > { %6845 = vrot.lane.b32.xlu0 %v6830_v50, %s13325_s2  ;;  %6954 = vrot.lane.b32.xlu1 %v6935_v29, %s13216_s0  ;;  %v7085_v50 = vmul.f32 %v12471_v55, %v13303_v32  ;;  %v6778_v32 = vmul.f32 %v6653_v63, %v13318_v42  ;;  %v6820_v42 = vld [vmem:[#allocation5 + $0x90] sm:$0x1]  ;;  %v6989_v55 = vrot.slane %v6981_v7, 1 }
 0xaf6   : > { %v6839_v48 = vrot.slane %v6820_v42, 1 }
 0xaf7   : > { %v6990_v49 = vsel %vm3511_vm2, %v6987_v34, %v6989_v55 }
 0xaf8   : > { %v6840_v53 = vsel %vm3511_vm2, %v12502_v2, %v6839_v48  ;;  %v6754_v2 = vmul.f32 %v6731_v16, %v13327_v58 }
 0xaf9   : > { %6895 = vrot.lane.b32.xlu0 %v12458_v11, %s13326_s12  ;;  %6847 = vrot.lane.b32.xlu1 %v12463_v41, %s13325_s2 }
 0xafa   : > { %v6762_v12 = vadd.f32 %v8085_v13, %v6754_v2  ;;  %v13334_v2 = vld [vmem:[#allocation29_spill] sm:$0xff] }
 0xafd   : > { %6795 = vrot.lane.b32.xlu0 %v6775_v57, %s13217_s3  ;;  %6897 = vrot.lane.b32.xlu1 %v12466_v31, %s13326_s12 }
 0xb01   : > { %7102 = vrot.lane.b32.xlu0 %v7084_v5, %s13180_s20  ;;  %6797 = vrot.lane.b32.xlu1 %v6776_v28, %s13217_s3 }
 0xb05   : > { %6995 = vrot.lane.b32.xlu0 %v12463_v41, %s13221_s15  ;;  %7104 = vrot.lane.b32.xlu1 %v7085_v50, %s13180_s20  ;;  %v6889_v41 = vrot.slane %v6882_v51, 7  ;;  %v13328_v50 = vld [vmem:[#allocation15_spill] sm:$0xff] }
 0xb07   : > { %v6890_v0 = vsel %vm3415_vm13, %v12508_v19, %v6889_v41  ;;  %v13330_v41 = vld [vmem:[#allocation43_spill] sm:$0xff] }
 0xb09   : > { %7045 = vrot.lane.b32.xlu0 %v12466_v31, %s13222_s22  ;;  %6997 = vrot.lane.b32.xlu1 %v6834_v3, %s13221_s15 }
 0xb0d   : > { %6956 = vrot.lane.b32.xlu0 %v6936_v44, %s13216_s0  ;;  %7047 = vrot.lane.b32.xlu1 %v12487_v59, %s13222_s22  ;;  %v7131_v44 = vld [vmem:[#allocation5 + $0x48] sm:$0xff] }
 0xb11   : > { %6849 = vrot.lane.b32.xlu0 %v6834_v3, %s13325_s2  ;;  %6958 = vrot.lane.b32.xlu1 %v6937_v30, %s13216_s0 }
 0xb15   : > { %6899 = vrot.lane.b32.xlu0 %v12487_v59, %s13326_s12  ;;  %6851 = vrot.lane.b32.xlu1 %v6836_v46, %s13325_s2 }
 0xb19   : > { %6799 = vrot.lane.b32.xlu0 %v6777_v37, %s13217_s3  ;;  %6901 = vrot.lane.b32.xlu1 %v12498_v62, %s13326_s12 }
 0xb1d   : > { %7106 = vrot.lane.b32.xlu0 %v7086_v20, %s13180_s20  ;;  %6801 = vrot.lane.b32.xlu1 %v6778_v32, %s13217_s3  ;;  %v13329_v20 = vld [vmem:[#allocation19_spill] sm:$0xff] }
 0xb21   : > { %6999 = vrot.lane.b32.xlu0 %v6836_v46, %s13221_s15  ;;  %7108 = vrot.lane.b32.xlu1 %v7087_v10, %s13180_s20  ;;  %v7130_v10 = vld [vmem:[#allocation5 + $0x38] sm:$0xfe] }
 0xb22   : > { %v7148_v51 = vrot.slane %v7130_v10, 1 }
 0xb25   : > { %7049 = vrot.lane.b32.xlu0 %v12498_v62, %s13222_s22  ;;  %7001 = vrot.lane.b32.xlu1 %v6838_v9, %s13221_s15 }
 0xb29   : > { %6960 = vrot.lane.b32.xlu0 %v6938_v60, %s13216_s0  ;;  %7051 = vrot.lane.b32.xlu1 %v6888_v17, %s13222_s22  ;;  %v7149_v60 = vrot.slane %v7131_v44, 1  ;;  %v13337_v44 = vld [vmem:[#allocation33_spill] sm:$0xff] }
 0xb2b   : > { %v7150_v15 = vsel %vm3511_vm2, %v7148_v51, %v7149_v60 }
 0xb2d   : > { %6853 = vrot.lane.b32.xlu0 %v6838_v9, %s13325_s2  ;;  %6962 = vrot.lane.b32.xlu1 %v6939_v36, %s13216_s0  ;;  %v6755_v9 = vmul.f32 %v6733_v14, %v9957_v26  ;;  %v12638_v36 = vld [vmem:[#allocation5 + $0x58] sm:$0xff]  ;;  %s350_s0 = sand.u32 1, %s9182_s14  }
 0xb2e   : > { %s7405_s3 = sshll.u32 %s350_s0, 6  ;;  %s12835_s25 = scalar_lea.sflag [#allocation7], %s350_s0 }
 0xb2f   : > { %v6763_v29 = vadd.f32 %v8086_v47, %v6755_v9 }
 0xb31   : > { %6903 = vrot.lane.b32.xlu0 %v6888_v17, %s13326_s12  ;;  %6855 = vrot.lane.b32.xlu1 %v6840_v53, %s13325_s2  ;;  %v6811_v17 = vadd.f32 %v6788_v43, %v6762_v12  ;;  %v13332_v43 = vld [vmem:[#allocation27_spill] sm:$0xff] }
 0xb32   : > { %v7173_v25 = vmul.f32 %v7150_v15, %v13332_v43  ;;  %v13341_v15 = vld [vmem:[#allocation42_spill] sm:$0xff] }
 0xb35   : > { %7003 = vrot.lane.b32.xlu0 %v6988_v45, %s13221_s15  ;;  %6905 = vrot.lane.b32.xlu1 %v6890_v0, %s13326_s12  ;;  %v13331_v0 = vld [vmem:[#allocation21_spill] sm:$0xff] }
 0xb39   : > { %7053 = vrot.lane.b32.xlu0 %v7038_v61, %s13222_s22  ;;  %7005 = vrot.lane.b32.xlu1 %v6990_v49, %s13221_s15  ;;  %v7151_v49 = vrot.slane %v12638_v36, 1  ;;  %s8099_s15 = sshll.u32 %s9291_s17, 10 }
 0xb3a   : > { %s12827_s21 = scalar_lea.hbm %s12887_s10, %s8099_s15 }
 0xb3b   : > { %v7152_v21 = vsel %vm3511_vm2, %v7149_v60, %v7151_v49 }
 0xb3c   : > { %v7174_v13 = vmul.f32 %v7152_v21, %v13334_v2  ;;  %v13342_v21 = vld [vmem:[#allocation45_spill] sm:$0xff] }
 0xb3d   : > { %7110 = vrot.lane.b32.xlu0 %v7088_v18, %s13180_s20  ;;  %7055 = vrot.lane.b32.xlu1 %v7040_v56, %s13222_s22 }
 0xb41   : > { %7112 = vrot.lane.b32.xlu1 %v7089_v23, %s13180_s20  ;;  %s12788_s20 = scalar_lea.vmem [#allocation6], %s7405_s3 }
 0xb42   : > { %s7339_s22 = sshll.u32 %s12788_s20, 4  ;;  %s12829_s22 = int_to_ptr.vmem [resolvable:$true] %s7339_s22 }
 0xb43   : > { %s9128_s17 = scalar_lea.vmem %s12829_s22, 1024  ;;  %p9135_p0 = scmp.lt.s32.totalorder %s12829_s22, %s9133_s18 }
 0xb44   : > { %p9129_p11 = scmp.ne.s32.totalorder %s12829_s22, %s9128_s17  ;;  %p9136_p1 = scmp.lt.s32.totalorder %s9134_s30, %s9128_s17 }
 0xb46   : > { %p9130_p12 = pnand %p9129_p11, %p9308_p5  ;;  %p9137_p2 = por %p9136_p1, %p9135_p0 }
 0xb47   : > { %v6949_v35 = vpop.permute.xlu0 %6948  ;;  %v6790_v3 = vpop.permute.xlu1 %6789 }
 0xb48   : > { %v6812_v5 = vadd.f32 %v6790_v3, %v6763_v29  ;;  %v13333_v3 = vld [vmem:[#allocation22_spill] sm:$0xff]  ;;  %p9131_p13 = pneg %p9130_p12 }
 0xb4a   : > { %p9138_p3 = pnand %p9137_p2, %p9131_p13 }
 0xb4b   : > { %v6842_v22 = vpop.permute.xlu0 %6841  ;;  %v6951_v46 = vpop.permute.xlu1 %6950 }
 0xb4c   : > { %v6865_v34 = vmul.f32 %v6842_v22, %v13226_v38 }
 0xb4e   : > { %v6873_v39 = vadd.f32 %v6865_v34, %v6811_v17  ;;  %v13335_v34 = vld [vmem:[#allocation92_spill] sm:$0xff] }
 0xb4f   : > { %v6892_v1 = vpop.permute.xlu0 %6891  ;;  %v6844_v63 = vpop.permute.xlu1 %6843  ;;  %v6756_v47 = vmul.f32 %v12439_v8, %v13335_v34  ;;  %v8088_v8 = vld [vmem:[%s12886_s9 + $0x58] sm:$0xff] }
 0xb50   : > { %v6915_v54 = vmul.f32 %v6892_v1, %v13227_v27  ;;  %v6866_v57 = vmul.f32 %v6844_v63, %v13228_v33 }
 0xb52   : > { %v6923_v28 = vadd.f32 %v6915_v54, %v6873_v39  ;;  %v6874_v37 = vadd.f32 %v6866_v57, %v6812_v5 }
 0xb53   : > { %v12625_v40 = vpop.permute.xlu0 %6791  ;;  %v6894_v19 = vpop.permute.xlu1 %6893 }
 0xb54   : > { %v6916_v26 = vmul.f32 %v6894_v19, %v13328_v50  ;;  %v6972_v42 = vadd.f32 %v6949_v35, %v6923_v28  ;;  %v13336_v28 = vld [vmem:[#allocation68_spill] sm:$0xff] }
 0xb55   : > { %v6757_v50 = vmul.f32 %v12458_v11, %v13336_v28 }
 0xb56   : > { %v6924_v27 = vadd.f32 %v6916_v26, %v6874_v37  ;;  %v13338_v37 = vld [vmem:[#allocation35_spill] sm:$0xff] }
 0xb57   : > { %v7099_v45 = vpop.permute.xlu0 %7098  ;;  %v12633_v61 = vpop.permute.xlu1 %6793  ;;  %v6765_v60 = vadd.f32 %v8088_v8, %v6757_v50 }
 0xb58   : > { %v6973_v18 = vadd.f32 %v6951_v46, %v6924_v27 }
 0xb59   : > { %v6814_v11 = vadd.f32 %v12633_v61, %v6765_v60 }
 0xb5b   : > { %v6992_v38 = vpop.permute.xlu0 %6991  ;;  %v7101_v30 = vpop.permute.xlu1 %7100 }
 0xb5c   : > { %v7015_v32 = vmul.f32 %v6992_v38, %v13329_v20 }
 0xb5e   : > { %v7023_v33 = vadd.f32 %v7015_v32, %v6972_v42  ;;  %v13339_v42 = vld [vmem:[#allocation18_spill] sm:$0xff] }
 0xb5f   : > { %v7042_v48 = vpop.permute.xlu0 %7041  ;;  %v6994_v53 = vpop.permute.xlu1 %6993 }
 0xb60   : > { %v7065_v7 = vmul.f32 %v7042_v48, %v13330_v41  ;;  %v7016_v55 = vmul.f32 %v6994_v53, %v13331_v0  ;;  %v13340_v53 = vld [vmem:[#allocation37_spill] sm:$0xff]  ;;  %v7133_v41 = vld [vmem:[#allocation5 + $0x68] sm:$0xff] }
 0xb62   : > { %v7073_v4 = vadd.f32 %v7065_v7, %v7023_v33  ;;  %v7024_v35 = vadd.f32 %v7016_v55, %v6973_v18 }
 0xb63   : > { %v6953_v56 = vpop.permute.xlu0 %6952  ;;  %v7044_v52 = vpop.permute.xlu1 %7043 }
 0xb64   : > { %v7122_v23 = vadd.f32 %v7099_v45, %v7073_v4  ;;  %v7066_v24 = vmul.f32 %v7044_v52, %v13333_v3  ;;  %v8087_v45 = vld [vmem:[%s12886_s9 + $0x50] sm:$0xff]  ;;  %v7153_v52 = vrot.slane %v7133_v41, 1 }
 0xb65   : > { %v6764_v5 = vadd.f32 %v8087_v45, %v6756_v47  ;;  %v13344_v47 = vld [vmem:[#allocation53_spill] sm:$0xff]  ;;  %v13345_v45 = vld [vmem:[#allocation48_spill] sm:$0xff] }
 0xb66   : > { %v12649_v22 = vadd.f32 %v7173_v25, %v7122_v23  ;;  %v7074_v16 = vadd.f32 %v7066_v24, %v7024_v35  ;;  %v12677_v25 = vld [vmem:[#allocation5 + $0x78] sm:$0xff]  ;;  %v7154_v2 = vsel %vm3511_vm2, %v7151_v49, %v7153_v52 }
 0xb67   : > { %v6846_v1 = vpop.permute.xlu0 %6845  ;;  %v6955_v63 = vpop.permute.xlu1 %6954 }
 0xb68   : > { %v7189_v58 = vadd.f32 2.0, %v12649_v22  ;;  %v7123_v46 = vadd.f32 %v7101_v30, %v7074_v16  ;;  %v6867_v38 = vmul.f32 %v6846_v1, %v13337_v44  ;;  %v6813_v30 = vadd.f32 %v12625_v40, %v6764_v5  ;;  %v13343_v1 = vld [vmem:[#allocation36_spill] sm:$0xff] }
 0xb6a   : > { %v7197_v14 = vsub.f32 0.0, %v7189_v58  ;;  %v12653_v19 = vadd.f32 %v7174_v13, %v7123_v46  ;;  %v6875_v27 = vadd.f32 %v6867_v38, %v6813_v30  ;;  %v7155_v13 = vrot.slane %v12677_v25, 1 }
 0xb6b   : > { %v6896_v12 = vpop.permute.xlu0 %6895  ;;  %v6848_v9 = vpop.permute.xlu1 %6847 }
 0xb6c   : > { %v7205_v17 = vmul.f32 1.442695, %v7197_v14  ;;  %v7190_v54 = vadd.f32 2.0, %v12653_v19  ;;  %v6917_v20 = vmul.f32 %v6896_v12, %v13338_v37  ;;  %v6868_v48 = vmul.f32 %v6848_v9, %v13339_v42 }
 0xb6e   : > { %9088 = vpow2.f32 %v7205_v17  ;;  %v7198_v29 = vsub.f32 0.0, %v7190_v54  ;;  %v6925_v51 = vadd.f32 %v6917_v20, %v6875_v27  ;;  %v6876_v40 = vadd.f32 %v6868_v48, %v6814_v11  ;;  %v8089_v11 = vld [vmem:[%s12886_s9 + $0x60] sm:$0xff] }
 0xb6f   : > { %v12661_v39 = vpop.permute.xlu0 %6795  ;;  %v6898_v57 = vpop.permute.xlu1 %6897  ;;  %v7175_v17 = vmul.f32 %v7154_v2, %v13344_v47 }
 0xb70   : > { %v7207_v26 = vmul.f32 1.442695, %v7198_v29  ;;  %v6918_v33 = vmul.f32 %v6898_v57, %v13340_v53  ;;  %v6974_v43 = vadd.f32 %v6953_v56, %v6925_v51  ;;  %v7156_v57 = vsel %vm3511_vm2, %v7153_v52, %v7155_v13 }
 0xb72   : > { %9090 = vpow2.f32 %v7207_v26  ;;  %v6926_v23 = vadd.f32 %v6918_v33, %v6876_v40  ;;  %v13346_v26 = vld [vmem:[#allocation50_spill] sm:$0xff] }
 0xb73   : > { %v7103_v32 = vpop.permute.xlu0 %7102  ;;  %v12671_v10 = vpop.permute.xlu1 %6797  ;;  %v7176_v44 = vmul.f32 %v7156_v57, %v13346_v26 }
 0xb74   : > { %v6975_v56 = vadd.f32 %v6955_v63, %v6926_v23 }
 0xb77   : > { %v6996_v7 = vpop.permute.xlu0 %6995  ;;  %v7105_v0 = vpop.permute.xlu1 %7104 }
 0xb78   : > { %v9089_v55 = vpop.eup %9088  ;;  %v7017_v4 = vmul.f32 %v6996_v7, %v13341_v15  ;;  %v13348_v7 = vld [vmem:[#allocation71_spill] sm:$0xff]  ;;  %v8090_v15 = vld [vmem:[%s12886_s9 + $0x68] sm:$0xff] }
 0xb79   : > { %v7221_v18 = vadd.f32 1.0, %v9089_v55  ;;  %v13349_v55 = vld [vmem:[#allocation20_spill] sm:$0xff] }
 0xb7a   : > { %v7025_v24 = vadd.f32 %v7017_v4, %v6974_v43 }
 0xb7b   : > { %9092 = vrcp.f32 %v7221_v18  ;;  %v7046_v35 = vpop.permute.xlu0 %7045  ;;  %v6998_v3 = vpop.permute.xlu1 %6997  ;;  %v13350_v18 = vld [vmem:[#allocation64_spill] sm:$0xff] }
 0xb7c   : > { %v9091_v61 = vpop.eup %9090  ;;  %v7067_v16 = vmul.f32 %v7046_v35, %v13342_v21  ;;  %v7018_v58 = vmul.f32 %v6998_v3, %v13343_v1 }
 0xb7d   : > { %v7222_v46 = vadd.f32 1.0, %v9091_v61  ;;  %v13351_v61 = vld [vmem:[#allocation60_spill] sm:$0xff] }
 0xb7e   : > { %v7075_v14 = vadd.f32 %v7067_v16, %v7025_v24  ;;  %v7026_v54 = vadd.f32 %v7018_v58, %v6975_v56  ;;  %v13352_v16 = vld [vmem:[#allocation32_spill] sm:$0xff]  ;;  %v6719_v56 = vld [vmem:[#allocation5 + $0x80] sm:$0x7f] }
 0xb7f   : > { %9094 = vrcp.f32 %v7222_v46  ;;  %v6957_v12 = vpop.permute.xlu0 %6956  ;;  %v7048_v9 = vpop.permute.xlu1 %7047  ;;  %v7135_v58 = vld [vmem:[#allocation5 + $0x88] sm:$0xff]  ;;  %v6744_v57 = vrot.slane %v6719_v56, 7 }
 0xb80   : > { %v7124_v34 = vadd.f32 %v7103_v32, %v7075_v14  ;;  %v7068_v29 = vmul.f32 %v7048_v9, %v13345_v45  ;;  %v13347_v32 = vld [vmem:[#allocation76_spill] sm:$0xff]  ;;  %v13353_v9 = vld [vmem:[#allocation38_spill] sm:$0xff] }
 0xb81   : > { %v6758_v60 = vmul.f32 %v12466_v31, %v13347_v32 }
 0xb82   : > { %v12690_v36 = vadd.f32 %v7175_v17, %v7124_v34  ;;  %v7076_v49 = vadd.f32 %v7068_v29, %v7026_v54  ;;  %v7157_v17 = vrot.slane %v7135_v58, 1  ;;  %v12720_v29 = vld [vmem:[#allocation5 + $0x98] sm:$0xff] }
 0xb83   : > { %v6850_v5 = vpop.permute.xlu0 %6849  ;;  %v6959_v28 = vpop.permute.xlu1 %6958  ;;  %v6766_v41 = vadd.f32 %v8089_v11, %v6758_v60  ;;  %v13356_v60 = vld [vmem:[#allocation74_spill] sm:$0xff] }
 0xb84   : > { %v7191_v63 = vadd.f32 2.0, %v12690_v36  ;;  %v7125_v50 = vadd.f32 %v7105_v0, %v7076_v49  ;;  %v6759_v0 = vmul.f32 %v12487_v59, %v13348_v7  ;;  %v6869_v40 = vmul.f32 %v6850_v5, %v13349_v55  ;;  %v13358_v7 = vld [vmem:[#allocation44_spill] sm:$0xff] }
 0xb85   : > { %v9093_v38 = vpop.eup %9092  ;;  %v6815_v4 = vadd.f32 %v12661_v39, %v6766_v41  ;;  %v13359_v55 = vld [vmem:[#allocation72_spill] sm:$0xff] }
 0xb86   : > { %v7199_v8 = vsub.f32 0.0, %v7191_v63  ;;  %v12694_v30 = vadd.f32 %v7176_v44, %v7125_v50  ;;  %7269 = vrot.lane.b32.xlu0 %v9093_v38, %s13177_s11  ;;  %v6767_v35 = vadd.f32 %v8090_v15, %v6759_v0  ;;  %v13354_v50 = vld [vmem:[#allocation77_spill] sm:$0xff]  ;;  %v13355_v44 = vld [vmem:[#allocation75_spill] sm:$0xff] }
 0xb87   : > { %v6900_v37 = vpop.permute.xlu0 %6899  ;;  %v6852_v20 = vpop.permute.xlu1 %6851  ;;  %v6877_v3 = vadd.f32 %v6869_v40, %v6815_v4 }
 0xb88   : > { %v7209_v27 = vmul.f32 1.442695, %v7199_v8  ;;  %v7192_v42 = vadd.f32 2.0, %v12694_v30  ;;  %v6919_v52 = vmul.f32 %v6900_v37, %v13350_v18  ;;  %v6870_v24 = vmul.f32 %v6852_v20, %v13351_v61  ;;  %v8092_v18 = vld [vmem:[%s12886_s9 + $0x78] sm:$0xff] }
 0xb89   : > { %v9095_v48 = vpop.eup %9094  ;;  %v6816_v59 = vadd.f32 %v12671_v10, %v6767_v35  ;;  %v7158_v37 = vsel %vm3511_vm2, %v7155_v13, %v7157_v17  ;;  %v7159_v20 = vrot.slane %v12720_v29, 1  ;;  %v13360_v35 = vld [vmem:[#allocation80_spill] sm:$0xff]  ;;  %v13361_v61 = vld [vmem:[#allocation82_spill] sm:$0xff] }
 0xb8a   : > { %9096 = vpow2.f32 %v7209_v27  ;;  %v7200_v51 = vsub.f32 0.0, %v7192_v42  ;;  %7271 = vrot.lane.b32.xlu1 %v9095_v48, %s13177_s11  ;;  %v6927_v21 = vadd.f32 %v6919_v52, %v6877_v3  ;;  %v6760_v27 = vmul.f32 %v12498_v62, %v13356_v60 }
 0xb8b   : > { %v12704_v53 = vpop.permute.xlu0 %6799  ;;  %v6902_v33 = vpop.permute.xlu1 %6901  ;;  %v6878_v39 = vadd.f32 %v6870_v24, %v6816_v59  ;;  %v6745_v42 = vsel %vm3415_vm13, %v12490_v6, %v6744_v57 }
 0xb8c   : > { %v7211_v31 = vmul.f32 1.442695, %v7200_v51  ;;  %v6920_v1 = vmul.f32 %v6902_v33, %v13352_v16  ;;  %v6976_v45 = vadd.f32 %v6957_v12, %v6927_v21  ;;  %v8091_v51 = vld [vmem:[%s12886_s9 + $0x70] sm:$0xff]  ;;  %v13357_v33 = vld [vmem:[#allocation52_spill] sm:$0xff]  ;;  %v6761_v40 = vmul.f32 %v6745_v42, %v13359_v55 }
 0xb8d   : > { %v7177_v13 = vmul.f32 %v7158_v37, %v13357_v33  ;;  %v6768_v6 = vadd.f32 %v8091_v51, %v6760_v27  ;;  %v7137_v37 = vld [vmem:[#allocation5 + $0xa8] sm:$0xff]  ;;  %v13367_v33 = vld [vmem:[#allocation87_spill] sm:$0xff] }
 0xb8e   : > { %9098 = vpow2.f32 %v7211_v31  ;;  %v6928_v54 = vadd.f32 %v6920_v1, %v6878_v39  ;;  %v6769_v58 = vadd.f32 %v8092_v18, %v6761_v40  ;;  %v7161_v27 = vrot.slane %v7137_v37, 1  ;;  %v13368_v40 = vld [vmem:[#allocation54_spill] sm:$0xff]  ;;  %v13369_v18 = vld [vmem:[#allocation47_spill] sm:$0xff] }
 0xb8f   : > { %v7107_v23 = vpop.permute.xlu0 %7106  ;;  %v12714_v43 = vpop.permute.xlu1 %6801  ;;  %v6817_v21 = vadd.f32 %v12704_v53, %v6768_v6  ;;  %v13373_v37 = vld [vmem:[#allocation46_spill] sm:$0xff] }
 0xb90   : > { %v6977_v32 = vadd.f32 %v6959_v28, %v6928_v54  ;;  %v7160_v28 = vsel %vm3511_vm2, %v7157_v17, %v7159_v20 }
 0xb91   : > { %v7178_v3 = vmul.f32 %v7160_v28, %v13360_v35 }
 0xb93   : > { %v7000_v46 = vpop.permute.xlu0 %6999  ;;  %v7109_v2 = vpop.permute.xlu1 %7108 }
 0xb94   : > { %v9097_v14 = vpop.eup %9096  ;;  %v7019_v34 = vmul.f32 %v7000_v46, %v13353_v9 }
 0xb95   : > { %v7223_v47 = vadd.f32 1.0, %v9097_v14 }
 0xb96   : > { %v7027_v63 = vadd.f32 %v7019_v34, %v6976_v45  ;;  %v6818_v45 = vadd.f32 %v12714_v43, %v6769_v58 }
 0xb97   : > { %9100 = vrcp.f32 %v7223_v47  ;;  %v7050_v10 = vpop.permute.xlu0 %7049  ;;  %v7002_v49 = vpop.permute.xlu1 %7001  ;;  %v13363_v47 = vld [vmem:[#allocation83_spill] sm:$0xff] }
 0xb98   : > { %v9099_v5 = vpop.eup %9098  ;;  %v7069_v26 = vmul.f32 %v7050_v10, %v13354_v50  ;;  %v7020_v38 = vmul.f32 %v7002_v49, %v13355_v44 }
 0xb99   : > { %v7224_v8 = vadd.f32 1.0, %v9099_v5 }
 0xb9a   : > { %v7077_v12 = vadd.f32 %v7069_v26, %v7027_v63  ;;  %v7028_v41 = vadd.f32 %v7020_v38, %v6977_v32  ;;  %v13364_v26 = vld [vmem:[#allocation40_spill] sm:$0xff]  ;;  %v13365_v38 = vld [vmem:[#allocation34_spill] sm:$0xff] }
 0xb9b   : > { %9102 = vrcp.f32 %v7224_v8  ;;  %v6961_v48 = vpop.permute.xlu0 %6960  ;;  %v7052_v11 = vpop.permute.xlu1 %7051  ;;  %v7138_v32 = vld [vmem:[#allocation5 + $0xb8] sm:$0x1] }
 0xb9c   : > { %v7126_v25 = vadd.f32 %v7107_v23, %v7077_v12  ;;  %v7070_v0 = vmul.f32 %v7052_v11, %v13358_v7  ;;  %v13366_v11 = vld [vmem:[#allocation88_spill] sm:$0xff] }
 0xb9e   : > { %v12740_v62 = vadd.f32 %v7177_v13, %v7126_v25  ;;  %v7078_v31 = vadd.f32 %v7070_v0, %v7028_v41  ;;  %v7163_v41 = vrot.slane %v7138_v32, 1 }
 0xb9f   : > { %v6854_v15 = vpop.permute.xlu0 %6853  ;;  %v6963_v4 = vpop.permute.xlu1 %6962 }
 0xba0   : > { %v7193_v52 = vadd.f32 2.0, %v12740_v62  ;;  %v7127_v23 = vadd.f32 %v7109_v2, %v7078_v31  ;;  %v6871_v24 = vmul.f32 %v6854_v15, %v13361_v61  ;;  %v13362_v2 = vld [vmem:[#allocation84_spill] sm:$0xff] }
 0xba1   : > { %v9101_v59 = vpop.eup %9100 }
 0xba2   : > { %v7201_v16 = vsub.f32 0.0, %v7193_v52  ;;  %v12750_v1 = vadd.f32 %v7178_v3, %v7127_v23  ;;  %7273 = vrot.lane.b32.xlu0 %v9101_v59, %s13177_s11  ;;  %v6879_v46 = vadd.f32 %v6871_v24, %v6817_v21  ;;  %v13370_v24 = vld [vmem:[#allocation91_spill] sm:$0xff] }
 0xba3   : > { %v6904_v14 = vpop.permute.xlu0 %6903  ;;  %v6856_v39 = vpop.permute.xlu1 %6855 }
 0xba4   : > { %v7213_v56 = vmul.f32 1.442695, %v7201_v16  ;;  %v7194_v9 = vadd.f32 2.0, %v12750_v1  ;;  %v6921_v34 = vmul.f32 %v6904_v14, %v13362_v2  ;;  %v6872_v17 = vmul.f32 %v6856_v39, %v13363_v47 }
 0xba5   : > { %v9103_v54 = vpop.eup %9102 }
 0xba6   : > { %9104 = vpow2.f32 %v7213_v56  ;;  %v7202_v53 = vsub.f32 0.0, %v7194_v9  ;;  %v6929_v57 = vadd.f32 %v6921_v34, %v6879_v46  ;;  %7275 = vrot.lane.b32.xlu1 %v9103_v54, %s13177_s11  ;;  %v6880_v10 = vadd.f32 %v6872_v17, %v6818_v45 }
 0xba7   : > { %v7004_v49 = vpop.permute.xlu0 %7003  ;;  %v6906_v5 = vpop.permute.xlu1 %6905 }
 0xba8   : > { %v7215_v63 = vmul.f32 1.442695, %v7202_v53  ;;  %v6978_v50 = vadd.f32 %v6961_v48, %v6929_v57  ;;  %v7021_v44 = vmul.f32 %v7004_v49, %v13364_v26  ;;  %v6922_v8 = vmul.f32 %v6906_v5, %v13365_v38 }
 0xba9   : > { %v7162_v48 = vsel %vm3511_vm2, %v7159_v20, %v7161_v27 }
 0xbaa   : > { %9106 = vpow2.f32 %v7215_v63  ;;  %v6930_v12 = vadd.f32 %v6922_v8, %v6880_v10  ;;  %v7029_v42 = vadd.f32 %v7021_v44, %v6978_v50  ;;  %v7179_v15 = vmul.f32 %v7162_v48, %v13368_v40  ;;  %v13371_v10 = vld [vmem:[#allocation12_spill] sm:$0xff]  ;;  %v13372_v50 = vld [vmem:[#allocation25_spill] sm:$0xff] }
 0xbab   : > { %v7054_v60 = vpop.permute.xlu0 %7053  ;;  %v7006_v43 = vpop.permute.xlu1 %7005  ;;  %v7253_v49 = vadd.f32 %v12649_v22, %v13371_v10  ;;  %v7254_v26 = vadd.f32 %v12653_v19, %v13372_v50  ;;  %v7255_v19 = vadd.f32 %v12690_v36, %v13373_v37  ;;  %v13375_v36 = vld [vmem:[#allocation30_spill] sm:$0xff] }
 0xbac   : > { %v7071_v51 = vmul.f32 %v7054_v60, %v13366_v11  ;;  %v6979_v25 = vadd.f32 %v6963_v4, %v6930_v12  ;;  %v7022_v13 = vmul.f32 %v7006_v43, %v13367_v33  ;;  %v7164_v4 = vsel %vm3511_vm2, %v7161_v27, %v7163_v41  ;;  %v13374_v60 = vld [vmem:[#allocation41_spill] sm:$0xff] }
 0xbad   : > { %v7180_v59 = vmul.f32 %v7164_v4, %v13370_v24  ;;  %v7256_v43 = vadd.f32 %v12694_v30, %v13374_v60  ;;  %v13376_v30 = vld [vmem:[#allocation11_spill] sm:$0xff] }
 0xbae   : > { %v7079_v7 = vadd.f32 %v7071_v51, %v7029_v42  ;;  %v7030_v6 = vadd.f32 %v7022_v13, %v6979_v25  ;;  %v7257_v25 = vadd.f32 %v12740_v62, %v13375_v36  ;;  %v7258_v48 = vadd.f32 %v12750_v1, %v13376_v30  ;;  %v13377_v62 = vld [vmem:[#allocation49_spill] sm:$0xff] }
 0xbaf   : > { %v7111_v0 = vpop.permute.xlu0 %7110  ;;  %v7056_v28 = vpop.permute.xlu1 %7055 }
 0xbb0   : > { %v9105_v31 = vpop.eup %9104  ;;  %v7128_v55 = vadd.f32 %v7111_v0, %v7079_v7  ;;  %v7072_v52 = vmul.f32 %v7056_v28, %v13369_v18 }
 0xbb1   : > { %v7225_v23 = vadd.f32 1.0, %v9105_v31 }
 0xbb2   : > { %v12768_v35 = vadd.f32 %v7179_v15, %v7128_v55  ;;  %v7080_v3 = vadd.f32 %v7072_v52, %v7030_v6  ;;  %v13378_v55 = vld [vmem:[#allocation14_spill] sm:$0xff] }
 0xbb3   : > { %9108 = vrcp.f32 %v7225_v23  ;;  %v7113_v29 = vpop.permute.xlu1 %7112 }
 0xbb4   : > { %v9107_v20 = vpop.eup %9106  ;;  %v7195_v61 = vadd.f32 2.0, %v12768_v35  ;;  %v7129_v21 = vadd.f32 %v7113_v29, %v7080_v3  ;;  %v7259_v31 = vadd.f32 %v12768_v35, %v13377_v62 }
 0xbb5   : > { %v7226_v16 = vadd.f32 1.0, %v9107_v20 }
 0xbb6   : > { %v7203_v58 = vsub.f32 0.0, %v7195_v61  ;;  %v12772_v46 = vadd.f32 %v7180_v59, %v7129_v21 }
 0xbb7   : > { %9110 = vrcp.f32 %v7226_v16 }
 0xbb8   : > { %v7217_v14 = vmul.f32 1.442695, %v7203_v58  ;;  %v7196_v39 = vadd.f32 2.0, %v12772_v46  ;;  %v7260_v40 = vadd.f32 %v12772_v46, %v13378_v55 }
 0xbba   : > { %9112 = vpow2.f32 %v7217_v14  ;;  %v7204_v56 = vsub.f32 0.0, %v7196_v39 }
 0xbbc   : > { %v7219_v9 = vmul.f32 1.442695, %v7204_v56 }
 0xbbd   : > { %v9109_v2 = vpop.eup %9108 }
 0xbbe   : > { %9114 = vpow2.f32 %v7219_v9  ;;  %7277 = vrot.lane.b32.xlu0 %v9109_v2, %s13177_s11 }
 0xbc1   : > { %v9111_v34 = vpop.eup %9110 }
 0xbc2   : > { %7279 = vrot.lane.b32.xlu1 %v9111_v34, %s13177_s11 }
 0xbc4   : > { %v9113_v47 = vpop.eup %9112 }
 0xbc5   : > { %v7227_v17 = vadd.f32 1.0, %v9113_v47 }
 0xbc7   : > { %9116 = vrcp.f32 %v7227_v17 }
 0xbc8   : > { %v9115_v54 = vpop.eup %9114 }
 0xbc9   : > { %v7228_v45 = vadd.f32 1.0, %v9115_v54 }
 0xbcb   : > { %9118 = vrcp.f32 %v7228_v45 }
 0xbd1   : > { %v9117_v53 = vpop.eup %9116 }
 0xbd2   : > { %7281 = vrot.lane.b32.xlu0 %v9117_v53, %s13177_s11 }
 0xbd5   : > { %v9119_v57 = vpop.eup %9118 }
 0xbd6   : > { %7283 = vrot.lane.b32.xlu1 %v9119_v57, %s13177_s11 }
 0xbf8   : > { %v7270_v5 = vpop.permute.xlu0 %7269 }
 0xbf9   : > { %v7293_v63 = vmul.f32 %v7270_v5, %v7253_v49 }
 0xbfb   : > { %7301 = vst.msk [vmem:[#allocation2] sm:$0xff] %vm695_vm4, %v7293_v63 }
 0xbfc   : > { %v7272_v44 = vpop.permute.xlu1 %7271 }
 0xbfd   : > { %v7294_v38 = vmul.f32 %v7272_v44, %v7254_v26 }
 0xbff   : > { %7302 = vst.msk [vmem:[#allocation2 + $0x8] sm:$0xff] %vm695_vm4, %v7294_v38 }
 0xc02   : > { %v7309_v8 = vld [vmem:[#allocation2] sm:$0xff] }
 0xc03   : > { %7317 = vst.msk [vmem:[%s12788_s20] sm:$0xff] %vm375_vm0, %v7309_v8 }
 0xc06   : > { %v7310_v22 = vld [vmem:[#allocation2 + $0x8] sm:$0xff] }
 0xc07   : > { %7318 = vst.msk [vmem:[%s12788_s20 + $0x8] sm:$0xff] %vm375_vm0, %v7310_v22 }
 0xc14   : > { %v7274_v12 = vpop.permute.xlu0 %7273 }
 0xc15   : > { %v7295_v32 = vmul.f32 %v7274_v12, %v7255_v19 }
 0xc17   : > { %7303 = vst.msk [vmem:[#allocation2 + $0x10] sm:$0xff] %vm695_vm4, %v7295_v32 }
 0xc18   : > { %v7276_v27 = vpop.permute.xlu1 %7275 }
 0xc19   : > { %v7296_v42 = vmul.f32 %v7276_v27, %v7256_v43 }
 0xc1b   : > { %7304 = vst.msk [vmem:[#allocation2 + $0x18] sm:$0xff] %vm695_vm4, %v7296_v42 }
 0xc1e   : > { %v7311_v11 = vld [vmem:[#allocation2 + $0x10] sm:$0xff] }
 0xc1f   : > { %7319 = vst.msk [vmem:[%s12788_s20 + $0x10] sm:$0xff] %vm375_vm0, %v7311_v11 }
 0xc22   : > { %v7312_v51 = vld [vmem:[#allocation2 + $0x18] sm:$0xff] }
 0xc23   : > { %7320 = vst.msk [vmem:[%s12788_s20 + $0x18] sm:$0xff] %vm375_vm0, %v7312_v51 }
 0xc30   : > { %v7278_v33 = vpop.permute.xlu0 %7277 }
 0xc31   : > { %v7297_v13 = vmul.f32 %v7278_v33, %v7257_v25 }
 0xc33   : > { %7305 = vst.msk [vmem:[#allocation2 + $0x20] sm:$0xff] %vm695_vm4, %v7297_v13 }
 0xc34   : > { %v7280_v41 = vpop.permute.xlu1 %7279 }
 0xc35   : > { %v7298_v7 = vmul.f32 %v7280_v41, %v7258_v48 }
 0xc37   : > { %7306 = vst.msk [vmem:[#allocation2 + $0x28] sm:$0xff] %vm695_vm4, %v7298_v7 }
 0xc3a   : > { %v7313_v0 = vld [vmem:[#allocation2 + $0x20] sm:$0xff] }
 0xc3b   : > { %7321 = vst.msk [vmem:[%s12788_s20 + $0x20] sm:$0xff] %vm375_vm0, %v7313_v0 }
 0xc3e   : > { %v7314_v28 = vld [vmem:[#allocation2 + $0x28] sm:$0xff] }
 0xc3f   : > { %7322 = vst.msk [vmem:[%s12788_s20 + $0x28] sm:$0xff] %vm375_vm0, %v7314_v28 }
 0xc44   : > { %v7282_v6 = vpop.permute.xlu0 %7281 }
 0xc45   : > { %v7299_v1 = vmul.f32 %v7282_v6, %v7259_v31 }
 0xc47   : > { %7307 = vst.msk [vmem:[#allocation2 + $0x30] sm:$0xff] %vm695_vm4, %v7299_v1 }
 0xc48   : > { %v7284_v15 = vpop.permute.xlu1 %7283 }
 0xc49   : > { %v7300_v18 = vmul.f32 %v7284_v15, %v7260_v40 }
 0xc4b   : > { %7308 = vst.msk [vmem:[#allocation2 + $0x38] sm:$0xff] %vm695_vm4, %v7300_v18 }
 0xc4e   : > { %v7315_v52 = vld [vmem:[#allocation2 + $0x30] sm:$0xff] }
 0xc4f   : > { %7323 = vst.msk [vmem:[%s12788_s20 + $0x30] sm:$0xff] %vm375_vm0, %v7315_v52 }
 0xc52   : > { %v7316_v23 = vld [vmem:[#allocation2 + $0x38] sm:$0xff] }
 0xc53   : > { %7324 = vst.msk [vmem:[%s12788_s20 + $0x38] sm:$0xff] %vm375_vm0, %v7316_v23 }
 0xc54   : > { %9141 = shalt.err (!%p9138_p3)
}
 0xc55   : > { %s9142_s1 = scalar_lea.hbm %s12827_s21, 1024  ;;  %s9146_s12 = scalar_lea.hbm %s12887_s10, 2048 }
 0xc56   : > { %p9143_p4 = scmp.ne.s32.totalorder %s12827_s21, %s9142_s1  ;;  %p9147_p9 = scmp.lt.u32.totalorder %s12827_s21, %s12887_s10 }
 0xc57   : > { %p9148_p10 = scmp.lt.u32.totalorder %s9146_s12, %s9142_s1  ;;  %p9150_p12 = scmp.lt.u32.totalorder %s9142_s1, %s12827_s21 }
 0xc58   : > { %p9144_p7 = pnand %p9143_p4, %p9308_p5 }
 0xc59   : > { %p9149_p11 = por %p9148_p10, %p9147_p9 }
 0xc5a   : > { %p9145_p8 = pneg %p9144_p7 }
 0xc5b   : > { %p9151_p13 = por %p9150_p12, %p9149_p11 }
 0xc5d   : > { %p9152_p0 = pnand %p9151_p13, %p9145_p8 }
 0xc5f   : > { %9155 = shalt.err (!%p9152_p0)
}
 0xc60   : > { %s9214_s20 = smov 128  }
 0xc61   : > { %8320 = dma.vmem_to_hbm [thread:$0]  (%p9308_p5), %s12829_s22, 1024, %s12827_s21, %s12835_s25, %s9214_s20, %s9214_s20, %s13177_s11  }
 0xc62 PF: > { %p8326_p1 = scmp.ge.s32.totalorder %s9190_s16, 2  ;;  %s7354_s15 = sand.u32 1, %s9178_s13  }
 0xc63   : > { %s7355_s29 = scalar_lea.sflag [#allocation7], %s7354_s15 }
 0xc64   : > { %p8323_p2 = pnand %p8326_p1, %p9312_p6 }
 0xc66   : > { %9173 = dma.done.wait (!%p8323_p2), %s7355_s29, 1024  }
 0xc67   : > { %9175 = vsyncadd (!%p8323_p2), %s7355_s29, 4294966272  ;;  %s13379_s28 = sld [smem:[#allocation9_spill]]  ;;  %s13380_s15 = sld [smem:[#allocation10_spill]] }
 0xc68   : > { %p20_p3 = scmp.ge.s32.totalorder %s9295_s19, 4   ;;  %s13381_s13 = smov %s9182_s14 }
 0xc69   : > { %s13383_s16 = smov %s9295_s19 }
 0xc6a   :  { %22 = sbr.rel (!%p20_p3) target bundleno = 8 (0x8), region = 103 }
 0xc6d   : > { %s13382_s14 = smov %s13379_s28 }
 0xc71   :  { %7360 = vsyncpa [#allocation7], 1 }
 0xc72   :  { %7362 = vsyncpa [#allocation7 + $0x1], 1 }

</bundles_post_ra>
